<compile_context>
chip_gen: v6e
topology: v6e:2x2x1
jax: 0.10.0
libtpu: 0.0.40
codegen_flags: <defaults>
</compile_context>

<pallas_src>
import math
import jax
import jax.numpy as jnp
from jax.experimental import pallas as pl
from jax.experimental.pallas import tpu as pltpu

NPAD = 128  # lane-dense classify output width (cols 0/1 are start/end logits)


# --------------------------------------------------------------------------
# Pallas kernel.  grid = (B, num_C_tiles).
# --------------------------------------------------------------------------
def _qaconv_kernel(seq_ref, kmask_ref, qvec_ref,
                   wk_ref, bk_ref, wv_ref, bv_ref,
                   wc1_ref, bc1_ref, wc3_ref, bc3_ref, wc5_ref, bc5_ref,
                   wcls1_ref, wcls3_ref, wcls5_ref, bcls_ref,
                   logits_ref, win_ref):
    S = seq_ref.shape[1]
    H = seq_ref.shape[2]
    f32 = jnp.float32
    bf16 = jnp.bfloat16
    c = pl.program_id(1)
    fuse_taps = (H % 128 == 0)   # wide-K fused conv only when lane-aligned

    # ---- c == 0: build the attention-scaled value and its padded conv window
    #      (kept in VMEM scratch, reused by every C tile of this batch element).
    @pl.when(c == 0)
    def _build_window():
        seq = seq_ref[0]                                        # [S, H] bf16
        ek = jnp.dot(seq * kmask_ref[0], wk_ref[...],
                     preferred_element_type=f32) + bk_ref[...]  # [S, H] f32
        att = jnp.sum(ek * qvec_ref[0], axis=-1, keepdims=True)  # [S, 1]
        att = att * (1.0 / (math.sqrt(H) * 10.0))
        att = jnp.exp(att - jnp.max(att, axis=0, keepdims=True))
        att = att * pl.reciprocal(jnp.sum(att, axis=0, keepdims=True),
                                  approx=True)
        ev = jnp.dot(seq, wv_ref[...], preferred_element_type=f32) + bv_ref[...]
        ev = ev * att                                           # [S, H] f32
        win_ref[...] = jnp.zeros_like(win_ref)                  # zero halos
        win_ref[pl.ds(2, S), :] = ev                            # rows 2..2+S

    # ---- conv (k taps) -> ReLU -> classify slice, fused per branch so only one
    #      [S, C_tile] intermediate is live at a time.
    def conv_branch(k, w_ref, b_ref, wcls_ref):
        start = 2 - (k - 1) // 2        # window row of tap d is start + d
        if fuse_taps and k > 1:
            xk = jnp.concatenate(
                [win_ref[pl.ds(start + d, S), :] for d in range(k)],
                axis=1).astype(bf16)                            # [S, k*H]
            outk = jnp.dot(xk, w_ref[...], preferred_element_type=f32)
        else:
            outk = jnp.dot(win_ref[pl.ds(start, S), :].astype(bf16),
                           w_ref[pl.ds(0, H), :],
                           preferred_element_type=f32)
            for d in range(1, k):
                outk = outk + jnp.dot(
                    win_ref[pl.ds(start + d, S), :].astype(bf16),
                    w_ref[pl.ds(d * H, H), :],
                    preferred_element_type=f32)
        outk = jnp.maximum(outk + b_ref[...], 0.0).astype(bf16)  # [S, C_tile]
        return jnp.dot(outk, wcls_ref[...], preferred_element_type=f32)

    contrib = conv_branch(1, wc1_ref, bc1_ref, wcls1_ref)
    contrib = contrib + conv_branch(3, wc3_ref, bc3_ref, wcls3_ref)
    contrib = contrib + conv_branch(5, wc5_ref, bc5_ref, wcls5_ref)  # [S, 128]

    # ---- accumulate logits across C tiles in the (revisited) output block.
    @pl.when(c == 0)
    def _init_out():
        logits_ref[0] = contrib + bcls_ref[...]

    @pl.when(c != 0)
    def _acc_out():
        logits_ref[0] = logits_ref[0] + contrib


# --------------------------------------------------------------------------
# Wrapper: query branch in XLA, parameter re-layout / bf16 cast, pallas_call.
# --------------------------------------------------------------------------
def qaconv_forward(sequence_output, token_type_ids, p, *, c_tile=512):
    B, S, H = sequence_output.shape
    C = p['bc1'].shape[0]
    assert S >= 50, "forward slices the first 50 tokens of the query"
    if C % c_tile != 0:
        c_tile = C
    NC = C // c_tile
    f32, bf16 = jnp.float32, jnp.bfloat16

    # ---- query branch (XLA): mask -> relu -> slice -> Linear(50H->H) -> classify
    seq_f32 = sequence_output.astype(f32)
    qmask = (token_type_ids[..., None] == 0).astype(f32)
    eq = jnp.maximum(seq_f32 * qmask, 0.0)
    q_flat = eq[:, :50, :].reshape(B, 50 * H)
    qvec = q_flat @ p['wq'].T + p['bq']                               # [B, H]
    query_logits = jax.nn.softmax(qvec @ p['wqc'].T + p['bqc'], axis=-1)  # [B, 6]
    qvec_k = qvec.reshape(B, 1, H).astype(f32)

    # ---- kernel activation inputs (bf16 for MXU; mask built from int ids)
    seq_k = sequence_output.astype(bf16)
    kmask_k = (token_type_ids == 1)[..., None].astype(bf16)           # [B, S, 1]

    # ---- parameter re-layout (once) to [in, out] / [k*in, out], bf16 weights
    wk_k = p['wk'].T.astype(bf16);  bk_k = p['bk'].reshape(1, H).astype(f32)
    wv_k = p['wv'].T.astype(bf16);  bv_k = p['bv'].reshape(1, H).astype(f32)
    wc1_k = jnp.transpose(p['wc1'], (2, 1, 0)).reshape(1 * H, C).astype(bf16)
    wc3_k = jnp.transpose(p['wc3'], (2, 1, 0)).reshape(3 * H, C).astype(bf16)
    wc5_k = jnp.transpose(p['wc5'], (2, 1, 0)).reshape(5 * H, C).astype(bf16)
    bc1_k = p['bc1'].reshape(1, C).astype(f32)
    bc3_k = p['bc3'].reshape(1, C).astype(f32)
    bc5_k = p['bc5'].reshape(1, C).astype(f32)
    wcls_t = p['wcls'].T.astype(f32)                                  # [3C, 2]

    def pad_cls(w):                                                   # [C,2]->[C,128]
        return jnp.pad(w, ((0, 0), (0, NPAD - w.shape[1]))).astype(bf16)

    wcls1_k = pad_cls(wcls_t[:C])
    wcls3_k = pad_cls(wcls_t[C:2 * C])
    wcls5_k = pad_cls(wcls_t[2 * C:])
    bcls_k = jnp.pad(p['bcls'].reshape(1, 2), ((0, 0), (0, NPAD - 2))).astype(f32)

    def batch_spec(shape):
        n = len(shape)
        return pl.BlockSpec(shape, lambda b, c, _n=n: (b,) + (0,) * (_n - 1))

    def const_spec(shape, single_buffer):
        n = len(shape)
        idx = lambda b, c, _n=n: (0,) * _n
        if single_buffer:
            return pl.BlockSpec(shape, idx, pipeline_mode=pl.Buffered(1))
        return pl.BlockSpec(shape, idx)

    def build_and_run(single_buffer_weights):
        sb = single_buffer_weights
        in_specs = [
            batch_spec((1, S, H)),                                    # seq (bf16)
            batch_spec((1, S, 1)),                                    # key mask
            batch_spec((1, 1, H)),                                    # qvec (f32)
            const_spec((H, H), sb), const_spec((1, H), sb),           # key layer
            const_spec((H, H), sb), const_spec((1, H), sb),           # value layer
            pl.BlockSpec((1 * H, c_tile), lambda b, c: (0, c)),       # conv k=1
            pl.BlockSpec((1, c_tile), lambda b, c: (0, c)),
            pl.BlockSpec((3 * H, c_tile), lambda b, c: (0, c)),       # conv k=3
            pl.BlockSpec((1, c_tile), lambda b, c: (0, c)),
            pl.BlockSpec((5 * H, c_tile), lambda b, c: (0, c)),       # conv k=5
            pl.BlockSpec((1, c_tile), lambda b, c: (0, c)),
            pl.BlockSpec((c_tile, NPAD), lambda b, c: (c, 0)),        # classify
            pl.BlockSpec((c_tile, NPAD), lambda b, c: (c, 0)),
            pl.BlockSpec((c_tile, NPAD), lambda b, c: (c, 0)),
            const_spec((1, NPAD), sb),
        ]
        out_specs = pl.BlockSpec((1, S, NPAD), lambda b, c: (b, 0, 0))
        fn = pl.pallas_call(
            _qaconv_kernel,
            grid=(B, NC),
            in_specs=in_specs,
            out_specs=out_specs,
            out_shape=jax.ShapeDtypeStruct((B, S, NPAD), f32),
            scratch_shapes=[pltpu.VMEM((S + 4, H), f32)],             # padded window
            compiler_params=pltpu.CompilerParams(
                dimension_semantics=("parallel", "arbitrary"),
                vmem_limit_bytes=48 * 1024 * 1024),
        )
        return fn(seq_k, kmask_k, qvec_k,
                  wk_k, bk_k, wv_k, bv_k,
                  wc1_k, bc1_k, wc3_k, bc3_k, wc5_k, bc5_k,
                  wcls1_k, wcls3_k, wcls5_k, bcls_k)

    try:
        logits_pad = build_and_run(True)     # single-buffered invariant weights
    except Exception:
        logits_pad = build_and_run(False)    # fallback: default double-buffering

    return {
        'start_logits': logits_pad[..., 0],          # [B, S]
        'end_logits': logits_pad[..., 1],            # [B, S]
        'query_logits': query_logits,                # [B, 6]
    }


# --------------------------------------------------------------------------
# Deterministic parameter init (shapes mirror QAConvModelV2.__init__)
# --------------------------------------------------------------------------
def init_params(key, H, C=1024, qlen=50):
    ks = jax.random.split(key, 8)

    def nrm(k, shape, scale=0.05):
        return jax.random.normal(k, shape, jnp.float32) * scale

    p = {}
    kw, kb = jax.random.split(ks[0]); p['wq'] = nrm(kw, (H, qlen * H)); p['bq'] = nrm(kb, (H,))
    kw, kb = jax.random.split(ks[1]); p['wqc'] = nrm(kw, (6, H));       p['bqc'] = nrm(kb, (6,))
    kw, kb = jax.random.split(ks[2]); p['wk'] = nrm(kw, (H, H));        p['bk'] = nrm(kb, (H,))
    kw, kb = jax.random.split(ks[3]); p['wv'] = nrm(kw, (H, H));        p['bv'] = nrm(kb, (H,))
    kw, kb = jax.random.split(ks[4]); p['wc1'] = nrm(kw, (C, H, 1));    p['bc1'] = nrm(kb, (C,))
    kw, kb = jax.random.split(ks[5]); p['wc3'] = nrm(kw, (C, H, 3));    p['bc3'] = nrm(kb, (C,))
    kw, kb = jax.random.split(ks[6]); p['wc5'] = nrm(kw, (C, H, 5));    p['bc5'] = nrm(kb, (C,))
    kw, kb = jax.random.split(ks[7]); p['wcls'] = nrm(kw, (2, 3 * C));  p['bcls'] = nrm(kb, (2,))
    return p


# --------------------------------------------------------------------------
# Pure-JAX f32 reference (mirrors the PyTorch forward, dropout = identity)
# --------------------------------------------------------------------------
def _conv1d_ref(x_nch, w, b, pad):
    y = jax.lax.conv_general_dilated(
        x_nch, w, window_strides=(1,), padding=[(pad, pad)],
        dimension_numbers=('NCH', 'OIH', 'NCH'))
    return y + b[None, :, None]


def reference_forward(sequence_output, token_type_ids, p):
    B, S, H = sequence_output.shape
    eq = sequence_output * (token_type_ids[..., None] == 0)
    eq = jax.nn.relu(eq)
    eq = eq[:, :50, :].reshape(B, 1, -1)
    eq = eq @ p['wq'].T + p['bq']                                   # [B, 1, H]
    qlogits = jax.nn.softmax(jnp.squeeze(eq, 1) @ p['wqc'].T + p['bqc'], axis=-1)
    ek = sequence_output * (token_type_ids[..., None] == 1)
    ek = ek @ p['wk'].T + p['bk']
    att = jnp.matmul(ek, jnp.swapaxes(eq, 1, 2))
    att = att / math.sqrt(H)
    att = att / 10.0
    att = jax.nn.softmax(att, axis=1)
    ev = sequence_output @ p['wv'].T + p['bv']
    ev = ev * att
    ci = jnp.swapaxes(ev, 1, 2)                                     # [B, H, S]
    o1 = jax.nn.relu(_conv1d_ref(ci, p['wc1'], p['bc1'], 0))
    o3 = jax.nn.relu(_conv1d_ref(ci, p['wc3'], p['bc3'], 1))
    o5 = jax.nn.relu(_conv1d_ref(ci, p['wc5'], p['bc5'], 2))
    cat = jnp.swapaxes(jnp.concatenate([o1, o3, o5], axis=1), 1, 2)  # [B, S, 3C]
    logits = cat @ p['wcls'].T + p['bcls']
    return logits[..., 0], logits[..., 1], qlogits


if __name__ == "__main__":
    B, S, H = 2, 64, 32   # small hidden / seq; conv channels stay at 1024 per the module
    key = jax.random.PRNGKey(0)
    k_seq, k_param = jax.random.split(key)

    sequence_output = jax.random.normal(k_seq, (B, S, H), jnp.float32)
    # token_type_ids as make_token_type_ids would build them: 0 until [SEP], 1 after.
    sep_idx = 30
    token_type_ids = jnp.tile(
        (jnp.arange(S)[None, :] >= sep_idx).astype(jnp.int32), (B, 1))

    params = init_params(k_param, H)

    out = qaconv_forward(sequence_output, token_type_ids, params)
    out = jax.block_until_ready(out)

    ref_s, ref_e, ref_q = reference_forward(sequence_output, token_type_ids, params)
    # bf16 MXU operands in the kernel -> compare against the f32 reference with
    # a bf16-appropriate tolerance; the query branch is pure f32 XLA (tight).
    assert jnp.allclose(out['start_logits'], ref_s, atol=1e-2, rtol=1e-2)
    assert jnp.allclose(out['end_logits'], ref_e, atol=1e-2, rtol=1e-2)
    assert jnp.allclose(out['query_logits'], ref_q, atol=1e-4, rtol=1e-4)

    print("KERNEL_OK")
</pallas_src>

<mosaic_0001>
module attributes {stable_mosaic.version = 11 : i64} {
  func.func @_qaconv_kernel(%arg0: i32, %arg1: i32, %arg2: memref<1x64x32xbf16, #tpu.memory_space<vmem>>, %arg3: memref<1x64x1xbf16, #tpu.memory_space<vmem>>, %arg4: memref<1x1x32xf32, #tpu.memory_space<vmem>>, %arg5: memref<32x32xbf16, #tpu.memory_space<vmem>>, %arg6: memref<1x32xf32, #tpu.memory_space<vmem>>, %arg7: memref<32x32xbf16, #tpu.memory_space<vmem>>, %arg8: memref<1x32xf32, #tpu.memory_space<vmem>>, %arg9: memref<32x512xbf16, #tpu.memory_space<vmem>>, %arg10: memref<1x512xf32, #tpu.memory_space<vmem>>, %arg11: memref<96x512xbf16, #tpu.memory_space<vmem>>, %arg12: memref<1x512xf32, #tpu.memory_space<vmem>>, %arg13: memref<160x512xbf16, #tpu.memory_space<vmem>>, %arg14: memref<1x512xf32, #tpu.memory_space<vmem>>, %arg15: memref<512x128xbf16, #tpu.memory_space<vmem>>, %arg16: memref<512x128xbf16, #tpu.memory_space<vmem>>, %arg17: memref<512x128xbf16, #tpu.memory_space<vmem>>, %arg18: memref<1x128xf32, #tpu.memory_space<vmem>>, %arg19: memref<1x64x128xf32, #tpu.memory_space<vmem>>, %arg20: memref<68x32xf32, #tpu.memory_space<vmem>>) attributes {dimension_semantics = [#tpu.dimension_semantics<parallel>, #tpu.dimension_semantics<arbitrary>], iteration_bounds = array<i64: 2, 2>, scalar_prefetch = 0 : i64, scratch_operands = 1 : i64, tpu.core_type = #tpu.core_type<tc>, window_params = [{transform_indices = @transform_0, window_bounds = array<i64: 1, 64, 32>}, {transform_indices = @transform_1, window_bounds = array<i64: 1, 64, 1>}, {transform_indices = @transform_2, window_bounds = array<i64: 1, 1, 32>}, {pipeline_mode = #tpu.pipeline_mode<synchronous>, transform_indices = @transform_3, window_bounds = array<i64: 32, 32>}, {pipeline_mode = #tpu.pipeline_mode<synchronous>, transform_indices = @transform_4, window_bounds = array<i64: 1, 32>}, {pipeline_mode = #tpu.pipeline_mode<synchronous>, transform_indices = @transform_5, window_bounds = array<i64: 32, 32>}, {pipeline_mode = #tpu.pipeline_mode<synchronous>, transform_indices = @transform_6, window_bounds = array<i64: 1, 32>}, {transform_indices = @transform_7, window_bounds = array<i64: 32, 512>}, {transform_indices = @transform_8, window_bounds = array<i64: 1, 512>}, {transform_indices = @transform_9, window_bounds = array<i64: 96, 512>}, {transform_indices = @transform_10, window_bounds = array<i64: 1, 512>}, {transform_indices = @transform_11, window_bounds = array<i64: 160, 512>}, {transform_indices = @transform_12, window_bounds = array<i64: 1, 512>}, {transform_indices = @transform_13, window_bounds = array<i64: 512, 128>}, {transform_indices = @transform_14, window_bounds = array<i64: 512, 128>}, {transform_indices = @transform_15, window_bounds = array<i64: 512, 128>}, {pipeline_mode = #tpu.pipeline_mode<synchronous>, transform_indices = @transform_16, window_bounds = array<i64: 1, 128>}, {transform_indices = @transform_17, window_bounds = array<i64: 1, 64, 128>}]} {
    %c0_i32 = arith.constant 0 : i32
    %0 = arith.cmpi eq, %arg1, %c0_i32 : i32
    %1 = arith.extui %0 : i1 to i32
    %c0_i32_0 = arith.constant 0 : i32
    %2 = arith.cmpi ne, %1, %c0_i32_0 : i32
    scf.if %2 {
      %c0_58 = arith.constant 0 : index
      %c0_59 = arith.constant 0 : index
      %c0_60 = arith.constant 0 : index
      %77 = vector.load %arg2[%c0_58, %c0_59, %c0_60] : memref<1x64x32xbf16, #tpu.memory_space<vmem>>, vector<1x64x32xbf16>
      %78 = vector.shape_cast %77 : vector<1x64x32xbf16> to vector<64x32xbf16>
      %c0_61 = arith.constant 0 : index
      %c0_62 = arith.constant 0 : index
      %c0_63 = arith.constant 0 : index
      %79 = vector.load %arg3[%c0_61, %c0_62, %c0_63] : memref<1x64x1xbf16, #tpu.memory_space<vmem>>, vector<1x64x1xbf16>
      %80 = vector.shape_cast %79 : vector<1x64x1xbf16> to vector<64x1xbf16>
      %81 = vector.broadcast %80 : vector<64x1xbf16> to vector<64x32xbf16>
      %82 = arith.mulf %78, %81 : vector<64x32xbf16>
      %c0_64 = arith.constant 0 : index
      %c0_65 = arith.constant 0 : index
      %83 = vector.load %arg5[%c0_64, %c0_65] : memref<32x32xbf16, #tpu.memory_space<vmem>>, vector<32x32xbf16>
      %cst_66 = arith.constant dense<0.000000e+00> : vector<64x32xf32>
      %84 = tpu.matmul %82, %83, %cst_66 {dimension_numbers = #tpu.dot_dimension_numbers<[1], [0], [0], [1], [0, 0, 1, 1], [], []>} : vector<64x32xbf16>, vector<32x32xbf16>, vector<64x32xf32> -> vector<64x32xf32>
      %c0_67 = arith.constant 0 : index
      %c0_68 = arith.constant 0 : index
      %85 = vector.load %arg6[%c0_67, %c0_68] : memref<1x32xf32, #tpu.memory_space<vmem>>, vector<1x32xf32>
      %86 = vector.broadcast %85 : vector<1x32xf32> to vector<64x32xf32>
      %87 = arith.addf %84, %86 : vector<64x32xf32>
      %c0_69 = arith.constant 0 : index
      %c0_70 = arith.constant 0 : index
      %c0_71 = arith.constant 0 : index
      %88 = vector.load %arg4[%c0_69, %c0_70, %c0_71] : memref<1x1x32xf32, #tpu.memory_space<vmem>>, vector<1x1x32xf32>
      %89 = vector.shape_cast %88 : vector<1x1x32xf32> to vector<1x32xf32>
      %90 = vector.broadcast %89 : vector<1x32xf32> to vector<64x32xf32>
      %91 = arith.mulf %87, %90 : vector<64x32xf32>
      %cst_72 = arith.constant dense<0.000000e+00> : vector<64xf32>
      %92 = vector.multi_reduction <add>, %91, %cst_72 [1] : vector<64x32xf32> to vector<64xf32>
      %93 = vector.shape_cast %92 : vector<64xf32> to vector<64x1xf32>
      %cst_73 = arith.constant 0.0176776703 : f32
      %94 = vector.broadcast %cst_73 : f32 to vector<64x1xf32>
      %95 = arith.mulf %93, %94 : vector<64x1xf32>
      %cst_74 = arith.constant dense<0xFF800000> : vector<1xf32>
      %96 = vector.multi_reduction <maximumf>, %95, %cst_74 [0] : vector<64x1xf32> to vector<1xf32>
      %97 = vector.shape_cast %96 : vector<1xf32> to vector<1x1xf32>
      %98 = vector.broadcast %97 : vector<1x1xf32> to vector<64x1xf32>
      %99 = arith.subf %95, %98 : vector<64x1xf32>
      %100 = math.exp %99 : vector<64x1xf32>
      %cst_75 = arith.constant dense<0.000000e+00> : vector<1xf32>
      %101 = vector.multi_reduction <add>, %100, %cst_75 [0] : vector<64x1xf32> to vector<1xf32>
      %102 = vector.shape_cast %101 : vector<1xf32> to vector<1x1xf32>
      %103 = tpu.reciprocal %102 {approx = true} : vector<1x1xf32> -> vector<1x1xf32>
      %104 = vector.broadcast %103 : vector<1x1xf32> to vector<64x1xf32>
      %105 = arith.mulf %100, %104 : vector<64x1xf32>
      %c0_76 = arith.constant 0 : index
      %c0_77 = arith.constant 0 : index
      %106 = vector.load %arg7[%c0_76, %c0_77] : memref<32x32xbf16, #tpu.memory_space<vmem>>, vector<32x32xbf16>
      %cst_78 = arith.constant dense<0.000000e+00> : vector<64x32xf32>
      %107 = tpu.matmul %78, %106, %cst_78 {dimension_numbers = #tpu.dot_dimension_numbers<[1], [0], [0], [1], [0, 0, 1, 1], [], []>} : vector<64x32xbf16>, vector<32x32xbf16>, vector<64x32xf32> -> vector<64x32xf32>
      %c0_79 = arith.constant 0 : index
      %c0_80 = arith.constant 0 : index
      %108 = vector.load %arg8[%c0_79, %c0_80] : memref<1x32xf32, #tpu.memory_space<vmem>>, vector<1x32xf32>
      %109 = vector.broadcast %108 : vector<1x32xf32> to vector<64x32xf32>
      %110 = arith.addf %107, %109 : vector<64x32xf32>
      %111 = vector.broadcast %105 : vector<64x1xf32> to vector<64x32xf32>
      %112 = arith.mulf %110, %111 : vector<64x32xf32>
      %cst_81 = arith.constant 0.000000e+00 : f32
      %113 = vector.broadcast %cst_81 : f32 to vector<68x32xf32>
      %c0_82 = arith.constant 0 : index
      %c0_83 = arith.constant 0 : index
      %114 = vector.load %arg20[%c0_82, %c0_83] : memref<68x32xf32, #tpu.memory_space<vmem>>, vector<68x32xf32>
      tpu.vector_store %arg20[%c0_82, %c0_83], %113 {strides = array<i32>} : memref<68x32xf32, #tpu.memory_space<vmem>>, vector<68x32xf32>,
      %c2_84 = arith.constant 2 : index
      %c0_85 = arith.constant 0 : index
      %115 = vector.load %arg20[%c2_84, %c0_85] : memref<68x32xf32, #tpu.memory_space<vmem>>, vector<64x32xf32>
      tpu.vector_store %arg20[%c2_84, %c0_85], %112 {strides = array<i32>} : memref<68x32xf32, #tpu.memory_space<vmem>>, vector<64x32xf32>,
    } else {
    }
    %c2 = arith.constant 2 : index
    %c0 = arith.constant 0 : index
    %3 = vector.load %arg20[%c2, %c0] : memref<68x32xf32, #tpu.memory_space<vmem>>, vector<64x32xf32>
    %4 = arith.truncf %3 : vector<64x32xf32> to vector<64x32xbf16>
    %c0_1 = arith.constant 0 : index
    %c0_2 = arith.constant 0 : index
    %5 = vector.load %arg9[%c0_1, %c0_2] : memref<32x512xbf16, #tpu.memory_space<vmem>>, vector<32x512xbf16>
    %cst = arith.constant dense<0.000000e+00> : vector<64x512xf32>
    %6 = tpu.matmul %4, %5, %cst {dimension_numbers = #tpu.dot_dimension_numbers<[1], [0], [0], [1], [0, 0, 1, 1], [], []>} : vector<64x32xbf16>, vector<32x512xbf16>, vector<64x512xf32> -> vector<64x512xf32>
    %c0_3 = arith.constant 0 : index
    %c0_4 = arith.constant 0 : index
    %7 = vector.load %arg10[%c0_3, %c0_4] : memref<1x512xf32, #tpu.memory_space<vmem>>, vector<1x512xf32>
    %8 = vector.broadcast %7 : vector<1x512xf32> to vector<64x512xf32>
    %9 = arith.addf %6, %8 : vector<64x512xf32>
    %cst_5 = arith.constant 0.000000e+00 : f32
    %10 = vector.broadcast %cst_5 : f32 to vector<64x512xf32>
    %11 = arith.maximumf %9, %10 : vector<64x512xf32>
    %12 = arith.truncf %11 : vector<64x512xf32> to vector<64x512xbf16>
    %c0_6 = arith.constant 0 : index
    %c0_7 = arith.constant 0 : index
    %13 = vector.load %arg15[%c0_6, %c0_7] : memref<512x128xbf16, #tpu.memory_space<vmem>>, vector<512x128xbf16>
    %cst_8 = arith.constant dense<0.000000e+00> : vector<64x128xf32>
    %14 = tpu.matmul %12, %13, %cst_8 {dimension_numbers = #tpu.dot_dimension_numbers<[1], [0], [0], [1], [0, 0, 1, 1], [], []>} : vector<64x512xbf16>, vector<512x128xbf16>, vector<64x128xf32> -> vector<64x128xf32>
    %c1 = arith.constant 1 : index
    %c0_9 = arith.constant 0 : index
    %15 = vector.load %arg20[%c1, %c0_9] : memref<68x32xf32, #tpu.memory_space<vmem>>, vector<64x32xf32>
    %16 = arith.truncf %15 : vector<64x32xf32> to vector<64x32xbf16>
    %c0_10 = arith.constant 0 : index
    %c0_11 = arith.constant 0 : index
    %17 = vector.load %arg11[%c0_10, %c0_11] : memref<96x512xbf16, #tpu.memory_space<vmem>>, vector<32x512xbf16>
    %cst_12 = arith.constant dense<0.000000e+00> : vector<64x512xf32>
    %18 = tpu.matmul %16, %17, %cst_12 {dimension_numbers = #tpu.dot_dimension_numbers<[1], [0], [0], [1], [0, 0, 1, 1], [], []>} : vector<64x32xbf16>, vector<32x512xbf16>, vector<64x512xf32> -> vector<64x512xf32>
    %c2_13 = arith.constant 2 : index
    %c0_14 = arith.constant 0 : index
    %19 = vector.load %arg20[%c2_13, %c0_14] : memref<68x32xf32, #tpu.memory_space<vmem>>, vector<64x32xf32>
    %20 = arith.truncf %19 : vector<64x32xf32> to vector<64x32xbf16>
    %c32 = arith.constant 32 : index
    %c0_15 = arith.constant 0 : index
    %21 = vector.load %arg11[%c32, %c0_15] : memref<96x512xbf16, #tpu.memory_space<vmem>>, vector<32x512xbf16>
    %cst_16 = arith.constant dense<0.000000e+00> : vector<64x512xf32>
    %22 = tpu.matmul %20, %21, %cst_16 {dimension_numbers = #tpu.dot_dimension_numbers<[1], [0], [0], [1], [0, 0, 1, 1], [], []>} : vector<64x32xbf16>, vector<32x512xbf16>, vector<64x512xf32> -> vector<64x512xf32>
    %23 = arith.addf %18, %22 : vector<64x512xf32>
    %c3 = arith.constant 3 : index
    %c0_17 = arith.constant 0 : index
    %24 = vector.load %arg20[%c3, %c0_17] : memref<68x32xf32, #tpu.memory_space<vmem>>, vector<64x32xf32>
    %25 = arith.truncf %24 : vector<64x32xf32> to vector<64x32xbf16>
    %c64 = arith.constant 64 : index
    %c0_18 = arith.constant 0 : index
    %26 = vector.load %arg11[%c64, %c0_18] : memref<96x512xbf16, #tpu.memory_space<vmem>>, vector<32x512xbf16>
    %cst_19 = arith.constant dense<0.000000e+00> : vector<64x512xf32>
    %27 = tpu.matmul %25, %26, %cst_19 {dimension_numbers = #tpu.dot_dimension_numbers<[1], [0], [0], [1], [0, 0, 1, 1], [], []>} : vector<64x32xbf16>, vector<32x512xbf16>, vector<64x512xf32> -> vector<64x512xf32>
    %28 = arith.addf %23, %27 : vector<64x512xf32>
    %c0_20 = arith.constant 0 : index
    %c0_21 = arith.constant 0 : index
    %29 = vector.load %arg12[%c0_20, %c0_21] : memref<1x512xf32, #tpu.memory_space<vmem>>, vector<1x512xf32>
    %30 = vector.broadcast %29 : vector<1x512xf32> to vector<64x512xf32>
    %31 = arith.addf %28, %30 : vector<64x512xf32>
    %cst_22 = arith.constant 0.000000e+00 : f32
    %32 = vector.broadcast %cst_22 : f32 to vector<64x512xf32>
    %33 = arith.maximumf %31, %32 : vector<64x512xf32>
    %34 = arith.truncf %33 : vector<64x512xf32> to vector<64x512xbf16>
    %c0_23 = arith.constant 0 : index
    %c0_24 = arith.constant 0 : index
    %35 = vector.load %arg16[%c0_23, %c0_24] : memref<512x128xbf16, #tpu.memory_space<vmem>>, vector<512x128xbf16>
    %cst_25 = arith.constant dense<0.000000e+00> : vector<64x128xf32>
    %36 = tpu.matmul %34, %35, %cst_25 {dimension_numbers = #tpu.dot_dimension_numbers<[1], [0], [0], [1], [0, 0, 1, 1], [], []>} : vector<64x512xbf16>, vector<512x128xbf16>, vector<64x128xf32> -> vector<64x128xf32>
    %37 = arith.addf %14, %36 : vector<64x128xf32>
    %c0_26 = arith.constant 0 : index
    %c0_27 = arith.constant 0 : index
    %38 = vector.load %arg20[%c0_26, %c0_27] : memref<68x32xf32, #tpu.memory_space<vmem>>, vector<64x32xf32>
    %39 = arith.truncf %38 : vector<64x32xf32> to vector<64x32xbf16>
    %c0_28 = arith.constant 0 : index
    %c0_29 = arith.constant 0 : index
    %40 = vector.load %arg13[%c0_28, %c0_29] : memref<160x512xbf16, #tpu.memory_space<vmem>>, vector<32x512xbf16>
    %cst_30 = arith.constant dense<0.000000e+00> : vector<64x512xf32>
    %41 = tpu.matmul %39, %40, %cst_30 {dimension_numbers = #tpu.dot_dimension_numbers<[1], [0], [0], [1], [0, 0, 1, 1], [], []>} : vector<64x32xbf16>, vector<32x512xbf16>, vector<64x512xf32> -> vector<64x512xf32>
    %c1_31 = arith.constant 1 : index
    %c0_32 = arith.constant 0 : index
    %42 = vector.load %arg20[%c1_31, %c0_32] : memref<68x32xf32, #tpu.memory_space<vmem>>, vector<64x32xf32>
    %43 = arith.truncf %42 : vector<64x32xf32> to vector<64x32xbf16>
    %c32_33 = arith.constant 32 : index
    %c0_34 = arith.constant 0 : index
    %44 = vector.load %arg13[%c32_33, %c0_34] : memref<160x512xbf16, #tpu.memory_space<vmem>>, vector<32x512xbf16>
    %cst_35 = arith.constant dense<0.000000e+00> : vector<64x512xf32>
    %45 = tpu.matmul %43, %44, %cst_35 {dimension_numbers = #tpu.dot_dimension_numbers<[1], [0], [0], [1], [0, 0, 1, 1], [], []>} : vector<64x32xbf16>, vector<32x512xbf16>, vector<64x512xf32> -> vector<64x512xf32>
    %46 = arith.addf %41, %45 : vector<64x512xf32>
    %c2_36 = arith.constant 2 : index
    %c0_37 = arith.constant 0 : index
    %47 = vector.load %arg20[%c2_36, %c0_37] : memref<68x32xf32, #tpu.memory_space<vmem>>, vector<64x32xf32>
    %48 = arith.truncf %47 : vector<64x32xf32> to vector<64x32xbf16>
    %c64_38 = arith.constant 64 : index
    %c0_39 = arith.constant 0 : index
    %49 = vector.load %arg13[%c64_38, %c0_39] : memref<160x512xbf16, #tpu.memory_space<vmem>>, vector<32x512xbf16>
    %cst_40 = arith.constant dense<0.000000e+00> : vector<64x512xf32>
    %50 = tpu.matmul %48, %49, %cst_40 {dimension_numbers = #tpu.dot_dimension_numbers<[1], [0], [0], [1], [0, 0, 1, 1], [], []>} : vector<64x32xbf16>, vector<32x512xbf16>, vector<64x512xf32> -> vector<64x512xf32>
    %51 = arith.addf %46, %50 : vector<64x512xf32>
    %c3_41 = arith.constant 3 : index
    %c0_42 = arith.constant 0 : index
    %52 = vector.load %arg20[%c3_41, %c0_42] : memref<68x32xf32, #tpu.memory_space<vmem>>, vector<64x32xf32>
    %53 = arith.truncf %52 : vector<64x32xf32> to vector<64x32xbf16>
    %c96 = arith.constant 96 : index
    %c0_43 = arith.constant 0 : index
    %54 = vector.load %arg13[%c96, %c0_43] : memref<160x512xbf16, #tpu.memory_space<vmem>>, vector<32x512xbf16>
    %cst_44 = arith.constant dense<0.000000e+00> : vector<64x512xf32>
    %55 = tpu.matmul %53, %54, %cst_44 {dimension_numbers = #tpu.dot_dimension_numbers<[1], [0], [0], [1], [0, 0, 1, 1], [], []>} : vector<64x32xbf16>, vector<32x512xbf16>, vector<64x512xf32> -> vector<64x512xf32>
    %56 = arith.addf %51, %55 : vector<64x512xf32>
    %c4 = arith.constant 4 : index
    %c0_45 = arith.constant 0 : index
    %57 = vector.load %arg20[%c4, %c0_45] : memref<68x32xf32, #tpu.memory_space<vmem>>, vector<64x32xf32>
    %58 = arith.truncf %57 : vector<64x32xf32> to vector<64x32xbf16>
    %c128 = arith.constant 128 : index
    %c0_46 = arith.constant 0 : index
    %59 = vector.load %arg13[%c128, %c0_46] : memref<160x512xbf16, #tpu.memory_space<vmem>>, vector<32x512xbf16>
    %cst_47 = arith.constant dense<0.000000e+00> : vector<64x512xf32>
    %60 = tpu.matmul %58, %59, %cst_47 {dimension_numbers = #tpu.dot_dimension_numbers<[1], [0], [0], [1], [0, 0, 1, 1], [], []>} : vector<64x32xbf16>, vector<32x512xbf16>, vector<64x512xf32> -> vector<64x512xf32>
    %61 = arith.addf %56, %60 : vector<64x512xf32>
    %c0_48 = arith.constant 0 : index
    %c0_49 = arith.constant 0 : index
    %62 = vector.load %arg14[%c0_48, %c0_49] : memref<1x512xf32, #tpu.memory_space<vmem>>, vector<1x512xf32>
    %63 = vector.broadcast %62 : vector<1x512xf32> to vector<64x512xf32>
    %64 = arith.addf %61, %63 : vector<64x512xf32>
    %cst_50 = arith.constant 0.000000e+00 : f32
    %65 = vector.broadcast %cst_50 : f32 to vector<64x512xf32>
    %66 = arith.maximumf %64, %65 : vector<64x512xf32>
    %67 = arith.truncf %66 : vector<64x512xf32> to vector<64x512xbf16>
    %c0_51 = arith.constant 0 : index
    %c0_52 = arith.constant 0 : index
    %68 = vector.load %arg17[%c0_51, %c0_52] : memref<512x128xbf16, #tpu.memory_space<vmem>>, vector<512x128xbf16>
    %cst_53 = arith.constant dense<0.000000e+00> : vector<64x128xf32>
    %69 = tpu.matmul %67, %68, %cst_53 {dimension_numbers = #tpu.dot_dimension_numbers<[1], [0], [0], [1], [0, 0, 1, 1], [], []>} : vector<64x512xbf16>, vector<512x128xbf16>, vector<64x128xf32> -> vector<64x128xf32>
    %70 = arith.addf %37, %69 : vector<64x128xf32>
    %c0_i32_54 = arith.constant 0 : i32
    %71 = arith.cmpi eq, %arg1, %c0_i32_54 : i32
    %72 = arith.extui %71 : i1 to i32
    %c0_i32_55 = arith.constant 0 : i32
    %73 = arith.cmpi ne, %72, %c0_i32_55 : i32
    scf.if %73 {
      %c0_58 = arith.constant 0 : index
      %c0_59 = arith.constant 0 : index
      %77 = vector.load %arg18[%c0_58, %c0_59] : memref<1x128xf32, #tpu.memory_space<vmem>>, vector<1x128xf32>
      %78 = vector.broadcast %77 : vector<1x128xf32> to vector<64x128xf32>
      %79 = arith.addf %70, %78 : vector<64x128xf32>
      %c0_60 = arith.constant 0 : index
      %c0_61 = arith.constant 0 : index
      %c0_62 = arith.constant 0 : index
      %80 = vector.load %arg19[%c0_60, %c0_61, %c0_62] : memref<1x64x128xf32, #tpu.memory_space<vmem>>, vector<1x64x128xf32>
      %81 = vector.shape_cast %80 : vector<1x64x128xf32> to vector<64x128xf32>
      %82 = vector.shape_cast %79 : vector<64x128xf32> to vector<1x64x128xf32>
      tpu.vector_store %arg19[%c0_60, %c0_61, %c0_62], %82 {strides = array<i32>} : memref<1x64x128xf32, #tpu.memory_space<vmem>>, vector<1x64x128xf32>,
    } else {
    }
    %c0_i32_56 = arith.constant 0 : i32
    %74 = arith.cmpi ne, %arg1, %c0_i32_56 : i32
    %75 = arith.extui %74 : i1 to i32
    %c0_i32_57 = arith.constant 0 : i32
    %76 = arith.cmpi ne, %75, %c0_i32_57 : i32
    scf.if %76 {
      %c0_58 = arith.constant 0 : index
      %c0_59 = arith.constant 0 : index
      %c0_60 = arith.constant 0 : index
      %77 = vector.load %arg19[%c0_58, %c0_59, %c0_60] : memref<1x64x128xf32, #tpu.memory_space<vmem>>, vector<1x64x128xf32>
      %78 = vector.shape_cast %77 : vector<1x64x128xf32> to vector<64x128xf32>
      %79 = arith.addf %78, %70 : vector<64x128xf32>
      %c0_61 = arith.constant 0 : index
      %c0_62 = arith.constant 0 : index
      %c0_63 = arith.constant 0 : index
      %80 = vector.load %arg19[%c0_61, %c0_62, %c0_63] : memref<1x64x128xf32, #tpu.memory_space<vmem>>, vector<1x64x128xf32>
      %81 = vector.shape_cast %80 : vector<1x64x128xf32> to vector<64x128xf32>
      %82 = vector.shape_cast %79 : vector<64x128xf32> to vector<1x64x128xf32>
      tpu.vector_store %arg19[%c0_61, %c0_62, %c0_63], %82 {strides = array<i32>} : memref<1x64x128xf32, #tpu.memory_space<vmem>>, vector<1x64x128xf32>,
    } else {
    }
    return
  }
  func.func @transform_0(%arg0: i32, %arg1: i32) -> (i32, i32, i32) {
    %c0_i32 = arith.constant 0 : i32
    %c0_i32_0 = arith.constant 0 : i32
    %c0_i32_1 = arith.constant 0 : i32
    return %arg0, %c0_i32, %c0_i32_0 : i32, i32, i32
  }
  func.func @transform_1(%arg0: i32, %arg1: i32) -> (i32, i32, i32) {
    %c0_i32 = arith.constant 0 : i32
    %c0_i32_0 = arith.constant 0 : i32
    %c0_i32_1 = arith.constant 0 : i32
    return %arg0, %c0_i32, %c0_i32_0 : i32, i32, i32
  }
  func.func @transform_2(%arg0: i32, %arg1: i32) -> (i32, i32, i32) {
    %c0_i32 = arith.constant 0 : i32
    %c0_i32_0 = arith.constant 0 : i32
    %c0_i32_1 = arith.constant 0 : i32
    return %arg0, %c0_i32, %c0_i32_0 : i32, i32, i32
  }
  func.func @transform_3(%arg0: i32, %arg1: i32) -> (i32, i32) {
    %c0_i32 = arith.constant 0 : i32
    %c0_i32_0 = arith.constant 0 : i32
    %c0_i32_1 = arith.constant 0 : i32
    return %c0_i32, %c0_i32_0 : i32, i32
  }
  func.func @transform_4(%arg0: i32, %arg1: i32) -> (i32, i32) {
    %c0_i32 = arith.constant 0 : i32
    %c0_i32_0 = arith.constant 0 : i32
    %c0_i32_1 = arith.constant 0 : i32
    return %c0_i32, %c0_i32_0 : i32, i32
  }
  func.func @transform_5(%arg0: i32, %arg1: i32) -> (i32, i32) {
    %c0_i32 = arith.constant 0 : i32
    %c0_i32_0 = arith.constant 0 : i32
    %c0_i32_1 = arith.constant 0 : i32
    return %c0_i32, %c0_i32_0 : i32, i32
  }
  func.func @transform_6(%arg0: i32, %arg1: i32) -> (i32, i32) {
    %c0_i32 = arith.constant 0 : i32
    %c0_i32_0 = arith.constant 0 : i32
    %c0_i32_1 = arith.constant 0 : i32
    return %c0_i32, %c0_i32_0 : i32, i32
  }
  func.func @transform_7(%arg0: i32, %arg1: i32) -> (i32, i32) {
    %c0_i32 = arith.constant 0 : i32
    %c0_i32_0 = arith.constant 0 : i32
    return %c0_i32, %arg1 : i32, i32
  }
  func.func @transform_8(%arg0: i32, %arg1: i32) -> (i32, i32) {
    %c0_i32 = arith.constant 0 : i32
    %c0_i32_0 = arith.constant 0 : i32
    return %c0_i32, %arg1 : i32, i32
  }
  func.func @transform_9(%arg0: i32, %arg1: i32) -> (i32, i32) {
    %c0_i32 = arith.constant 0 : i32
    %c0_i32_0 = arith.constant 0 : i32
    return %c0_i32, %arg1 : i32, i32
  }
  func.func @transform_10(%arg0: i32, %arg1: i32) -> (i32, i32) {
    %c0_i32 = arith.constant 0 : i32
    %c0_i32_0 = arith.constant 0 : i32
    return %c0_i32, %arg1 : i32, i32
  }
  func.func @transform_11(%arg0: i32, %arg1: i32) -> (i32, i32) {
    %c0_i32 = arith.constant 0 : i32
    %c0_i32_0 = arith.constant 0 : i32
    return %c0_i32, %arg1 : i32, i32
  }
  func.func @transform_12(%arg0: i32, %arg1: i32) -> (i32, i32) {
    %c0_i32 = arith.constant 0 : i32
    %c0_i32_0 = arith.constant 0 : i32
    return %c0_i32, %arg1 : i32, i32
  }
  func.func @transform_13(%arg0: i32, %arg1: i32) -> (i32, i32) {
    %c0_i32 = arith.constant 0 : i32
    %c0_i32_0 = arith.constant 0 : i32
    return %arg1, %c0_i32 : i32, i32
  }
  func.func @transform_14(%arg0: i32, %arg1: i32) -> (i32, i32) {
    %c0_i32 = arith.constant 0 : i32
    %c0_i32_0 = arith.constant 0 : i32
    return %arg1, %c0_i32 : i32, i32
  }
  func.func @transform_15(%arg0: i32, %arg1: i32) -> (i32, i32) {
    %c0_i32 = arith.constant 0 : i32
    %c0_i32_0 = arith.constant 0 : i32
    return %arg1, %c0_i32 : i32, i32
  }
  func.func @transform_16(%arg0: i32, %arg1: i32) -> (i32, i32) {
    %c0_i32 = arith.constant 0 : i32
    %c0_i32_0 = arith.constant 0 : i32
    %c0_i32_1 = arith.constant 0 : i32
    return %c0_i32, %c0_i32_0 : i32, i32
  }
  func.func @transform_17(%arg0: i32, %arg1: i32) -> (i32, i32, i32) {
    %c0_i32 = arith.constant 0 : i32
    %c0_i32_0 = arith.constant 0 : i32
    %c0_i32_1 = arith.constant 0 : i32
    return %arg0, %c0_i32, %c0_i32_0 : i32, i32, i32
  }
}

module attributes {stable_mosaic.version = 11 : i64} {
  func.func @_qaconv_kernel(%arg0: i32, %arg1: i32, %arg2: memref<1x64x32xbf16, #tpu.memory_space<vmem>>, %arg3: memref<1x64x1xbf16, #tpu.memory_space<vmem>>, %arg4: memref<1x1x32xf32, #tpu.memory_space<vmem>>, %arg5: memref<32x32xbf16, #tpu.memory_space<vmem>>, %arg6: memref<1x32xf32, #tpu.memory_space<vmem>>, %arg7: memref<32x32xbf16, #tpu.memory_space<vmem>>, %arg8: memref<1x32xf32, #tpu.memory_space<vmem>>, %arg9: memref<32x512xbf16, #tpu.memory_space<vmem>>, %arg10: memref<1x512xf32, #tpu.memory_space<vmem>>, %arg11: memref<96x512xbf16, #tpu.memory_space<vmem>>, %arg12: memref<1x512xf32, #tpu.memory_space<vmem>>, %arg13: memref<160x512xbf16, #tpu.memory_space<vmem>>, %arg14: memref<1x512xf32, #tpu.memory_space<vmem>>, %arg15: memref<512x128xbf16, #tpu.memory_space<vmem>>, %arg16: memref<512x128xbf16, #tpu.memory_space<vmem>>, %arg17: memref<512x128xbf16, #tpu.memory_space<vmem>>, %arg18: memref<1x128xf32, #tpu.memory_space<vmem>>, %arg19: memref<1x64x128xf32, #tpu.memory_space<vmem>>, %arg20: memref<68x32xf32, #tpu.memory_space<vmem>>) attributes {dimension_semantics = [#tpu.dimension_semantics<parallel>, #tpu.dimension_semantics<arbitrary>], iteration_bounds = array<i64: 2, 2>, scalar_prefetch = 0 : i64, scratch_operands = 1 : i64, tpu.core_type = #tpu.core_type<tc>, window_params = [{transform_indices = @transform_0, window_bounds = array<i64: 1, 64, 32>}, {transform_indices = @transform_1, window_bounds = array<i64: 1, 64, 1>}, {transform_indices = @transform_2, window_bounds = array<i64: 1, 1, 32>}, {pipeline_mode = #tpu.pipeline_mode<synchronous>, transform_indices = @transform_3, window_bounds = array<i64: 32, 32>}, {pipeline_mode = #tpu.pipeline_mode<synchronous>, transform_indices = @transform_4, window_bounds = array<i64: 1, 32>}, {pipeline_mode = #tpu.pipeline_mode<synchronous>, transform_indices = @transform_5, window_bounds = array<i64: 32, 32>}, {pipeline_mode = #tpu.pipeline_mode<synchronous>, transform_indices = @transform_6, window_bounds = array<i64: 1, 32>}, {transform_indices = @transform_7, window_bounds = array<i64: 32, 512>}, {transform_indices = @transform_8, window_bounds = array<i64: 1, 512>}, {transform_indices = @transform_9, window_bounds = array<i64: 96, 512>}, {transform_indices = @transform_10, window_bounds = array<i64: 1, 512>}, {transform_indices = @transform_11, window_bounds = array<i64: 160, 512>}, {transform_indices = @transform_12, window_bounds = array<i64: 1, 512>}, {transform_indices = @transform_13, window_bounds = array<i64: 512, 128>}, {transform_indices = @transform_14, window_bounds = array<i64: 512, 128>}, {transform_indices = @transform_15, window_bounds = array<i64: 512, 128>}, {pipeline_mode = #tpu.pipeline_mode<synchronous>, transform_indices = @transform_16, window_bounds = array<i64: 1, 128>}, {transform_indices = @transform_17, window_bounds = array<i64: 1, 64, 128>}]} {
    %c0_i32 = arith.constant 0 : i32
    %0 = arith.cmpi eq, %arg1, %c0_i32 : i32
    %1 = arith.extui %0 : i1 to i32
    %c0_i32_0 = arith.constant 0 : i32
    %2 = arith.cmpi ne, %1, %c0_i32_0 : i32
    scf.if %2 {
      %c0_58 = arith.constant 0 : index
      %c0_59 = arith.constant 0 : index
      %c0_60 = arith.constant 0 : index
      %77 = vector.load %arg2[%c0_58, %c0_59, %c0_60] : memref<1x64x32xbf16, #tpu.memory_space<vmem>>, vector<1x64x32xbf16>
      %78 = vector.shape_cast %77 : vector<1x64x32xbf16> to vector<64x32xbf16>
      %c0_61 = arith.constant 0 : index
      %c0_62 = arith.constant 0 : index
      %c0_63 = arith.constant 0 : index
      %79 = vector.load %arg3[%c0_61, %c0_62, %c0_63] : memref<1x64x1xbf16, #tpu.memory_space<vmem>>, vector<1x64x1xbf16>
      %80 = vector.shape_cast %79 : vector<1x64x1xbf16> to vector<64x1xbf16>
      %81 = vector.broadcast %80 : vector<64x1xbf16> to vector<64x32xbf16>
      %82 = arith.mulf %78, %81 : vector<64x32xbf16>
      %c0_64 = arith.constant 0 : index
      %c0_65 = arith.constant 0 : index
      %83 = vector.load %arg5[%c0_64, %c0_65] : memref<32x32xbf16, #tpu.memory_space<vmem>>, vector<32x32xbf16>
      %cst_66 = arith.constant dense<0.000000e+00> : vector<64x32xf32>
      %84 = tpu.matmul %82, %83, %cst_66 {dimension_numbers = #tpu.dot_dimension_numbers<[1], [0], [0], [1], [0, 0, 1, 1], [], []>} : vector<64x32xbf16>, vector<32x32xbf16>, vector<64x32xf32> -> vector<64x32xf32>
      %c0_67 = arith.constant 0 : index
      %c0_68 = arith.constant 0 : index
      %85 = vector.load %arg6[%c0_67, %c0_68] : memref<1x32xf32, #tpu.memory_space<vmem>>, vector<1x32xf32>
      %86 = vector.broadcast %85 : vector<1x32xf32> to vector<64x32xf32>
      %87 = arith.addf %84, %86 : vector<64x32xf32>
      %c0_69 = arith.constant 0 : index
      %c0_70 = arith.constant 0 : index
      %c0_71 = arith.constant 0 : index
      %88 = vector.load %arg4[%c0_69, %c0_70, %c0_71] : memref<1x1x32xf32, #tpu.memory_space<vmem>>, vector<1x1x32xf32>
      %89 = vector.shape_cast %88 : vector<1x1x32xf32> to vector<1x32xf32>
      %90 = vector.broadcast %89 : vector<1x32xf32> to vector<64x32xf32>
      %91 = arith.mulf %87, %90 : vector<64x32xf32>
      %cst_72 = arith.constant dense<0.000000e+00> : vector<64xf32>
      %92 = vector.multi_reduction <add>, %91, %cst_72 [1] : vector<64x32xf32> to vector<64xf32>
      %93 = vector.shape_cast %92 : vector<64xf32> to vector<64x1xf32>
      %cst_73 = arith.constant 0.0176776703 : f32
      %94 = vector.broadcast %cst_73 : f32 to vector<64x1xf32>
      %95 = arith.mulf %93, %94 : vector<64x1xf32>
      %cst_74 = arith.constant dense<0xFF800000> : vector<1xf32>
      %96 = vector.multi_reduction <maximumf>, %95, %cst_74 [0] : vector<64x1xf32> to vector<1xf32>
      %97 = vector.shape_cast %96 : vector<1xf32> to vector<1x1xf32>
      %98 = vector.broadcast %97 : vector<1x1xf32> to vector<64x1xf32>
      %99 = arith.subf %95, %98 : vector<64x1xf32>
      %100 = math.exp %99 : vector<64x1xf32>
      %cst_75 = arith.constant dense<0.000000e+00> : vector<1xf32>
      %101 = vector.multi_reduction <add>, %100, %cst_75 [0] : vector<64x1xf32> to vector<1xf32>
      %102 = vector.shape_cast %101 : vector<1xf32> to vector<1x1xf32>
      %103 = tpu.reciprocal %102 {approx = true} : vector<1x1xf32> -> vector<1x1xf32>
      %104 = vector.broadcast %103 : vector<1x1xf32> to vector<64x1xf32>
      %105 = arith.mulf %100, %104 : vector<64x1xf32>
      %c0_76 = arith.constant 0 : index
      %c0_77 = arith.constant 0 : index
      %106 = vector.load %arg7[%c0_76, %c0_77] : memref<32x32xbf16, #tpu.memory_space<vmem>>, vector<32x32xbf16>
      %cst_78 = arith.constant dense<0.000000e+00> : vector<64x32xf32>
      %107 = tpu.matmul %78, %106, %cst_78 {dimension_numbers = #tpu.dot_dimension_numbers<[1], [0], [0], [1], [0, 0, 1, 1], [], []>} : vector<64x32xbf16>, vector<32x32xbf16>, vector<64x32xf32> -> vector<64x32xf32>
      %c0_79 = arith.constant 0 : index
      %c0_80 = arith.constant 0 : index
      %108 = vector.load %arg8[%c0_79, %c0_80] : memref<1x32xf32, #tpu.memory_space<vmem>>, vector<1x32xf32>
      %109 = vector.broadcast %108 : vector<1x32xf32> to vector<64x32xf32>
      %110 = arith.addf %107, %109 : vector<64x32xf32>
      %111 = vector.broadcast %105 : vector<64x1xf32> to vector<64x32xf32>
      %112 = arith.mulf %110, %111 : vector<64x32xf32>
      %cst_81 = arith.constant 0.000000e+00 : f32
      %113 = vector.broadcast %cst_81 : f32 to vector<68x32xf32>
      %c0_82 = arith.constant 0 : index
      %c0_83 = arith.constant 0 : index
      %114 = vector.load %arg20[%c0_82, %c0_83] : memref<68x32xf32, #tpu.memory_space<vmem>>, vector<68x32xf32>
      tpu.vector_store %arg20[%c0_82, %c0_83], %113 {strides = array<i32>} : memref<68x32xf32, #tpu.memory_space<vmem>>, vector<68x32xf32>,
      %c2_84 = arith.constant 2 : index
      %c0_85 = arith.constant 0 : index
      %115 = vector.load %arg20[%c2_84, %c0_85] : memref<68x32xf32, #tpu.memory_space<vmem>>, vector<64x32xf32>
      tpu.vector_store %arg20[%c2_84, %c0_85], %112 {strides = array<i32>} : memref<68x32xf32, #tpu.memory_space<vmem>>, vector<64x32xf32>,
    } else {
    }
    %c2 = arith.constant 2 : index
    %c0 = arith.constant 0 : index
    %3 = vector.load %arg20[%c2, %c0] : memref<68x32xf32, #tpu.memory_space<vmem>>, vector<64x32xf32>
    %4 = arith.truncf %3 : vector<64x32xf32> to vector<64x32xbf16>
    %c0_1 = arith.constant 0 : index
    %c0_2 = arith.constant 0 : index
    %5 = vector.load %arg9[%c0_1, %c0_2] : memref<32x512xbf16, #tpu.memory_space<vmem>>, vector<32x512xbf16>
    %cst = arith.constant dense<0.000000e+00> : vector<64x512xf32>
    %6 = tpu.matmul %4, %5, %cst {dimension_numbers = #tpu.dot_dimension_numbers<[1], [0], [0], [1], [0, 0, 1, 1], [], []>} : vector<64x32xbf16>, vector<32x512xbf16>, vector<64x512xf32> -> vector<64x512xf32>
    %c0_3 = arith.constant 0 : index
    %c0_4 = arith.constant 0 : index
    %7 = vector.load %arg10[%c0_3, %c0_4] : memref<1x512xf32, #tpu.memory_space<vmem>>, vector<1x512xf32>
    %8 = vector.broadcast %7 : vector<1x512xf32> to vector<64x512xf32>
    %9 = arith.addf %6, %8 : vector<64x512xf32>
    %cst_5 = arith.constant 0.000000e+00 : f32
    %10 = vector.broadcast %cst_5 : f32 to vector<64x512xf32>
    %11 = arith.maximumf %9, %10 : vector<64x512xf32>
    %12 = arith.truncf %11 : vector<64x512xf32> to vector<64x512xbf16>
    %c0_6 = arith.constant 0 : index
    %c0_7 = arith.constant 0 : index
    %13 = vector.load %arg15[%c0_6, %c0_7] : memref<512x128xbf16, #tpu.memory_space<vmem>>, vector<512x128xbf16>
    %cst_8 = arith.constant dense<0.000000e+00> : vector<64x128xf32>
    %14 = tpu.matmul %12, %13, %cst_8 {dimension_numbers = #tpu.dot_dimension_numbers<[1], [0], [0], [1], [0, 0, 1, 1], [], []>} : vector<64x512xbf16>, vector<512x128xbf16>, vector<64x128xf32> -> vector<64x128xf32>
    %c1 = arith.constant 1 : index
    %c0_9 = arith.constant 0 : index
    %15 = vector.load %arg20[%c1, %c0_9] : memref<68x32xf32, #tpu.memory_space<vmem>>, vector<64x32xf32>
    %16 = arith.truncf %15 : vector<64x32xf32> to vector<64x32xbf16>
    %c0_10 = arith.constant 0 : index
    %c0_11 = arith.constant 0 : index
    %17 = vector.load %arg11[%c0_10, %c0_11] : memref<96x512xbf16, #tpu.memory_space<vmem>>, vector<32x512xbf16>
    %cst_12 = arith.constant dense<0.000000e+00> : vector<64x512xf32>
    %18 = tpu.matmul %16, %17, %cst_12 {dimension_numbers = #tpu.dot_dimension_numbers<[1], [0], [0], [1], [0, 0, 1, 1], [], []>} : vector<64x32xbf16>, vector<32x512xbf16>, vector<64x512xf32> -> vector<64x512xf32>
    %c2_13 = arith.constant 2 : index
    %c0_14 = arith.constant 0 : index
    %19 = vector.load %arg20[%c2_13, %c0_14] : memref<68x32xf32, #tpu.memory_space<vmem>>, vector<64x32xf32>
    %20 = arith.truncf %19 : vector<64x32xf32> to vector<64x32xbf16>
    %c32 = arith.constant 32 : index
    %c0_15 = arith.constant 0 : index
    %21 = vector.load %arg11[%c32, %c0_15] : memref<96x512xbf16, #tpu.memory_space<vmem>>, vector<32x512xbf16>
    %cst_16 = arith.constant dense<0.000000e+00> : vector<64x512xf32>
    %22 = tpu.matmul %20, %21, %cst_16 {dimension_numbers = #tpu.dot_dimension_numbers<[1], [0], [0], [1], [0, 0, 1, 1], [], []>} : vector<64x32xbf16>, vector<32x512xbf16>, vector<64x512xf32> -> vector<64x512xf32>
    %23 = arith.addf %18, %22 : vector<64x512xf32>
    %c3 = arith.constant 3 : index
    %c0_17 = arith.constant 0 : index
    %24 = vector.load %arg20[%c3, %c0_17] : memref<68x32xf32, #tpu.memory_space<vmem>>, vector<64x32xf32>
    %25 = arith.truncf %24 : vector<64x32xf32> to vector<64x32xbf16>
    %c64 = arith.constant 64 : index
    %c0_18 = arith.constant 0 : index
    %26 = vector.load %arg11[%c64, %c0_18] : memref<96x512xbf16, #tpu.memory_space<vmem>>, vector<32x512xbf16>
    %cst_19 = arith.constant dense<0.000000e+00> : vector<64x512xf32>
    %27 = tpu.matmul %25, %26, %cst_19 {dimension_numbers = #tpu.dot_dimension_numbers<[1], [0], [0], [1], [0, 0, 1, 1], [], []>} : vector<64x32xbf16>, vector<32x512xbf16>, vector<64x512xf32> -> vector<64x512xf32>
    %28 = arith.addf %23, %27 : vector<64x512xf32>
    %c0_20 = arith.constant 0 : index
    %c0_21 = arith.constant 0 : index
    %29 = vector.load %arg12[%c0_20, %c0_21] : memref<1x512xf32, #tpu.memory_space<vmem>>, vector<1x512xf32>
    %30 = vector.broadcast %29 : vector<1x512xf32> to vector<64x512xf32>
    %31 = arith.addf %28, %30 : vector<64x512xf32>
    %cst_22 = arith.constant 0.000000e+00 : f32
    %32 = vector.broadcast %cst_22 : f32 to vector<64x512xf32>
    %33 = arith.maximumf %31, %32 : vector<64x512xf32>
    %34 = arith.truncf %33 : vector<64x512xf32> to vector<64x512xbf16>
    %c0_23 = arith.constant 0 : index
    %c0_24 = arith.constant 0 : index
    %35 = vector.load %arg16[%c0_23, %c0_24] : memref<512x128xbf16, #tpu.memory_space<vmem>>, vector<512x128xbf16>
    %cst_25 = arith.constant dense<0.000000e+00> : vector<64x128xf32>
    %36 = tpu.matmul %34, %35, %cst_25 {dimension_numbers = #tpu.dot_dimension_numbers<[1], [0], [0], [1], [0, 0, 1, 1], [], []>} : vector<64x512xbf16>, vector<512x128xbf16>, vector<64x128xf32> -> vector<64x128xf32>
    %37 = arith.addf %14, %36 : vector<64x128xf32>
    %c0_26 = arith.constant 0 : index
    %c0_27 = arith.constant 0 : index
    %38 = vector.load %arg20[%c0_26, %c0_27] : memref<68x32xf32, #tpu.memory_space<vmem>>, vector<64x32xf32>
    %39 = arith.truncf %38 : vector<64x32xf32> to vector<64x32xbf16>
    %c0_28 = arith.constant 0 : index
    %c0_29 = arith.constant 0 : index
    %40 = vector.load %arg13[%c0_28, %c0_29] : memref<160x512xbf16, #tpu.memory_space<vmem>>, vector<32x512xbf16>
    %cst_30 = arith.constant dense<0.000000e+00> : vector<64x512xf32>
    %41 = tpu.matmul %39, %40, %cst_30 {dimension_numbers = #tpu.dot_dimension_numbers<[1], [0], [0], [1], [0, 0, 1, 1], [], []>} : vector<64x32xbf16>, vector<32x512xbf16>, vector<64x512xf32> -> vector<64x512xf32>
    %c1_31 = arith.constant 1 : index
    %c0_32 = arith.constant 0 : index
    %42 = vector.load %arg20[%c1_31, %c0_32] : memref<68x32xf32, #tpu.memory_space<vmem>>, vector<64x32xf32>
    %43 = arith.truncf %42 : vector<64x32xf32> to vector<64x32xbf16>
    %c32_33 = arith.constant 32 : index
    %c0_34 = arith.constant 0 : index
    %44 = vector.load %arg13[%c32_33, %c0_34] : memref<160x512xbf16, #tpu.memory_space<vmem>>, vector<32x512xbf16>
    %cst_35 = arith.constant dense<0.000000e+00> : vector<64x512xf32>
    %45 = tpu.matmul %43, %44, %cst_35 {dimension_numbers = #tpu.dot_dimension_numbers<[1], [0], [0], [1], [0, 0, 1, 1], [], []>} : vector<64x32xbf16>, vector<32x512xbf16>, vector<64x512xf32> -> vector<64x512xf32>
    %46 = arith.addf %41, %45 : vector<64x512xf32>
    %c2_36 = arith.constant 2 : index
    %c0_37 = arith.constant 0 : index
    %47 = vector.load %arg20[%c2_36, %c0_37] : memref<68x32xf32, #tpu.memory_space<vmem>>, vector<64x32xf32>
    %48 = arith.truncf %47 : vector<64x32xf32> to vector<64x32xbf16>
    %c64_38 = arith.constant 64 : index
    %c0_39 = arith.constant 0 : index
    %49 = vector.load %arg13[%c64_38, %c0_39] : memref<160x512xbf16, #tpu.memory_space<vmem>>, vector<32x512xbf16>
    %cst_40 = arith.constant dense<0.000000e+00> : vector<64x512xf32>
    %50 = tpu.matmul %48, %49, %cst_40 {dimension_numbers = #tpu.dot_dimension_numbers<[1], [0], [0], [1], [0, 0, 1, 1], [], []>} : vector<64x32xbf16>, vector<32x512xbf16>, vector<64x512xf32> -> vector<64x512xf32>
    %51 = arith.addf %46, %50 : vector<64x512xf32>
    %c3_41 = arith.constant 3 : index
    %c0_42 = arith.constant 0 : index
    %52 = vector.load %arg20[%c3_41, %c0_42] : memref<68x32xf32, #tpu.memory_space<vmem>>, vector<64x32xf32>
    %53 = arith.truncf %52 : vector<64x32xf32> to vector<64x32xbf16>
    %c96 = arith.constant 96 : index
    %c0_43 = arith.constant 0 : index
    %54 = vector.load %arg13[%c96, %c0_43] : memref<160x512xbf16, #tpu.memory_space<vmem>>, vector<32x512xbf16>
    %cst_44 = arith.constant dense<0.000000e+00> : vector<64x512xf32>
    %55 = tpu.matmul %53, %54, %cst_44 {dimension_numbers = #tpu.dot_dimension_numbers<[1], [0], [0], [1], [0, 0, 1, 1], [], []>} : vector<64x32xbf16>, vector<32x512xbf16>, vector<64x512xf32> -> vector<64x512xf32>
    %56 = arith.addf %51, %55 : vector<64x512xf32>
    %c4 = arith.constant 4 : index
    %c0_45 = arith.constant 0 : index
    %57 = vector.load %arg20[%c4, %c0_45] : memref<68x32xf32, #tpu.memory_space<vmem>>, vector<64x32xf32>
    %58 = arith.truncf %57 : vector<64x32xf32> to vector<64x32xbf16>
    %c128 = arith.constant 128 : index
    %c0_46 = arith.constant 0 : index
    %59 = vector.load %arg13[%c128, %c0_46] : memref<160x512xbf16, #tpu.memory_space<vmem>>, vector<32x512xbf16>
    %cst_47 = arith.constant dense<0.000000e+00> : vector<64x512xf32>
    %60 = tpu.matmul %58, %59, %cst_47 {dimension_numbers = #tpu.dot_dimension_numbers<[1], [0], [0], [1], [0, 0, 1, 1], [], []>} : vector<64x32xbf16>, vector<32x512xbf16>, vector<64x512xf32> -> vector<64x512xf32>
    %61 = arith.addf %56, %60 : vector<64x512xf32>
    %c0_48 = arith.constant 0 : index
    %c0_49 = arith.constant 0 : index
    %62 = vector.load %arg14[%c0_48, %c0_49] : memref<1x512xf32, #tpu.memory_space<vmem>>, vector<1x512xf32>
    %63 = vector.broadcast %62 : vector<1x512xf32> to vector<64x512xf32>
    %64 = arith.addf %61, %63 : vector<64x512xf32>
    %cst_50 = arith.constant 0.000000e+00 : f32
    %65 = vector.broadcast %cst_50 : f32 to vector<64x512xf32>
    %66 = arith.maximumf %64, %65 : vector<64x512xf32>
    %67 = arith.truncf %66 : vector<64x512xf32> to vector<64x512xbf16>
    %c0_51 = arith.constant 0 : index
    %c0_52 = arith.constant 0 : index
    %68 = vector.load %arg17[%c0_51, %c0_52] : memref<512x128xbf16, #tpu.memory_space<vmem>>, vector<512x128xbf16>
    %cst_53 = arith.constant dense<0.000000e+00> : vector<64x128xf32>
    %69 = tpu.matmul %67, %68, %cst_53 {dimension_numbers = #tpu.dot_dimension_numbers<[1], [0], [0], [1], [0, 0, 1, 1], [], []>} : vector<64x512xbf16>, vector<512x128xbf16>, vector<64x128xf32> -> vector<64x128xf32>
    %70 = arith.addf %37, %69 : vector<64x128xf32>
    %c0_i32_54 = arith.constant 0 : i32
    %71 = arith.cmpi eq, %arg1, %c0_i32_54 : i32
    %72 = arith.extui %71 : i1 to i32
    %c0_i32_55 = arith.constant 0 : i32
    %73 = arith.cmpi ne, %72, %c0_i32_55 : i32
    scf.if %73 {
      %c0_58 = arith.constant 0 : index
      %c0_59 = arith.constant 0 : index
      %77 = vector.load %arg18[%c0_58, %c0_59] : memref<1x128xf32, #tpu.memory_space<vmem>>, vector<1x128xf32>
      %78 = vector.broadcast %77 : vector<1x128xf32> to vector<64x128xf32>
      %79 = arith.addf %70, %78 : vector<64x128xf32>
      %c0_60 = arith.constant 0 : index
      %c0_61 = arith.constant 0 : index
      %c0_62 = arith.constant 0 : index
      %80 = vector.load %arg19[%c0_60, %c0_61, %c0_62] : memref<1x64x128xf32, #tpu.memory_space<vmem>>, vector<1x64x128xf32>
      %81 = vector.shape_cast %80 : vector<1x64x128xf32> to vector<64x128xf32>
      %82 = vector.shape_cast %79 : vector<64x128xf32> to vector<1x64x128xf32>
      tpu.vector_store %arg19[%c0_60, %c0_61, %c0_62], %82 {strides = array<i32>} : memref<1x64x128xf32, #tpu.memory_space<vmem>>, vector<1x64x128xf32>,
    } else {
    }
    %c0_i32_56 = arith.constant 0 : i32
    %74 = arith.cmpi ne, %arg1, %c0_i32_56 : i32
    %75 = arith.extui %74 : i1 to i32
    %c0_i32_57 = arith.constant 0 : i32
    %76 = arith.cmpi ne, %75, %c0_i32_57 : i32
    scf.if %76 {
      %c0_58 = arith.constant 0 : index
      %c0_59 = arith.constant 0 : index
      %c0_60 = arith.constant 0 : index
      %77 = vector.load %arg19[%c0_58, %c0_59, %c0_60] : memref<1x64x128xf32, #tpu.memory_space<vmem>>, vector<1x64x128xf32>
      %78 = vector.shape_cast %77 : vector<1x64x128xf32> to vector<64x128xf32>
      %79 = arith.addf %78, %70 : vector<64x128xf32>
      %c0_61 = arith.constant 0 : index
      %c0_62 = arith.constant 0 : index
      %c0_63 = arith.constant 0 : index
      %80 = vector.load %arg19[%c0_61, %c0_62, %c0_63] : memref<1x64x128xf32, #tpu.memory_space<vmem>>, vector<1x64x128xf32>
      %81 = vector.shape_cast %80 : vector<1x64x128xf32> to vector<64x128xf32>
      %82 = vector.shape_cast %79 : vector<64x128xf32> to vector<1x64x128xf32>
      tpu.vector_store %arg19[%c0_61, %c0_62, %c0_63], %82 {strides = array<i32>} : memref<1x64x128xf32, #tpu.memory_space<vmem>>, vector<1x64x128xf32>,
    } else {
    }
    return
  }
  func.func @transform_0(%arg0: i32, %arg1: i32) -> (i32, i32, i32) {
    %c0_i32 = arith.constant 0 : i32
    %c0_i32_0 = arith.constant 0 : i32
    %c0_i32_1 = arith.constant 0 : i32
    return %arg0, %c0_i32, %c0_i32_0 : i32, i32, i32
  }
  func.func @transform_1(%arg0: i32, %arg1: i32) -> (i32, i32, i32) {
    %c0_i32 = arith.constant 0 : i32
    %c0_i32_0 = arith.constant 0 : i32
    %c0_i32_1 = arith.constant 0 : i32
    return %arg0, %c0_i32, %c0_i32_0 : i32, i32, i32
  }
  func.func @transform_2(%arg0: i32, %arg1: i32) -> (i32, i32, i32) {
    %c0_i32 = arith.constant 0 : i32
    %c0_i32_0 = arith.constant 0 : i32
    %c0_i32_1 = arith.constant 0 : i32
    return %arg0, %c0_i32, %c0_i32_0 : i32, i32, i32
  }
  func.func @transform_3(%arg0: i32, %arg1: i32) -> (i32, i32) {
    %c0_i32 = arith.constant 0 : i32
    %c0_i32_0 = arith.constant 0 : i32
    %c0_i32_1 = arith.constant 0 : i32
    return %c0_i32, %c0_i32_0 : i32, i32
  }
  func.func @transform_4(%arg0: i32, %arg1: i32) -> (i32, i32) {
    %c0_i32 = arith.constant 0 : i32
    %c0_i32_0 = arith.constant 0 : i32
    %c0_i32_1 = arith.constant 0 : i32
    return %c0_i32, %c0_i32_0 : i32, i32
  }
  func.func @transform_5(%arg0: i32, %arg1: i32) -> (i32, i32) {
    %c0_i32 = arith.constant 0 : i32
    %c0_i32_0 = arith.constant 0 : i32
    %c0_i32_1 = arith.constant 0 : i32
    return %c0_i32, %c0_i32_0 : i32, i32
  }
  func.func @transform_6(%arg0: i32, %arg1: i32) -> (i32, i32) {
    %c0_i32 = arith.constant 0 : i32
    %c0_i32_0 = arith.constant 0 : i32
    %c0_i32_1 = arith.constant 0 : i32
    return %c0_i32, %c0_i32_0 : i32, i32
  }
  func.func @transform_7(%arg0: i32, %arg1: i32) -> (i32, i32) {
    %c0_i32 = arith.constant 0 : i32
    %c0_i32_0 = arith.constant 0 : i32
    return %c0_i32, %arg1 : i32, i32
  }
  func.func @transform_8(%arg0: i32, %arg1: i32) -> (i32, i32) {
    %c0_i32 = arith.constant 0 : i32
    %c0_i32_0 = arith.constant 0 : i32
    return %c0_i32, %arg1 : i32, i32
  }
  func.func @transform_9(%arg0: i32, %arg1: i32) -> (i32, i32) {
    %c0_i32 = arith.constant 0 : i32
    %c0_i32_0 = arith.constant 0 : i32
    return %c0_i32, %arg1 : i32, i32
  }
  func.func @transform_10(%arg0: i32, %arg1: i32) -> (i32, i32) {
    %c0_i32 = arith.constant 0 : i32
    %c0_i32_0 = arith.constant 0 : i32
    return %c0_i32, %arg1 : i32, i32
  }
  func.func @transform_11(%arg0: i32, %arg1: i32) -> (i32, i32) {
    %c0_i32 = arith.constant 0 : i32
    %c0_i32_0 = arith.constant 0 : i32
    return %c0_i32, %arg1 : i32, i32
  }
  func.func @transform_12(%arg0: i32, %arg1: i32) -> (i32, i32) {
    %c0_i32 = arith.constant 0 : i32
    %c0_i32_0 = arith.constant 0 : i32
    return %c0_i32, %arg1 : i32, i32
  }
  func.func @transform_13(%arg0: i32, %arg1: i32) -> (i32, i32) {
    %c0_i32 = arith.constant 0 : i32
    %c0_i32_0 = arith.constant 0 : i32
    return %arg1, %c0_i32 : i32, i32
  }
  func.func @transform_14(%arg0: i32, %arg1: i32) -> (i32, i32) {
    %c0_i32 = arith.constant 0 : i32
    %c0_i32_0 = arith.constant 0 : i32
    return %arg1, %c0_i32 : i32, i32
  }
  func.func @transform_15(%arg0: i32, %arg1: i32) -> (i32, i32) {
    %c0_i32 = arith.constant 0 : i32
    %c0_i32_0 = arith.constant 0 : i32
    return %arg1, %c0_i32 : i32, i32
  }
  func.func @transform_16(%arg0: i32, %arg1: i32) -> (i32, i32) {
    %c0_i32 = arith.constant 0 : i32
    %c0_i32_0 = arith.constant 0 : i32
    %c0_i32_1 = arith.constant 0 : i32
    return %c0_i32, %c0_i32_0 : i32, i32
  }
  func.func @transform_17(%arg0: i32, %arg1: i32) -> (i32, i32, i32) {
    %c0_i32 = arith.constant 0 : i32
    %c0_i32_0 = arith.constant 0 : i32
    %c0_i32_1 = arith.constant 0 : i32
    return %arg0, %c0_i32, %c0_i32_0 : i32, i32, i32
  }
}

</mosaic_0001>

<bundles_post_ra>
// kernel: tpu_custom_call.1
= control target key start
LH: loop header
LB: loop body
LE: loop exit
PB: predicated region body
PF: predicated region fallthrough
CT: control target
= control target key end

     0   :  { %s8168_s0 = inlined_call_operand.vmem [shape: bf16[2,64,32], index: 0, kind: input, shape index: {}]   ;;  %s8169_s1 = inlined_call_operand.vmem [shape: bf16[2,64,1], index: 1, kind: input, shape index: {}]   ;;  %s8170_s2 = inlined_call_operand.hbm [shape: f32[2,1,32], index: 2, kind: input, shape index: {}]   ;;  %s8171_s3 = inlined_call_operand.vmem [shape: bf16[32,32], index: 3, kind: input, shape index: {}]   ;;  %s8172_s4 = inlined_call_operand.vmem [shape: f32[1,32], index: 4, kind: input, shape index: {}]   ;;  %s8173_s5 = inlined_call_operand.vmem [shape: bf16[32,32], index: 5, kind: input, shape index: {}]   ;;  %s8174_s6 = inlined_call_operand.hbm [shape: f32[1,32], index: 6, kind: input, shape index: {}]   ;;  %s8175_s7 = inlined_call_operand.vmem [shape: bf16[32,1024], index: 7, kind: input, shape index: {}]   ;;  %s8176_s8 = inlined_call_operand.vmem [shape: f32[1,1024], index: 8, kind: input, shape index: {}]   ;;  %s8177_s9 = inlined_call_operand.hbm [shape: bf16[96,1024], index: 9, kind: input, shape index: {}]   ;;  %s8178_s10 = inlined_call_operand.vmem [shape: f32[1,1024], index: 10, kind: input, shape index: {}]   ;;  %s8179_s11 = inlined_call_operand.hbm [shape: bf16[160,1024], index: 11, kind: input, shape index: {}]   ;;  %s8180_s12 = inlined_call_operand.hbm [shape: f32[1,1024], index: 12, kind: input, shape index: {}]   ;;  %s8181_s13 = inlined_call_operand.hbm [shape: bf16[1024,128], index: 13, kind: input, shape index: {}]   ;;  %s8182_s14 = inlined_call_operand.hbm [shape: bf16[1024,128], index: 14, kind: input, shape index: {}]   ;;  %s8183_s15 = inlined_call_operand.hbm [shape: bf16[1024,128], index: 15, kind: input, shape index: {}]   ;;  %s8184_s16 = inlined_call_operand.vmem [shape: f32[1,128], index: 16, kind: input, shape index: {}]   ;;  %s8185_s17 = inlined_call_operand.hbm [shape: f32[2,64,128], index: 17, kind: output, shape index: {}]  }
   0x1   :  { %8242 = sst [smem:[#allocation90_spill]] %s8168_s0 }
   0x2   :  { %8243 = sst [smem:[#allocation91_spill]] %s8169_s1 }
   0x3   :  { %8244 = sst [smem:[#allocation92_spill]] %s8170_s2 }
   0x4   :  { %8245 = sst [smem:[#allocation93_spill]] %s8171_s3 }
   0x5   :  { %8246 = sst [smem:[#allocation94_spill]] %s8172_s4 }
   0x6   :  { %8247 = sst [smem:[#allocation95_spill]] %s8173_s5 }
   0x7   :  { %8248 = sst [smem:[#allocation96_spill]] %s8174_s6 }
   0x8   :  { %8249 = sst [smem:[#allocation97_spill]] %s8175_s7 }
   0x9   :  { %8250 = sst [smem:[#allocation98_spill]] %s8176_s8 }
   0xa   :  { %8251 = sst [smem:[#allocation99_spill]] %s8177_s9 }
   0xb   :  { %8252 = sst [smem:[#allocation100_spill]] %s8178_s10 }
   0xc   :  { %8253 = sst [smem:[#allocation101_spill]] %s8179_s11 }
   0xd   :  { %8254 = sst [smem:[#allocation102_spill]] %s8180_s12 }
   0xe   :  { %8255 = sst [smem:[#allocation103_spill]] %s8181_s13 }
   0xf   :  { %8256 = sst [smem:[#allocation104_spill]] %s8182_s14 }
  0x10   :  { %8257 = sst [smem:[#allocation105_spill]] %s8183_s15 }
  0x11   :  { %8258 = sst [smem:[#allocation106_spill]] %s8184_s16 }
  0x12   :  { %8259 = sst [smem:[#allocation107_spill]] %s8185_s17 }
  0x13   :  { %22 = vsyncpa [#allocation4], 0 }
  0x14   :  { %24 = vsyncpa [#allocation4 + $0x1], 0 }
  0x15   :  { %25 = vsyncpa [#allocation7], 0 }
  0x16   :  { %26 = vsyncpa [#allocation5], 0 }
  0x17   :  { %28 = vsyncpa [#allocation5 + $0x1], 0  ;;  %s6629_s24 = smov 0   ;;  %s6631_s25 = smov 0  }
  0x18   :  { %s6633_s26 = smov 0   ;;  %s6635_s27 = smov 0  }
  0x19   :  { %s6637_s28 = smov 0   ;;  %s6639_s29 = smov 0  }
  0x1a   :  { %s6641_s0 = smov 0   ;;  %s6643_s30 = smov 0  }
  0x1b   :  { %s6645_s18 = smov 0   ;;  %s6647_s19 = smov 0  }
  0x1c   :  { %s6649_s1 = smov 0  }
  0x1d LB: > { %8260 = sst [smem:[#allocation20_spill]] %s6481_s25  ;;  %s6685_s20 = sadd.s32 4294967295, %s6517_s1   ;;  %s6517_s1 = sphi %s6649_s1, %s34_s1   ;;  %s6513_s19 = sphi %s6647_s19, %s8497_s19   ;;  %s6509_s18 = sphi %s6645_s18, %s8504_s18   ;;  %s6505_s30 = sphi %s6643_s30, %s8495_s30   ;;  %s6501_s0 = sphi %s6641_s0, %s8503_s0   ;;  %s6497_s29 = sphi %s6639_s29, %s8502_s29   ;;  %s6493_s28 = sphi %s6637_s28, %s8501_s28   ;;  %s6489_s27 = sphi %s6635_s27, %s8500_s27   ;;  %s6485_s26 = sphi %s6633_s26, %s8499_s26   ;;  %s6481_s25 = sphi %s6631_s25, %s8498_s25   ;;  %s6477_s24 = sphi %s6629_s24, %s8492_s24  }
  0x1e   : > { %8261 = sst [smem:[#allocation21_spill]] %s6489_s27  ;;  %s5218_s21 = sadd.s32 4294967294, %s6517_s1  }
  0x1f   : > { %8262 = sst [smem:[#allocation22_spill]] %s6501_s0  ;;  %s43_s22 = sadd.s32 1, %s6509_s18 }
  0x20   : > { %8263 = sst [smem:[#allocation23_spill]] %s6505_s30  ;;  %s46_s23 = sadd.s32 1, %s6513_s19 }
  0x21   : > { %8264 = sst [smem:[#allocation24_spill]] %s6513_s19  ;;  %p44_p0 = scmp.ge.s32.totalorder %s43_s22, 2 }
  0x22   : > { %s105_s17 = sadd.s32 1, %s6497_s29  ;;  %p8193_p1 = scmp.ne.s32.totalorder %s6497_s29, %s6493_s28 }
  0x23   : > { %p113_p2 = scmp.eq.s32.totalorder %s6517_s1, 0  ;;  %s8506_s22 = smov (%p44_p0, %s43_s22), 0 }
  0x24   : > { %8265 = sst [smem:[#allocation25_spill]] %s8506_s22  ;;  %s8508_s23 = smov (!%p44_p0, %s46_s23), %s6513_s19 }
  0x25   : > { %p6702_p3 = por %p113_p2, %p8193_p1  ;;  %p8192_p4 = scmp.ne.s32.totalorder %s6493_s28, %s6489_s27 }
  0x26   : > { %p48_p5 = scmp.ge.s32.totalorder %s8508_s23, 2  ;;  %p119_p6 = scmp.eq.s32.totalorder %s6685_s20, 0 }
  0x27   : > { %s8266_s16 = scalar_select %p6702_p3, 1, 0 }
  0x28   : > { %s212_s4 = ssub.s32 %s6509_s18, %s8506_s22  ;;  %s215_s5 = sadd.s32 1, %s6485_s26 }
  0x29   : > { %s8510_s23 = smov (%p48_p5, %s8508_s23), 0  ;;  %p6719_p7 = por %p119_p6, %p8192_p4 }
  0x2a   : > { %8267 = sst [smem:[#allocation26_spill]] %s8510_s23  ;;  %p213_p8 = scmp.eq.s32.totalorder %s212_s4, 0 }
  0x2b   : > { %s8268_s3 = scalar_select %p6719_p7, 1, 0 }
  0x2c   : > { %s102_s10 = ssub.s32 %s6513_s19, %s8510_s23  ;;  %p222_p9 = scmp.ne.s32.totalorder %s6485_s26, %s6481_s25 }
  0x2d   : > { %8269 = sst [smem:[#allocation27_spill]] %s8268_s3  ;;  %p103_p10 = scmp.eq.s32.totalorder %s102_s10, 0 }
  0x2e   : > { %p280_p11 = scmp.ne.s32.totalorder %s6481_s25, %s6477_s24  ;;  %p6737_p12 = por %p222_p9, %p113_p2 }
  0x2f   : > { %s6730_s22 = scalar_select %p213_p8, %s6485_s26, %s215_s5  }
  0x30   : > { %s6733_s8 = scalar_select %p103_p10, %s6497_s29, %s105_s17  }
  0x31   : > { %8270 = sst [smem:[#allocation28_spill]] %s6730_s22  ;;  %p6743_p13 = por %p280_p11, %p119_p6 }
  0x32   : > { %8271 = sst [smem:[#allocation29_spill]] %s6733_s8  ;;  %p481_p0 = scmp.eq.s32.totalorder %s6685_s20, 3 }
  0x33   : > { %s8273_s30 = scalar_select %p6743_p13, 1, 0 }
  0x34   : > { %p487_p5 = scmp.eq.s32.totalorder %s5218_s21, 3  ;;  %p5219_p4 = scmp.ge.s32.totalorder %s6517_s1, 1 }
  0x35   : > { %8274 = sst [smem:[#allocation30_spill]] %s8273_s30  ;;  %p494_p1 = scmp.lt.s32.totalorder %s6517_s1, 5 }
  0x36   : > { %p8275_p7 = scmp.ne.s32.totalorder %s6497_s29, %s6493_s28  ;;  %p8278_p8 = scmp.ne.s32.totalorder %s6493_s28, %s6489_s27 }
  0x37   : > { %p6764_p2 = pnand %p5219_p4, %p494_p1  ;;  %s6519_s17 = smov [#allocation6]  }
  0x38   : > { %p6753_p3 = por %p481_p0, %p8275_p7  ;;  %p6760_p10 = por %p487_p5, %p8278_p8 }
  0x39   : > { %p5838_p9 = pneg %p6764_p2  ;;  %s516_s24 = sshll.u32 %s6519_s17, 4  ;;  %s517_s24 = int_to_ptr.vmem [resolvable:$true] %s516_s24 }
  0x3a   : > { %s8276_s4 = scalar_select %p6753_p3, 1, 0 }
  0x3b   : > { %s8279_s5 = scalar_select %p6760_p10, 1, 0 }
  0x3c   : > { %8277 = sst [smem:[#allocation31_spill]] %s8276_s4  ;;  %p5839_p7 = pnand %p5838_p9, %p119_p6 }
  0x3d   : > { %8280 = sst [smem:[#allocation32_spill]] %s8279_s5  ;;  %s6192_s21 = scalar_lea.vmem %s517_s24, 16 }
  0x3e   : > { %p6183_p11 = pneg %p5839_p7  ;;  %p6193_p0 = scmp.ne.s32.totalorder %s517_s24, %s6192_s21 }
  0x3f   : > { %s6199_s23 = scalar_lea.vmem %s517_s24, 32  ;;  %p6200_p8 = scmp.lt.s32.totalorder %s517_s24, %s517_s24 }
  0x40   : > { %p6195_p3 = pnand %p6193_p0, %p6183_p11  ;;  %p6201_p10 = scmp.lt.s32.totalorder %s6199_s23, %s6192_s21 }
  0x42   : > { %p6196_p5 = pneg %p6195_p3  ;;  %p6202_p1 = por %p6201_p10, %p6200_p8 }
  0x44   : > { %p6203_p4 = pnand %p6202_p1, %p6196_p5 }
  0x46   : > { %6206 = shalt.err (!%p6203_p4)
}
  0x47   : > { %s8282_s6 = sld [smem:[#allocation96_spill]]  ;;  %p5221_p13 = scmp.ge.s32.totalorder %s6517_s1, 4 }
  0x48   : > { %s546_s17 = sand.u32 (!%p5221_p13), 1, %s6517_s1   ;;  %s548_s5 = sand.u32 (!%p5221_p13), 1, %s6497_s29  }
  0x49   : > { %526 = sbr.rel (%p5221_p13) target bundleno = 189 (0xbd), region = 36  ;;  %s5222_s27 = sshll.u32 (!%p5221_p13), %s6513_s19, 4 }
  0x4a   : > { %s549_s4 = scalar_lea.vmem (!%p5221_p13), [#allocation3], %s548_s5  ;;  %s8283_s2 = sld [smem:[#allocation92_spill]] (!%p5221_p13) }
  0x4b   : > { %s556_s30 = sshll.u32 (!%p5221_p13), %s549_s4, 4  ;;  %s6782_s3 = scalar_lea.sflag (!%p5221_p13), [#allocation4], %s546_s17  ;;  %s557_s30 = int_to_ptr.vmem [resolvable:$true] %s556_s30 }
  0x4c   : > { %s6219_s8 = scalar_lea.vmem (!%p5221_p13), %s557_s30, 16  ;;  %p8284_p10 = scmp.ne.s32.totalorder (!%p5221_p13), %s8266_s16, 0 }
  0x4d   : > { %5841 = dma.hbm_to_vmem [thread:$0]  (!%p5839_p7), %s8282_s6, 16, %s517_s24, [#allocation7]  }
  0x4e   : > { %p6220_p3 = scmp.ne.s32.totalorder %s557_s30, %s6219_s8  ;;  %s6520_s22 = smov [#allocation3]  }
  0x4f   : > { %s6223_s24 = sshll.u32 %s6520_s22, 4  ;;  %s6224_s24 = int_to_ptr.vmem [resolvable:$false] %s6223_s24 }
  0x50   : > { %s554_s25 = scalar_lea.hbm %s8283_s2, %s5222_s27  ;;  %p6221_p13 = pnand %p6220_p3, %p8284_p10 }
  0x51   : > { %s6225_s6 = scalar_lea.vmem %s6224_s24, 32  ;;  %p6226_p7 = scmp.lt.s32.totalorder %s557_s30, %s6224_s24 }
  0x52   : > { %p6222_p9 = pneg %p6221_p13  ;;  %p6227_p11 = scmp.lt.s32.totalorder %s6225_s6, %s6219_s8 }
  0x54   : > { %p6228_p0 = por %p6227_p11, %p6226_p7 }
  0x56   : > { %p6229_p5 = pnand %p6228_p0, %p6222_p9 }
  0x58   : > { %6232 = shalt.err (!%p6229_p5)
}
  0x59   : > { %5820 = dma.hbm_to_vmem [thread:$0]  (%p8284_p10), %s554_s25, 16, %s557_s30, %s6782_s3  }
  0x5a   : > { %562 = sbr.rel (!%p6737_p12) target bundleno = 104 (0x68), region = 52  ;;  %s564_s27 = sand.u32 (%p6737_p12), 1, %s6485_s26  }
  0x5b   : > { %s5528_s4 = sshll.u32 (%p6737_p12), %s6509_s18, 4  ;;  %s5223_s5 = sshll.u32 (%p6737_p12), %s564_s27, 6 }
  0x5c   : > { %s8285_s7 = sld [smem:[#allocation97_spill]] (%p6737_p12)  ;;  %s566_s6 = scalar_lea.vmem (%p6737_p12), [#allocation8], %s5223_s5 }
  0x62   : > { %s569_s21 = scalar_lea.vmem %s8285_s7, %s5528_s4 }
  0x63   : > { %v582_v0 = vld [vmem:[%s569_s21] sm:$0xff]  ;;  %v584_v1 = vld [vmem:[%s569_s21 + $0x8] sm:$0xff] }
  0x64   : > { %v586_v2 = vld [vmem:[%s569_s21 + $0x20] sm:$0xff]  ;;  %583 = vst [vmem:[%s566_s6] sm:$0xff] %v582_v0  ;;  %585 = vst [vmem:[%s566_s6 + $0x8] sm:$0xff] %v584_v1  ;;  %v588_v3 = vld [vmem:[%s569_s21 + $0x28] sm:$0xff] }
  0x65   : > { %587 = vst [vmem:[%s566_s6 + $0x10] sm:$0xff] %v586_v2  ;;  %v590_v4 = vld [vmem:[%s569_s21 + $0x40] sm:$0xff]  ;;  %v592_v5 = vld [vmem:[%s569_s21 + $0x48] sm:$0xff]  ;;  %589 = vst [vmem:[%s566_s6 + $0x18] sm:$0xff] %v588_v3 }
  0x66   : > { %591 = vst [vmem:[%s566_s6 + $0x20] sm:$0xff] %v590_v4  ;;  %593 = vst [vmem:[%s566_s6 + $0x28] sm:$0xff] %v592_v5  ;;  %v594_v6 = vld [vmem:[%s569_s21 + $0x60] sm:$0xff]  ;;  %v596_v7 = vld [vmem:[%s569_s21 + $0x68] sm:$0xff] }
  0x67   : > { %595 = vst [vmem:[%s566_s6 + $0x30] sm:$0xff] %v594_v6  ;;  %597 = vst [vmem:[%s566_s6 + $0x38] sm:$0xff] %v596_v7 }
  0x68 PF: > { %s6797_s16 = sand.u32 1, %s6485_s26   ;;  %s5529_s25 = sshll.u32 %s6509_s18, 8 }
  0x69   : > { %s5814_s30 = smul.u32 192, %s6797_s16  ;;  %s8286_s9 = sld [smem:[#allocation99_spill]] }
  0x6a   : > { %s8287_s11 = sld [smem:[#allocation101_spill]]  ;;  %s5815_s21 = smul.u32 320, %s6797_s16 }
  0x6b   : > { %s616_s27 = scalar_lea.vmem [#allocation9], %s5814_s30  ;;  %s6521_s2 = smov [#allocation9]  }
  0x6c   : > { %s623_s4 = sshll.u32 %s616_s27, 4  ;;  %s6249_s7 = sshll.u32 %s6521_s2, 4  ;;  %s624_s4 = int_to_ptr.vmem [resolvable:$true] %s623_s4  ;;  %s6250_s7 = int_to_ptr.vmem [resolvable:$false] %s6249_s7 }
  0x6d   : > { %s6245_s6 = scalar_lea.vmem %s624_s4, 3072  ;;  %s6251_s19 = scalar_lea.vmem %s6250_s7, 6144 }
  0x6e   : > { %p6246_p8 = scmp.ne.s32.totalorder %s624_s4, %s6245_s6  ;;  %p6252_p3 = scmp.lt.s32.totalorder %s624_s4, %s6250_s7 }
  0x6f   : > { %s622_s24 = scalar_lea.hbm %s8286_s9, %s5529_s25  ;;  %p6253_p10 = scmp.lt.s32.totalorder %s6251_s19, %s6245_s6 }
  0x70   : > { %s6807_s23 = scalar_lea.hbm %s8287_s11, %s5529_s25  ;;  %p6247_p1 = pnand %p6246_p8, %p6737_p12 }
  0x71   : > { %p6254_p13 = por %p6253_p10, %p6252_p3 }
  0x72   : > { %p6248_p4 = pneg %p6247_p1 }
  0x74   : > { %p6255_p9 = pnand %p6254_p13, %p6248_p4 }
  0x76   : > { %6258 = shalt.err (!%p6255_p9)
}
  0x77   : > { %s6522_s30 = smov 512   ;;  %s6523_s25 = smov 256  }
  0x78   : > { %s6524_s8 = smov 16   ;;  %s5230_s22 = sshll.u32 %s6797_s16, 2 }
  0x79   : > { %5821 = dma.hbm_to_vmem [thread:$0]  (%p6737_p12), %s622_s24, 3072, %s624_s4, %s6782_s3, %s6522_s30, %s6523_s25, %s6524_s8  }
  0x7a   : > { %s645_s27 = scalar_lea.vmem [#allocation10], %s5815_s21  ;;  %s5531_s5 = sshll.u32 %s6509_s18, 6 }
  0x7b   : > { %s652_s2 = sshll.u32 %s645_s27, 4  ;;  %s6525_s19 = smov [#allocation10]   ;;  %s653_s2 = int_to_ptr.vmem [resolvable:$true] %s652_s2 }
  0x7c   : > { %s6271_s7 = scalar_lea.vmem %s653_s2, 5120  ;;  %s6275_s17 = sshll.u32 %s6525_s19, 4  ;;  %s6276_s17 = int_to_ptr.vmem [resolvable:$false] %s6275_s17 }
  0x7d   : > { %p6272_p7 = scmp.ne.s32.totalorder %s653_s2, %s6271_s7  ;;  %s6277_s6 = scalar_lea.vmem %s6276_s17, 10240 }
  0x7e   : > { %p6278_p5 = scmp.lt.s32.totalorder %s653_s2, %s6276_s17  ;;  %p6279_p8 = scmp.lt.s32.totalorder %s6277_s6, %s6271_s7 }
  0x7f   : > { %p6273_p11 = pnand %p6272_p7, %p6737_p12 }
  0x80   : > { %p6280_p1 = por %p6279_p8, %p6278_p5 }
  0x81   : > { %p6274_p0 = pneg %p6273_p11 }
  0x83   : > { %p6281_p4 = pnand %p6280_p1, %p6274_p0 }
  0x85   : > { %6284 = shalt.err (!%p6281_p4)
}
  0x86   : > { %5822 = dma.hbm_to_vmem [thread:$0]  (%p6737_p12), %s6807_s23, 5120, %s653_s2, %s6782_s3, %s6522_s30, %s6523_s25, %s6524_s8  }
  0x87   : > { %s8288_s12 = sld [smem:[#allocation102_spill]]  ;;  %s666_s27 = scalar_lea.vmem [#allocation11], %s5230_s22 }
  0x88   : > { %s674_s19 = sshll.u32 %s666_s27, 4  ;;  %s6827_s9 = sshll.u32 %s6797_s16, 8  ;;  %s675_s19 = int_to_ptr.vmem [resolvable:$true] %s674_s19 }
  0x89   : > { %s6297_s7 = scalar_lea.vmem %s675_s19, 64  ;;  %s6526_s17 = smov [#allocation11]  }
  0x8a   : > { %p6298_p3 = scmp.ne.s32.totalorder %s675_s19, %s6297_s7  ;;  %s6301_s6 = sshll.u32 %s6526_s17, 4  ;;  %s6302_s6 = int_to_ptr.vmem [resolvable:$false] %s6301_s6 }
  0x8b   : > { %s6303_s11 = scalar_lea.vmem %s6302_s6, 128  ;;  %p6304_p9 = scmp.lt.s32.totalorder %s675_s19, %s6302_s6 }
  0x8c   : > { %p6299_p10 = pnand %p6298_p3, %p6737_p12  ;;  %p6305_p7 = scmp.lt.s32.totalorder %s6303_s11, %s6297_s7 }
  0x8d   : > { %s672_s21 = scalar_lea.hbm %s8288_s12, %s5531_s5 }
  0x8e   : > { %p6300_p13 = pneg %p6299_p10  ;;  %p6306_p11 = por %p6305_p7, %p6304_p9 }
  0x90   : > { %p6307_p0 = pnand %p6306_p11, %p6300_p13 }
  0x92   : > { %6310 = shalt.err (!%p6307_p0)
}
  0x93   : > { %5823 = dma.hbm_to_vmem [thread:$0]  (%p6737_p12), %s672_s21, 64, %s675_s19, %s6782_s3  }
  0x94   : > { %s6835_s16 = sshll.u32 %s6509_s18, 12  ;;  %s8289_s13 = sld [smem:[#allocation103_spill]] }
  0x95   : > { %s685_s8 = scalar_lea.vmem [#allocation12], %s6827_s9  ;;  %s6527_s2 = smov [#allocation12]  }
  0x96   : > { %s692_s22 = sshll.u32 %s685_s8, 4  ;;  %s6327_s5 = sshll.u32 %s6527_s2, 4  ;;  %s693_s22 = int_to_ptr.vmem [resolvable:$true] %s692_s22  ;;  %s6328_s5 = int_to_ptr.vmem [resolvable:$false] %s6327_s5 }
  0x97   : > { %s6323_s11 = scalar_lea.vmem %s693_s22, 4096  ;;  %s6329_s24 = scalar_lea.vmem %s6328_s5, 8192 }
  0x98   : > { %p6324_p5 = scmp.ne.s32.totalorder %s693_s22, %s6323_s11  ;;  %p6330_p4 = scmp.lt.s32.totalorder %s693_s22, %s6328_s5 }
  0x99   : > { %p6331_p3 = scmp.lt.s32.totalorder %s6329_s24, %s6323_s11 }
  0x9a   : > { %s691_s25 = scalar_lea.hbm %s8289_s13, %s6835_s16  ;;  %p6325_p8 = pnand %p6324_p5, %p6737_p12 }
  0x9b   : > { %p6332_p10 = por %p6331_p3, %p6330_p4 }
  0x9c   : > { %p6326_p1 = pneg %p6325_p8 }
  0x9e   : > { %p6333_p13 = pnand %p6332_p10, %p6326_p1 }
  0xa0   : > { %6336 = shalt.err (!%p6333_p13)
}
  0xa1   : > { %s6528_s4 = smov 64   ;;  %s6529_s21 = smov 4  }
  0xa2   : > { %5824 = dma.hbm_to_vmem [thread:$0]  (%p6737_p12), %s691_s25, 4096, %s693_s22, %s6782_s3, %s6528_s4, %s6528_s4, %s6529_s21  }
  0xa3   : > { %s8290_s14 = sld [smem:[#allocation104_spill]]  ;;  %s706_s17 = scalar_lea.vmem [#allocation13], %s6827_s9 }
  0xa4   : > { %s713_s6 = sshll.u32 %s706_s17, 4  ;;  %s6530_s30 = smov [#allocation13]   ;;  %s714_s6 = int_to_ptr.vmem [resolvable:$true] %s713_s6 }
  0xa5   : > { %s6349_s23 = scalar_lea.vmem %s714_s6, 4096  ;;  %s6353_s8 = sshll.u32 %s6530_s30, 4  ;;  %s6354_s8 = int_to_ptr.vmem [resolvable:$false] %s6353_s8 }
  0xa6   : > { %p6350_p9 = scmp.ne.s32.totalorder %s714_s6, %s6349_s23  ;;  %s6355_s11 = scalar_lea.vmem %s6354_s8, 8192 }
  0xa7   : > { %p6356_p0 = scmp.lt.s32.totalorder %s714_s6, %s6354_s8  ;;  %p6357_p5 = scmp.lt.s32.totalorder %s6355_s11, %s6349_s23 }
  0xa8   : > { %p6351_p7 = pnand %p6350_p9, %p6737_p12 }
  0xa9   : > { %s712_s7 = scalar_lea.hbm %s8290_s14, %s6835_s16  ;;  %p6358_p8 = por %p6357_p5, %p6356_p0 }
  0xaa   : > { %p6352_p11 = pneg %p6351_p7 }
  0xac   : > { %p6359_p1 = pnand %p6358_p8, %p6352_p11 }
  0xae   : > { %6362 = shalt.err (!%p6359_p1)
}
  0xaf   : > { %5825 = dma.hbm_to_vmem [thread:$0]  (%p6737_p12), %s712_s7, 4096, %s714_s6, %s6782_s3, %s6528_s4, %s6528_s4, %s6529_s21  }
  0xb0   : > { %s8291_s15 = sld [smem:[#allocation105_spill]]  ;;  %s727_s5 = scalar_lea.vmem [#allocation14], %s6827_s9 }
  0xb1   : > { %s734_s24 = sshll.u32 %s727_s5, 4  ;;  %s6531_s19 = smov [#allocation14]   ;;  %s735_s24 = int_to_ptr.vmem [resolvable:$true] %s734_s24 }
  0xb2   : > { %s6375_s27 = scalar_lea.vmem %s735_s24, 4096  ;;  %s6379_s17 = sshll.u32 %s6531_s19, 4  ;;  %s6380_s17 = int_to_ptr.vmem [resolvable:$false] %s6379_s17 }
  0xb3   : > { %p6376_p4 = scmp.ne.s32.totalorder %s735_s24, %s6375_s27  ;;  %s6381_s23 = scalar_lea.vmem %s6380_s17, 8192 }
  0xb4   : > { %p6382_p13 = scmp.lt.s32.totalorder %s735_s24, %s6380_s17  ;;  %p6383_p9 = scmp.lt.s32.totalorder %s6381_s23, %s6375_s27 }
  0xb5   : > { %p6377_p3 = pnand %p6376_p4, %p6737_p12 }
  0xb6   : > { %s733_s2 = scalar_lea.hbm %s8291_s15, %s6835_s16  ;;  %p6384_p7 = por %p6383_p9, %p6382_p13 }
  0xb7   : > { %p6378_p10 = pneg %p6377_p3 }
  0xb9   : > { %p6385_p11 = pnand %p6384_p7, %p6378_p10 }
  0xbb   : > { %6388 = shalt.err (!%p6385_p11)
}
  0xbc   : > { %5826 = dma.hbm_to_vmem [thread:$0]  (%p6737_p12), %s733_s2, 4096, %s735_s24, %s6782_s3, %s6528_s4, %s6528_s4, %s6529_s21  }
  0xbd PF: > { %746 = sbr.rel (%p6764_p2) target bundleno = 1812 (0x714), region = 107 }
  0xc2   : > { %s8292_s9 = sld [smem:[#allocation27_spill]]  ;;  %s748_s16 = sand.u32 1, %s6685_s20  }
  0xc3   : > { %s6880_s7 = sand.u32 1, %s6493_s28   ;;  %s749_s6 = scalar_lea.sflag [#allocation4], %s748_s16 }
  0xc8   : > { %p8293_p0 = scmp.ne.s32.totalorder %s8292_s9, 0 }
  0xca   : > { %6460 = dma.done.wait (%p8293_p0), %s749_s6, 16  }
  0xcb   : > { %6462 = vsyncadd (%p8293_p0), %s749_s6, 4294967280 }
  0xcc   : > { %6464 = dma.done.wait (%p119_p6), [#allocation7], 16  }
  0xcd   : > { %6466 = vsyncadd (%p119_p6), [#allocation7], 4294967280  ;;  %s8294_s3 = sld [smem:[#allocation20_spill]] }
  0xce   : > { %s8295_s0 = sld [smem:[#allocation30_spill]] }
  0xd3   : > { %s761_s10 = sand.u32 1, %s8294_s3  }
  0xd4   : > { %s5244_s4 = sshll.u32 %s761_s10, 6  ;;  %s5816_s21 = smul.u32 192, %s761_s10 }
  0xd5   : > { %s6892_s8 = scalar_lea.vmem [#allocation8], %s5244_s4  ;;  %p8296_p12 = scmp.ne.s32.totalorder %s8295_s0, 0 }
  0xd6   : > { %s6894_s11 = scalar_lea.vmem [#allocation9], %s5816_s21 }
  0xd7   : > { %6468 = dma.done.wait (%p8296_p12), %s749_s6, 20544  }
  0xd8   : > { %6470 = vsyncadd (%p8296_p12), %s749_s6, 4294946752  ;;  %s8297_s25 = sld [smem:[#allocation23_spill]]  ;;  %s5817_s20 = smul.u32 320, %s761_s10 }
  0xd9   : > { %s8298_s22 = sld [smem:[#allocation22_spill]]  ;;  %s5245_s2 = sshll.u32 %s761_s10, 2 }
  0xda   : > { %s5246_s5 = sshll.u32 %s761_s10, 8  ;;  %s5249_s24 = sshll.u32 %s6880_s7, 6 }
  0xdb   : > { %s8299_s9 = sld [smem:[#allocation90_spill]]  ;;  %s6924_s17 = scalar_lea.vmem [#allocation10], %s5817_s20 }
  0xdc   : > { %s8300_s0 = sld [smem:[#allocation91_spill]]  ;;  %s6926_s23 = scalar_lea.vmem [#allocation11], %s5245_s2 }
  0xdd   : > { %s8301_s30 = sld [smem:[#allocation98_spill]]  ;;  %s6932_s3 = scalar_lea.vmem [#allocation14], %s5246_s5 }
  0xde   : > { %p918_p6 = scmp.lt.s32.totalorder %s8297_s25, 1  ;;  %s8302_s14 = sld [smem:[#allocation100_spill]] }
  0xdf   : > { %s5254_s27 = sshll.u32 %s8298_s22, 2  ;;  %s6934_s6 = scalar_lea.vmem [#allocation15], %s5249_s24 }
  0xe0   : > { %s8512_s25 = smov (!%p918_p6, %s8297_s25), 1  ;;  %p930_p2 = scmp.lt.s32.totalorder %s5254_s27, 7 }
  0xe1   : > { %s5535_s19 = sshll.u32 %s8512_s25, 5  ;;  %p5256_p5 = scmp.ne.s32.totalorder %s8298_s22, 0 }
  0xe2   : > { %s6907_s16 = scalar_lea.vmem %s8299_s9, %s5535_s19  ;;  %s6912_s4 = scalar_lea.vmem %s8300_s0, %s5535_s19 }
  0xe3   : > { %s8514_s27 = smov (!%p930_p2, %s5254_s27), 7  ;;  %s6928_s9 = scalar_lea.vmem [#allocation12], %s5246_s5 }
  0xe4   : > { %s932_s12 = scalar_lea.vmem %s8301_s30, %s8514_s27  ;;  %s938_s15 = scalar_lea.vmem %s8302_s14, %s8514_s27 }
  0xe5   : > { %s6930_s19 = scalar_lea.vmem [#allocation13], %s5246_s5  ;;  %949 = sbr.rel (%p5256_p5) target bundleno = 812 (0x32c), region = 147 }
  0xe6   : > { %s8303_s30 = sld [smem:[#allocation93_spill]] (!%p5256_p5)  ;;  %s8308_s14 = scalar_lea.vmem (!%p5256_p5), [#allocation3], %s6880_s7 }
  0xe7   : > { %s8305_s0 = sld [smem:[#allocation95_spill]] (!%p5256_p5) }
  0xe8   : > { %s8307_s13 = sld [smem:[#allocation94_spill]] (!%p5256_p5) }
  0xea   : > { %v960_v8 = vld [vmem:[%s6912_s4 + $0x8] sm:$0xf]  ;;  %v958_v9 = vld [vmem:[%s6912_s4] sm:$0xf]  ;;  %v6532_v11 = vmov 0   ;;  %v974_v21 = vlaneseq  ;;  %vm1113_vm0 = vcmask 261120  }
  0xeb   : > { %5950 = vset.pattern.permute.xlu1 %v6532_v11  ;;  %5949 = vset.pattern.permute.xlu0 %v6532_v11  ;;  %v961_v12 = vld [vmem:[%s6912_s4 + $0xc] sm:$0xf]  ;;  %v959_v13 = vld [vmem:[%s6912_s4 + $0x4] sm:$0xf]  ;;  %v963_v15 = vld [vmem:[%s6912_s4 + $0x14] sm:$0xf] }
  0xec   : > { %s8304_s20 = smov %s8303_s30  ;;  %v5951_v10 = vld [vmem:[%s8303_s30 + $0x8] sm:$0xff]   ;;  %992 = vperm.xlu1 %5950, %v960_v8   ;;  %968 = vperm.xlu0 %5949, %v958_v9   ;;  %v962_v16 = vld [vmem:[%s6912_s4 + $0x10] sm:$0xf]  ;;  %v965_v17 = vld [vmem:[%s6912_s4 + $0x1c] sm:$0xf]  ;;  %v975_v23 = vshrl.u32 %v974_v21, 7 }
  0xed   : > { %5790 = vmatprep.subr.bf16.mxu0 %v5951_v10  ;;  %v5953_v14 = vld [vmem:[%s8304_s20] sm:$0xff]   ;;  %v964_v18 = vld [vmem:[%s6912_s4 + $0x18] sm:$0xf]  ;;  %v6533_v19 = vmov 839922192   ;;  %s8306_s4 = smov %s8305_s0  ;;  %v5956_v61 = vld [vmem:[%s8305_s0 + $0x8] sm:$0xff]  }
  0xee   : > { %5791 = vmatpush3.bf16.msra.mxu0 %v5951_v10  ;;  %v972_v20 = vunpack.c.l.s4 %v6533_v19  ;;  %v952_v27 = vld [vmem:[%s6907_s16 + $0x8] sm:$0xf]  ;;  %v950_v30 = vld [vmem:[%s6907_s16] sm:$0xf]  ;;  %v953_v32 = vld [vmem:[%s6907_s16 + $0xc] sm:$0xf]  ;;  %5802 = vmatprep.subr.bf16.mxu1 %v5956_v61 }
  0xef   : > { %5792 = vmatprep.subr.bf16.mxu0 %v5953_v14  ;;  %v951_v34 = vld [vmem:[%s6907_s16 + $0x4] sm:$0xf]  ;;  %v955_v42 = vld [vmem:[%s6907_s16 + $0x14] sm:$0xf]  ;;  %v954_v44 = vld [vmem:[%s6907_s16 + $0x10] sm:$0xf]  ;;  %5803 = vmatpush3.bf16.msra.mxu1 %v5956_v61  ;;  %v5271_v63 = vcombine.low %v952_v27, %v953_v32 }
  0xf0   : > { %1004 = vperm.xlu1 %5950, %v961_v12   ;;  %980 = vperm.xlu0 %5949, %v959_v13   ;;  %v973_v22 = vunpack.c.0.s8 %v972_v20  ;;  %v957_v52 = vld [vmem:[%s6907_s16 + $0x1c] sm:$0xf]  ;;  %v956_v54 = vld [vmem:[%s6907_s16 + $0x18] sm:$0xf]  ;;  %v5957_v62 = vld [vmem:[%s8306_s4] sm:$0xff]   ;;  %v5272_v0 = vcombine.low %v954_v44, %v955_v42  ;;  %v5270_v1 = vcombine.low %v950_v30, %v951_v34  ;;  %vm1433_vm1 = vcmask 257024  }
  0xf1   : > { %5804 = vmatprep.subr.bf16.mxu1 %v5957_v62  ;;  %v5273_v2 = vcombine.low %v956_v54, %v957_v52  ;;  %v5257_v3 = vld [vmem:[%s8307_s13] ss:$0 sm:$0xff] }
  0xf2   : > { %5793 = vmatpush3.bf16.msra.mxu0 %v5953_v14  ;;  %v976_v24 = vsub.s32 %v973_v22, %v975_v23  ;;  %5806 = vmatprep.mubr.msk.bf16.mxu1 %vm1113_vm0, %v5270_v1  ;;  %v5268_v5 = vld [vmem:[%s8308_s14] ss:$0 sm:$0xff] }
  0xf3   : > { %5805 = vmatpush3.bf16.msra.mxu1 %v5957_v62 }
  0xf4   : > { %1028 = vperm.xlu1 %5950, %v963_v15   ;;  %1016 = vperm.xlu0 %5949, %v962_v16  }
  0xf6   : > { %5807 = vmatmul.mubr.msk.bf16.vlgmr.msra.gmra.mxu1 %vm1113_vm0, %v5271_v63 }
  0xf7   : > { %5810 = vmatprep.mubr.msk.bf16.mxu1 %vm1113_vm0, %v5272_v0 }
  0xf8   : > { %1052 = vperm.xlu1 %5950, %v965_v17   ;;  %1040 = vperm.xlu0 %5949, %v964_v18  }
  0xfe   : > { %5811 = vmatmul.mubr.msk.bf16.gmra.mxu1 %vm1113_vm0, %v5273_v2 }
 0x167   : > { %v993_v25 = vpop.permute.xlu1 %992  ;;  %v969_v26 = vpop.permute.xlu0 %968 }
 0x168   : > { %v1001_v28 = vrot.slane %v993_v25, %v976_v24  ;;  %v977_v29 = vrot.slane %v969_v26, %v976_v24 }
 0x16a   : > { %v1064_v37 = vmul.bf16 %v1001_v28, %v952_v27  ;;  %v1062_v38 = vmul.bf16 %v977_v29, %v950_v30 }
 0x16b   : > { %v1005_v31 = vpop.permute.xlu1 %1004  ;;  %v981_v33 = vpop.permute.xlu0 %980 }
 0x16c   : > { %v1013_v35 = vrot.slane %v1005_v31, %v976_v24  ;;  %v989_v36 = vrot.slane %v981_v33, %v976_v24 }
 0x16e   : > { %v1065_v39 = vmul.bf16 %v1013_v35, %v953_v32  ;;  %v1063_v40 = vmul.bf16 %v989_v36, %v951_v34 }
 0x16f   : > { %v1029_v41 = vpop.permute.xlu1 %1028  ;;  %v1017_v43 = vpop.permute.xlu0 %1016 }
 0x170   : > { %v5259_v45 = vcombine.low %v1064_v37, %v1065_v39  ;;  %v1037_v46 = vrot.slane %v1029_v41, %v976_v24  ;;  %v1025_v47 = vrot.slane %v1017_v43, %v976_v24  ;;  %v5258_v48 = vcombine.low %v1062_v38, %v1063_v40 }
 0x171   : > { %v6534_v37 = vmov 0.0  }
 0x172   : > { %v1067_v49 = vmul.bf16 %v1037_v46, %v955_v42  ;;  %v1066_v50 = vmul.bf16 %v1025_v47, %v954_v44  ;;  %5794 = vmatprep.mubr.msk.bf16.mxu0 %vm1113_vm0, %v5258_v48  ;;  %1427 = vst.msk [vmem:[#allocation2 + $0x10] sm:$0xff] %vm1113_vm0, %v6534_v37  ;;  %1428 = vst.msk [vmem:[#allocation2 + $0x18] sm:$0xff] %vm1113_vm0, %v6534_v37 }
 0x173   : > { %v1053_v51 = vpop.permute.xlu1 %1052  ;;  %v1041_v53 = vpop.permute.xlu0 %1040  ;;  %5795 = vmatmul.mubr.msk.bf16.vlgmr.msra.gmra.mxu0 %vm1113_vm0, %v5259_v45  ;;  %1425 = vst.msk [vmem:[#allocation2] sm:$0xff] %vm1113_vm0, %v6534_v37  ;;  %1426 = vst.msk [vmem:[#allocation2 + $0x8] sm:$0xff] %vm1113_vm0, %v6534_v37 }
 0x174   : > { %v5260_v55 = vcombine.low %v1066_v50, %v1067_v49  ;;  %v1061_v56 = vrot.slane %v1053_v51, %v976_v24  ;;  %v1049_v57 = vrot.slane %v1041_v53, %v976_v24  ;;  %1429 = vst.msk [vmem:[#allocation2 + $0x20] sm:$0xff] %vm1113_vm0, %v6534_v37  ;;  %1430 = vst.msk [vmem:[#allocation2 + $0x28] sm:$0xff] %vm1113_vm0, %v6534_v37 }
 0x175   : > { %1431 = vst.msk [vmem:[#allocation2 + $0x30] sm:$0xff] %vm1113_vm0, %v6534_v37  ;;  %1432 = vst.msk [vmem:[#allocation2 + $0x38] sm:$0xff] %vm1113_vm0, %v6534_v37 }
 0x176   : > { %v1069_v58 = vmul.bf16 %v1061_v56, %v957_v52  ;;  %v1068_v59 = vmul.bf16 %v1049_v57, %v956_v54  ;;  %5798 = vmatprep.mubr.msk.bf16.mxu0 %vm1113_vm0, %v5260_v55  ;;  %1434 = vst.msk [vmem:[#allocation2 + $0x40] sm:$0xf] %vm1433_vm1, %v6534_v37 }
 0x178   : > { %v5261_v60 = vcombine.low %v1068_v59, %v1069_v58 }
 0x17b   : > { %5799 = vmatmul.mubr.msk.bf16.gmra.mxu0 %vm1113_vm0, %v5261_v60 }
 0x233   : > { %v5796_v4 = vpop.f32.mrf.mxu0 }
 0x234   : > { %v1169_v6 = vadd.f32 %v5796_v4, %v5257_v3 }
 0x235   : > { %v1160_v7 = vpop.f32.mrf.mxu0 }
 0x236   : > { %v1161_v8 = vadd.f32 %v5257_v3, %v1160_v7  ;;  %v1200_v9 = vmul.f32 %v5268_v5, %v1169_v6 }
 0x237   : > { %v5797_v10 = vpop.f32.mrf.mxu0 }
 0x238   : > { %v1172_v11 = vadd.f32 %v5797_v10, %v5257_v3  ;;  %v1212_v12 = vsel %vm1113_vm0, %v1200_v9, 0.0  ;;  %v1198_v13 = vmul.f32 %v5268_v5, %v1161_v8 }
 0x239   : > { %1213 = vadd.xlane.f32.xlu0 %v1212_v12  ;;  %v1163_v14 = vpop.f32.mrf.mxu0 }
 0x23a   : > { %v1164_v15 = vadd.f32 %v5257_v3, %v1163_v14  ;;  %v1206_v17 = vsel %vm1113_vm0, %v1198_v13, 0.0  ;;  %v1201_v19 = vmul.f32 %v5268_v5, %v1172_v11 }
 0x23b   : > { %v5800_v16 = vpop.f32.mrf.mxu0 }
 0x23c   : > { %v1199_v18 = vmul.f32 %v5268_v5, %v1164_v15  ;;  %v1185_v21 = vadd.f32 %v5800_v16, %v5257_v3  ;;  %v1215_v25 = vsel %vm1113_vm0, %v1201_v19, 0.0 }
 0x23d   : > { %v1176_v20 = vpop.f32.mrf.mxu0  ;;  %1207 = vadd.xlane.f32.xlu0 %v1206_v17 }
 0x23e   : > { %v1177_v22 = vadd.f32 %v5257_v3, %v1176_v20  ;;  %v1209_v23 = vsel %vm1113_vm0, %v1199_v18, 0.0  ;;  %v1204_v31 = vmul.f32 %v5268_v5, %v1185_v21 }
 0x23f   : > { %v5801_v24 = vpop.f32.mrf.mxu0  ;;  %1210 = vadd.xlane.f32.xlu1 %v1209_v23 }
 0x240   : > { %v1202_v26 = vmul.f32 %v5268_v5, %v1177_v22  ;;  %v1188_v28 = vadd.f32 %v5801_v24, %v5257_v3  ;;  %v1224_v33 = vsel %vm1113_vm0, %v1204_v31, 0.0 }
 0x241   : > { %v1179_v27 = vpop.f32.mrf.mxu0  ;;  %1216 = vadd.xlane.f32.xlu0 %v1215_v25 }
 0x242   : > { %v1180_v29 = vadd.f32 %v5257_v3, %v1179_v27  ;;  %v1218_v30 = vsel %vm1113_vm0, %v1202_v26, 0.0  ;;  %v1205_v35 = vmul.f32 %v5268_v5, %v1188_v28 }
 0x243   : > { %1219 = vadd.xlane.f32.xlu1 %v1218_v30  ;;  %v5808_v30 = vpop.f32.mrf.mxu1 }
 0x244   : > { %v1203_v32 = vmul.f32 %v5268_v5, %v1180_v29  ;;  %v1227_v36 = vsel %vm1113_vm0, %v1205_v35, 0.0 }
 0x245   : > { %v1386_v35 = vpop.f32.mrf.mxu1 }
 0x246   : > { %v1221_v34 = vsel %vm1113_vm0, %v1203_v32, 0.0 }
 0x247   : > { %1225 = vadd.xlane.f32.xlu1 %v1224_v33  ;;  %1222 = vadd.xlane.f32.xlu0 %v1221_v34 }
 0x24b   : > { %1228 = vadd.xlane.f32.xlu0 %v1227_v36 }
 0x2c2   : > { %v1214_v38 = vpop.xlane.xlu0 %1213 }
 0x2c3   : > { %v1232_v49 = vmul.f32 0.01767767, %v1214_v38  ;;  %v5809_v38 = vpop.f32.mrf.mxu1 }
 0x2c6   : > { %v1208_v39 = vpop.xlane.xlu0 %1207 }
 0x2c7   : > { %v1230_v51 = vmul.f32 0.01767767, %v1208_v39 }
 0x2c8   : > { %v1211_v40 = vpop.xlane.xlu1 %1210 }
 0x2c9   : > { %v1231_v46 = vmul.f32 0.01767767, %v1211_v40 }
 0x2ca   : > { %v1217_v41 = vpop.xlane.xlu0 %1216 }
 0x2cb   : > { %v1233_v52 = vmul.f32 0.01767767, %v1217_v41  ;;  %v1389_v41 = vpop.f32.mrf.mxu1 }
 0x2cc   : > { %v1220_v42 = vpop.xlane.xlu1 %1219 }
 0x2cd   : > { %v1234_v47 = vmul.f32 0.01767767, %v1220_v42 }
 0x2cf   : > { %v1238_v55 = vmax.f32 %v1230_v51, %v1234_v47 }
 0x2d0   : > { %v1226_v43 = vpop.xlane.xlu1 %1225  ;;  %v1223_v44 = vpop.xlane.xlu0 %1222 }
 0x2d1   : > { %v1235_v45 = vmul.f32 0.01767767, %v1223_v44  ;;  %v1236_v48 = vmul.f32 0.01767767, %v1226_v43  ;;  %v5812_v44 = vpop.f32.mrf.mxu1 }
 0x2d3   : > { %v1239_v53 = vmax.f32 %v1231_v46, %v1235_v45  ;;  %v1240_v56 = vmax.f32 %v1232_v49, %v1236_v48 }
 0x2d4   : > { %v1229_v50 = vpop.xlane.xlu0 %1228 }
 0x2d5   : > { %v1237_v54 = vmul.f32 0.01767767, %v1229_v50  ;;  %v1242_v58 = vmax.f32 %v1238_v55, %v1239_v53 }
 0x2d7   : > { %v1241_v57 = vmax.f32 %v1233_v52, %v1237_v54 }
 0x2d9   : > { %v1243_v59 = vmax.f32 %v1240_v56, %v1241_v57 }
 0x2db   : > { %v1244_v60 = vmax.f32 %v1242_v58, %v1243_v59 }
 0x2dd   : > { %v1245_v61 = vrot.slane %v1244_v60, 4 }
 0x2df   : > { %v1246_v62 = vmax.f32 %v1244_v60, %v1245_v61 }
 0x2e1   : > { %v1247_v63 = vrot.slane %v1246_v62, 2 }
 0x2e3   : > { %v1248_v0 = vmax.f32 %v1246_v62, %v1247_v63 }
 0x2e5   : > { %v1249_v1 = vrot.slane %v1248_v0, 1 }
 0x2e7   : > { %v1250_v2 = vmax.f32 %v1248_v0, %v1249_v1 }
 0x2e9   : > { %v1251_v3 = vsub.f32 %v1230_v51, %v1250_v2  ;;  %v1252_v4 = vsub.f32 %v1231_v46, %v1250_v2  ;;  %v1253_v5 = vsub.f32 %v1232_v49, %v1250_v2  ;;  %v1254_v6 = vsub.f32 %v1233_v52, %v1250_v2 }
 0x2ea   : > { %v1255_v9 = vsub.f32 %v1234_v47, %v1250_v2  ;;  %v1256_v11 = vsub.f32 %v1235_v45, %v1250_v2  ;;  %v1257_v13 = vsub.f32 %v1236_v48, %v1250_v2  ;;  %v1258_v15 = vsub.f32 %v1237_v54, %v1250_v2  ;;  %v1402_v45 = vpop.f32.mrf.mxu1  ;;  %v5269_v47 = vld [vmem:[#allocation6] ss:$0 sm:$0xff] }
 0x2eb   : > { %v1259_v7 = vmul.f32 1.442695, %v1251_v3  ;;  %v1261_v8 = vmul.f32 1.442695, %v1252_v4  ;;  %v1263_v10 = vmul.f32 1.442695, %v1253_v5  ;;  %v1395_v49 = vadd.f32 %v5808_v30, %v5269_v47 }
 0x2ec   : > { %v1265_v12 = vmul.f32 1.442695, %v1254_v6  ;;  %v1267_v14 = vmul.f32 1.442695, %v1255_v9  ;;  %v1269_v16 = vmul.f32 1.442695, %v1256_v11  ;;  %v5813_v46 = vpop.f32.mrf.mxu1  ;;  %v1387_v50 = vadd.f32 %v5269_v47, %v1386_v35 }
 0x2ed   : > { %5959 = vpow2.f32 %v1259_v7  ;;  %v1271_v17 = vmul.f32 1.442695, %v1257_v13  ;;  %v1273_v18 = vmul.f32 1.442695, %v1258_v15  ;;  %v1398_v51 = vadd.f32 %v5809_v38, %v5269_v47 }
 0x2ee   : > { %5961 = vpow2.f32 %v1261_v8  ;;  %v1405_v48 = vpop.f32.mrf.mxu1  ;;  %v1390_v52 = vadd.f32 %v5269_v47, %v1389_v41  ;;  %v1411_v54 = vadd.f32 %v5812_v44, %v5269_v47  ;;  %v1403_v55 = vadd.f32 %v5269_v47, %v1402_v45 }
 0x2ef   : > { %5963 = vpow2.f32 %v1263_v10  ;;  %v1414_v56 = vadd.f32 %v5813_v46, %v5269_v47  ;;  %v1406_v57 = vadd.f32 %v5269_v47, %v1405_v48 }
 0x2f0   : > { %5965 = vpow2.f32 %v1265_v12 }
 0x2f1   : > { %5967 = vpow2.f32 %v1267_v14 }
 0x2f2   : > { %5969 = vpow2.f32 %v1269_v16 }
 0x2f3   : > { %5971 = vpow2.f32 %v1271_v17 }
 0x2f4   : > { %5973 = vpow2.f32 %v1273_v18 }
 0x2fa   : > { %v5960_v19 = vpop.eup %5959 }
 0x2fb   : > { %v5962_v20 = vpop.eup %5961 }
 0x2fc   : > { %v1275_v21 = vadd.f32 %v5962_v20, %v5960_v19  ;;  %v5964_v22 = vpop.eup %5963 }
 0x2fd   : > { %v5966_v24 = vpop.eup %5965 }
 0x2fe   : > { %v1276_v23 = vadd.f32 %v5964_v22, %v1275_v21  ;;  %v5968_v26 = vpop.eup %5967 }
 0x2ff   : > { %v5970_v28 = vpop.eup %5969 }
 0x300   : > { %v1277_v25 = vadd.f32 %v5966_v24, %v1276_v23  ;;  %v5972_v31 = vpop.eup %5971 }
 0x301   : > { %v5974_v33 = vpop.eup %5973 }
 0x302   : > { %v1278_v27 = vadd.f32 %v5968_v26, %v1277_v25 }
 0x304   : > { %v1279_v29 = vadd.f32 %v5970_v28, %v1278_v27 }
 0x306   : > { %v1280_v32 = vadd.f32 %v5972_v31, %v1279_v29 }
 0x308   : > { %v1281_v34 = vadd.f32 %v5974_v33, %v1280_v32 }
 0x30a   : > { %v1282_v36 = vrot.slane %v1281_v34, 4 }
 0x30c   : > { %v1283_v37 = vadd.f32 %v1282_v36, %v1281_v34 }
 0x30e   : > { %v1284_v39 = vrot.slane %v1283_v37, 2 }
 0x310   : > { %v1285_v40 = vadd.f32 %v1284_v39, %v1283_v37 }
 0x312   : > { %v1286_v42 = vrot.slane %v1285_v40, 1 }
 0x314   : > { %v1287_v43 = vadd.f32 %v1286_v42, %v1285_v40 }
 0x316   : > { %5975 = vrcp.f32 %v1287_v43 }
 0x323   : > { %v5976_v53 = vpop.eup %5975 }
 0x324   : > { %v1291_v58 = vmul.f32 %v5976_v53, %v5964_v22  ;;  %v1289_v59 = vmul.f32 %v5976_v53, %v5960_v19  ;;  %v1292_v60 = vmul.f32 %v5976_v53, %v5966_v24  ;;  %v1290_v61 = vmul.f32 %v5976_v53, %v5962_v20 }
 0x325   : > { %v1295_v62 = vmul.f32 %v5976_v53, %v5972_v31  ;;  %v1293_v63 = vmul.f32 %v5976_v53, %v5968_v26  ;;  %v1296_v0 = vmul.f32 %v5976_v53, %v5974_v33  ;;  %v1294_v1 = vmul.f32 %v5976_v53, %v5970_v28 }
 0x326   : > { %v1419_v2 = vmul.f32 %v1395_v49, %v1291_v58  ;;  %v1417_v3 = vmul.f32 %v1387_v50, %v1289_v59  ;;  %v1420_v4 = vmul.f32 %v1398_v51, %v1292_v60  ;;  %v1418_v5 = vmul.f32 %v1390_v52, %v1290_v61 }
 0x327   : > { %v1423_v6 = vmul.f32 %v1411_v54, %v1295_v62  ;;  %v1421_v7 = vmul.f32 %v1403_v55, %v1293_v63  ;;  %v1424_v8 = vmul.f32 %v1414_v56, %v1296_v0  ;;  %v1422_v9 = vmul.f32 %v1406_v57, %v1294_v1 }
 0x328   : > { %1437 = vst.msk [vmem:[#allocation2 + $0x12] sm:$0xff] %vm1113_vm0, %v1419_v2  ;;  %1435 = vst.msk [vmem:[#allocation2 + $0x2] sm:$0xff] %vm1113_vm0, %v1417_v3 }
 0x329   : > { %1438 = vst.msk [vmem:[#allocation2 + $0x1a] sm:$0xff] %vm1113_vm0, %v1420_v4  ;;  %1436 = vst.msk [vmem:[#allocation2 + $0xa] sm:$0xff] %vm1113_vm0, %v1418_v5 }
 0x32a   : > { %1441 = vst.msk [vmem:[#allocation2 + $0x32] sm:$0xff] %vm1113_vm0, %v1423_v6  ;;  %1439 = vst.msk [vmem:[#allocation2 + $0x22] sm:$0xff] %vm1113_vm0, %v1421_v7 }
 0x32b   : > { %1442 = vst.msk [vmem:[#allocation2 + $0x3a] sm:$0xff] %vm1113_vm0, %v1424_v8  ;;  %1440 = vst.msk [vmem:[#allocation2 + $0x2a] sm:$0xff] %vm1113_vm0, %v1422_v9 }
 0x32c PF: > { %v5977_v10 = vld [vmem:[%s6892_s8 + $0x24] ss:$16 sps:$4 sm:$0xff]   ;;  %v5979_v11 = vld [vmem:[%s6892_s8 + $0x2c] ss:$16 sps:$4 sm:$0xff]   ;;  %v8209_v12 = vmov 0   ;;  %vm1525_vm2 = vcmask 261120  }
 0x32d   : > { %1570 = vmatprep.mubr.bf16.mxu0 %v8209_v12  ;;  %1643 = vmatprep.mubr.bf16.mxu1 %v8209_v12  ;;  %v5981_v13 = vld [vmem:[%s6892_s8 + $0x20] ss:$16 sps:$4 sm:$0xff]   ;;  %v5982_v14 = vld [vmem:[%s6892_s8 + $0x28] ss:$16 sps:$4 sm:$0xff]   ;;  %v5983_v15 = vld [vmem:[%s6892_s8 + $0x4] ss:$16 sps:$4 sm:$0xff]  }
 0x32e   : > { %1550 = vmatprep.subr.bf16.mxu0 %v5977_v10  ;;  %1623 = vmatprep.subr.bf16.mxu1 %v5979_v11  ;;  %v5985_v16 = vld [vmem:[%s6892_s8 + $0xc] ss:$16 sps:$4 sm:$0xff]   ;;  %v5987_v17 = vld [vmem:[%s6892_s8] ss:$16 sps:$4 sm:$0xff]   ;;  %v5988_v18 = vld [vmem:[%s6892_s8 + $0x8] ss:$16 sps:$4 sm:$0xff]  }
 0x32f   : > { %1551 = vmatpush1.bf16.msra.mxu0 %v5981_v13  ;;  %1624 = vmatpush1.bf16.msra.mxu1 %v5982_v14  ;;  %v1443_v19 = vld [vmem:[#allocation2 + $0x2] sm:$0xff]  ;;  %v5989_v23 = vld [vmem:[%s6894_s11 + $0x60] ss:$16 sps:$4 sm:$0xff]   ;;  %v1445_v26 = vld [vmem:[#allocation2 + $0x12] sm:$0xff] }
 0x330   : > { %1552 = vmatprep.subr.bf16.mxu0 %v5983_v15  ;;  %v1444_v20 = vld [vmem:[#allocation2 + $0xa] sm:$0xff]  ;;  %1625 = vmatprep.subr.bf16.mxu1 %v5985_v16  ;;  %v5992_v24 = vld [vmem:[%s6894_s11 + $0x68] ss:$16 sps:$4 sm:$0xff]   ;;  %v1446_v27 = vld [vmem:[#allocation2 + $0x1a] sm:$0xff] }
 0x331   : > { %v7014_v21 = vpack.c.bf16 %v1444_v20, %v1443_v19  ;;  %v5991_v22 = vld [vmem:[%s6894_s11 + $0x64] ss:$16 sps:$4 sm:$0xff]   ;;  %v5994_v25 = vld [vmem:[%s6894_s11 + $0x6c] ss:$16 sps:$4 sm:$0xff]   ;;  %v5995_v29 = vld [vmem:[%s6894_s11 + $0x40] ss:$16 sps:$4 sm:$0xff]   ;;  %v7031_v33 = vpack.c.bf16 %v1446_v27, %v1445_v26 }
 0x332   : > { %v5997_v28 = vld [vmem:[%s6894_s11 + $0x44] ss:$16 sps:$4 sm:$0xff]   ;;  %v5998_v30 = vld [vmem:[%s6894_s11 + $0x48] ss:$16 sps:$4 sm:$0xff]   ;;  %v6000_v31 = vld [vmem:[%s6894_s11 + $0x4c] ss:$16 sps:$4 sm:$0xff]  }
 0x333   : > { %8309 = vst [vmem:[#allocation33_spill] sm:$0xff] %v7014_v21  ;;  %1553 = vmatpush1.bf16.msra.mxu0 %v5987_v17  ;;  %1626 = vmatpush1.bf16.msra.mxu1 %v5988_v18  ;;  %v6003_v32 = vld [vmem:[%s6894_s11 + $0x24] ss:$16 sps:$4 sm:$0xff]   ;;  %8310 = vst [vmem:[#allocation34_spill] sm:$0xff] %v7031_v33  ;;  %v6006_v34 = vld [vmem:[%s6894_s11 + $0x2c] ss:$16 sps:$4 sm:$0xff]  }
 0x334   : > { %1876 = vmatprep.subr.bf16.mxu0 %v5991_v22  ;;  %1949 = vmatprep.subr.bf16.mxu1 %v5994_v25  ;;  %v1447_v35 = vld [vmem:[#allocation2 + $0x22] sm:$0xff]  ;;  %v1448_v36 = vld [vmem:[#allocation2 + $0x2a] sm:$0xff]  ;;  %v1449_v38 = vld [vmem:[#allocation2 + $0x32] sm:$0xff] }
 0x335   : > { %v7040_v37 = vpack.c.bf16 %v1448_v36, %v1447_v35  ;;  %v1450_v39 = vld [vmem:[#allocation2 + $0x3a] sm:$0xff]  ;;  %v6004_v42 = vld [vmem:[%s6894_s11 + $0x28] ss:$16 sps:$4 sm:$0xff]   ;;  %v1797_v50 = vld [vmem:[#allocation2 + $0x9] sm:$0xff] }
 0x336   : > { %5288 = vmatmul.mubr.msk.bf16.vlgmr.msra.gmra.mxu0 %vm1525_vm2, %v7014_v21  ;;  %5292 = vmatmul.mubr.msk.bf16.vlgmr.msra.gmra.mxu1 %vm1525_vm2, %v7014_v21  ;;  %v7048_v40 = vpack.c.bf16 %v1450_v39, %v1449_v38  ;;  %v6001_v41 = vld [vmem:[%s6894_s11 + $0x20] ss:$16 sps:$4 sm:$0xff]   ;;  %v6009_v43 = vld [vmem:[%s6894_s11 + $0x4] ss:$16 sps:$4 sm:$0xff]   ;;  %v6012_v44 = vld [vmem:[%s6894_s11 + $0xc] ss:$16 sps:$4 sm:$0xff]  }
 0x337   : > { %1877 = vmatpush1.bf16.msra.mxu0 %v5989_v23  ;;  %1950 = vmatpush1.bf16.msra.mxu1 %v5992_v24  ;;  %8311 = vst [vmem:[#allocation35_spill] sm:$0xff] %v7040_v37  ;;  %v6007_v45 = vld [vmem:[%s6894_s11] ss:$16 sps:$4 sm:$0xff]   ;;  %v6010_v46 = vld [vmem:[%s6894_s11 + $0x8] ss:$16 sps:$4 sm:$0xff]  }
 0x338   : > { %1580 = vmatprep.mubr.bf16.mxu0 %v8209_v12  ;;  %1653 = vmatprep.mubr.bf16.mxu1 %v8209_v12  ;;  %8312 = vst [vmem:[#allocation36_spill] sm:$0xff] %v7048_v40  ;;  %v6015_v47 = vld [vmem:[%s6894_s11 + $0xa4] ss:$16 sps:$4 sm:$0xff]   ;;  %v6018_v48 = vld [vmem:[%s6894_s11 + $0xac] ss:$16 sps:$4 sm:$0xff]  }
 0x339   : > { %1878 = vmatprep.subr.bf16.mxu0 %v5997_v28  ;;  %1951 = vmatprep.subr.bf16.mxu1 %v6000_v31  ;;  %v1796_v49 = vld [vmem:[#allocation2 + $0x1] sm:$0xff]  ;;  %v6013_v51 = vld [vmem:[%s6894_s11 + $0xa0] ss:$16 sps:$4 sm:$0xff]   ;;  %v1798_v56 = vld [vmem:[#allocation2 + $0x11] sm:$0xff] }
 0x33a   : > { %v6016_v52 = vld [vmem:[%s6894_s11 + $0xa8] ss:$16 sps:$4 sm:$0xff]   ;;  %v7090_v53 = vpack.c.bf16 %v1797_v50, %v1796_v49  ;;  %v6021_v54 = vld [vmem:[%s6894_s11 + $0x84] ss:$16 sps:$4 sm:$0xff]   ;;  %v6024_v55 = vld [vmem:[%s6894_s11 + $0x8c] ss:$16 sps:$4 sm:$0xff]  }
 0x33b   : > { %1879 = vmatpush1.bf16.msra.mxu0 %v5995_v29  ;;  %1952 = vmatpush1.bf16.msra.mxu1 %v5998_v30  ;;  %v1799_v57 = vld [vmem:[#allocation2 + $0x19] sm:$0xff]  ;;  %v6022_v59 = vld [vmem:[%s6894_s11 + $0x88] ss:$16 sps:$4 sm:$0xff]   ;;  %v1801_v62 = vld [vmem:[#allocation2 + $0x29] sm:$0xff] }
 0x33c   : > { %2074 = vmatprep.subr.bf16.mxu0 %v6003_v32  ;;  %2147 = vmatprep.subr.bf16.mxu1 %v6006_v34  ;;  %8313 = vst [vmem:[#allocation37_spill] sm:$0xff] %v7090_v53  ;;  %v6019_v58 = vld [vmem:[%s6894_s11 + $0x80] ss:$16 sps:$4 sm:$0xff]   ;;  %v7102_v60 = vpack.c.bf16 %v1799_v57, %v1798_v56  ;;  %v1800_v61 = vld [vmem:[#allocation2 + $0x21] sm:$0xff]  ;;  %v1802_v0 = vld [vmem:[#allocation2 + $0x31] sm:$0xff] }
 0x33d   : > { %v7110_v63 = vpack.c.bf16 %v1801_v62, %v1800_v61  ;;  %v1803_v1 = vld [vmem:[#allocation2 + $0x39] sm:$0xff]  ;;  %v2208_v3 = vld [vmem:[#allocation2 + $0x3] sm:$0xff]  ;;  %v2209_v4 = vld [vmem:[#allocation2 + $0xb] sm:$0xff] }
 0x33e   : > { %5289 = vmatmul.mubr.msk.bf16.gmra.mxu0 %vm1525_vm2, %v7031_v33  ;;  %5293 = vmatmul.mubr.msk.bf16.gmra.mxu1 %vm1525_vm2, %v7031_v33  ;;  %8314 = vst [vmem:[#allocation38_spill] sm:$0xff] %v7102_v60  ;;  %v7118_v2 = vpack.c.bf16 %v1803_v1, %v1802_v0  ;;  %v7126_v5 = vpack.c.bf16 %v2209_v4, %v2208_v3  ;;  %v2210_v6 = vld [vmem:[#allocation2 + $0x13] sm:$0xff]  ;;  %v2211_v7 = vld [vmem:[#allocation2 + $0x1b] sm:$0xff]  ;;  %v2212_v9 = vld [vmem:[#allocation2 + $0x23] sm:$0xff] }
 0x33f   : > { %1590 = vmatprep.mubr.bf16.mxu0 %v8209_v12  ;;  %1663 = vmatprep.mubr.bf16.mxu1 %v8209_v12  ;;  %8315 = vst [vmem:[#allocation39_spill] sm:$0xff] %v7110_v63  ;;  %v7134_v8 = vpack.c.bf16 %v2211_v7, %v2210_v6  ;;  %v2213_v10 = vld [vmem:[#allocation2 + $0x2b] sm:$0xff]  ;;  %v2214_v13 = vld [vmem:[#allocation2 + $0x33] sm:$0xff]  ;;  %v2215_v14 = vld [vmem:[#allocation2 + $0x3b] sm:$0xff] }
 0x340   : > { %8316 = vst [vmem:[#allocation40_spill] sm:$0xff] %v7118_v2  ;;  %8317 = vst [vmem:[#allocation41_spill] sm:$0xff] %v7126_v5  ;;  %v7142_v11 = vpack.c.bf16 %v2213_v10, %v2212_v9  ;;  %v7150_v15 = vpack.c.bf16 %v2215_v14, %v2214_v13  ;;  %v6025_v16 = vld [vmem:[%s6930_s19 + $0x78] sm:$0xff]   ;;  %v6029_v20 = vld [vmem:[%s6930_s19 + $0x70] sm:$0xff]  }
 0x341   : > { %8318 = vst [vmem:[#allocation42_spill] sm:$0xff] %v7134_v8  ;;  %v6026_v17 = vld [vmem:[%s6930_s19 + $0xf8] sm:$0xff]   ;;  %v6030_v22 = vld [vmem:[%s6930_s19 + $0xf0] sm:$0xff]   ;;  %v6033_v25 = vld [vmem:[%s6930_s19 + $0x68] sm:$0xff]  }
 0x342   : > { %8319 = vst [vmem:[#allocation43_spill] sm:$0xff] %v7142_v11  ;;  %8320 = vst [vmem:[#allocation44_spill] sm:$0xff] %v7150_v15  ;;  %v6027_v18 = vld [vmem:[%s6930_s19 + $0x38] sm:$0xff]   ;;  %v6031_v23 = vld [vmem:[%s6930_s19 + $0x30] sm:$0xff]  }
 0x343   : > { %v6028_v19 = vld [vmem:[%s6930_s19 + $0xb8] sm:$0xff]   ;;  %v6032_v24 = vld [vmem:[%s6930_s19 + $0xb0] sm:$0xff]   ;;  %v6034_v26 = vld [vmem:[%s6930_s19 + $0xe8] sm:$0xff]  }
 0x344   : > { %v6035_v27 = vld [vmem:[%s6930_s19 + $0x28] sm:$0xff]   ;;  %v6037_v29 = vld [vmem:[%s6930_s19 + $0x60] sm:$0xff]   ;;  %v6041_v34 = vld [vmem:[%s6930_s19 + $0x58] sm:$0xff]  }
 0x345   : > { %v6036_v28 = vld [vmem:[%s6930_s19 + $0xa8] sm:$0xff]   ;;  %v6038_v30 = vld [vmem:[%s6930_s19 + $0xe0] sm:$0xff]   ;;  %v6042_v35 = vld [vmem:[%s6930_s19 + $0xd8] sm:$0xff]  }
 0x346   : > { %5290 = vmatmul.mubr.msk.bf16.gmra.mxu0 %vm1525_vm2, %v7040_v37  ;;  %5294 = vmatmul.mubr.msk.bf16.gmra.mxu1 %vm1525_vm2, %v7040_v37  ;;  %v6039_v31 = vld [vmem:[%s6930_s19 + $0x20] sm:$0xff]   ;;  %v6043_v36 = vld [vmem:[%s6930_s19 + $0x18] sm:$0xff]   ;;  %v6045_v39 = vld [vmem:[%s6930_s19 + $0x50] sm:$0xff]  }
 0x347   : > { %1600 = vmatprep.mubr.bf16.mxu0 %v8209_v12  ;;  %1673 = vmatprep.mubr.bf16.mxu1 %v8209_v12  ;;  %v6040_v32 = vld [vmem:[%s6930_s19 + $0xa0] sm:$0xff]   ;;  %v6044_v38 = vld [vmem:[%s6930_s19 + $0x98] sm:$0xff]  }
 0x348   : > { %v6054_v49 = vld [vmem:[%s6930_s19 + $0xc0] sm:$0xff]  }
 0x349   : > { %v6055_v50 = vld [vmem:[%s6930_s19] sm:$0xff]  }
 0x34e   : > { %5291 = vmatmul.mubr.msk.bf16.gmra.mxu0 %vm1525_vm2, %v7048_v40  ;;  %5295 = vmatmul.mubr.msk.bf16.gmra.mxu1 %vm1525_vm2, %v7048_v40 }
 0x34f   : > { %1896 = vmatprep.mubr.bf16.mxu0 %v8209_v12  ;;  %1969 = vmatprep.mubr.bf16.mxu1 %v8209_v12 }
 0x356   : > { %5304 = vmatmul.mubr.msk.bf16.vlgmr.msra.gmra.mxu0 %vm1525_vm2, %v7014_v21  ;;  %5308 = vmatmul.mubr.msk.bf16.vlgmr.msra.gmra.mxu1 %vm1525_vm2, %v7014_v21 }
 0x357   : > { %2075 = vmatpush1.bf16.msra.mxu0 %v6001_v41  ;;  %2148 = vmatpush1.bf16.msra.mxu1 %v6004_v42  ;;  %v6046_v41 = vld [vmem:[%s6930_s19 + $0xd0] sm:$0xff]  }
 0x358   : > { %1906 = vmatprep.mubr.bf16.mxu0 %v8209_v12  ;;  %1979 = vmatprep.mubr.bf16.mxu1 %v8209_v12  ;;  %v6047_v42 = vld [vmem:[%s6930_s19 + $0x10] sm:$0xff]  }
 0x359   : > { %2076 = vmatprep.subr.bf16.mxu0 %v6009_v43  ;;  %2149 = vmatprep.subr.bf16.mxu1 %v6012_v44  ;;  %v6048_v43 = vld [vmem:[%s6930_s19 + $0x90] sm:$0xff]   ;;  %v6049_v44 = vld [vmem:[%s6930_s19 + $0x48] sm:$0xff]  }
 0x35b   : > { %2077 = vmatpush1.bf16.msra.mxu0 %v6007_v45  ;;  %2150 = vmatpush1.bf16.msra.mxu1 %v6010_v46  ;;  %v6050_v45 = vld [vmem:[%s6930_s19 + $0xc8] sm:$0xff]  }
 0x35c   : > { %2292 = vmatprep.subr.bf16.mxu0 %v6015_v47  ;;  %2365 = vmatprep.subr.bf16.mxu1 %v6018_v48  ;;  %v6051_v46 = vld [vmem:[%s6930_s19 + $0x8] sm:$0xff]   ;;  %v6053_v48 = vld [vmem:[%s6930_s19 + $0x40] sm:$0xff]  }
 0x35d   : > { %v6052_v47 = vld [vmem:[%s6930_s19 + $0x88] sm:$0xff]  }
 0x35e   : > { %5305 = vmatmul.mubr.msk.bf16.gmra.mxu0 %vm1525_vm2, %v7031_v33  ;;  %5309 = vmatmul.mubr.msk.bf16.gmra.mxu1 %vm1525_vm2, %v7031_v33 }
 0x35f   : > { %1916 = vmatprep.mubr.bf16.mxu0 %v8209_v12  ;;  %1989 = vmatprep.mubr.bf16.mxu1 %v8209_v12 }
 0x366   : > { %5306 = vmatmul.mubr.msk.bf16.gmra.mxu0 %vm1525_vm2, %v7040_v37  ;;  %5310 = vmatmul.mubr.msk.bf16.gmra.mxu1 %vm1525_vm2, %v7040_v37 }
 0x367   : > { %1926 = vmatprep.mubr.bf16.mxu0 %v8209_v12  ;;  %1999 = vmatprep.mubr.bf16.mxu1 %v8209_v12 }
 0x36e   : > { %5307 = vmatmul.mubr.msk.bf16.gmra.mxu0 %vm1525_vm2, %v7048_v40  ;;  %5311 = vmatmul.mubr.msk.bf16.gmra.mxu1 %vm1525_vm2, %v7048_v40 }
 0x36f   : > { %2094 = vmatprep.mubr.bf16.mxu0 %v8209_v12  ;;  %2167 = vmatprep.mubr.bf16.mxu1 %v8209_v12 }
 0x376   : > { %5320 = vmatmul.mubr.msk.bf16.vlgmr.msra.gmra.mxu0 %vm1525_vm2, %v7090_v53  ;;  %5324 = vmatmul.mubr.msk.bf16.vlgmr.msra.gmra.mxu1 %vm1525_vm2, %v7090_v53 }
 0x377   : > { %2293 = vmatpush1.bf16.msra.mxu0 %v6013_v51  ;;  %2366 = vmatpush1.bf16.msra.mxu1 %v6016_v52  ;;  %v6056_v51 = vld [vmem:[%s6930_s19 + $0x80] sm:$0xff]   ;;  %v6057_v52 = vld [vmem:[%s6928_s9 + $0x78] sm:$0xff]  }
 0x378   : > { %2104 = vmatprep.mubr.bf16.mxu0 %v8209_v12  ;;  %2177 = vmatprep.mubr.bf16.mxu1 %v8209_v12 }
 0x379   : > { %2294 = vmatprep.subr.bf16.mxu0 %v6021_v54  ;;  %2367 = vmatprep.subr.bf16.mxu1 %v6024_v55  ;;  %v6058_v54 = vld [vmem:[%s6928_s9 + $0xf8] sm:$0xff]   ;;  %v1465_v55 = vlaneseq }
 0x37b   : > { %2295 = vmatpush1.bf16.msra.mxu0 %v6019_v58  ;;  %2368 = vmatpush1.bf16.msra.mxu1 %v6022_v59  ;;  %v7190_v56 = vshrl.u32 %v1465_v55, 7  ;;  %v7203_v59 = vld [vmem:[%s932_s12] sm:$0xf] }
 0x37c   : > { %5550 = vmatprep.subr.bf16.mxu0 %v6025_v16  ;;  %5590 = vmatprep.subr.bf16.mxu1 %v6026_v17 }
 0x37d   : > { %v7193_v57 = vsub.s32 0, %v7190_v56  ;;  %v7196_v58 = vsub.s32 2, %v7190_v56 }
 0x37e   : > { %5321 = vmatmul.mubr.msk.bf16.gmra.mxu0 %vm1525_vm2, %v7102_v60  ;;  %5325 = vmatmul.mubr.msk.bf16.gmra.mxu1 %vm1525_vm2, %v7102_v60 }
 0x37f   : > { %2114 = vmatprep.mubr.bf16.mxu0 %v8209_v12  ;;  %2187 = vmatprep.mubr.bf16.mxu1 %v8209_v12  ;;  %8321 = vst [vmem:[#allocation45_spill] sm:$0xff] %v7193_v57  ;;  %8322 = vst [vmem:[#allocation46_spill] sm:$0xff] %v7196_v58  ;;  %v7207_v61 = vrot.slane %v7203_v59, %v7193_v57  ;;  %v7211_v62 = vrot.slane %v7203_v59, %v7196_v58 }
 0x386   : > { %5322 = vmatmul.mubr.msk.bf16.gmra.mxu0 %vm1525_vm2, %v7110_v63  ;;  %5326 = vmatmul.mubr.msk.bf16.gmra.mxu1 %vm1525_vm2, %v7110_v63 }
 0x387   : > { %2124 = vmatprep.mubr.bf16.mxu0 %v8209_v12  ;;  %2197 = vmatprep.mubr.bf16.mxu1 %v8209_v12 }
 0x38e   : > { %5323 = vmatmul.mubr.msk.bf16.gmra.mxu0 %vm1525_vm2, %v7118_v2  ;;  %5327 = vmatmul.mubr.msk.bf16.gmra.mxu1 %vm1525_vm2, %v7118_v2 }
 0x38f   : > { %2312 = vmatprep.mubr.bf16.mxu0 %v8209_v12  ;;  %2385 = vmatprep.mubr.bf16.mxu1 %v8209_v12 }
 0x396   : > { %5336 = vmatmul.mubr.msk.bf16.vlgmr.msra.gmra.mxu0 %vm1525_vm2, %v7126_v5  ;;  %5340 = vmatmul.mubr.msk.bf16.vlgmr.msra.gmra.mxu1 %vm1525_vm2, %v7126_v5 }
 0x397   : > { %2322 = vmatprep.mubr.bf16.mxu0 %v8209_v12  ;;  %2395 = vmatprep.mubr.bf16.mxu1 %v8209_v12 }
 0x398   : > { %5551 = vmatpush3.bf16.msra.mxu0 %v6027_v18  ;;  %5591 = vmatpush3.bf16.msra.mxu1 %v6028_v19 }
 0x399   : > { %5552 = vmatprep.subr.bf16.mxu0 %v6029_v20  ;;  %5592 = vmatprep.subr.bf16.mxu1 %v6030_v22 }
 0x39c   : > { %5553 = vmatpush3.bf16.msra.mxu0 %v6031_v23  ;;  %5593 = vmatpush3.bf16.msra.mxu1 %v6032_v24 }
 0x39d   : > { %5554 = vmatprep.subr.bf16.mxu0 %v6033_v25  ;;  %5594 = vmatprep.subr.bf16.mxu1 %v6034_v26 }
 0x39e   : > { %5337 = vmatmul.mubr.msk.bf16.gmra.mxu0 %vm1525_vm2, %v7134_v8  ;;  %5341 = vmatmul.mubr.msk.bf16.gmra.mxu1 %vm1525_vm2, %v7134_v8 }
 0x39f   : > { %2332 = vmatprep.mubr.bf16.mxu0 %v8209_v12  ;;  %2405 = vmatprep.mubr.bf16.mxu1 %v8209_v12 }
 0x3a0   : > { %5555 = vmatpush3.bf16.msra.mxu0 %v6035_v27  ;;  %5595 = vmatpush3.bf16.msra.mxu1 %v6036_v28 }
 0x3a1   : > { %5556 = vmatprep.subr.bf16.mxu0 %v6037_v29  ;;  %5596 = vmatprep.subr.bf16.mxu1 %v6038_v30 }
 0x3a4   : > { %5557 = vmatpush3.bf16.msra.mxu0 %v6039_v31  ;;  %5597 = vmatpush3.bf16.msra.mxu1 %v6040_v32 }
 0x3a5   : > { %5558 = vmatprep.subr.bf16.mxu0 %v6041_v34  ;;  %5598 = vmatprep.subr.bf16.mxu1 %v6042_v35 }
 0x3a6   : > { %5338 = vmatmul.mubr.msk.bf16.gmra.mxu0 %vm1525_vm2, %v7142_v11  ;;  %5342 = vmatmul.mubr.msk.bf16.gmra.mxu1 %vm1525_vm2, %v7142_v11 }
 0x3a7   : > { %2342 = vmatprep.mubr.bf16.mxu0 %v8209_v12  ;;  %2415 = vmatprep.mubr.bf16.mxu1 %v8209_v12 }
 0x3a8   : > { %5559 = vmatpush3.bf16.msra.mxu0 %v6043_v36  ;;  %5599 = vmatpush3.bf16.msra.mxu1 %v6044_v38 }
 0x3a9   : > { %5560 = vmatprep.subr.bf16.mxu0 %v6045_v39  ;;  %5600 = vmatprep.subr.bf16.mxu1 %v6046_v41 }
 0x3ac   : > { %5561 = vmatpush3.bf16.msra.mxu0 %v6047_v42  ;;  %5601 = vmatpush3.bf16.msra.mxu1 %v6048_v43 }
 0x3ad   : > { %5562 = vmatprep.subr.bf16.mxu0 %v6049_v44  ;;  %5602 = vmatprep.subr.bf16.mxu1 %v6050_v45 }
 0x3ae   : > { %5339 = vmatmul.mubr.msk.bf16.gmra.mxu0 %vm1525_vm2, %v7150_v15  ;;  %5343 = vmatmul.mubr.msk.bf16.gmra.mxu1 %vm1525_vm2, %v7150_v15 }
 0x3b0   : > { %5563 = vmatpush3.bf16.msra.mxu0 %v6051_v46  ;;  %5603 = vmatpush3.bf16.msra.mxu1 %v6052_v47 }
 0x3b1   : > { %5564 = vmatprep.subr.bf16.mxu0 %v6053_v48  ;;  %5604 = vmatprep.subr.bf16.mxu1 %v6054_v49 }
 0x3b4   : > { %5565 = vmatpush3.bf16.msra.mxu0 %v6055_v50  ;;  %5605 = vmatpush3.bf16.msra.mxu1 %v6056_v51 }
 0x3b5   : > { %5630 = vmatprep.subr.bf16.mxu0 %v6057_v52  ;;  %5670 = vmatprep.subr.bf16.mxu1 %v6058_v54 }
 0x3f6   : > { %v1572_v0 = vpop.f32.mrf.mxu0  ;;  %v1645_v1 = vpop.f32.mrf.mxu1 }
 0x3f7   : > { %v1573_v6 = vadd.f32 %v1572_v0, %v7207_v61  ;;  %v1646_v7 = vadd.f32 %v1645_v1, %v7211_v62 }
 0x3f8   : > { %v7213_v3 = vpop.f32.mrf.mxu0  ;;  %v7215_v4 = vpop.f32.mrf.mxu1 }
 0x3f9   : > { %8324 = vst [vmem:[#allocation47_spill] sm:$0xff] %v7213_v3  ;;  %8325 = vst [vmem:[#allocation48_spill] sm:$0xff] %v7215_v4  ;;  %v1684_v18 = vmax.f32 %v1573_v6, 0.0  ;;  %v1686_v19 = vmax.f32 %v1646_v7, 0.0  ;;  %v7342_v3 = vsub.s32 1, %v7190_v56 }
 0x3fa   : > { %v1576_v9 = vpop.f32.mrf.mxu0  ;;  %v1649_v10 = vpop.f32.mrf.mxu1 }
 0x3fb   : > { %v1577_v13 = vadd.f32 %v1576_v9, %v7207_v61  ;;  %v1650_v14 = vadd.f32 %v1649_v10, %v7211_v62  ;;  %8356 = vst [vmem:[#allocation79_spill] sm:$0xff] %v7342_v3 }
 0x3fc   : > { %v7221_v16 = vpop.f32.mrf.mxu0  ;;  %v7223_v17 = vpop.f32.mrf.mxu1 }
 0x3fd   : > { %8326 = vst [vmem:[#allocation49_spill] sm:$0xff] %v7221_v16  ;;  %8327 = vst [vmem:[#allocation50_spill] sm:$0xff] %v7223_v17  ;;  %v1688_v20 = vmax.f32 %v1577_v13, 0.0  ;;  %v1690_v22 = vmax.f32 %v1650_v14, 0.0  ;;  %v7345_v16 = vsub.s32 3, %v7190_v56 }
 0x3fe   : > { %v1582_v23 = vpop.f32.mrf.mxu0  ;;  %v1655_v24 = vpop.f32.mrf.mxu1 }
 0x3ff   : > { %v7225_v25 = vpack.c.bf16 %v1688_v20, %v1684_v18  ;;  %v7227_v26 = vpack.c.bf16 %v1690_v22, %v1686_v19  ;;  %v1583_v29 = vadd.f32 %v1582_v23, %v7207_v61  ;;  %v1656_v30 = vadd.f32 %v1655_v24, %v7211_v62 }
 0x400   : > { %v7229_v27 = vpop.f32.mrf.mxu0  ;;  %v7231_v28 = vpop.f32.mrf.mxu1  ;;  %v7366_v56 = vrot.slane %v7203_v59, %v7345_v16 }
 0x401   : > { %8328 = vst [vmem:[#allocation51_spill] sm:$0xff] %v7225_v25  ;;  %8329 = vst [vmem:[#allocation52_spill] sm:$0xff] %v7227_v26  ;;  %v1692_v39 = vmax.f32 %v1583_v29, 0.0  ;;  %v1694_v41 = vmax.f32 %v1656_v30, 0.0 }
 0x402   : > { %8330 = vst [vmem:[#allocation53_spill] sm:$0xff] %v7229_v27  ;;  %8331 = vst [vmem:[#allocation54_spill] sm:$0xff] %v7231_v28  ;;  %v1586_v31 = vpop.f32.mrf.mxu0  ;;  %v1659_v32 = vpop.f32.mrf.mxu1 }
 0x403   : > { %v1587_v34 = vadd.f32 %v1586_v31, %v7207_v61  ;;  %v1660_v35 = vadd.f32 %v1659_v32, %v7211_v62  ;;  %8363 = vst [vmem:[#allocation85_spill] sm:$0xff] %v7366_v56 }
 0x404   : > { %v7237_v36 = vpop.f32.mrf.mxu0  ;;  %v7239_v38 = vpop.f32.mrf.mxu1 }
 0x405   : > { %8332 = vst [vmem:[#allocation55_spill] sm:$0xff] %v7237_v36  ;;  %8333 = vst [vmem:[#allocation56_spill] sm:$0xff] %v7239_v38  ;;  %v1696_v42 = vmax.f32 %v1587_v34, 0.0  ;;  %v1698_v43 = vmax.f32 %v1660_v35, 0.0 }
 0x406   : > { %v1592_v44 = vpop.f32.mrf.mxu0  ;;  %v1665_v45 = vpop.f32.mrf.mxu1 }
 0x407   : > { %v7241_v46 = vpack.c.bf16 %v1696_v42, %v1692_v39  ;;  %v7243_v47 = vpack.c.bf16 %v1698_v43, %v1694_v41  ;;  %v1593_v50 = vadd.f32 %v1592_v44, %v7207_v61  ;;  %v1666_v51 = vadd.f32 %v1665_v45, %v7211_v62 }
 0x408   : > { %v7245_v48 = vpop.f32.mrf.mxu0  ;;  %v7247_v49 = vpop.f32.mrf.mxu1 }
 0x409   : > { %8334 = vst [vmem:[#allocation57_spill] sm:$0xff] %v7241_v46  ;;  %8335 = vst [vmem:[#allocation58_spill] sm:$0xff] %v7243_v47  ;;  %v1700_v7 = vmax.f32 %v1593_v50, 0.0  ;;  %v1702_v9 = vmax.f32 %v1666_v51, 0.0 }
 0x40a   : > { %8336 = vst [vmem:[#allocation59_spill] sm:$0xff] %v7245_v48  ;;  %8337 = vst [vmem:[#allocation60_spill] sm:$0xff] %v7247_v49  ;;  %v1596_v52 = vpop.f32.mrf.mxu0  ;;  %v1669_v54 = vpop.f32.mrf.mxu1 }
 0x40b   : > { %v1597_v55 = vadd.f32 %v1596_v52, %v7207_v61  ;;  %v1670_v0 = vadd.f32 %v1669_v54, %v7211_v62 }
 0x40c   : > { %v7253_v1 = vpop.f32.mrf.mxu0  ;;  %v7255_v6 = vpop.f32.mrf.mxu1 }
 0x40d   : > { %8338 = vst [vmem:[#allocation61_spill] sm:$0xff] %v7253_v1  ;;  %8339 = vst [vmem:[#allocation62_spill] sm:$0xff] %v7255_v6  ;;  %v1704_v10 = vmax.f32 %v1597_v55, 0.0  ;;  %v1706_v13 = vmax.f32 %v1670_v0, 0.0 }
 0x40e   : > { %v1602_v14 = vpop.f32.mrf.mxu0  ;;  %v1675_v18 = vpop.f32.mrf.mxu1 }
 0x40f   : > { %v7257_v19 = vpack.c.bf16 %v1704_v10, %v1700_v7  ;;  %v7259_v20 = vpack.c.bf16 %v1706_v13, %v1702_v9  ;;  %v1603_v24 = vadd.f32 %v1602_v14, %v7207_v61  ;;  %v1676_v29 = vadd.f32 %v1675_v18, %v7211_v62 }
 0x410   : > { %v7261_v22 = vpop.f32.mrf.mxu0  ;;  %v7263_v23 = vpop.f32.mrf.mxu1 }
 0x411   : > { %8340 = vst [vmem:[#allocation63_spill] sm:$0xff] %v7257_v19  ;;  %8341 = vst [vmem:[#allocation64_spill] sm:$0xff] %v7259_v20  ;;  %v1708_v41 = vmax.f32 %v1603_v24, 0.0  ;;  %v1710_v42 = vmax.f32 %v1676_v29, 0.0 }
 0x412   : > { %8342 = vst [vmem:[#allocation65_spill] sm:$0xff] %v7261_v22  ;;  %8343 = vst [vmem:[#allocation66_spill] sm:$0xff] %v7263_v23  ;;  %v1606_v30 = vpop.f32.mrf.mxu0  ;;  %v1679_v31 = vpop.f32.mrf.mxu1 }
 0x413   : > { %v1607_v32 = vadd.f32 %v1606_v30, %v7207_v61  ;;  %v1680_v34 = vadd.f32 %v1679_v31, %v7211_v62 }
 0x414   : > { %v7269_v35 = vpop.f32.mrf.mxu0  ;;  %v7271_v39 = vpop.f32.mrf.mxu1 }
 0x415   : > { %8344 = vst [vmem:[#allocation67_spill] sm:$0xff] %v7269_v35  ;;  %8345 = vst [vmem:[#allocation68_spill] sm:$0xff] %v7271_v39  ;;  %v1712_v43 = vmax.f32 %v1607_v32, 0.0  ;;  %v1714_v44 = vmax.f32 %v1680_v34, 0.0 }
 0x416   : > { %v7273_v45 = vpop.f32.mrf.mxu0  ;;  %v7275_v50 = vpop.f32.mrf.mxu1 }
 0x417   : > { %v7277_v51 = vpack.c.bf16 %v1712_v43, %v1708_v41  ;;  %v7279_v52 = vpack.c.bf16 %v1714_v44, %v1710_v42 }
 0x418   : > { %v7281_v54 = vpop.f32.mrf.mxu0  ;;  %v7283_v61 = vpop.f32.mrf.mxu1 }
 0x419   : > { %8346 = vst [vmem:[#allocation69_spill] sm:$0xff] %v7277_v51  ;;  %8347 = vst [vmem:[#allocation70_spill] sm:$0xff] %v7279_v52 }
 0x41a   : > { %v7285_v62 = vpop.f32.mrf.mxu0  ;;  %v7287_v55 = vpop.f32.mrf.mxu1 }
 0x41c   : > { %v7289_v0 = vpop.f32.mrf.mxu0  ;;  %v7291_v7 = vpop.f32.mrf.mxu1 }
 0x41e   : > { %v7293_v9 = vpop.f32.mrf.mxu0  ;;  %v7295_v10 = vpop.f32.mrf.mxu1 }
 0x420   : > { %v7297_v13 = vpop.f32.mrf.mxu0  ;;  %v7299_v14 = vpop.f32.mrf.mxu1 }
 0x422   : > { %v7301_v18 = vpop.f32.mrf.mxu0  ;;  %v7303_v24 = vpop.f32.mrf.mxu1 }
 0x424   : > { %v7305_v29 = vpop.f32.mrf.mxu0  ;;  %v7307_v30 = vpop.f32.mrf.mxu1 }
 0x426   : > { %v7309_v31 = vpop.f32.mrf.mxu0  ;;  %v7311_v32 = vpop.f32.mrf.mxu1 }
 0x428   : > { %v7313_v34 = vpop.f32.mrf.mxu0  ;;  %v7315_v41 = vpop.f32.mrf.mxu1 }
 0x42a   : > { %v7317_v42 = vpop.f32.mrf.mxu0  ;;  %v7319_v43 = vpop.f32.mrf.mxu1 }
 0x42c   : > { %v7321_v44 = vpop.f32.mrf.mxu0  ;;  %v7323_v12 = vpop.f32.mrf.mxu1 }
 0x42e   : > { %v7325_v15 = vpop.f32.mrf.mxu0  ;;  %v7327_v11 = vpop.f32.mrf.mxu1 }
 0x42f   : > { %8348 = vst [vmem:[#allocation71_spill] sm:$0xff] %v7325_v15  ;;  %8349 = vst [vmem:[#allocation72_spill] sm:$0xff] %v7327_v11 }
 0x430   : > { %v7329_v8 = vpop.f32.mrf.mxu0  ;;  %v7331_v5 = vpop.f32.mrf.mxu1 }
 0x431   : > { %8350 = vst [vmem:[#allocation73_spill] sm:$0xff] %v7329_v8  ;;  %8351 = vst [vmem:[#allocation74_spill] sm:$0xff] %v7331_v5  ;;  %v7362_v8 = vrot.slane %v7203_v59, %v7342_v3 }
 0x432   : > { %v7333_v40 = vpop.f32.mrf.mxu0  ;;  %v7335_v37 = vpop.f32.mrf.mxu1 }
 0x433   : > { %8352 = vst [vmem:[#allocation75_spill] sm:$0xff] %v7333_v40  ;;  %8353 = vst [vmem:[#allocation76_spill] sm:$0xff] %v7335_v37  ;;  %v2458_v37 = vld [vmem:[%s938_s15] sm:$0xf] }
 0x434   : > { %v7337_v33 = vpop.f32.mrf.mxu0  ;;  %v7339_v21 = vpop.f32.mrf.mxu1  ;;  %8362 = vst [vmem:[#allocation84_spill] sm:$0xff] %v7362_v8  ;;  %v7373_v11 = vrot.slane %v2458_v37, %v7193_v57  ;;  %v7376_v15 = vrot.slane %v2458_v37, %v7196_v58 }
 0x435   : > { %8354 = vst [vmem:[#allocation77_spill] sm:$0xff] %v7337_v33  ;;  %8355 = vst [vmem:[#allocation78_spill] sm:$0xff] %v7339_v21 }
 0x436   : > { %v2096_v2 = vpop.f32.mrf.mxu0  ;;  %v2169_v63 = vpop.f32.mrf.mxu1  ;;  %8366 = vst [vmem:[#allocation88_spill] sm:$0xff] %v7376_v15 }
 0x437   : > { %v2097_v8 = vadd.f32 %v2096_v2, %v7273_v45  ;;  %v2170_v59 = vadd.f32 %v2169_v63, %v7275_v50 }
 0x438   : > { %v2098_v60 = vpop.f32.mrf.mxu0  ;;  %v2171_v53 = vpop.f32.mrf.mxu1 }
 0x439   : > { %v2099_v56 = vadd.f32 %v2098_v60, %v7281_v54 }
 0x43a   : > { %v2100_v52 = vpop.f32.mrf.mxu0  ;;  %v2173_v51 = vpop.f32.mrf.mxu1 }
 0x43b   : > { %v2101_v57 = vadd.f32 %v2100_v52, %v7285_v62 }
 0x43c   : > { %v2102_v20 = vpop.f32.mrf.mxu0  ;;  %v2175_v19 = vpop.f32.mrf.mxu1 }
 0x43d   : > { %v2103_v58 = vadd.f32 %v2102_v20, %v7289_v0 }
 0x43e   : > { %v2106_v23 = vpop.f32.mrf.mxu0  ;;  %v2179_v47 = vpop.f32.mrf.mxu1 }
 0x43f   : > { %v2180_v2 = vadd.f32 %v2179_v47, %v7295_v10  ;;  %v8370_v10 = vld [vmem:[#allocation71_spill] sm:$0xff] }
 0x440   : > { %v2108_v39 = vpop.f32.mrf.mxu0  ;;  %v2181_v22 = vpop.f32.mrf.mxu1 }
 0x441   : > { %v2109_v63 = vadd.f32 %v2108_v39, %v7297_v13  ;;  %v2182_v60 = vadd.f32 %v2181_v22, %v7299_v14  ;;  %v8371_v13 = vld [vmem:[#allocation72_spill] sm:$0xff] }
 0x442   : > { %v2110_v46 = vpop.f32.mrf.mxu0  ;;  %v2183_v35 = vpop.f32.mrf.mxu1 }
 0x443   : > { %v2184_v50 = vadd.f32 %v2183_v35, %v7303_v24 }
 0x444   : > { %v2112_v49 = vpop.f32.mrf.mxu0  ;;  %v2185_v26 = vpop.f32.mrf.mxu1 }
 0x445   : > { %v7402_v54 = vadd.f32 %v2185_v26, %v7307_v30 }
 0x446   : > { %v2116_v6 = vpop.f32.mrf.mxu0  ;;  %v2189_v48 = vpop.f32.mrf.mxu1 }
 0x447   : > { %v7405_v39 = vadd.f32 %v2116_v6, %v7309_v31 }
 0x448   : > { %v2118_v25 = vpop.f32.mrf.mxu0  ;;  %v2191_v1 = vpop.f32.mrf.mxu1 }
 0x44a   : > { %v2120_v28 = vpop.f32.mrf.mxu0  ;;  %v2193_v38 = vpop.f32.mrf.mxu1 }
 0x44b   : > { %v7417_v22 = vadd.f32 %v2120_v28, %v7317_v42  ;;  %v7420_v26 = vadd.f32 %v2193_v38, %v7319_v43 }
 0x44c   : > { %v2122_v27 = vpop.f32.mrf.mxu0  ;;  %v2195_v36 = vpop.f32.mrf.mxu1 }
 0x44d   : > { %v7427_v6 = vadd.f32 %v2195_v36, %v7323_v12 }
 0x44e   : > { %v2126_v4 = vpop.f32.mrf.mxu0  ;;  %v2199_v17 = vpop.f32.mrf.mxu1 }
 0x44f   : > { %v7436_v14 = vadd.f32 %v2199_v17, %v8371_v13 }
 0x450   : > { %v7347_v21 = vpop.f32.mrf.mxu0  ;;  %v7349_v33 = vpop.f32.mrf.mxu1 }
 0x451   : > { %8357 = vst [vmem:[#allocation80_spill] sm:$0xff] %v7347_v21  ;;  %8358 = vst [vmem:[#allocation81_spill] sm:$0xff] %v7349_v33 }
 0x452   : > { %v7356_v40 = vpop.f32.mrf.mxu0  ;;  %v7358_v5 = vpop.f32.mrf.mxu1 }
 0x453   : > { %8360 = vst [vmem:[#allocation82_spill] sm:$0xff] %v7356_v40  ;;  %8361 = vst [vmem:[#allocation83_spill] sm:$0xff] %v7358_v5  ;;  %v7379_v5 = vrot.slane %v2458_v37, %v7342_v3  ;;  %v7382_v40 = vrot.slane %v2458_v37, %v7345_v16  ;;  %v2176_v3 = vadd.f32 %v2175_v19, %v7291_v7 }
 0x454   : > { %v7368_v21 = vpop.f32.mrf.mxu0  ;;  %v7370_v33 = vpop.f32.mrf.mxu1  ;;  %v2107_v37 = vadd.f32 %v2106_v23, %v7293_v9  ;;  %v7399_v19 = vadd.f32 %v2112_v49, %v7305_v29 }
 0x455   : > { %8364 = vst [vmem:[#allocation86_spill] sm:$0xff] %v7368_v21  ;;  %8365 = vst [vmem:[#allocation87_spill] sm:$0xff] %v7370_v33  ;;  %v2172_v33 = vadd.f32 %v2171_v53, %v7283_v61  ;;  %v2174_v21 = vadd.f32 %v2173_v51, %v7287_v55  ;;  %v2111_v53 = vadd.f32 %v2110_v46, %v7301_v18 }
 0x456   : > { %8367 = vst [vmem:[#allocation89_spill] sm:$0xff] %v7379_v5  ;;  %v2314_v5 = vpop.f32.mrf.mxu0  ;;  %v2387_v15 = vpop.f32.mrf.mxu1 }
 0x457   : > { %v2426_v45 = vadd.f32 %v2314_v5, %v2097_v8  ;;  %v2428_v51 = vadd.f32 %v2387_v15, %v2170_v59  ;;  %v7408_v5 = vadd.f32 %v2189_v48, %v7311_v32  ;;  %v7411_v8 = vadd.f32 %v2118_v25, %v7313_v34  ;;  %v8368_v25 = vld [vmem:[#allocation88_spill] sm:$0xff] }
 0x458   : > { %v2316_v52 = vpop.f32.mrf.mxu0  ;;  %v2389_v20 = vpop.f32.mrf.mxu1  ;;  %v7414_v15 = vadd.f32 %v2191_v1, %v7315_v41 }
 0x459   : > { %v2427_v23 = vadd.f32 %v2316_v52, %v2099_v56  ;;  %v2429_v47 = vadd.f32 %v2389_v20, %v2172_v33  ;;  %v7423_v33 = vadd.f32 %v2122_v27, %v7321_v44  ;;  %v2480_v48 = vadd.f32 %v7373_v11, %v2426_v45  ;;  %v8372_v20 = vld [vmem:[#allocation73_spill] sm:$0xff] }
 0x45a   : > { %v2318_v46 = vpop.f32.mrf.mxu0  ;;  %v2391_v49 = vpop.f32.mrf.mxu1  ;;  %v2482_v35 = vadd.f32 %v8368_v25, %v2428_v51  ;;  %v7433_v27 = vadd.f32 %v2126_v4, %v8370_v10  ;;  %v8375_v10 = vld [vmem:[#allocation81_spill] sm:$0xff] }
 0x45b   : > { %v2430_v1 = vadd.f32 %v2318_v46, %v2101_v57  ;;  %v2432_v61 = vadd.f32 %v2391_v49, %v2174_v21  ;;  %v2483_v7 = vadd.f32 %v7382_v40, %v2429_v47  ;;  %v2512_v18 = vmax.f32 %v2480_v48, 0.0 }
 0x45c   : > { %v2320_v62 = vpop.f32.mrf.mxu0  ;;  %v2393_v55 = vpop.f32.mrf.mxu1 }
 0x45d   : > { %v8369_v0 = vld [vmem:[#allocation89_spill] sm:$0xff]  ;;  %v2431_v38 = vadd.f32 %v2320_v62, %v2103_v58  ;;  %v2433_v9 = vadd.f32 %v2393_v55, %v2176_v3  ;;  %v2484_v12 = vadd.f32 %v7373_v11, %v2430_v1  ;;  %v2486_v36 = vadd.f32 %v8368_v25, %v2432_v61  ;;  %v6059_v61 = vld [vmem:[%s6928_s9 + $0x38] sm:$0xff]  }
 0x45e   : > { %v2481_v28 = vadd.f32 %v8369_v0, %v2427_v23  ;;  %v2324_v57 = vpop.f32.mrf.mxu0  ;;  %v2397_v21 = vpop.f32.mrf.mxu1  ;;  %v2514_v58 = vmax.f32 %v2482_v35, 0.0  ;;  %v2515_v41 = vmax.f32 %v2483_v7, 0.0  ;;  %v6060_v62 = vld [vmem:[%s6928_s9 + $0xb8] sm:$0xff]  }
 0x45f   : > { %v2485_v24 = vadd.f32 %v8369_v0, %v2431_v38  ;;  %v2487_v29 = vadd.f32 %v7382_v40, %v2433_v9  ;;  %v2434_v30 = vadd.f32 %v2324_v57, %v2107_v37  ;;  %v2516_v3 = vmax.f32 %v2484_v12, 0.0  ;;  %v8373_v37 = vld [vmem:[#allocation80_spill] sm:$0xff]  ;;  %v8374_v9 = vld [vmem:[#allocation74_spill] sm:$0xff]  ;;  %v8376_v12 = vld [vmem:[#allocation75_spill] sm:$0xff] }
 0x460   : > { %v2518_v31 = vmax.f32 %v2486_v36, 0.0  ;;  %v2436_v4 = vadd.f32 %v2397_v21, %v2180_v2  ;;  %v2326_v32 = vpop.f32.mrf.mxu0  ;;  %v2399_v34 = vpop.f32.mrf.mxu1  ;;  %v2513_v17 = vmax.f32 %v2481_v28, 0.0  ;;  %v7444_v23 = vadd.f32 %v8373_v37, %v8372_v20  ;;  %v8377_v36 = vld [vmem:[#allocation82_spill] sm:$0xff] }
 0x461   : > { %v2517_v42 = vmax.f32 %v2485_v24, 0.0  ;;  %v2519_v43 = vmax.f32 %v2487_v29, 0.0  ;;  %v2544_v44 = vpack.c.bf16 %v2516_v3, %v2512_v18  ;;  %v2435_v59 = vadd.f32 %v2326_v32, %v2109_v63 }
 0x462   : > { %v2546_v56 = vpack.c.bf16 %v2518_v31, %v2514_v58  ;;  %v2437_v45 = vadd.f32 %v2399_v34, %v2182_v60  ;;  %v2328_v51 = vpop.f32.mrf.mxu0  ;;  %v2401_v52 = vpop.f32.mrf.mxu1  ;;  %v2488_v2 = vadd.f32 %v7373_v11, %v2434_v30  ;;  %v2490_v49 = vadd.f32 %v8368_v25, %v2436_v4 }
 0x463   : > { %v2438_v47 = vadd.f32 %v2328_v51, %v2111_v53  ;;  %v2440_v46 = vadd.f32 %v2401_v52, %v2184_v50  ;;  %v2489_v48 = vadd.f32 %v8369_v0, %v2435_v59  ;;  %v2545_v63 = vpack.c.bf16 %v2517_v42, %v2513_v17  ;;  %v6061_v53 = vld [vmem:[%s6928_s9 + $0x70] sm:$0xff]  }
 0x464   : > { %v2330_v35 = vpop.f32.mrf.mxu0  ;;  %v2403_v1 = vpop.f32.mrf.mxu1  ;;  %v2547_v60 = vpack.c.bf16 %v2519_v43, %v2515_v41  ;;  %v6062_v50 = vld [vmem:[%s6928_s9 + $0xf0] sm:$0xff]   ;;  %v7459_v13 = vadd.f32 %v8375_v10, %v8374_v9  ;;  %v7463_v57 = vadd.f32 %v8377_v36, %v8376_v12  ;;  %v2491_v21 = vadd.f32 %v7382_v40, %v2437_v45  ;;  %v6066_v45 = vld [vmem:[%s6928_s9 + $0xe8] sm:$0xff]   ;;  %v6070_v10 = vld [vmem:[%s6928_s9 + $0xe0] sm:$0xff]  }
 0x465   : > { %v2492_v55 = vadd.f32 %v7373_v11, %v2438_v47  ;;  %v2494_v28 = vadd.f32 %v8368_v25, %v2440_v46  ;;  %v2439_v7 = vadd.f32 %v2330_v35, %v7399_v19  ;;  %v2441_v38 = vadd.f32 %v2403_v1, %v7402_v54  ;;  %2848 = vmatprep.mubr.bf16.mxu0 %v2545_v63  ;;  %v6063_v17 = vld [vmem:[%s6928_s9 + $0x30] sm:$0xff]  }
 0x466   : > { %2913 = vmatprep.mubr.bf16.mxu1 %v2547_v60  ;;  %v2334_v18 = vpop.f32.mrf.mxu0  ;;  %v2407_v24 = vpop.f32.mrf.mxu1  ;;  %2849 = vmatmul.mubr.bf16.vlgmr.msra.gmra.mxu0 %v2544_v44  ;;  %v2520_v58 = vmax.f32 %v2488_v2, 0.0  ;;  %v2522_v3 = vmax.f32 %v2490_v49, 0.0  ;;  %v6064_v41 = vld [vmem:[%s6928_s9 + $0xb0] sm:$0xff]   ;;  %v2521_v42 = vmax.f32 %v2489_v48, 0.0  ;;  %v2523_v51 = vmax.f32 %v2491_v21, 0.0  ;;  %v8378_v2 = vld [vmem:[#allocation76_spill] sm:$0xff] }
 0x467   : > { %v2524_v19 = vmax.f32 %v2492_v55, 0.0  ;;  %v2526_v54 = vmax.f32 %v2494_v28, 0.0  ;;  %v2493_v29 = vadd.f32 %v8369_v0, %v2439_v7  ;;  %v2495_v30 = vadd.f32 %v7382_v40, %v2441_v38  ;;  %2914 = vmatmul.mubr.bf16.vlgmr.msra.gmra.mxu1 %v2546_v56  ;;  %5631 = vmatpush3.bf16.msra.mxu0 %v6059_v61  ;;  %v6065_v56 = vld [vmem:[%s6928_s9 + $0x68] sm:$0xff]   ;;  %v8379_v47 = vld [vmem:[#allocation83_spill] sm:$0xff] }
 0x468   : > { %v2442_v31 = vadd.f32 %v2334_v18, %v7405_v39  ;;  %v2444_v4 = vadd.f32 %v2407_v24, %v7408_v5  ;;  %5671 = vmatpush3.bf16.msra.mxu1 %v6060_v62  ;;  %v2336_v32 = vpop.f32.mrf.mxu0  ;;  %v2409_v34 = vpop.f32.mrf.mxu1  ;;  %5632 = vmatprep.subr.bf16.mxu0 %v6061_v53  ;;  %v7478_v46 = vadd.f32 %v8379_v47, %v8378_v2  ;;  %v6067_v61 = vld [vmem:[%s6928_s9 + $0x28] sm:$0xff]  }
 0x469   : > { %v2525_v43 = vmax.f32 %v2493_v29, 0.0  ;;  %v2527_v59 = vmax.f32 %v2495_v30, 0.0  ;;  %v2443_v44 = vadd.f32 %v2336_v32, %v7411_v8  ;;  %5672 = vmatprep.subr.bf16.mxu1 %v6062_v50  ;;  %v2445_v39 = vadd.f32 %v2409_v34, %v7414_v15  ;;  %v6068_v62 = vld [vmem:[%s6928_s9 + $0xa8] sm:$0xff]   ;;  %v6071_v30 = vld [vmem:[%s6928_s9 + $0x20] sm:$0xff]   ;;  %v6073_v34 = vld [vmem:[%s6928_s9 + $0x58] sm:$0xff]  }
 0x46a   : > { %v2338_v5 = vpop.f32.mrf.mxu0  ;;  %v2411_v52 = vpop.f32.mrf.mxu1  ;;  %v2548_v20 = vpack.c.bf16 %v2524_v19, %v2520_v58  ;;  %v2550_v37 = vpack.c.bf16 %v2526_v54, %v2522_v3  ;;  %v2496_v49 = vadd.f32 %v7373_v11, %v2442_v31  ;;  %v2498_v35 = vadd.f32 %v8368_v25, %v2444_v4  ;;  %v6072_v58 = vld [vmem:[%s6928_s9 + $0xa0] sm:$0xff]  }
 0x46b   : > { %v2446_v8 = vadd.f32 %v2338_v5, %v7417_v22  ;;  %v2448_v48 = vadd.f32 %v2411_v52, %v7420_v26  ;;  %5633 = vmatpush3.bf16.msra.mxu0 %v6063_v17  ;;  %v2549_v63 = vpack.c.bf16 %v2525_v43, %v2521_v42  ;;  %v2551_v60 = vpack.c.bf16 %v2527_v59, %v2523_v51  ;;  %v6069_v26 = vld [vmem:[%s6928_s9 + $0x60] sm:$0xff]   ;;  %v6074_v17 = vld [vmem:[%s6928_s9 + $0xd8] sm:$0xff]   ;;  %v8383_v51 = vld [vmem:[#allocation87_spill] sm:$0xff] }
 0x46c   : > { %5673 = vmatpush3.bf16.msra.mxu1 %v6064_v41  ;;  %v2340_v15 = vpop.f32.mrf.mxu0  ;;  %v2413_v1 = vpop.f32.mrf.mxu1  ;;  %v2497_v55 = vadd.f32 %v8369_v0, %v2443_v44  ;;  %5634 = vmatprep.subr.bf16.mxu0 %v6065_v56  ;;  %v2499_v7 = vadd.f32 %v7382_v40, %v2445_v39  ;;  %v2528_v24 = vmax.f32 %v2496_v49, 0.0  ;;  %v8380_v3 = vld [vmem:[#allocation77_spill] sm:$0xff] }
 0x46d   : > { %v2500_v28 = vadd.f32 %v7373_v11, %v2446_v8  ;;  %v2502_v22 = vadd.f32 %v8368_v25, %v2448_v48  ;;  %5674 = vmatprep.subr.bf16.mxu1 %v6066_v45  ;;  %v2447_v38 = vadd.f32 %v2340_v15, %v7423_v33  ;;  %v2449_v53 = vadd.f32 %v2413_v1, %v7427_v6  ;;  %v8382_v45 = vld [vmem:[#allocation78_spill] sm:$0xff]  ;;  %v6075_v8 = vld [vmem:[%s6928_s9 + $0x18] sm:$0xff]   ;;  %v6077_v1 = vld [vmem:[%s6928_s9 + $0x50] sm:$0xff]  }
 0x46e   : > { %2856 = vmatprep.mubr.bf16.mxu0 %v2549_v63  ;;  %2921 = vmatprep.mubr.bf16.mxu1 %v2551_v60  ;;  %v2344_v50 = vpop.f32.mrf.mxu0  ;;  %v2417_v9 = vpop.f32.mrf.mxu1  ;;  %v2530_v33 = vmax.f32 %v2498_v35, 0.0  ;;  %v2206_v39 = vadd.f32 %v8383_v51, %v8382_v45  ;;  %v2531_v52 = vmax.f32 %v2499_v7, 0.0  ;;  %v8384_v63 = vld [vmem:[#allocation84_spill] sm:$0xff]  ;;  %v8385_v60 = vld [vmem:[#allocation49_spill] sm:$0xff]  ;;  %v8388_v7 = vld [vmem:[#allocation50_spill] sm:$0xff] }
 0x46f   : > { %v2532_v12 = vmax.f32 %v2500_v28, 0.0  ;;  %v2534_v36 = vmax.f32 %v2502_v22, 0.0  ;;  %v2450_v21 = vadd.f32 %v2344_v50, %v7433_v27  ;;  %v2452_v18 = vadd.f32 %v2417_v9, %v7436_v14  ;;  %2857 = vmatmul.mubr.bf16.gmra.mxu0 %v2548_v20  ;;  %2922 = vmatmul.mubr.bf16.gmra.mxu1 %v2550_v37  ;;  %v8381_v27 = vld [vmem:[#allocation86_spill] sm:$0xff]  ;;  %v8386_v28 = vld [vmem:[#allocation47_spill] sm:$0xff]  ;;  %v8392_v45 = vld [vmem:[#allocation56_spill] sm:$0xff] }
 0x470   : > { %v2501_v6 = vadd.f32 %v8369_v0, %v2447_v38  ;;  %v2503_v19 = vadd.f32 %v7382_v40, %v2449_v53  ;;  %5635 = vmatpush3.bf16.msra.mxu0 %v6067_v61  ;;  %5675 = vmatpush3.bf16.msra.mxu1 %v6068_v62  ;;  %v2346_v54 = vpop.f32.mrf.mxu0  ;;  %v2419_v29 = vpop.f32.mrf.mxu1  ;;  %v2133_v31 = vadd.f32 %v8381_v27, %v8380_v3  ;;  %v2529_v14 = vmax.f32 %v2497_v55, 0.0  ;;  %v6076_v55 = vld [vmem:[%s6928_s9 + $0x98] sm:$0xff]   ;;  %v6078_v9 = vld [vmem:[%s6928_s9 + $0xd0] sm:$0xff]   ;;  %v6082_v27 = vld [vmem:[%s6928_s9 + $0xc8] sm:$0xff]  }
 0x471   : > { %v2451_v4 = vadd.f32 %v2346_v54, %v7444_v23  ;;  %v2453_v32 = vadd.f32 %v2419_v29, %v7459_v13  ;;  %5636 = vmatprep.subr.bf16.mxu0 %v6069_v26  ;;  %5676 = vmatprep.subr.bf16.mxu1 %v6070_v10  ;;  %v2552_v44 = vpack.c.bf16 %v2532_v12, %v2528_v24  ;;  %v8387_v26 = vld [vmem:[#allocation85_spill] sm:$0xff] }
 0x472   : > { %v2533_v41 = vmax.f32 %v2501_v6, 0.0  ;;  %v2535_v42 = vmax.f32 %v2503_v19, 0.0  ;;  %v2348_v43 = vpop.f32.mrf.mxu0  ;;  %v2421_v59 = vpop.f32.mrf.mxu1  ;;  %v2554_v56 = vpack.c.bf16 %v2534_v36, %v2530_v33  ;;  %v2504_v5 = vadd.f32 %v7373_v11, %v2450_v21  ;;  %v6079_v36 = vld [vmem:[%s6928_s9 + $0x10] sm:$0xff]  }
 0x473   : > { %v2506_v23 = vadd.f32 %v8368_v25, %v2452_v18  ;;  %v2505_v13 = vadd.f32 %v8369_v0, %v2451_v4  ;;  %v2454_v20 = vadd.f32 %v2348_v43, %v7463_v57  ;;  %v2456_v37 = vadd.f32 %v2421_v59, %v7478_v46  ;;  %v6080_v19 = vld [vmem:[%s6928_s9 + $0x90] sm:$0xff]   ;;  %v6083_v4 = vld [vmem:[%s6928_s9 + $0x8] sm:$0xff]   ;;  %v6086_v59 = vld [vmem:[%s6928_s9 + $0xc0] sm:$0xff]  }
 0x474   : > { %5637 = vmatpush3.bf16.msra.mxu0 %v6071_v30  ;;  %5677 = vmatpush3.bf16.msra.mxu1 %v6072_v58  ;;  %v2350_v2 = vpop.f32.mrf.mxu0  ;;  %v2423_v47 = vpop.f32.mrf.mxu1  ;;  %v2553_v49 = vpack.c.bf16 %v2533_v41, %v2529_v14  ;;  %v2507_v48 = vadd.f32 %v7382_v40, %v2453_v32  ;;  %v1579_v57 = vadd.f32 %v8385_v60, %v8384_v63  ;;  %v2536_v10 = vmax.f32 %v2504_v5, 0.0  ;;  %v6081_v30 = vld [vmem:[%s6928_s9 + $0x48] sm:$0xff]   ;;  %v6085_v32 = vld [vmem:[%s6928_s9 + $0x40] sm:$0xff]  }
 0x475   : > { %v2455_v35 = vadd.f32 %v2350_v2, %v2133_v31  ;;  %v2457_v15 = vadd.f32 %v2423_v47, %v2206_v39  ;;  %5638 = vmatprep.subr.bf16.mxu0 %v6073_v34  ;;  %5678 = vmatprep.subr.bf16.mxu1 %v6074_v17  ;;  %v2508_v46 = vadd.f32 %v7373_v11, %v2454_v20  ;;  %v2538_v11 = vmax.f32 %v2506_v23, 0.0  ;;  %v8390_v17 = vld [vmem:[#allocation55_spill] sm:$0xff]  ;;  %v6084_v43 = vld [vmem:[%s6928_s9 + $0x88] sm:$0xff]   ;;  %v6087_v5 = vld [vmem:[%s6928_s9] sm:$0xff]  }
 0x476   : > { %v2510_v61 = vadd.f32 %v8368_v25, %v2456_v37  ;;  %2864 = vmatprep.mubr.bf16.mxu0 %v2553_v49  ;;  %v2555_v62 = vpack.c.bf16 %v2535_v42, %v2531_v52  ;;  %v1575_v22 = vadd.f32 %v8386_v28, %v8384_v63  ;;  %v1652_v38 = vadd.f32 %v8388_v7, %v8387_v26  ;;  %v6091_v23 = vld [vmem:[%s6924_s17 + $0x64] ss:$16 sps:$4 sm:$0xff]   ;;  %v6088_v37 = vld [vmem:[%s6928_s9 + $0x80] sm:$0xff]  }
 0x477   : > { %v2509_v53 = vadd.f32 %v8369_v0, %v2455_v35  ;;  %v2511_v50 = vadd.f32 %v7382_v40, %v2457_v15  ;;  %2865 = vmatmul.mubr.bf16.gmra.mxu0 %v2552_v44  ;;  %v2540_v25 = vmax.f32 %v2508_v46, 0.0  ;;  %v2537_v21 = vmax.f32 %v2505_v13, 0.0  ;;  %v8389_v40 = vld [vmem:[#allocation48_spill] sm:$0xff]  ;;  %v8391_v44 = vld [vmem:[#allocation53_spill] sm:$0xff]  ;;  %v8393_v13 = vld [vmem:[#allocation54_spill] sm:$0xff] }
 0x478   : > { %v2542_v12 = vmax.f32 %v2510_v61, 0.0  ;;  %2929 = vmatprep.mubr.bf16.mxu1 %v2555_v62  ;;  %5639 = vmatpush3.bf16.msra.mxu0 %v6075_v8  ;;  %v2539_v18 = vmax.f32 %v2507_v48, 0.0  ;;  %v1648_v0 = vadd.f32 %v8389_v40, %v8387_v26  ;;  %v1689_v6 = vmax.f32 %v1579_v57, 0.0  ;;  %v6094_v2 = vld [vmem:[%s6924_s17 + $0x6c] ss:$16 sps:$4 sm:$0xff]   ;;  %v8397_v28 = vld [vmem:[#allocation62_spill] sm:$0xff] }
 0x479   : > { %v2541_v24 = vmax.f32 %v2509_v53, 0.0  ;;  %v2543_v33 = vmax.f32 %v2511_v50, 0.0  ;;  %2930 = vmatmul.mubr.bf16.gmra.mxu1 %v2554_v56  ;;  %5640 = vmatprep.subr.bf16.mxu0 %v6077_v1  ;;  %v2556_v54 = vpack.c.bf16 %v2540_v25, %v2536_v10  ;;  %v1685_v31 = vmax.f32 %v1575_v22, 0.0  ;;  %v6089_v8 = vld [vmem:[%s6924_s17 + $0x60] ss:$16 sps:$4 sm:$0xff]   ;;  %v8394_v15 = vld [vmem:[#allocation61_spill] sm:$0xff] }
 0x47a   : > { %5679 = vmatpush3.bf16.msra.mxu1 %v6076_v55  ;;  %v2558_v29 = vpack.c.bf16 %v2542_v12, %v2538_v11  ;;  %v1691_v14 = vmax.f32 %v1652_v38, 0.0  ;;  %v1687_v34 = vmax.f32 %v1648_v0, 0.0  ;;  %v1589_v41 = vadd.f32 %v8390_v17, %v8384_v63  ;;  %v6097_v48 = vld [vmem:[%s6924_s17 + $0x44] ss:$16 sps:$4 sm:$0xff]   ;;  %v6092_v60 = vld [vmem:[%s6924_s17 + $0x68] ss:$16 sps:$4 sm:$0xff]  }
 0x47b   : > { %5680 = vmatprep.subr.bf16.mxu1 %v6078_v9  ;;  %v2557_v58 = vpack.c.bf16 %v2541_v24, %v2537_v21  ;;  %v2559_v3 = vpack.c.bf16 %v2543_v33, %v2539_v18  ;;  %v1717_v42 = vpack.c.bf16 %v1689_v6, %v1685_v31  ;;  %v1585_v56 = vadd.f32 %v8391_v44, %v8384_v63  ;;  %v8395_v46 = vld [vmem:[#allocation51_spill] sm:$0xff]  ;;  %v6095_v38 = vld [vmem:[%s6924_s17 + $0x40] ss:$16 sps:$4 sm:$0xff]   ;;  %v6103_v50 = vld [vmem:[%s6924_s17 + $0x24] ss:$16 sps:$4 sm:$0xff]  }
 0x47c   : > { %5641 = vmatpush3.bf16.msra.mxu0 %v6079_v36  ;;  %v1662_v51 = vadd.f32 %v8392_v45, %v8387_v26  ;;  %v1719_v39 = vpack.c.bf16 %v1691_v14, %v1687_v34  ;;  %v1658_v52 = vadd.f32 %v8393_v13, %v8387_v26  ;;  %v1697_v20 = vmax.f32 %v1589_v41, 0.0  ;;  %v6100_v61 = vld [vmem:[%s6924_s17 + $0x4c] ss:$16 sps:$4 sm:$0xff]   ;;  %v8398_v53 = vld [vmem:[#allocation52_spill] sm:$0xff]  ;;  %v6098_v25 = vld [vmem:[%s6924_s17 + $0x48] ss:$16 sps:$4 sm:$0xff]  }
 0x47d   : > { %2872 = vmatprep.mubr.bf16.mxu0 %v2557_v58  ;;  %2937 = vmatprep.mubr.bf16.mxu1 %v2559_v3  ;;  %v1693_v47 = vmax.f32 %v1585_v56, 0.0  ;;  %v1599_v1 = vadd.f32 %v8394_v15, %v8384_v63  ;;  %v8396_v62 = vld [vmem:[#allocation59_spill] sm:$0xff]  ;;  %v1672_v22 = vadd.f32 %v8397_v28, %v8387_v26  ;;  %v8399_v9 = vld [vmem:[#allocation60_spill] sm:$0xff]  ;;  %v8401_v0 = vld [vmem:[#allocation57_spill] sm:$0xff] }
 0x47e   : > { %5681 = vmatpush3.bf16.msra.mxu1 %v6080_v19  ;;  %5642 = vmatprep.subr.bf16.mxu0 %v6081_v30  ;;  %v1699_v49 = vmax.f32 %v1662_v51, 0.0  ;;  %v1695_v35 = vmax.f32 %v1658_v52, 0.0  ;;  %v1595_v55 = vadd.f32 %v8396_v62, %v8384_v63  ;;  %v1668_v10 = vadd.f32 %v8399_v9, %v8387_v26  ;;  %v6106_v12 = vld [vmem:[%s6924_s17 + $0x2c] ss:$16 sps:$4 sm:$0xff]   ;;  %v8404_v58 = vld [vmem:[#allocation58_spill] sm:$0xff]  ;;  %v8407_v41 = vld [vmem:[#allocation64_spill] sm:$0xff] }
 0x47f   : > { %2873 = vmatmul.mubr.bf16.gmra.mxu0 %v2556_v54  ;;  %5682 = vmatprep.subr.bf16.mxu1 %v6082_v27  ;;  %v1721_v57 = vpack.c.bf16 %v1697_v20, %v1693_v47  ;;  %v1705_v11 = vmax.f32 %v1599_v1, 0.0  ;;  %v1707_v21 = vmax.f32 %v1672_v22, 0.0  ;;  %v8400_v24 = vld [vmem:[#allocation67_spill] sm:$0xff]  ;;  %v8402_v6 = vld [vmem:[#allocation65_spill] sm:$0xff]  ;;  %v8403_v54 = vld [vmem:[#allocation68_spill] sm:$0xff] }
 0x480   : > { %5643 = vmatpush3.bf16.msra.mxu0 %v6083_v4  ;;  %3170 = vmatprep.mubr.bf16.mxu0 %v1717_v42  ;;  %v1723_v7 = vpack.c.bf16 %v1699_v49, %v1695_v35  ;;  %v1701_v36 = vmax.f32 %v1595_v55, 0.0  ;;  %v1703_v18 = vmax.f32 %v1668_v10, 0.0  ;;  %v1609_v33 = vadd.f32 %v8400_v24, %v8384_v63  ;;  %v8405_v3 = vld [vmem:[#allocation66_spill] sm:$0xff]  ;;  %v8406_v34 = vld [vmem:[#allocation63_spill] sm:$0xff]  ;;  %v8411_v45 = vld [vmem:[#allocation37_spill] sm:$0xff] }
 0x481   : > { %2938 = vmatmul.mubr.bf16.gmra.mxu1 %v2558_v29  ;;  %5644 = vmatprep.subr.bf16.mxu0 %v6085_v32  ;;  %v1605_v19 = vadd.f32 %v8402_v6, %v8384_v63  ;;  %v1682_v29 = vadd.f32 %v8403_v54, %v8387_v26  ;;  %v1678_v27 = vadd.f32 %v8405_v3, %v8387_v26  ;;  %v8408_v26 = vld [vmem:[#allocation69_spill] sm:$0xff]  ;;  %v8409_v42 = vmov 0   ;;  %v6109_v44 = vld [vmem:[%s6924_s17 + $0x4] ss:$16 sps:$4 sm:$0xff]   ;;  %v8413_v20 = vld [vmem:[#allocation39_spill] sm:$0xff] }
 0x482   : > { %5683 = vmatpush3.bf16.msra.mxu1 %v6084_v43  ;;  %3235 = vmatprep.mubr.bf16.mxu1 %v1719_v39  ;;  %v1725_v40 = vpack.c.bf16 %v1705_v11, %v1701_v36  ;;  %v1727_v30 = vpack.c.bf16 %v1707_v21, %v1703_v18  ;;  %v1713_v31 = vmax.f32 %v1609_v33, 0.0  ;;  %v8410_v43 = vld [vmem:[#allocation70_spill] sm:$0xff]  ;;  %v6104_v56 = vld [vmem:[%s6924_s17 + $0x28] ss:$16 sps:$4 sm:$0xff]   ;;  %v6112_v51 = vld [vmem:[%s6924_s17 + $0xc] ss:$16 sps:$4 sm:$0xff]  }
 0x483   : > { %5684 = vmatprep.subr.bf16.mxu1 %v6086_v59  ;;  %v1709_v14 = vmax.f32 %v1605_v19, 0.0  ;;  %v1715_v4 = vmax.f32 %v1682_v29, 0.0  ;;  %v1711_v32 = vmax.f32 %v1678_v27, 0.0  ;;  %v6101_v59 = vld [vmem:[%s6924_s17 + $0x20] ss:$16 sps:$4 sm:$0xff]   ;;  %v3270_v1 = vld [vmem:[#allocation2 + $0x10] sm:$0xff] }
 0x484   : > { %5645 = vmatpush3.bf16.msra.mxu0 %v6087_v5  ;;  %v6107_v39 = vld [vmem:[%s6924_s17] ss:$16 sps:$4 sm:$0xff]   ;;  %v6115_v5 = vld [vmem:[%s6924_s17 + $0xa4] ss:$16 sps:$4 sm:$0xff]   ;;  %v6118_v13 = vld [vmem:[%s6924_s17 + $0xac] ss:$16 sps:$4 sm:$0xff]  }
 0x485   : > { %3348 = vmatprep.subr.bf16.mxu0 %v6091_v23  ;;  %v1729_v63 = vpack.c.bf16 %v1713_v31, %v1709_v14  ;;  %v1731_v17 = vpack.c.bf16 %v1715_v4, %v1711_v32  ;;  %v6110_v23 = vld [vmem:[%s6924_s17 + $0x8] ss:$16 sps:$4 sm:$0xff]   ;;  %v8412_v52 = vld [vmem:[#allocation38_spill] sm:$0xff]  ;;  %v3269_v47 = vld [vmem:[#allocation2 + $0x8] sm:$0xff] }
 0x486   : > { %5685 = vmatpush3.bf16.msra.mxu1 %v6088_v37  ;;  %v8414_v37 = vld [vmem:[#allocation40_spill] sm:$0xff]  ;;  %v6116_v35 = vld [vmem:[%s6924_s17 + $0xa8] ss:$16 sps:$4 sm:$0xff]   ;;  %v6124_v15 = vld [vmem:[%s6924_s17 + $0x8c] ss:$16 sps:$4 sm:$0xff]  }
 0x487   : > { %3171 = vmatmul.mubr.bf16.vlgmr.msra.gmra.mxu0 %v8395_v46  ;;  %3421 = vmatprep.subr.bf16.mxu1 %v6094_v2  ;;  %v3268_v2 = vld [vmem:[#allocation2] sm:$0xff]  ;;  %v6130_v55 = vld [vmem:[%s6924_s17 + $0xec] ss:$16 sps:$4 sm:$0xff]   ;;  %v6125_v9 = vld [vmem:[%s6924_s17 + $0xe0] ss:$16 sps:$4 sm:$0xff]  }
 0x488   : > { %3178 = vmatprep.mubr.bf16.mxu0 %v1721_v57  ;;  %3349 = vmatpush1.bf16.msra.mxu0 %v6089_v8  ;;  %v3276_v49 = vpack.c.bf16 %v3269_v47, %v3268_v2  ;;  %v6113_v8 = vld [vmem:[%s6924_s17 + $0xa0] ss:$16 sps:$4 sm:$0xff]   ;;  %v6127_v46 = vld [vmem:[%s6924_s17 + $0xe4] ss:$16 sps:$4 sm:$0xff]   ;;  %v6128_v11 = vld [vmem:[%s6924_s17 + $0xe8] ss:$16 sps:$4 sm:$0xff]  }
 0x489   : > { %3236 = vmatmul.mubr.bf16.vlgmr.msra.gmra.mxu1 %v8398_v53  ;;  %3350 = vmatprep.subr.bf16.mxu0 %v6097_v48  ;;  %v6121_v48 = vld [vmem:[%s6924_s17 + $0x84] ss:$16 sps:$4 sm:$0xff]   ;;  %v6119_v57 = vld [vmem:[%s6924_s17 + $0x80] ss:$16 sps:$4 sm:$0xff]   ;;  %v6134_v18 = vld [vmem:[%s6924_s17 + $0xc8] ss:$16 sps:$4 sm:$0xff]  }
 0x48a   : > { %3243 = vmatprep.mubr.bf16.mxu1 %v1723_v7  ;;  %3422 = vmatpush1.bf16.msra.mxu1 %v6092_v60  ;;  %v3271_v60 = vld [vmem:[#allocation2 + $0x18] sm:$0xff]  ;;  %v3272_v28 = vld [vmem:[#allocation2 + $0x20] sm:$0xff]  ;;  %v3273_v22 = vld [vmem:[#allocation2 + $0x28] sm:$0xff] }
 0x48b   : > { %3423 = vmatprep.subr.bf16.mxu1 %v6100_v61  ;;  %v6122_v61 = vld [vmem:[%s6924_s17 + $0x88] ss:$16 sps:$4 sm:$0xff]   ;;  %v3277_v62 = vpack.c.bf16 %v3271_v60, %v3270_v1  ;;  %v3278_v7 = vpack.c.bf16 %v3273_v22, %v3272_v28  ;;  %v3275_v53 = vld [vmem:[#allocation2 + $0x38] sm:$0xff]  ;;  %v6133_v10 = vld [vmem:[%s6924_s17 + $0xc4] ss:$16 sps:$4 sm:$0xff]  }
 0x48c   : > { %3351 = vmatpush1.bf16.msra.mxu0 %v6095_v38  ;;  %v3274_v38 = vld [vmem:[#allocation2 + $0x30] sm:$0xff]  ;;  %v6131_v36 = vld [vmem:[%s6924_s17 + $0xc0] ss:$16 sps:$4 sm:$0xff]   ;;  %v6142_v24 = vld [vmem:[%s6924_s17 + $0x12c] ss:$16 sps:$4 sm:$0xff]  }
 0x48d   : > { %3546 = vmatprep.subr.bf16.mxu0 %v6103_v50  ;;  %v3279_v50 = vpack.c.bf16 %v3275_v53, %v3274_v38  ;;  %v6139_v21 = vld [vmem:[%s6924_s17 + $0x124] ss:$16 sps:$4 sm:$0xff]   ;;  %v6137_v6 = vld [vmem:[%s6924_s17 + $0x120] ss:$16 sps:$4 sm:$0xff]   ;;  %v6140_v54 = vld [vmem:[%s6924_s17 + $0x128] ss:$16 sps:$4 sm:$0xff]  }
 0x48e   : > { %3424 = vmatpush1.bf16.msra.mxu1 %v6098_v25  ;;  %v8415_v25 = vld [vmem:[#allocation33_spill] sm:$0xff]  ;;  %v8416_v33 = vld [vmem:[#allocation34_spill] sm:$0xff]  ;;  %v8421_v31 = vld [vmem:[#allocation43_spill] sm:$0xff] }
 0x48f   : > { %3179 = vmatmul.mubr.bf16.gmra.mxu0 %v8401_v0  ;;  %3619 = vmatprep.subr.bf16.mxu1 %v6106_v12  ;;  %v6136_v12 = vld [vmem:[%s6924_s17 + $0xcc] ss:$16 sps:$4 sm:$0xff]   ;;  %v8418_v0 = vld [vmem:[#allocation36_spill] sm:$0xff]  ;;  %v6146_v3 = vld [vmem:[%s6924_s17 + $0x108] ss:$16 sps:$4 sm:$0xff]  }
 0x490   : > { %3186 = vmatprep.mubr.bf16.mxu0 %v1725_v40  ;;  %v8417_v40 = vld [vmem:[#allocation35_spill] sm:$0xff]  ;;  %v6145_v19 = vld [vmem:[%s6924_s17 + $0x104] ss:$16 sps:$4 sm:$0xff]   ;;  %v8419_v29 = vld [vmem:[#allocation41_spill] sm:$0xff] }
 0x491   : > { %3244 = vmatmul.mubr.bf16.gmra.mxu1 %v8404_v58  ;;  %v6143_v58 = vld [vmem:[%s6924_s17 + $0x100] ss:$16 sps:$4 sm:$0xff]   ;;  %v4132_v4 = vld [vmem:[#allocation2 + $0x4] sm:$0xff]  ;;  %v4138_v53 = vld [vmem:[#allocation2 + $0x34] sm:$0xff] }
 0x492   : > { %3251 = vmatprep.mubr.bf16.mxu1 %v1727_v30  ;;  %v6148_v30 = vld [vmem:[%s6924_s17 + $0x10c] ss:$16 sps:$4 sm:$0xff]   ;;  %v8420_v27 = vld [vmem:[#allocation42_spill] sm:$0xff]  ;;  %v8422_v14 = vld [vmem:[#allocation44_spill] sm:$0xff] }
 0x493   : > { %v4133_v32 = vld [vmem:[#allocation2 + $0xc] sm:$0xff] }
 0x497   : > { %3187 = vmatmul.mubr.bf16.gmra.mxu0 %v8406_v34 }
 0x498   : > { %3194 = vmatprep.mubr.bf16.mxu0 %v1729_v63  ;;  %v4140_v63 = vpack.c.bf16 %v4133_v32, %v4132_v4 }
 0x499   : > { %3252 = vmatmul.mubr.bf16.gmra.mxu1 %v8407_v41  ;;  %v4134_v41 = vld [vmem:[#allocation2 + $0x14] sm:$0xff] }
 0x49a   : > { %3259 = vmatprep.mubr.bf16.mxu1 %v1731_v17 }
 0x49f   : > { %3195 = vmatmul.mubr.bf16.gmra.mxu0 %v8408_v26  ;;  %v4135_v26 = vld [vmem:[#allocation2 + $0x1c] sm:$0xff] }
 0x4a0   : > { %3368 = vmatprep.mubr.bf16.mxu0 %v8409_v42 }
 0x4a1   : > { %3260 = vmatmul.mubr.bf16.gmra.mxu1 %v8410_v43 }
 0x4a2   : > { %3441 = vmatprep.mubr.bf16.mxu1 %v8409_v42 }
 0x4a7   : > { %5416 = vmatmul.mubr.msk.bf16.vlgmr.msra.gmra.mxu0 %vm1525_vm2, %v8411_v45 }
 0x4a8   : > { %3547 = vmatpush1.bf16.msra.mxu0 %v6101_v59  ;;  %3378 = vmatprep.mubr.bf16.mxu0 %v8409_v42 }
 0x4a9   : > { %5420 = vmatmul.mubr.msk.bf16.vlgmr.msra.gmra.mxu1 %vm1525_vm2, %v8411_v45  ;;  %3548 = vmatprep.subr.bf16.mxu0 %v6109_v44 }
 0x4aa   : > { %3620 = vmatpush1.bf16.msra.mxu1 %v6104_v56  ;;  %3451 = vmatprep.mubr.bf16.mxu1 %v8409_v42 }
 0x4ab   : > { %3621 = vmatprep.subr.bf16.mxu1 %v6112_v51 }
 0x4ac   : > { %3549 = vmatpush1.bf16.msra.mxu0 %v6107_v39  ;;  %v4141_v39 = vpack.c.bf16 %v4135_v26, %v4134_v41 }
 0x4ad   : > { %3740 = vmatprep.subr.bf16.mxu0 %v6115_v5 }
 0x4ae   : > { %3622 = vmatpush1.bf16.msra.mxu1 %v6110_v23 }
 0x4af   : > { %5417 = vmatmul.mubr.msk.bf16.gmra.mxu0 %vm1525_vm2, %v8412_v52  ;;  %3813 = vmatprep.subr.bf16.mxu1 %v6118_v13 }
 0x4b0   : > { %3388 = vmatprep.mubr.bf16.mxu0 %v8409_v42 }
 0x4b1   : > { %5421 = vmatmul.mubr.msk.bf16.gmra.mxu1 %vm1525_vm2, %v8412_v52 }
 0x4b2   : > { %3461 = vmatprep.mubr.bf16.mxu1 %v8409_v42 }
 0x4b7   : > { %5418 = vmatmul.mubr.msk.bf16.gmra.mxu0 %vm1525_vm2, %v8413_v20 }
 0x4b8   : > { %3398 = vmatprep.mubr.bf16.mxu0 %v8409_v42 }
 0x4b9   : > { %5422 = vmatmul.mubr.msk.bf16.gmra.mxu1 %vm1525_vm2, %v8413_v20 }
 0x4ba   : > { %3471 = vmatprep.mubr.bf16.mxu1 %v8409_v42 }
 0x4bf   : > { %5419 = vmatmul.mubr.msk.bf16.gmra.mxu0 %vm1525_vm2, %v8414_v37 }
 0x4c0   : > { %3566 = vmatprep.mubr.bf16.mxu0 %v8409_v42 }
 0x4c1   : > { %5423 = vmatmul.mubr.msk.bf16.gmra.mxu1 %vm1525_vm2, %v8414_v37 }
 0x4c2   : > { %3639 = vmatprep.mubr.bf16.mxu1 %v8409_v42 }
 0x4c7   : > { %5432 = vmatmul.mubr.msk.bf16.vlgmr.msra.gmra.mxu0 %vm1525_vm2, %v3276_v49 }
 0x4c8   : > { %3741 = vmatpush1.bf16.msra.mxu0 %v6113_v8  ;;  %3576 = vmatprep.mubr.bf16.mxu0 %v8409_v42  ;;  %v4137_v8 = vld [vmem:[#allocation2 + $0x2c] sm:$0xff] }
 0x4c9   : > { %5436 = vmatmul.mubr.msk.bf16.vlgmr.msra.gmra.mxu1 %vm1525_vm2, %v3276_v49  ;;  %3742 = vmatprep.subr.bf16.mxu0 %v6121_v48  ;;  %v4136_v49 = vld [vmem:[#allocation2 + $0x24] sm:$0xff] }
 0x4ca   : > { %3814 = vmatpush1.bf16.msra.mxu1 %v6116_v35  ;;  %3649 = vmatprep.mubr.bf16.mxu1 %v8409_v42 }
 0x4cb   : > { %3815 = vmatprep.subr.bf16.mxu1 %v6124_v15 }
 0x4cc   : > { %3743 = vmatpush1.bf16.msra.mxu0 %v6119_v57 }
 0x4cd   : > { %3966 = vmatprep.subr.bf16.mxu0 %v6127_v46  ;;  %v4142_v46 = vpack.c.bf16 %v4137_v8, %v4136_v49 }
 0x4ce   : > { %3816 = vmatpush1.bf16.msra.mxu1 %v6122_v61 }
 0x4cf   : > { %5433 = vmatmul.mubr.msk.bf16.gmra.mxu0 %vm1525_vm2, %v3277_v62  ;;  %4039 = vmatprep.subr.bf16.mxu1 %v6130_v55 }
 0x4d0   : > { %3586 = vmatprep.mubr.bf16.mxu0 %v8409_v42 }
 0x4d1   : > { %5437 = vmatmul.mubr.msk.bf16.gmra.mxu1 %vm1525_vm2, %v3277_v62 }
 0x4d2   : > { %3659 = vmatprep.mubr.bf16.mxu1 %v8409_v42 }
 0x4d7   : > { %5434 = vmatmul.mubr.msk.bf16.gmra.mxu0 %vm1525_vm2, %v3278_v7 }
 0x4d8   : > { %3596 = vmatprep.mubr.bf16.mxu0 %v8409_v42 }
 0x4d9   : > { %5438 = vmatmul.mubr.msk.bf16.gmra.mxu1 %vm1525_vm2, %v3278_v7 }
 0x4da   : > { %3669 = vmatprep.mubr.bf16.mxu1 %v8409_v42 }
 0x4df   : > { %5435 = vmatmul.mubr.msk.bf16.gmra.mxu0 %vm1525_vm2, %v3279_v50 }
 0x4e0   : > { %3760 = vmatprep.mubr.bf16.mxu0 %v8409_v42 }
 0x4e1   : > { %5439 = vmatmul.mubr.msk.bf16.gmra.mxu1 %vm1525_vm2, %v3279_v50  ;;  %v4139_v50 = vld [vmem:[#allocation2 + $0x3c] sm:$0xff] }
 0x4e2   : > { %3833 = vmatprep.mubr.bf16.mxu1 %v8409_v42 }
 0x4e7   : > { %5448 = vmatmul.mubr.msk.bf16.vlgmr.msra.gmra.mxu0 %vm1525_vm2, %v8415_v25 }
 0x4e8   : > { %3967 = vmatpush1.bf16.msra.mxu0 %v6125_v9  ;;  %3770 = vmatprep.mubr.bf16.mxu0 %v8409_v42 }
 0x4e9   : > { %5452 = vmatmul.mubr.msk.bf16.vlgmr.msra.gmra.mxu1 %vm1525_vm2, %v8415_v25  ;;  %3968 = vmatprep.subr.bf16.mxu0 %v6133_v10 }
 0x4ea   : > { %4040 = vmatpush1.bf16.msra.mxu1 %v6128_v11  ;;  %3843 = vmatprep.mubr.bf16.mxu1 %v8409_v42 }
 0x4eb   : > { %4041 = vmatprep.subr.bf16.mxu1 %v6136_v12 }
 0x4ec   : > { %3969 = vmatpush1.bf16.msra.mxu0 %v6131_v36  ;;  %v4143_v36 = vpack.c.bf16 %v4139_v50, %v4138_v53  ;;  %v6150_v53 = vld [vmem:[%s6932_s3 + $0xf8] sm:$0xff]  }
 0x4ed   : > { %4216 = vmatprep.subr.bf16.mxu0 %v6139_v21 }
 0x4ee   : > { %4042 = vmatpush1.bf16.msra.mxu1 %v6134_v18 }
 0x4ef   : > { %5449 = vmatmul.mubr.msk.bf16.gmra.mxu0 %vm1525_vm2, %v8416_v33  ;;  %4289 = vmatprep.subr.bf16.mxu1 %v6142_v24 }
 0x4f0   : > { %3780 = vmatprep.mubr.bf16.mxu0 %v8409_v42 }
 0x4f1   : > { %5453 = vmatmul.mubr.msk.bf16.gmra.mxu1 %vm1525_vm2, %v8416_v33 }
 0x4f2   : > { %3853 = vmatprep.mubr.bf16.mxu1 %v8409_v42 }
 0x4f7   : > { %5450 = vmatmul.mubr.msk.bf16.gmra.mxu0 %vm1525_vm2, %v8417_v40 }
 0x4f8   : > { %3790 = vmatprep.mubr.bf16.mxu0 %v8409_v42 }
 0x4f9   : > { %5454 = vmatmul.mubr.msk.bf16.gmra.mxu1 %vm1525_vm2, %v8417_v40 }
 0x4fa   : > { %3863 = vmatprep.mubr.bf16.mxu1 %v8409_v42 }
 0x4ff   : > { %5451 = vmatmul.mubr.msk.bf16.gmra.mxu0 %vm1525_vm2, %v8418_v0 }
 0x500   : > { %3986 = vmatprep.mubr.bf16.mxu0 %v8409_v42 }
 0x501   : > { %5455 = vmatmul.mubr.msk.bf16.gmra.mxu1 %vm1525_vm2, %v8418_v0 }
 0x502   : > { %4059 = vmatprep.mubr.bf16.mxu1 %v8409_v42 }
 0x507   : > { %5464 = vmatmul.mubr.msk.bf16.vlgmr.msra.gmra.mxu0 %vm1525_vm2, %v8419_v29 }
 0x508   : > { %4217 = vmatpush1.bf16.msra.mxu0 %v6137_v6  ;;  %3996 = vmatprep.mubr.bf16.mxu0 %v8409_v42 }
 0x509   : > { %5468 = vmatmul.mubr.msk.bf16.vlgmr.msra.gmra.mxu1 %vm1525_vm2, %v8419_v29  ;;  %4218 = vmatprep.subr.bf16.mxu0 %v6145_v19 }
 0x50a   : > { %4290 = vmatpush1.bf16.msra.mxu1 %v6140_v54  ;;  %4069 = vmatprep.mubr.bf16.mxu1 %v8409_v42 }
 0x50b   : > { %4291 = vmatprep.subr.bf16.mxu1 %v6148_v30 }
 0x50c   : > { %4219 = vmatpush1.bf16.msra.mxu0 %v6143_v58 }
 0x50e   : > { %4292 = vmatpush1.bf16.msra.mxu1 %v6146_v3 }
 0x50f   : > { %5465 = vmatmul.mubr.msk.bf16.gmra.mxu0 %vm1525_vm2, %v8420_v27  ;;  %5750 = vmatprep.subr.bf16.mxu1 %v6150_v53  ;;  %v6171_v53 = vld [vmem:[%s6932_s3 + $0x10] sm:$0xff]  }
 0x510   : > { %4006 = vmatprep.mubr.bf16.mxu0 %v8409_v42 }
 0x511   : > { %5469 = vmatmul.mubr.msk.bf16.gmra.mxu1 %vm1525_vm2, %v8420_v27 }
 0x512   : > { %4079 = vmatprep.mubr.bf16.mxu1 %v8409_v42 }
 0x517   : > { %5466 = vmatmul.mubr.msk.bf16.gmra.mxu0 %vm1525_vm2, %v8421_v31 }
 0x518   : > { %4016 = vmatprep.mubr.bf16.mxu0 %v8409_v42 }
 0x519   : > { %5470 = vmatmul.mubr.msk.bf16.gmra.mxu1 %vm1525_vm2, %v8421_v31 }
 0x51a   : > { %4089 = vmatprep.mubr.bf16.mxu1 %v8409_v42 }
 0x51f   : > { %5467 = vmatmul.mubr.msk.bf16.gmra.mxu0 %vm1525_vm2, %v8422_v14 }
 0x520   : > { %4236 = vmatprep.mubr.bf16.mxu0 %v8409_v42 }
 0x521   : > { %5471 = vmatmul.mubr.msk.bf16.gmra.mxu1 %vm1525_vm2, %v8422_v14 }
 0x522   : > { %4309 = vmatprep.mubr.bf16.mxu1 %v8409_v42 }
 0x526   : > { %v5566_v34 = vpop.f32.mrf.mxu0 }
 0x527   : > { %v5606_v17 = vpop.f32.mrf.mxu1  ;;  %5480 = vmatmul.mubr.msk.bf16.vlgmr.msra.gmra.mxu0 %vm1525_vm2, %v4140_v63 }
 0x528   : > { %4246 = vmatprep.mubr.bf16.mxu0 %v8409_v42  ;;  %v5567_v43 = vpop.f32.mrf.mxu0 }
 0x529   : > { %5484 = vmatmul.mubr.msk.bf16.vlgmr.msra.gmra.mxu1 %vm1525_vm2, %v4140_v63  ;;  %v5607_v59 = vpop.f32.mrf.mxu1  ;;  %v5568_v44 = vadd.f32 %v5567_v43, %v5566_v34 }
 0x52a   : > { %v5608_v56 = vadd.f32 %v5607_v59, %v5606_v17  ;;  %4319 = vmatprep.mubr.bf16.mxu1 %v8409_v42  ;;  %v5569_v45 = vpop.f32.mrf.mxu0 }
 0x52b   : > { %v5609_v51 = vpop.f32.mrf.mxu1 }
 0x52c   : > { %v7706_v5 = vadd.f32 %v5608_v56, %v5568_v44  ;;  %v5570_v23 = vpop.f32.mrf.mxu0 }
 0x52d   : > { %v5610_v13 = vpop.f32.mrf.mxu1  ;;  %v5571_v52 = vadd.f32 %v5570_v23, %v5569_v45 }
 0x52e   : > { %v5611_v20 = vadd.f32 %v5610_v13, %v5609_v51 }
 0x52f   : > { %v5572_v37 = vpop.f32.mrf.mxu0  ;;  %v5612_v2 = vpop.f32.mrf.mxu1  ;;  %5481 = vmatmul.mubr.msk.bf16.gmra.mxu0 %vm1525_vm2, %v4141_v39 }
 0x530   : > { %v7709_v47 = vadd.f32 %v5611_v20, %v5571_v52  ;;  %4256 = vmatprep.mubr.bf16.mxu0 %v8409_v42 }
 0x531   : > { %5485 = vmatmul.mubr.msk.bf16.gmra.mxu1 %vm1525_vm2, %v4141_v39  ;;  %v5573_v48 = vpop.f32.mrf.mxu0  ;;  %v5613_v35 = vpop.f32.mrf.mxu1 }
 0x532   : > { %v5574_v15 = vadd.f32 %v5573_v48, %v5572_v37  ;;  %v5614_v1 = vadd.f32 %v5613_v35, %v5612_v2  ;;  %4329 = vmatprep.mubr.bf16.mxu1 %v8409_v42 }
 0x533   : > { %v5575_v60 = vpop.f32.mrf.mxu0  ;;  %v5615_v57 = vpop.f32.mrf.mxu1 }
 0x534   : > { %v7714_v61 = vadd.f32 %v5614_v1, %v5574_v15 }
 0x535   : > { %v5576_v62 = vpop.f32.mrf.mxu0  ;;  %v5616_v55 = vpop.f32.mrf.mxu1 }
 0x536   : > { %v5577_v28 = vadd.f32 %v5576_v62, %v5575_v60  ;;  %v5617_v22 = vadd.f32 %v5616_v55, %v5615_v57 }
 0x537   : > { %v5578_v7 = vpop.f32.mrf.mxu0  ;;  %5482 = vmatmul.mubr.msk.bf16.gmra.mxu0 %vm1525_vm2, %v4142_v46 }
 0x538   : > { %v7717_v38 = vadd.f32 %v5617_v22, %v5577_v28  ;;  %4266 = vmatprep.mubr.bf16.mxu0 %v8409_v42 }
 0x539   : > { %v5618_v9 = vpop.f32.mrf.mxu1  ;;  %5486 = vmatmul.mubr.msk.bf16.gmra.mxu1 %vm1525_vm2, %v4142_v46  ;;  %v5579_v10 = vpop.f32.mrf.mxu0 }
 0x53a   : > { %v5580_v11 = vadd.f32 %v5579_v10, %v5578_v7  ;;  %4339 = vmatprep.mubr.bf16.mxu1 %v8409_v42  ;;  %v6149_v7 = vld [vmem:[%s6932_s3 + $0x78] sm:$0xff]  }
 0x53b   : > { %v5619_v25 = vpop.f32.mrf.mxu1  ;;  %v5581_v12 = vpop.f32.mrf.mxu0  ;;  %v6151_v10 = vld [vmem:[%s6932_s3 + $0x38] sm:$0xff]   ;;  %5710 = vmatprep.subr.bf16.mxu0 %v6149_v7  ;;  %v6170_v7 = vld [vmem:[%s6932_s3 + $0xd0] sm:$0xff]  }
 0x53c   : > { %v5620_v21 = vadd.f32 %v5619_v25, %v5618_v9  ;;  %5711 = vmatpush3.bf16.msra.mxu0 %v6151_v10 }
 0x53d   : > { %v5621_v18 = vpop.f32.mrf.mxu1  ;;  %v5582_v24 = vpop.f32.mrf.mxu0 }
 0x53e   : > { %v7722_v33 = vadd.f32 %v5620_v21, %v5580_v11  ;;  %v5583_v40 = vadd.f32 %v5582_v24, %v5581_v12  ;;  %v6152_v11 = vld [vmem:[%s6932_s3 + $0xb8] sm:$0xff]   ;;  %v6153_v24 = vld [vmem:[%s6932_s3 + $0x70] sm:$0xff]  }
 0x53f   : > { %v5622_v0 = vpop.f32.mrf.mxu1  ;;  %v5584_v6 = vpop.f32.mrf.mxu0  ;;  %5483 = vmatmul.mubr.msk.bf16.gmra.mxu0 %vm1525_vm2, %v4143_v36  ;;  %5751 = vmatpush3.bf16.msra.mxu1 %v6152_v11 }
 0x540   : > { %v5623_v19 = vadd.f32 %v5622_v0, %v5621_v18  ;;  %5712 = vmatprep.subr.bf16.mxu0 %v6153_v24 }
 0x541   : > { %v5624_v54 = vpop.f32.mrf.mxu1  ;;  %5487 = vmatmul.mubr.msk.bf16.gmra.mxu1 %vm1525_vm2, %v4143_v36  ;;  %v5585_v29 = vpop.f32.mrf.mxu0 }
 0x542   : > { %v7726_v30 = vadd.f32 %v5623_v19, %v5583_v40  ;;  %v5586_v42 = vadd.f32 %v5585_v29, %v5584_v6  ;;  %v6154_v40 = vld [vmem:[%s6932_s3 + $0xf0] sm:$0xff]  }
 0x543   : > { %v5625_v58 = vpop.f32.mrf.mxu1  ;;  %v5587_v3 = vpop.f32.mrf.mxu0  ;;  %v6155_v6 = vld [vmem:[%s6932_s3 + $0x30] sm:$0xff]   ;;  %5752 = vmatprep.subr.bf16.mxu1 %v6154_v40 }
 0x544   : > { %v5626_v27 = vadd.f32 %v5625_v58, %v5624_v54  ;;  %v6156_v19 = vld [vmem:[%s6932_s3 + $0xb0] sm:$0xff]   ;;  %5713 = vmatpush3.bf16.msra.mxu0 %v6155_v6  ;;  %v6177_v6 = vld [vmem:[%s6932_s3 + $0x40] sm:$0xff]  }
 0x545   : > { %v5627_v31 = vpop.f32.mrf.mxu1  ;;  %v5588_v14 = vpop.f32.mrf.mxu0  ;;  %5753 = vmatpush3.bf16.msra.mxu1 %v6156_v19  ;;  %v6178_v19 = vld [vmem:[%s6932_s3 + $0xc0] sm:$0xff]  }
 0x546   : > { %v7728_v4 = vadd.f32 %v5626_v27, %v5586_v42  ;;  %v5589_v32 = vadd.f32 %v5588_v14, %v5587_v3  ;;  %v6158_v14 = vld [vmem:[%s6932_s3 + $0xe8] sm:$0xff]  }
 0x547   : > { %v5628_v63 = vpop.f32.mrf.mxu1  ;;  %v5646_v34 = vpop.f32.mrf.mxu0  ;;  %5754 = vmatprep.subr.bf16.mxu1 %v6158_v14 }
 0x548   : > { %v5629_v17 = vadd.f32 %v5628_v63, %v5627_v31  ;;  %v6157_v31 = vld [vmem:[%s6932_s3 + $0x68] sm:$0xff]  }
 0x549   : > { %v5686_v41 = vpop.f32.mrf.mxu1  ;;  %v5647_v26 = vpop.f32.mrf.mxu0  ;;  %v6159_v63 = vld [vmem:[%s6932_s3 + $0x28] sm:$0xff]   ;;  %5714 = vmatprep.subr.bf16.mxu0 %v6157_v31 }
 0x54a   : > { %v7730_v43 = vadd.f32 %v5629_v17, %v5589_v32  ;;  %v5648_v59 = vadd.f32 %v5647_v26, %v5646_v34  ;;  %v6160_v34 = vld [vmem:[%s6932_s3 + $0xa8] sm:$0xff]   ;;  %5715 = vmatpush3.bf16.msra.mxu0 %v6159_v63 }
 0x54b   : > { %v5687_v44 = vpop.f32.mrf.mxu1  ;;  %v5649_v56 = vpop.f32.mrf.mxu0  ;;  %5755 = vmatpush3.bf16.msra.mxu1 %v6160_v34 }
 0x54c   : > { %v3173_v45 = vadd.f32 %v5648_v59, %v7706_v5  ;;  %v5688_v51 = vadd.f32 %v5687_v44, %v5686_v41 }
 0x54d   : > { %v5689_v39 = vpop.f32.mrf.mxu1  ;;  %v5650_v23 = vpop.f32.mrf.mxu0 }
 0x54e   : > { %v7733_v13 = vadd.f32 %v5688_v51, %v3173_v45  ;;  %v5651_v52 = vadd.f32 %v5650_v23, %v5649_v56  ;;  %v6161_v45 = vld [vmem:[%s6932_s3 + $0x60] sm:$0xff]  }
 0x54f   : > { %v5690_v20 = vpop.f32.mrf.mxu1  ;;  %v5652_v37 = vpop.f32.mrf.mxu0  ;;  %v6162_v51 = vld [vmem:[%s6932_s3 + $0xe0] sm:$0xff]   ;;  %5716 = vmatprep.subr.bf16.mxu0 %v6161_v45 }
 0x550   : > { %8423 = vst [vmem:[#allocation88_spill] sm:$0xff] %v7733_v13  ;;  %v3176_v2 = vadd.f32 %v5651_v52, %v7709_v47  ;;  %v5691_v49 = vadd.f32 %v5690_v20, %v5689_v39  ;;  %v6163_v23 = vld [vmem:[%s6932_s3 + $0x20] sm:$0xff]   ;;  %5756 = vmatprep.subr.bf16.mxu1 %v6162_v51 }
 0x551   : > { %v5692_v8 = vpop.f32.mrf.mxu1  ;;  %v5653_v48 = vpop.f32.mrf.mxu0  ;;  %v6164_v52 = vld [vmem:[%s6932_s3 + $0xa0] sm:$0xff]   ;;  %5717 = vmatpush3.bf16.msra.mxu0 %v6163_v23 }
 0x552   : > { %v7736_v35 = vadd.f32 %v5691_v49, %v3176_v2  ;;  %v5654_v15 = vadd.f32 %v5653_v48, %v5652_v37  ;;  %5757 = vmatpush3.bf16.msra.mxu1 %v6164_v52 }
 0x553   : > { %v5693_v5 = vpop.f32.mrf.mxu1  ;;  %v5655_v1 = vpop.f32.mrf.mxu0 }
 0x554   : > { %8424 = vst [vmem:[#allocation89_spill] sm:$0xff] %v7736_v35  ;;  %v3181_v60 = vadd.f32 %v5654_v15, %v7714_v61  ;;  %v5694_v57 = vadd.f32 %v5693_v5, %v5692_v8  ;;  %v6165_v15 = vld [vmem:[%s6932_s3 + $0x58] sm:$0xff]  }
 0x555   : > { %v5695_v46 = vpop.f32.mrf.mxu1  ;;  %v5656_v62 = vpop.f32.mrf.mxu0  ;;  %5718 = vmatprep.subr.bf16.mxu0 %v6165_v15 }
 0x556   : > { %v7739_v55 = vadd.f32 %v5694_v57, %v3181_v60  ;;  %v5657_v47 = vadd.f32 %v5656_v62, %v5655_v1  ;;  %v6167_v60 = vld [vmem:[%s6932_s3 + $0x18] sm:$0xff]  }
 0x557   : > { %v5696_v28 = vpop.f32.mrf.mxu1  ;;  %v5658_v22 = vpop.f32.mrf.mxu0  ;;  %v6168_v57 = vld [vmem:[%s6932_s3 + $0x98] sm:$0xff]   ;;  %5719 = vmatpush3.bf16.msra.mxu0 %v6167_v60 }
 0x558   : > { %8425 = vst [vmem:[#allocation71_spill] sm:$0xff] %v7739_v55  ;;  %v3184_v50 = vadd.f32 %v5657_v47, %v7717_v38  ;;  %v5697_v9 = vadd.f32 %v5696_v28, %v5695_v46 }
 0x559   : > { %v5698_v61 = vpop.f32.mrf.mxu1  ;;  %v5659_v25 = vpop.f32.mrf.mxu0 }
 0x55a   : > { %v7746_v12 = vadd.f32 %v5697_v9, %v3184_v50  ;;  %v5660_v36 = vadd.f32 %v5659_v25, %v5658_v22  ;;  %v6172_v50 = vld [vmem:[%s6932_s3 + $0x90] sm:$0xff]   ;;  %v6173_v25 = vld [vmem:[%s6932_s3 + $0x48] sm:$0xff]  }
 0x55b   : > { %v5699_v21 = vpop.f32.mrf.mxu1  ;;  %v5661_v18 = vpop.f32.mrf.mxu0 }
 0x55c   : > { %8426 = vst [vmem:[#allocation72_spill] sm:$0xff] %v7746_v12  ;;  %v3189_v38 = vadd.f32 %v5660_v36, %v7722_v33  ;;  %v5700_v0 = vadd.f32 %v5699_v21, %v5698_v61  ;;  %v6174_v36 = vld [vmem:[%s6932_s3 + $0xc8] sm:$0xff]  }
 0x55d   : > { %v5701_v54 = vpop.f32.mrf.mxu1  ;;  %v5662_v29 = vpop.f32.mrf.mxu0  ;;  %v6175_v21 = vld [vmem:[%s6932_s3 + $0x8] sm:$0xff]  }
 0x55e   : > { %v7753_v42 = vadd.f32 %v5700_v0, %v3189_v38  ;;  %v5663_v58 = vadd.f32 %v5662_v29, %v5661_v18  ;;  %v6176_v18 = vld [vmem:[%s6932_s3 + $0x88] sm:$0xff]  }
 0x55f   : > { %v5702_v3 = vpop.f32.mrf.mxu1  ;;  %v5664_v27 = vpop.f32.mrf.mxu0 }
 0x560   : > { %8427 = vst [vmem:[#allocation73_spill] sm:$0xff] %v7753_v42  ;;  %v3192_v33 = vadd.f32 %v5663_v58, %v7726_v30  ;;  %v5703_v32 = vadd.f32 %v5702_v3, %v5701_v54  ;;  %v6179_v58 = vld [vmem:[%s6932_s3] sm:$0xff]  }
 0x561   : > { %v5704_v17 = vpop.f32.mrf.mxu1  ;;  %v5665_v41 = vpop.f32.mrf.mxu0  ;;  %v6180_v3 = vld [vmem:[%s6932_s3 + $0x80] sm:$0xff]  }
 0x562   : > { %v7760_v26 = vadd.f32 %v5703_v32, %v3192_v33  ;;  %v5666_v59 = vadd.f32 %v5665_v41, %v5664_v27 }
 0x563   : > { %v5705_v44 = vpop.f32.mrf.mxu1  ;;  %v5667_v56 = vpop.f32.mrf.mxu0 }
 0x564   : > { %8428 = vst [vmem:[#allocation80_spill] sm:$0xff] %v7760_v26  ;;  %v3197_v30 = vadd.f32 %v5666_v59, %v7728_v4  ;;  %v5706_v39 = vadd.f32 %v5705_v44, %v5704_v17  ;;  %v6166_v4 = vld [vmem:[%s6932_s3 + $0xd8] sm:$0xff]  }
 0x565   : > { %v5707_v20 = vpop.f32.mrf.mxu1  ;;  %v5668_v37 = vpop.f32.mrf.mxu0  ;;  %5758 = vmatprep.subr.bf16.mxu1 %v6166_v4 }
 0x566   : > { %v7767_v2 = vadd.f32 %v5706_v39, %v3197_v30  ;;  %v5669_v49 = vadd.f32 %v5668_v37, %v5667_v56  ;;  %5759 = vmatpush3.bf16.msra.mxu1 %v6168_v57 }
 0x567   : > { %v5708_v8 = vpop.f32.mrf.mxu1  ;;  %v7769_v48 = vpop.f32.mrf.mxu0  ;;  %5760 = vmatprep.subr.bf16.mxu1 %v6170_v7 }
 0x568   : > { %8429 = vst [vmem:[#allocation74_spill] sm:$0xff] %v7767_v2  ;;  %v3200_v5 = vadd.f32 %v5669_v49, %v7730_v43  ;;  %v5709_v1 = vadd.f32 %v5708_v8, %v5707_v20  ;;  %v6169_v43 = vld [vmem:[%s6932_s3 + $0x50] sm:$0xff]  }
 0x569   : > { %v7776_v46 = vpop.f32.mrf.mxu1  ;;  %v7778_v62 = vpop.f32.mrf.mxu0  ;;  %5720 = vmatprep.subr.bf16.mxu0 %v6169_v43 }
 0x56a   : > { %v7780_v47 = vadd.f32 %v5709_v1, %v3200_v5  ;;  %5721 = vmatpush3.bf16.msra.mxu0 %v6171_v53  ;;  %5761 = vmatpush3.bf16.msra.mxu1 %v6172_v50 }
 0x56b   : > { %v3445_v28 = vpop.f32.mrf.mxu1  ;;  %v3374_v22 = vpop.f32.mrf.mxu0  ;;  %5722 = vmatprep.subr.bf16.mxu0 %v6173_v25  ;;  %5762 = vmatprep.subr.bf16.mxu1 %v6174_v36 }
 0x56c   : > { %8430 = vst [vmem:[#allocation81_spill] sm:$0xff] %v7780_v47 }
 0x56d   : > { %v3447_v9 = vpop.f32.mrf.mxu1  ;;  %v3376_v10 = vpop.f32.mrf.mxu0 }
 0x56e   : > { %5723 = vmatpush3.bf16.msra.mxu0 %v6175_v21  ;;  %5763 = vmatpush3.bf16.msra.mxu1 %v6176_v18 }
 0x56f   : > { %v3449_v11 = vpop.f32.mrf.mxu1  ;;  %v3380_v61 = vpop.f32.mrf.mxu0  ;;  %5724 = vmatprep.subr.bf16.mxu0 %v6177_v6  ;;  %5764 = vmatprep.subr.bf16.mxu1 %v6178_v19 }
 0x571   : > { %v3453_v24 = vpop.f32.mrf.mxu1  ;;  %v3382_v40 = vpop.f32.mrf.mxu0 }
 0x572   : > { %5725 = vmatpush3.bf16.msra.mxu0 %v6179_v58  ;;  %5765 = vmatpush3.bf16.msra.mxu1 %v6180_v3 }
 0x573   : > { %v3455_v38 = vpop.f32.mrf.mxu1  ;;  %v3384_v0 = vpop.f32.mrf.mxu0 }
 0x575   : > { %v3457_v54 = vpop.f32.mrf.mxu1  ;;  %v3386_v29 = vpop.f32.mrf.mxu0 }
 0x577   : > { %v3459_v27 = vpop.f32.mrf.mxu1  ;;  %v3390_v31 = vpop.f32.mrf.mxu0 }
 0x579   : > { %v3463_v14 = vpop.f32.mrf.mxu1  ;;  %v3392_v33 = vpop.f32.mrf.mxu0 }
 0x57b   : > { %v3465_v32 = vpop.f32.mrf.mxu1  ;;  %v3394_v63 = vpop.f32.mrf.mxu0 }
 0x57d   : > { %v3467_v34 = vpop.f32.mrf.mxu1  ;;  %v3396_v17 = vpop.f32.mrf.mxu0 }
 0x57f   : > { %v3469_v41 = vpop.f32.mrf.mxu1  ;;  %v3400_v59 = vpop.f32.mrf.mxu0 }
 0x581   : > { %v3473_v44 = vpop.f32.mrf.mxu1  ;;  %v3402_v56 = vpop.f32.mrf.mxu0 }
 0x583   : > { %v3475_v45 = vpop.f32.mrf.mxu1  ;;  %v3404_v51 = vpop.f32.mrf.mxu0 }
 0x585   : > { %v7794_v30 = vpop.f32.mrf.mxu1  ;;  %v7796_v39 = vpop.f32.mrf.mxu0 }
 0x587   : > { %v7798_v23 = vpop.f32.mrf.mxu1  ;;  %v3568_v52 = vpop.f32.mrf.mxu0 }
 0x588   : > { %v7801_v20 = vadd.f32 %v3568_v52, %v7769_v48 }
 0x589   : > { %v3641_v37 = vpop.f32.mrf.mxu1  ;;  %v3570_v49 = vpop.f32.mrf.mxu0 }
 0x58a   : > { %v7804_v8 = vadd.f32 %v3641_v37, %v7776_v46  ;;  %v7807_v15 = vadd.f32 %v3570_v49, %v7778_v62 }
 0x58b   : > { %v3643_v4 = vpop.f32.mrf.mxu1  ;;  %v3572_v5 = vpop.f32.mrf.mxu0 }
 0x58c   : > { %v7809_v1 = vadd.f32 %v3643_v4, %v3445_v28  ;;  %v7811_v60 = vadd.f32 %v3572_v5, %v3374_v22 }
 0x58d   : > { %v3645_v57 = vpop.f32.mrf.mxu1  ;;  %v3574_v43 = vpop.f32.mrf.mxu0 }
 0x58e   : > { %v7813_v7 = vadd.f32 %v3645_v57, %v3447_v9  ;;  %v7815_v48 = vadd.f32 %v3574_v43, %v3376_v10 }
 0x58f   : > { %v3647_v53 = vpop.f32.mrf.mxu1  ;;  %v3578_v50 = vpop.f32.mrf.mxu0 }
 0x590   : > { %v7817_v25 = vadd.f32 %v3647_v53, %v3449_v11  ;;  %v3579_v46 = vadd.f32 %v3578_v50, %v3380_v61 }
 0x591   : > { %v3651_v36 = vpop.f32.mrf.mxu1  ;;  %v3580_v62 = vpop.f32.mrf.mxu0 }
 0x592   : > { %v3652_v21 = vadd.f32 %v3651_v36, %v3453_v24  ;;  %v3581_v18 = vadd.f32 %v3580_v62, %v3382_v40 }
 0x593   : > { %v3653_v6 = vpop.f32.mrf.mxu1  ;;  %v3582_v28 = vpop.f32.mrf.mxu0 }
 0x594   : > { %v3654_v19 = vadd.f32 %v3653_v6, %v3455_v38  ;;  %v3583_v22 = vadd.f32 %v3582_v28, %v3384_v0 }
 0x595   : > { %v3655_v58 = vpop.f32.mrf.mxu1  ;;  %v3584_v3 = vpop.f32.mrf.mxu0 }
 0x596   : > { %v7819_v52 = vadd.f32 %v3655_v58, %v3457_v54  ;;  %v7821_v9 = vadd.f32 %v3584_v3, %v3386_v29 }
 0x597   : > { %v3657_v10 = vpop.f32.mrf.mxu1  ;;  %v3588_v37 = vpop.f32.mrf.mxu0 }
 0x598   : > { %v7823_v49 = vadd.f32 %v3657_v10, %v3459_v27  ;;  %v3589_v11 = vadd.f32 %v3588_v37, %v3390_v31 }
 0x599   : > { %v3661_v61 = vpop.f32.mrf.mxu1  ;;  %v3590_v4 = vpop.f32.mrf.mxu0 }
 0x59a   : > { %v3662_v5 = vadd.f32 %v3661_v61, %v3463_v14  ;;  %v3591_v24 = vadd.f32 %v3590_v4, %v3392_v33 }
 0x59b   : > { %v3663_v40 = vpop.f32.mrf.mxu1  ;;  %v3592_v57 = vpop.f32.mrf.mxu0 }
 0x59c   : > { %v3664_v43 = vadd.f32 %v3663_v40, %v3465_v32  ;;  %v3593_v38 = vadd.f32 %v3592_v57, %v3394_v63 }
 0x59d   : > { %v3665_v0 = vpop.f32.mrf.mxu1  ;;  %v3594_v53 = vpop.f32.mrf.mxu0 }
 0x59e   : > { %v3666_v50 = vadd.f32 %v3665_v0, %v3467_v34  ;;  %v7825_v54 = vadd.f32 %v3594_v53, %v3396_v17 }
 0x59f   : > { %v3667_v29 = vpop.f32.mrf.mxu1  ;;  %v3598_v36 = vpop.f32.mrf.mxu0 }
 0x5a0   : > { %v7827_v62 = vadd.f32 %v3667_v29, %v3469_v41  ;;  %v3599_v27 = vadd.f32 %v3598_v36, %v3400_v59 }
 0x5a1   : > { %v3671_v6 = vpop.f32.mrf.mxu1  ;;  %v3600_v31 = vpop.f32.mrf.mxu0 }
 0x5a2   : > { %v3672_v28 = vadd.f32 %v3671_v6, %v3473_v44  ;;  %v3601_v58 = vadd.f32 %v3600_v31, %v3402_v56 }
 0x5a3   : > { %v3673_v14 = vpop.f32.mrf.mxu1  ;;  %v3602_v33 = vpop.f32.mrf.mxu0 }
 0x5a4   : > { %v3674_v3 = vadd.f32 %v3673_v14, %v3475_v45  ;;  %v3603_v10 = vadd.f32 %v3602_v33, %v3404_v51 }
 0x5a5   : > { %v3675_v32 = vpop.f32.mrf.mxu1  ;;  %v3604_v63 = vpop.f32.mrf.mxu0 }
 0x5a6   : > { %v3676_v37 = vadd.f32 %v3675_v32, %v7794_v30  ;;  %v7831_v34 = vadd.f32 %v3604_v63, %v7796_v39 }
 0x5a7   : > { %v3677_v17 = vpop.f32.mrf.mxu1  ;;  %v3762_v61 = vpop.f32.mrf.mxu0 }
 0x5a8   : > { %v7834_v41 = vadd.f32 %v3677_v17, %v7798_v23  ;;  %v7837_v59 = vadd.f32 %v3762_v61, %v7801_v20 }
 0x5a9   : > { %v3835_v44 = vpop.f32.mrf.mxu1  ;;  %v3764_v56 = vpop.f32.mrf.mxu0 }
 0x5aa   : > { %v7840_v45 = vadd.f32 %v3835_v44, %v7804_v8  ;;  %v7843_v51 = vadd.f32 %v3764_v56, %v7807_v15 }
 0x5ab   : > { %v3837_v30 = vpop.f32.mrf.mxu1  ;;  %v3766_v4 = vpop.f32.mrf.mxu0 }
 0x5ac   : > { %v7846_v39 = vadd.f32 %v3837_v30, %v7809_v1  ;;  %v7849_v40 = vadd.f32 %v3766_v4, %v7811_v60 }
 0x5ad   : > { %v7851_v23 = vpop.f32.mrf.mxu1  ;;  %v7853_v20 = vpop.f32.mrf.mxu0 }
 0x5af   : > { %v7855_v57 = vpop.f32.mrf.mxu1  ;;  %v3772_v0 = vpop.f32.mrf.mxu0 }
 0x5b0   : > { %v7857_v8 = vadd.f32 %v3772_v0, %v3579_v46 }
 0x5b1   : > { %v3845_v53 = vpop.f32.mrf.mxu1  ;;  %v3774_v15 = vpop.f32.mrf.mxu0 }
 0x5b2   : > { %v7859_v29 = vadd.f32 %v3845_v53, %v3652_v21  ;;  %v7861_v36 = vadd.f32 %v3774_v15, %v3581_v18 }
 0x5b3   : > { %v3847_v1 = vpop.f32.mrf.mxu1  ;;  %v3776_v6 = vpop.f32.mrf.mxu0 }
 0x5b4   : > { %v7863_v31 = vadd.f32 %v3847_v1, %v3654_v19  ;;  %v7865_v60 = vadd.f32 %v3776_v6, %v3583_v22 }
 0x5b5   : > { %v7867_v14 = vpop.f32.mrf.mxu1  ;;  %v7869_v33 = vpop.f32.mrf.mxu0 }
 0x5b6   : > { %8431 = vst [vmem:[#allocation75_spill] sm:$0xff] %v7863_v31  ;;  %8432 = vst [vmem:[#allocation82_spill] sm:$0xff] %v7865_v60 }
 0x5b7   : > { %v7871_v32 = vpop.f32.mrf.mxu1  ;;  %v3782_v46 = vpop.f32.mrf.mxu0 }
 0x5b8   : > { %v7873_v63 = vadd.f32 %v3782_v46, %v3589_v11 }
 0x5b9   : > { %v3855_v17 = vpop.f32.mrf.mxu1  ;;  %v3784_v21 = vpop.f32.mrf.mxu0 }
 0x5ba   : > { %8433 = vst [vmem:[#allocation76_spill] sm:$0xff] %v7873_v63  ;;  %v7875_v61 = vadd.f32 %v3855_v17, %v3662_v5  ;;  %v7877_v18 = vadd.f32 %v3784_v21, %v3591_v24  ;;  %v8452_v63 = vld [vmem:[#allocation46_spill] sm:$0xff] }
 0x5bb   : > { %v3857_v44 = vpop.f32.mrf.mxu1  ;;  %v3786_v19 = vpop.f32.mrf.mxu0 }
 0x5bc   : > { %8434 = vst [vmem:[#allocation83_spill] sm:$0xff] %v7875_v61  ;;  %8435 = vst [vmem:[#allocation77_spill] sm:$0xff] %v7877_v18  ;;  %v7879_v56 = vadd.f32 %v3857_v44, %v3664_v43  ;;  %v7881_v22 = vadd.f32 %v3786_v19, %v3593_v38  ;;  %v8451_v18 = vld [vmem:[#allocation45_spill] sm:$0xff] }
 0x5bd   : > { %v3859_v30 = vpop.f32.mrf.mxu1  ;;  %v3788_v4 = vpop.f32.mrf.mxu0 }
 0x5be   : > { %8436 = vst [vmem:[#allocation86_spill] sm:$0xff] %v7879_v56  ;;  %8437 = vst [vmem:[#allocation78_spill] sm:$0xff] %v7881_v22  ;;  %v7883_v0 = vadd.f32 %v3859_v30, %v3666_v50 }
 0x5bf   : > { %v3861_v53 = vpop.f32.mrf.mxu1  ;;  %v3792_v15 = vpop.f32.mrf.mxu0 }
 0x5c0   : > { %8438 = vst [vmem:[#allocation87_spill] sm:$0xff] %v7883_v0  ;;  %v7885_v11 = vadd.f32 %v3792_v15, %v3599_v27  ;;  %v4382_v0 = vld [vmem:[%s6926_s23] sm:$0xf]  ;;  %s8483_s23 = sld [smem:[#allocation106_spill]] (!%p5256_p5) }
 0x5c1   : > { %v3865_v1 = vpop.f32.mrf.mxu1  ;;  %v3794_v6 = vpop.f32.mrf.mxu0  ;;  %v7913_v61 = vrot.slane %v4382_v0, %v8451_v18  ;;  %v7916_v60 = vrot.slane %v4382_v0, %v8452_v63  ;;  %v7932_v18 = vrot.slane %v4382_v0, %v7345_v16  ;;  %v3888_v63 = vadd.f32 %v7867_v14, %v7819_v52 }
 0x5c2   : > { %8439 = vst [vmem:[#allocation84_spill] sm:$0xff] %v7885_v11  ;;  %v7887_v5 = vadd.f32 %v3865_v1, %v3672_v28  ;;  %v7889_v24 = vadd.f32 %v3794_v6, %v3601_v58 }
 0x5c3   : > { %v3867_v46 = vpop.f32.mrf.mxu1  ;;  %v3796_v17 = vpop.f32.mrf.mxu0 }
 0x5c4   : > { %8440 = vst [vmem:[#allocation49_spill] sm:$0xff] %v7887_v5  ;;  %8441 = vst [vmem:[#allocation47_spill] sm:$0xff] %v7889_v24  ;;  %v7891_v43 = vadd.f32 %v3867_v46, %v3674_v3  ;;  %v7893_v38 = vadd.f32 %v3796_v17, %v3603_v10 }
 0x5c5   : > { %v3869_v21 = vpop.f32.mrf.mxu1  ;;  %v3798_v44 = vpop.f32.mrf.mxu0 }
 0x5c6   : > { %8442 = vst [vmem:[#allocation85_spill] sm:$0xff] %v7891_v43  ;;  %8443 = vst [vmem:[#allocation50_spill] sm:$0xff] %v7893_v38  ;;  %v7895_v50 = vadd.f32 %v3869_v21, %v3676_v37 }
 0x5c7   : > { %v3871_v19 = vpop.f32.mrf.mxu1  ;;  %v3988_v30 = vpop.f32.mrf.mxu0 }
 0x5c8   : > { %8444 = vst [vmem:[#allocation48_spill] sm:$0xff] %v7895_v50  ;;  %v7948_v16 = vadd.f32 %v3871_v19, %v7834_v41 }
 0x5c9   : > { %v4061_v27 = vpop.f32.mrf.mxu1  ;;  %v3990_v15 = vpop.f32.mrf.mxu0 }
 0x5cb   : > { %v4063_v47 = vpop.f32.mrf.mxu1  ;;  %v3992_v2 = vpop.f32.mrf.mxu0 }
 0x5cd   : > { %v4065_v28 = vpop.f32.mrf.mxu1  ;;  %v3994_v1 = vpop.f32.mrf.mxu0 }
 0x5cf   : > { %v4067_v58 = vpop.f32.mrf.mxu1  ;;  %v3998_v6 = vpop.f32.mrf.mxu0 }
 0x5d1   : > { %v4071_v26 = vpop.f32.mrf.mxu1  ;;  %v4000_v42 = vpop.f32.mrf.mxu0 }
 0x5d3   : > { %v4073_v3 = vpop.f32.mrf.mxu1  ;;  %v4002_v10 = vpop.f32.mrf.mxu0 }
 0x5d5   : > { %v4075_v46 = vpop.f32.mrf.mxu1  ;;  %v4004_v17 = vpop.f32.mrf.mxu0 }
 0x5d7   : > { %v4077_v12 = vpop.f32.mrf.mxu1  ;;  %v4008_v37 = vpop.f32.mrf.mxu0 }
 0x5d9   : > { %v4081_v21 = vpop.f32.mrf.mxu1  ;;  %v4010_v55 = vpop.f32.mrf.mxu0 }
 0x5db   : > { %v4083_v35 = vpop.f32.mrf.mxu1  ;;  %v4012_v13 = vpop.f32.mrf.mxu0 }
 0x5dd   : > { %v4085_v50 = vpop.f32.mrf.mxu1  ;;  %v7897_v38 = vpop.f32.mrf.mxu0 }
 0x5de   : > { %8445 = vst [vmem:[#allocation55_spill] sm:$0xff] %v7897_v38  ;;  %v8453_v38 = vld [vmem:[#allocation79_spill] sm:$0xff] }
 0x5df   : > { %v7899_v43 = vpop.f32.mrf.mxu1  ;;  %v7901_v24 = vpop.f32.mrf.mxu0  ;;  %v7919_v31 = vrot.slane %v4382_v0, %v8453_v38  ;;  %v3887_v38 = vadd.f32 %v7869_v33, %v7821_v9  ;;  %v4102_v9 = vadd.f32 %v4061_v27, %v7840_v45  ;;  %v4108_v0 = vadd.f32 %v3998_v6, %v7857_v8  ;;  %v8454_v45 = vld [vmem:[#allocation75_spill] sm:$0xff]  ;;  %v8459_v6 = vld [vmem:[#allocation86_spill] sm:$0xff] }
 0x5e0   : > { %8446 = vst [vmem:[#allocation53_spill] sm:$0xff] %v7901_v24  ;;  %v3880_v24 = vadd.f32 %v7851_v23, %v7813_v7  ;;  %v3889_v7 = vadd.f32 %v7871_v32, %v7823_v49  ;;  %v7945_v23 = vadd.f32 %v3798_v44, %v7831_v34  ;;  %v4101_v49 = vadd.f32 %v3990_v15, %v7843_v51  ;;  %v8455_v51 = vld [vmem:[#allocation82_spill] sm:$0xff]  ;;  %v8457_v15 = vld [vmem:[#allocation83_spill] sm:$0xff] }
 0x5e1   : > { %v7903_v5 = vpop.f32.mrf.mxu1  ;;  %v7905_v11 = vpop.f32.mrf.mxu0  ;;  %v4111_v19 = vadd.f32 %v4073_v3, %v8454_v45  ;;  %v7975_v3 = vadd.f32 %v4083_v35, %v8459_v6 }
 0x5e2   : > { %8447 = vst [vmem:[#allocation56_spill] sm:$0xff] %v7903_v5  ;;  %8448 = vst [vmem:[#allocation54_spill] sm:$0xff] %v7905_v11  ;;  %v3879_v11 = vadd.f32 %v7853_v20, %v7815_v48  ;;  %v3895_v48 = vadd.f32 %v3788_v4, %v7825_v54  ;;  %v4100_v20 = vadd.f32 %v3988_v30, %v7837_v59 }
 0x5e3   : > { %v7908_v22 = vpop.f32.mrf.mxu1  ;;  %v7910_v56 = vpop.f32.mrf.mxu0  ;;  %v4103_v54 = vadd.f32 %v4063_v47, %v7846_v39  ;;  %v4106_v14 = vadd.f32 %v4065_v28, %v3880_v24  ;;  %v4110_v59 = vadd.f32 %v4071_v26, %v7859_v29  ;;  %v4112_v30 = vadd.f32 %v4002_v10, %v8455_v51  ;;  %v8456_v24 = vld [vmem:[#allocation76_spill] sm:$0xff] }
 0x5e4   : > { %8449 = vst [vmem:[#allocation61_spill] sm:$0xff] %v7908_v22  ;;  %8450 = vst [vmem:[#allocation51_spill] sm:$0xff] %v7910_v56  ;;  %v3881_v22 = vadd.f32 %v7855_v57, %v7817_v25  ;;  %v7942_v25 = vadd.f32 %v3861_v53, %v7827_v62  ;;  %v4104_v62 = vadd.f32 %v3992_v2, %v7849_v40 }
 0x5e5   : > { %v7927_v5 = vpop.f32.mrf.mxu1  ;;  %v7929_v56 = vpop.f32.mrf.mxu0  ;;  %v4105_v33 = vadd.f32 %v3994_v1, %v3879_v11  ;;  %v4109_v53 = vadd.f32 %v4000_v42, %v7861_v36  ;;  %v4114_v47 = vadd.f32 %v4075_v46, %v3888_v63  ;;  %v4113_v11 = vadd.f32 %v4004_v17, %v3887_v38  ;;  %v8458_v42 = vld [vmem:[#allocation77_spill] sm:$0xff] }
 0x5e6   : > { %v4107_v34 = vadd.f32 %v4067_v58, %v3881_v22  ;;  %v7962_v22 = vadd.f32 %v4077_v12, %v3889_v7  ;;  %v7965_v27 = vadd.f32 %v4008_v37, %v8456_v24  ;;  %v7968_v26 = vadd.f32 %v4081_v21, %v8457_v15  ;;  %v8460_v12 = vld [vmem:[#allocation78_spill] sm:$0xff]  ;;  %v8461_v37 = vld [vmem:[#allocation87_spill] sm:$0xff] }
 0x5e7   : > { %v7951_v52 = vpop.f32.mrf.mxu1  ;;  %v4238_v57 = vpop.f32.mrf.mxu0  ;;  %v7971_v29 = vadd.f32 %v4010_v55, %v8458_v42  ;;  %v7978_v10 = vadd.f32 %v4012_v13, %v8460_v12  ;;  %v7982_v21 = vadd.f32 %v4085_v50, %v8461_v37  ;;  %v8464_v37 = vld [vmem:[#allocation53_spill] sm:$0xff] }
 0x5e8   : > { %v4350_v32 = vadd.f32 %v4238_v57, %v4100_v20  ;;  %v8462_v57 = vld [vmem:[#allocation55_spill] sm:$0xff] }
 0x5e9   : > { %v4311_v4 = vpop.f32.mrf.mxu1  ;;  %v4240_v41 = vpop.f32.mrf.mxu0 }
 0x5ea   : > { %v4352_v44 = vadd.f32 %v4311_v4, %v4102_v9  ;;  %v4351_v39 = vadd.f32 %v4240_v41, %v4101_v49  ;;  %v4404_v36 = vadd.f32 %v7913_v61, %v4350_v32  ;;  %v7987_v9 = vadd.f32 %v8462_v57, %v3895_v48 }
 0x5eb   : > { %v4313_v2 = vpop.f32.mrf.mxu1  ;;  %v4242_v40 = vpop.f32.mrf.mxu0 }
 0x5ec   : > { %v4353_v8 = vadd.f32 %v4313_v2, %v4103_v54  ;;  %v4354_v28 = vadd.f32 %v4242_v40, %v4104_v62  ;;  %v4406_v46 = vadd.f32 %v7916_v60, %v4352_v44  ;;  %v4405_v55 = vadd.f32 %v7919_v31, %v4351_v39 }
 0x5ed   : > { %v4315_v1 = vpop.f32.mrf.mxu1  ;;  %v4244_v58 = vpop.f32.mrf.mxu0  ;;  %v4436_v54 = vmax.f32 %v4404_v36, 0.0 }
 0x5ee   : > { %v4356_v17 = vadd.f32 %v4315_v1, %v4106_v14  ;;  %v4408_v63 = vadd.f32 %v7913_v61, %v4354_v28  ;;  %v4355_v38 = vadd.f32 %v4244_v58, %v4105_v33  ;;  %v4407_v35 = vadd.f32 %v7932_v18, %v4353_v8 }
 0x5ef   : > { %v4317_v7 = vpop.f32.mrf.mxu1  ;;  %v4248_v20 = vpop.f32.mrf.mxu0  ;;  %v4438_v41 = vmax.f32 %v4406_v46, 0.0  ;;  %v4437_v51 = vmax.f32 %v4405_v55, 0.0 }
 0x5f0   : > { %v4410_v13 = vadd.f32 %v7916_v60, %v4356_v17  ;;  %v4357_v49 = vadd.f32 %v4317_v7, %v4107_v34  ;;  %v4440_v62 = vmax.f32 %v4408_v63, 0.0  ;;  %v4409_v50 = vadd.f32 %v7919_v31, %v4355_v38  ;;  %v8463_v17 = vld [vmem:[#allocation84_spill] sm:$0xff] }
 0x5f1   : > { %v4358_v14 = vadd.f32 %v4248_v20, %v4108_v0  ;;  %v4321_v32 = vpop.f32.mrf.mxu1  ;;  %v4250_v4 = vpop.f32.mrf.mxu0  ;;  %v7995_v34 = vadd.f32 %v7899_v43, %v7942_v25  ;;  %v4439_v8 = vmax.f32 %v4407_v35, 0.0  ;;  %v4124_v55 = vadd.f32 %v8464_v37, %v8463_v17  ;;  %v8465_v43 = vld [vmem:[#allocation49_spill] sm:$0xff]  ;;  %v8466_v25 = vld [vmem:[#allocation56_spill] sm:$0xff]  ;;  %v8467_v35 = vld [vmem:[#allocation47_spill] sm:$0xff] }
 0x5f2   : > { %v4442_v44 = vmax.f32 %v4410_v13, 0.0  ;;  %v4411_v33 = vadd.f32 %v7932_v18, %v4357_v49  ;;  %v4360_v45 = vadd.f32 %v4321_v32, %v4110_v59  ;;  %v4468_v48 = vpack.c.bf16 %v4440_v62, %v4436_v54  ;;  %v8468_v13 = vld [vmem:[#allocation54_spill] sm:$0xff]  ;;  %v8473_v17 = vld [vmem:[#allocation48_spill] sm:$0xff] }
 0x5f3   : > { %v4441_v39 = vmax.f32 %v4409_v50, 0.0  ;;  %v4359_v2 = vadd.f32 %v4250_v4, %v4109_v53  ;;  %v4323_v40 = vpop.f32.mrf.mxu1  ;;  %v4252_v24 = vpop.f32.mrf.mxu0  ;;  %v4412_v42 = vadd.f32 %v7913_v61, %v4358_v14  ;;  %v8003_v63 = vadd.f32 %v8466_v25, %v8465_v43 }
 0x5f4   : > { %v4470_v15 = vpack.c.bf16 %v4442_v44, %v4438_v41  ;;  %v4443_v0 = vmax.f32 %v4411_v33, 0.0  ;;  %v4361_v36 = vadd.f32 %v4323_v40, %v4111_v19  ;;  %v4362_v28 = vadd.f32 %v4252_v24, %v4112_v30 }
 0x5f5   : > { %v4325_v1 = vpop.f32.mrf.mxu1  ;;  %v4254_v58 = vpop.f32.mrf.mxu0  ;;  %v4469_v59 = vpack.c.bf16 %v4441_v39, %v4437_v51  ;;  %v4414_v6 = vadd.f32 %v7916_v60, %v4360_v45  ;;  %v4413_v38 = vadd.f32 %v7919_v31, %v4359_v2  ;;  %v4125_v49 = vadd.f32 %v8468_v13, %v8467_v35 }
 0x5f6   : > { %v4364_v12 = vadd.f32 %v4325_v1, %v4114_v47  ;;  %v4363_v53 = vadd.f32 %v4254_v58, %v4113_v11  ;;  %v4471_v46 = vpack.c.bf16 %v4443_v0, %v4439_v8  ;;  %v4416_v19 = vadd.f32 %v7913_v61, %v4362_v28  ;;  %v8469_v58 = vld [vmem:[#allocation85_spill] sm:$0xff] }
 0x5f7   : > { %v4327_v30 = vpop.f32.mrf.mxu1  ;;  %4772 = vmatprep.mubr.bf16.mxu0 %v4469_v59  ;;  %v4258_v7 = vpop.f32.mrf.mxu0  ;;  %v4415_v20 = vadd.f32 %v7932_v18, %v4361_v36  ;;  %v4444_v54 = vmax.f32 %v4412_v42, 0.0  ;;  %v4446_v4 = vmax.f32 %v4414_v6, 0.0  ;;  %v4445_v45 = vmax.f32 %v4413_v38, 0.0 }
 0x5f8   : > { %v4418_v47 = vadd.f32 %v7916_v60, %v4364_v12  ;;  %v4417_v11 = vadd.f32 %v7919_v31, %v4363_v53  ;;  %v4365_v57 = vadd.f32 %v4327_v30, %v7962_v22  ;;  %4837 = vmatprep.mubr.bf16.mxu1 %v4471_v46  ;;  %v4448_v62 = vmax.f32 %v4416_v19, 0.0  ;;  %4773 = vmatmul.mubr.bf16.vlgmr.msra.gmra.mxu0 %v4468_v48  ;;  %v8471_v53 = vld [vmem:[#allocation50_spill] sm:$0xff]  ;;  %v8472_v46 = vld [vmem:[#allocation51_spill] sm:$0xff] }
 0x5f9   : > { %v4366_v50 = vadd.f32 %v4258_v7, %v7965_v27  ;;  %v4331_v14 = vpop.f32.mrf.mxu1  ;;  %4838 = vmatmul.mubr.bf16.vlgmr.msra.gmra.mxu1 %v4470_v15  ;;  %v4260_v32 = vpop.f32.mrf.mxu0  ;;  %v4447_v24 = vmax.f32 %v4415_v20, 0.0  ;;  %v4130_v37 = vadd.f32 %v7927_v5, %v8473_v17 }
 0x5fa   : > { %v4450_v41 = vmax.f32 %v4418_v47, 0.0  ;;  %v4449_v44 = vmax.f32 %v4417_v11, 0.0  ;;  %v4419_v33 = vadd.f32 %v7932_v18, %v4365_v57  ;;  %v4472_v51 = vpack.c.bf16 %v4448_v62, %v4444_v54 }
 0x5fb   : > { %v4368_v22 = vadd.f32 %v4331_v14, %v7968_v26  ;;  %v4367_v39 = vadd.f32 %v4260_v32, %v7971_v29  ;;  %v4333_v2 = vpop.f32.mrf.mxu1  ;;  %v4262_v40 = vpop.f32.mrf.mxu0  ;;  %v4420_v15 = vadd.f32 %v7913_v61, %v4366_v50  ;;  %v8470_v26 = vld [vmem:[#allocation61_spill] sm:$0xff]  ;;  %v4129_v50 = vadd.f32 %v7929_v56, %v7945_v23 }
 0x5fc   : > { %v4474_v8 = vpack.c.bf16 %v4450_v41, %v4446_v4  ;;  %v4451_v27 = vmax.f32 %v4419_v33, 0.0  ;;  %v4369_v48 = vadd.f32 %v4333_v2, %v7975_v3  ;;  %v4370_v42 = vadd.f32 %v4262_v40, %v7978_v10 }
 0x5fd   : > { %v4422_v0 = vadd.f32 %v7916_v60, %v4368_v22  ;;  %v4335_v36 = vpop.f32.mrf.mxu1  ;;  %v4264_v28 = vpop.f32.mrf.mxu0  ;;  %v4473_v1 = vpack.c.bf16 %v4449_v44, %v4445_v45  ;;  %v4127_v59 = vadd.f32 %v8470_v26, %v8469_v58  ;;  %v4128_v3 = vadd.f32 %v8472_v46, %v8471_v53 }
 0x5fe   : > { %v4372_v29 = vadd.f32 %v4335_v36, %v7982_v21  ;;  %v4371_v6 = vadd.f32 %v4264_v28, %v7987_v9  ;;  %v4475_v12 = vpack.c.bf16 %v4451_v27, %v4447_v24  ;;  %v4421_v43 = vadd.f32 %v7919_v31, %v4367_v39 }
 0x5ff   : > { %v4424_v10 = vadd.f32 %v7913_v61, %v4370_v42  ;;  %v4337_v25 = vpop.f32.mrf.mxu1  ;;  %4780 = vmatprep.mubr.bf16.mxu0 %v4473_v1  ;;  %v4268_v38 = vpop.f32.mrf.mxu0  ;;  %v4423_v19 = vadd.f32 %v7932_v18, %v4369_v48  ;;  %v4452_v7 = vmax.f32 %v4420_v15, 0.0  ;;  %v4454_v20 = vmax.f32 %v4422_v0, 0.0 }
 0x600   : > { %v4426_v21 = vadd.f32 %v7916_v60, %v4372_v29  ;;  %v4425_v9 = vadd.f32 %v7919_v31, %v4371_v6  ;;  %v4373_v30 = vadd.f32 %v4337_v25, %v7995_v34  ;;  %4845 = vmatprep.mubr.bf16.mxu1 %v4475_v12  ;;  %v4374_v5 = vadd.f32 %v4268_v38, %v4124_v55 }
 0x601   : > { %v4456_v47 = vmax.f32 %v4424_v10, 0.0  ;;  %v4341_v11 = vpop.f32.mrf.mxu1  ;;  %4781 = vmatmul.mubr.bf16.gmra.mxu0 %v4472_v51  ;;  %4846 = vmatmul.mubr.bf16.gmra.mxu1 %v4474_v8  ;;  %v4270_v57 = vpop.f32.mrf.mxu0  ;;  %v4453_v14 = vmax.f32 %v4421_v43, 0.0  ;;  %v4455_v44 = vmax.f32 %v4423_v19, 0.0  ;;  %v4131_v56 = vadd.f32 %v7951_v52, %v7948_v16 }
 0x602   : > { %v4458_v35 = vmax.f32 %v4426_v21, 0.0  ;;  %v4457_v13 = vmax.f32 %v4425_v9, 0.0  ;;  %v4427_v54 = vadd.f32 %v7932_v18, %v4373_v30  ;;  %v4376_v62 = vadd.f32 %v4341_v11, %v8003_v63  ;;  %v8474_v21 = vld [vmem:[#allocation88_spill] sm:$0xff] }
 0x603   : > { %v4476_v34 = vpack.c.bf16 %v4456_v47, %v4452_v7  ;;  %v4375_v32 = vadd.f32 %v4270_v57, %v4125_v49  ;;  %v4343_v4 = vpop.f32.mrf.mxu1  ;;  %v4272_v41 = vpop.f32.mrf.mxu0  ;;  %v4428_v51 = vadd.f32 %v7913_v61, %v4374_v5 }
 0x604   : > { %v4478_v55 = vpack.c.bf16 %v4458_v35, %v4454_v20  ;;  %v4459_v33 = vmax.f32 %v4427_v54, 0.0  ;;  %v4377_v45 = vadd.f32 %v4343_v4, %v4127_v59  ;;  %v4430_v22 = vadd.f32 %v7916_v60, %v4376_v62  ;;  %v8475_v35 = vld [vmem:[#allocation89_spill] sm:$0xff] }
 0x605   : > { %v4378_v39 = vadd.f32 %v4272_v41, %v4128_v3  ;;  %v4345_v2 = vpop.f32.mrf.mxu1  ;;  %v4274_v40 = vpop.f32.mrf.mxu0  ;;  %v4477_v63 = vpack.c.bf16 %v4457_v13, %v4453_v14  ;;  %v4429_v23 = vadd.f32 %v7919_v31, %v4375_v32  ;;  %v4460_v28 = vmax.f32 %v4428_v51, 0.0  ;;  %v8476_v41 = vld [vmem:[#allocation71_spill] sm:$0xff] }
 0x606   : > { %v4380_v49 = vadd.f32 %v4345_v2, %v4130_v37  ;;  %v4379_v24 = vadd.f32 %v4274_v40, %v4129_v50  ;;  %v4479_v48 = vpack.c.bf16 %v4459_v33, %v4455_v44  ;;  %v4431_v15 = vadd.f32 %v7932_v18, %v4377_v45  ;;  %v8477_v2 = vld [vmem:[#allocation72_spill] sm:$0xff] }
 0x607   : > { %v4432_v8 = vadd.f32 %v7913_v61, %v4378_v39  ;;  %v4347_v27 = vpop.f32.mrf.mxu1  ;;  %4788 = vmatprep.mubr.bf16.mxu0 %v4477_v63  ;;  %v4462_v1 = vmax.f32 %v4430_v22, 0.0  ;;  %v4461_v16 = vmax.f32 %v4429_v23, 0.0 }
 0x608   : > { %v4434_v0 = vadd.f32 %v7916_v60, %v4380_v49  ;;  %v4433_v42 = vadd.f32 %v7919_v31, %v4379_v24  ;;  %v4381_v36 = vadd.f32 %v4347_v27, %v4131_v56  ;;  %4853 = vmatprep.mubr.bf16.mxu1 %v4479_v48  ;;  %v4463_v29 = vmax.f32 %v4431_v15, 0.0 }
 0x609   : > { %v4464_v58 = vmax.f32 %v4432_v8, 0.0  ;;  %4789 = vmatmul.mubr.bf16.gmra.mxu0 %v4476_v34  ;;  %4854 = vmatmul.mubr.bf16.gmra.mxu1 %v4478_v55 }
 0x60a   : > { %v4466_v52 = vmax.f32 %v4434_v0, 0.0  ;;  %v4465_v26 = vmax.f32 %v4433_v42, 0.0  ;;  %v4435_v61 = vadd.f32 %v7932_v18, %v4381_v36  ;;  %v8478_v0 = vld [vmem:[#allocation73_spill] sm:$0xff] }
 0x60b   : > { %v4480_v59 = vpack.c.bf16 %v4464_v58, %v4460_v28 }
 0x60c   : > { %v4482_v6 = vpack.c.bf16 %v4466_v52, %v4462_v1  ;;  %v4467_v12 = vmax.f32 %v4435_v61, 0.0  ;;  %v4481_v53 = vpack.c.bf16 %v4465_v26, %v4461_v16  ;;  %v8479_v61 = vld [vmem:[#allocation80_spill] sm:$0xff] }
 0x60e   : > { %4796 = vmatprep.mubr.bf16.mxu0 %v4481_v53  ;;  %v4483_v60 = vpack.c.bf16 %v4467_v12, %v4463_v29 }
 0x610   : > { %4861 = vmatprep.mubr.bf16.mxu1 %v4483_v60 }
 0x611   : > { %4797 = vmatmul.mubr.bf16.gmra.mxu0 %v4480_v59  ;;  %4862 = vmatmul.mubr.bf16.gmra.mxu1 %v4482_v6 }
 0x6b8   : > { %v5726_v31 = vpop.f32.mrf.mxu0 }
 0x6b9   : > { %v5766_v46 = vpop.f32.mrf.mxu1 }
 0x6ba   : > { %v5727_v3 = vpop.f32.mrf.mxu0 }
 0x6bb   : > { %v5767_v17 = vpop.f32.mrf.mxu1  ;;  %v5728_v37 = vadd.f32 %v5727_v3, %v5726_v31  ;;  %v8480_v3 = vld [vmem:[#allocation74_spill] sm:$0xff] }
 0x6bc   : > { %v5768_v43 = vadd.f32 %v5767_v17, %v5766_v46  ;;  %v5729_v10 = vpop.f32.mrf.mxu0 }
 0x6bd   : > { %v5769_v25 = vpop.f32.mrf.mxu1 }
 0x6be   : > { %v4840_v18 = vadd.f32 %v5768_v43, %v5728_v37  ;;  %v5730_v38 = vpop.f32.mrf.mxu0 }
 0x6bf   : > { %v5770_v19 = vpop.f32.mrf.mxu1  ;;  %v5731_v30 = vadd.f32 %v5730_v38, %v5729_v10  ;;  %v8481_v10 = vld [vmem:[#allocation81_spill] sm:$0xff] }
 0x6c0   : > { %v8050_v9 = vadd.f32 %v4840_v18, %v8474_v21  ;;  %v5771_v7 = vadd.f32 %v5770_v19, %v5769_v25 }
 0x6c1   : > { %v5732_v20 = vpop.f32.mrf.mxu0  ;;  %v5772_v47 = vpop.f32.mrf.mxu1 }
 0x6c2   : > { %v4843_v5 = vadd.f32 %v5771_v7, %v5731_v30 }
 0x6c3   : > { %v5733_v11 = vpop.f32.mrf.mxu0  ;;  %v5773_v57 = vpop.f32.mrf.mxu1 }
 0x6c4   : > { %v8053_v13 = vadd.f32 %v4843_v5, %v8475_v35  ;;  %v5734_v54 = vadd.f32 %v5733_v11, %v5732_v20  ;;  %v5774_v62 = vadd.f32 %v5773_v57, %v5772_v47 }
 0x6c5   : > { %v5735_v50 = vpop.f32.mrf.mxu0  ;;  %v5775_v14 = vpop.f32.mrf.mxu1 }
 0x6c6   : > { %v4848_v34 = vadd.f32 %v5774_v62, %v5734_v54 }
 0x6c7   : > { %v5736_v32 = vpop.f32.mrf.mxu0  ;;  %v5776_v4 = vpop.f32.mrf.mxu1 }
 0x6c8   : > { %v8056_v44 = vadd.f32 %v4848_v34, %v8476_v41  ;;  %v5737_v55 = vadd.f32 %v5736_v32, %v5735_v50  ;;  %v5777_v33 = vadd.f32 %v5776_v4, %v5775_v14 }
 0x6c9   : > { %v5738_v45 = vpop.f32.mrf.mxu0  ;;  %v5778_v22 = vpop.f32.mrf.mxu1 }
 0x6ca   : > { %v4851_v51 = vadd.f32 %v5777_v33, %v5737_v55 }
 0x6cb   : > { %v5739_v39 = vpop.f32.mrf.mxu0  ;;  %v5779_v56 = vpop.f32.mrf.mxu1 }
 0x6cc   : > { %v4873_v40 = vadd.f32 %v4851_v51, %v8477_v2  ;;  %v5740_v63 = vadd.f32 %v5739_v39, %v5738_v45  ;;  %v5780_v23 = vadd.f32 %v5779_v56, %v5778_v22 }
 0x6cd   : > { %v5741_v49 = vpop.f32.mrf.mxu0  ;;  %v5781_v24 = vpop.f32.mrf.mxu1 }
 0x6ce   : > { %v4856_v8 = vadd.f32 %v5780_v23, %v5740_v63 }
 0x6cf   : > { %v5742_v27 = vpop.f32.mrf.mxu0  ;;  %v5782_v15 = vpop.f32.mrf.mxu1 }
 0x6d0   : > { %v5743_v48 = vadd.f32 %v5742_v27, %v5741_v49  ;;  %v4874_v42 = vadd.f32 %v4856_v8, %v8478_v0  ;;  %v5783_v36 = vadd.f32 %v5782_v15, %v5781_v24 }
 0x6d1   : > { %v5744_v28 = vpop.f32.mrf.mxu0  ;;  %v5784_v1 = vpop.f32.mrf.mxu1 }
 0x6d2   : > { %v4859_v58 = vadd.f32 %v5783_v36, %v5743_v48 }
 0x6d3   : > { %v5745_v16 = vpop.f32.mrf.mxu0  ;;  %v5785_v26 = vpop.f32.mrf.mxu1 }
 0x6d4   : > { %v5746_v52 = vadd.f32 %v5745_v16, %v5744_v28  ;;  %v4875_v59 = vadd.f32 %v4859_v58, %v8479_v61  ;;  %v5786_v29 = vadd.f32 %v5785_v26, %v5784_v1 }
 0x6d5   : > { %v5747_v6 = vpop.f32.mrf.mxu0  ;;  %v5787_v12 = vpop.f32.mrf.mxu1 }
 0x6d6   : > { %v4864_v53 = vadd.f32 %v5786_v29, %v5746_v52 }
 0x6d7   : > { %v5748_v60 = vpop.f32.mrf.mxu0  ;;  %v5788_v46 = vpop.f32.mrf.mxu1 }
 0x6d8   : > { %v5749_v31 = vadd.f32 %v5748_v60, %v5747_v6  ;;  %v4876_v17 = vadd.f32 %v4864_v53, %v8480_v3  ;;  %v5789_v37 = vadd.f32 %v5788_v46, %v5787_v12  ;;  %4880 = sbr.rel (%p5256_p5) target bundleno = 1764 (0x6e4), region = 151 }
 0x6da   : > { %v4867_v43 = vadd.f32 %v5789_v37, %v5749_v31 }
 0x6dc   : > { %v4877_v25 = vadd.f32 %v4867_v43, %v8481_v10 }
 0x6dd   : > { %v5521_v18 = vld [vmem:[%s8483_s23] ss:$0 sm:$0xff] }
 0x6de   : > { %v4888_v38 = vadd.f32 %v5521_v18, %v8050_v9  ;;  %v4889_v19 = vadd.f32 %v5521_v18, %v8053_v13  ;;  %v4890_v21 = vadd.f32 %v5521_v18, %v8056_v44  ;;  %v4891_v30 = vadd.f32 %v5521_v18, %v4873_v40 }
 0x6df   : > { %v4892_v7 = vadd.f32 %v5521_v18, %v4874_v42  ;;  %v4893_v20 = vadd.f32 %v5521_v18, %v4875_v59  ;;  %v4894_v47 = vadd.f32 %v5521_v18, %v4876_v17  ;;  %v4895_v5 = vadd.f32 %v5521_v18, %v4877_v25 }
 0x6e0   : > { %4896 = vst [vmem:[%s6934_s6] sm:$0xff] %v4888_v38  ;;  %4897 = vst [vmem:[%s6934_s6 + $0x8] sm:$0xff] %v4889_v19 }
 0x6e1   : > { %4898 = vst [vmem:[%s6934_s6 + $0x10] sm:$0xff] %v4890_v21  ;;  %4899 = vst [vmem:[%s6934_s6 + $0x18] sm:$0xff] %v4891_v30 }
 0x6e2   : > { %4900 = vst [vmem:[%s6934_s6 + $0x20] sm:$0xff] %v4892_v7  ;;  %4901 = vst [vmem:[%s6934_s6 + $0x28] sm:$0xff] %v4893_v20 }
 0x6e3   : > { %4902 = vst [vmem:[%s6934_s6 + $0x30] sm:$0xff] %v4894_v47  ;;  %4903 = vst [vmem:[%s6934_s6 + $0x38] sm:$0xff] %v4895_v5 }
 0x6e4 PF: > { %s8484_s9 = sld [smem:[#allocation22_spill]] }
 0x6ea   : > { %p5522_p8 = scmp.eq.s32.totalorder %s8484_s9, 0 }
 0x6ec   : > { %4907 = sbr.rel (%p5522_p8) target bundleno = 1784 (0x6f8), region = 155 }
 0x6f1   : > { %v4908_v11 = vld [vmem:[%s6934_s6] sm:$0xff]  ;;  %v4909_v57 = vld [vmem:[%s6934_s6 + $0x8] sm:$0xff]  ;;  %v4910_v35 = vld [vmem:[%s6934_s6 + $0x10] sm:$0xff] }
 0x6f2   : > { %v4916_v54 = vadd.f32 %v4908_v11, %v8050_v9  ;;  %v4917_v62 = vadd.f32 %v4909_v57, %v8053_v13  ;;  %v4918_v50 = vadd.f32 %v4910_v35, %v8056_v44  ;;  %v4911_v14 = vld [vmem:[%s6934_s6 + $0x18] sm:$0xff]  ;;  %v4912_v34 = vld [vmem:[%s6934_s6 + $0x20] sm:$0xff]  ;;  %v4913_v32 = vld [vmem:[%s6934_s6 + $0x28] sm:$0xff] }
 0x6f3   : > { %v4919_v4 = vadd.f32 %v4911_v14, %v4873_v40  ;;  %v4920_v41 = vadd.f32 %v4912_v34, %v4874_v42  ;;  %v4921_v55 = vadd.f32 %v4913_v32, %v4875_v59  ;;  %v4914_v33 = vld [vmem:[%s6934_s6 + $0x30] sm:$0xff]  ;;  %v4915_v45 = vld [vmem:[%s6934_s6 + $0x38] sm:$0xff] }
 0x6f4   : > { %4924 = vst [vmem:[%s6934_s6] sm:$0xff] %v4916_v54  ;;  %4925 = vst [vmem:[%s6934_s6 + $0x8] sm:$0xff] %v4917_v62  ;;  %v4922_v9 = vadd.f32 %v4914_v33, %v4876_v17  ;;  %v4923_v51 = vadd.f32 %v4915_v45, %v4877_v25 }
 0x6f5   : > { %4926 = vst [vmem:[%s6934_s6 + $0x10] sm:$0xff] %v4918_v50  ;;  %4927 = vst [vmem:[%s6934_s6 + $0x18] sm:$0xff] %v4919_v4 }
 0x6f6   : > { %4928 = vst [vmem:[%s6934_s6 + $0x20] sm:$0xff] %v4920_v41  ;;  %4929 = vst [vmem:[%s6934_s6 + $0x28] sm:$0xff] %v4921_v55 }
 0x6f7   : > { %4930 = vst [vmem:[%s6934_s6 + $0x30] sm:$0xff] %v4922_v9  ;;  %4931 = vst [vmem:[%s6934_s6 + $0x38] sm:$0xff] %v4923_v51 }
 0x6f8 PF: > { %s8485_s3 = sld [smem:[#allocation23_spill]]  ;;  %s4946_s21 = sshll.u32 %s6934_s6, 4  ;;  %s8106_s21 = int_to_ptr.vmem [resolvable:$true] %s4946_s21 }
 0x6f9   : > { %s8486_s2 = sld [smem:[#allocation31_spill]]  ;;  %s4933_s25 = scalar_lea.sflag [#allocation5], %s6880_s7 }
 0x6fa   : > { %s8487_s16 = sld [smem:[#allocation107_spill]]  ;;  %s6389_s13 = scalar_lea.vmem %s8106_s21, 1024 }
 0x6fb   : > { %p6390_p1 = scmp.ne.s32.totalorder %s8106_s21, %s6389_s13  ;;  %s6536_s14 = smov [#allocation15]  }
 0x6fc   : > { %s6393_s8 = sshll.u32 %s6536_s14, 4  ;;  %s6394_s8 = int_to_ptr.vmem [resolvable:$false] %s6393_s8 }
 0x6fd   : > { %s6395_s11 = scalar_lea.vmem %s6394_s8, 2048  ;;  %p6396_p13 = scmp.lt.s32.totalorder %s8106_s21, %s6394_s8 }
 0x6fe   : > { %s5537_s5 = sshll.u32 %s8485_s3, 10  ;;  %p6397_p9 = scmp.lt.s32.totalorder %s6395_s11, %s6389_s13 }
 0x6ff   : > { %p8488_p4 = scmp.ne.s32.totalorder %s8486_s2, 0 }
 0x700   : > { %s8103_s10 = scalar_lea.hbm %s8487_s16, %s5537_s5  ;;  %p6398_p7 = por %p6397_p9, %p6396_p13 }
 0x701   : > { %p6391_p3 = pnand %p6390_p1, %p8488_p4 }
 0x703   : > { %p6392_p10 = pneg %p6391_p3 }
 0x705   : > { %p6399_p11 = pnand %p6398_p7, %p6392_p10 }
 0x707   : > { %6402 = shalt.err (!%p6399_p11)
}
 0x708   : > { %s6403_s6 = scalar_lea.hbm %s8103_s10, 1024  ;;  %s6407_s30 = scalar_lea.hbm %s8487_s16, 2048 }
 0x709   : > { %p6404_p0 = scmp.ne.s32.totalorder %s8103_s10, %s6403_s6  ;;  %p6408_p2 = scmp.lt.s32.totalorder %s8103_s10, %s8487_s16 }
 0x70a   : > { %p6409_p5 = scmp.lt.s32.totalorder %s6407_s30, %s6403_s6 }
 0x70b   : > { %p6405_p12 = pnand %p6404_p0, %p8488_p4 }
 0x70c   : > { %p6410_p8 = por %p6409_p5, %p6408_p2 }
 0x70d   : > { %p6406_p6 = pneg %p6405_p12 }
 0x70f   : > { %p6411_p1 = pnand %p6410_p8, %p6406_p6 }
 0x711   : > { %6414 = shalt.err (!%p6411_p1)
}
 0x712   : > { %s6537_s27 = smov 128   ;;  %s6538_s17 = smov 8  }
 0x713   : > { %5836 = dma.vmem_to_hbm [thread:$0]  (%p8488_p4), %s8106_s21, 1024, %s8103_s10, %s4933_s25, %s6537_s27, %s6537_s27, %s6538_s17  }
 0x714 PF: > { %s8489_s23 = sld [smem:[#allocation21_spill]]  ;;  %p5848_p3 = scmp.ge.s32.totalorder %s6517_s1, 2 }
 0x715   : > { %s8490_s9 = sld [smem:[#allocation32_spill]] }
 0x71a   : > { %s4961_s3 = sand.u32 1, %s8489_s23  }
 0x71b   : > { %p8491_p10 = scmp.ne.s32.totalorder %s8490_s9, 0  ;;  %s4962_s5 = scalar_lea.sflag [#allocation5], %s4961_s3 }
 0x71d   : > { %p5843_p13 = pnand %p5848_p3, %p8491_p10 }
 0x71f   : > { %p5844_p9 = pneg %p5843_p13 }
 0x721   : > { %6472 = dma.done.wait (%p5844_p9), %s4962_s5, 1024  }
 0x722   : > { %6474 = vsyncadd (%p5844_p9), %s4962_s5, 4294966272  ;;  %s34_s1 = sadd.s32 1, %s6517_s1   ;;  %s8492_s24 = sld [smem:[#allocation20_spill]] }
 0x723   : > { %p31_p7 = scmp.ge.s32.totalorder %s34_s1, 6   ;;  %s8493_s2 = sld [smem:[#allocation28_spill]] }
 0x724   : > { %s8494_s7 = sld [smem:[#allocation29_spill]]  ;;  %s8498_s25 = smov %s6485_s26 }
 0x725   : > { %s8495_s30 = sld [smem:[#allocation24_spill]]  ;;  %s8500_s27 = smov %s6493_s28 }
 0x726   : > { %s8496_s10 = sld [smem:[#allocation25_spill]]  ;;  %s8501_s28 = smov %s6497_s29 }
 0x727   : > { %s8497_s19 = sld [smem:[#allocation26_spill]]  ;;  %s8503_s0 = smov %s6509_s18 }
 0x728   :  { %33 = sbr.rel (!%p31_p7) target bundleno = 29 (0x1d), region = 258 }
 0x729   : > { %s8499_s26 = smov %s8493_s2 }
 0x72a   : > { %s8502_s29 = smov %s8494_s7 }
 0x72c   : > { %s8504_s18 = smov %s8496_s10 }
 0x72d   :  { %4967 = vsyncpa [#allocation4], 1 }
 0x72e   :  { %4969 = vsyncpa [#allocation4 + $0x1], 1 }
 0x72f   :  { %4970 = vsyncpa [#allocation7], 1 }
 0x730   :  { %4971 = vsyncpa [#allocation5], 1 }
 0x731   :  { %4973 = vsyncpa [#allocation5 + $0x1], 1 }

// kernel: tpu_custom_call.1
= control target key start
LH: loop header
LB: loop body
LE: loop exit
PB: predicated region body
PF: predicated region fallthrough
CT: control target
= control target key end

     0   :  { %s8168_s0 = inlined_call_operand.vmem [shape: bf16[2,64,32], index: 0, kind: input, shape index: {}]   ;;  %s8169_s1 = inlined_call_operand.vmem [shape: bf16[2,64,1], index: 1, kind: input, shape index: {}]   ;;  %s8170_s2 = inlined_call_operand.hbm [shape: f32[2,1,32], index: 2, kind: input, shape index: {}]   ;;  %s8171_s3 = inlined_call_operand.vmem [shape: bf16[32,32], index: 3, kind: input, shape index: {}]   ;;  %s8172_s4 = inlined_call_operand.vmem [shape: f32[1,32], index: 4, kind: input, shape index: {}]   ;;  %s8173_s5 = inlined_call_operand.vmem [shape: bf16[32,32], index: 5, kind: input, shape index: {}]   ;;  %s8174_s6 = inlined_call_operand.hbm [shape: f32[1,32], index: 6, kind: input, shape index: {}]   ;;  %s8175_s7 = inlined_call_operand.vmem [shape: bf16[32,1024], index: 7, kind: input, shape index: {}]   ;;  %s8176_s8 = inlined_call_operand.vmem [shape: f32[1,1024], index: 8, kind: input, shape index: {}]   ;;  %s8177_s9 = inlined_call_operand.hbm [shape: bf16[96,1024], index: 9, kind: input, shape index: {}]   ;;  %s8178_s10 = inlined_call_operand.vmem [shape: f32[1,1024], index: 10, kind: input, shape index: {}]   ;;  %s8179_s11 = inlined_call_operand.hbm [shape: bf16[160,1024], index: 11, kind: input, shape index: {}]   ;;  %s8180_s12 = inlined_call_operand.hbm [shape: f32[1,1024], index: 12, kind: input, shape index: {}]   ;;  %s8181_s13 = inlined_call_operand.hbm [shape: bf16[1024,128], index: 13, kind: input, shape index: {}]   ;;  %s8182_s14 = inlined_call_operand.hbm [shape: bf16[1024,128], index: 14, kind: input, shape index: {}]   ;;  %s8183_s15 = inlined_call_operand.hbm [shape: bf16[1024,128], index: 15, kind: input, shape index: {}]   ;;  %s8184_s16 = inlined_call_operand.vmem [shape: f32[1,128], index: 16, kind: input, shape index: {}]   ;;  %s8185_s17 = inlined_call_operand.hbm [shape: f32[2,64,128], index: 17, kind: output, shape index: {}]  }
   0x1   :  { %8242 = sst [smem:[#allocation90_spill]] %s8168_s0 }
   0x2   :  { %8243 = sst [smem:[#allocation91_spill]] %s8169_s1 }
   0x3   :  { %8244 = sst [smem:[#allocation92_spill]] %s8170_s2 }
   0x4   :  { %8245 = sst [smem:[#allocation93_spill]] %s8171_s3 }
   0x5   :  { %8246 = sst [smem:[#allocation94_spill]] %s8172_s4 }
   0x6   :  { %8247 = sst [smem:[#allocation95_spill]] %s8173_s5 }
   0x7   :  { %8248 = sst [smem:[#allocation96_spill]] %s8174_s6 }
   0x8   :  { %8249 = sst [smem:[#allocation97_spill]] %s8175_s7 }
   0x9   :  { %8250 = sst [smem:[#allocation98_spill]] %s8176_s8 }
   0xa   :  { %8251 = sst [smem:[#allocation99_spill]] %s8177_s9 }
   0xb   :  { %8252 = sst [smem:[#allocation100_spill]] %s8178_s10 }
   0xc   :  { %8253 = sst [smem:[#allocation101_spill]] %s8179_s11 }
   0xd   :  { %8254 = sst [smem:[#allocation102_spill]] %s8180_s12 }
   0xe   :  { %8255 = sst [smem:[#allocation103_spill]] %s8181_s13 }
   0xf   :  { %8256 = sst [smem:[#allocation104_spill]] %s8182_s14 }
  0x10   :  { %8257 = sst [smem:[#allocation105_spill]] %s8183_s15 }
  0x11   :  { %8258 = sst [smem:[#allocation106_spill]] %s8184_s16 }
  0x12   :  { %8259 = sst [smem:[#allocation107_spill]] %s8185_s17 }
  0x13   :  { %22 = vsyncpa [#allocation4], 0 }
  0x14   :  { %24 = vsyncpa [#allocation4 + $0x1], 0 }
  0x15   :  { %25 = vsyncpa [#allocation7], 0 }
  0x16   :  { %26 = vsyncpa [#allocation5], 0 }
  0x17   :  { %28 = vsyncpa [#allocation5 + $0x1], 0  ;;  %s6629_s24 = smov 0   ;;  %s6631_s25 = smov 0  }
  0x18   :  { %s6633_s26 = smov 0   ;;  %s6635_s27 = smov 0  }
  0x19   :  { %s6637_s28 = smov 0   ;;  %s6639_s29 = smov 0  }
  0x1a   :  { %s6641_s0 = smov 0   ;;  %s6643_s30 = smov 0  }
  0x1b   :  { %s6645_s18 = smov 0   ;;  %s6647_s19 = smov 0  }
  0x1c   :  { %s6649_s1 = smov 0  }
  0x1d LB: > { %8260 = sst [smem:[#allocation20_spill]] %s6481_s25  ;;  %s6685_s20 = sadd.s32 4294967295, %s6517_s1   ;;  %s6517_s1 = sphi %s6649_s1, %s34_s1   ;;  %s6513_s19 = sphi %s6647_s19, %s8497_s19   ;;  %s6509_s18 = sphi %s6645_s18, %s8504_s18   ;;  %s6505_s30 = sphi %s6643_s30, %s8495_s30   ;;  %s6501_s0 = sphi %s6641_s0, %s8503_s0   ;;  %s6497_s29 = sphi %s6639_s29, %s8502_s29   ;;  %s6493_s28 = sphi %s6637_s28, %s8501_s28   ;;  %s6489_s27 = sphi %s6635_s27, %s8500_s27   ;;  %s6485_s26 = sphi %s6633_s26, %s8499_s26   ;;  %s6481_s25 = sphi %s6631_s25, %s8498_s25   ;;  %s6477_s24 = sphi %s6629_s24, %s8492_s24  }
  0x1e   : > { %8261 = sst [smem:[#allocation21_spill]] %s6489_s27  ;;  %s5218_s21 = sadd.s32 4294967294, %s6517_s1  }
  0x1f   : > { %8262 = sst [smem:[#allocation22_spill]] %s6501_s0  ;;  %s43_s22 = sadd.s32 1, %s6509_s18 }
  0x20   : > { %8263 = sst [smem:[#allocation23_spill]] %s6505_s30  ;;  %s46_s23 = sadd.s32 1, %s6513_s19 }
  0x21   : > { %8264 = sst [smem:[#allocation24_spill]] %s6513_s19  ;;  %p44_p0 = scmp.ge.s32.totalorder %s43_s22, 2 }
  0x22   : > { %s105_s17 = sadd.s32 1, %s6497_s29  ;;  %p8193_p1 = scmp.ne.s32.totalorder %s6497_s29, %s6493_s28 }
  0x23   : > { %p113_p2 = scmp.eq.s32.totalorder %s6517_s1, 0  ;;  %s8506_s22 = smov (%p44_p0, %s43_s22), 0 }
  0x24   : > { %8265 = sst [smem:[#allocation25_spill]] %s8506_s22  ;;  %s8508_s23 = smov (!%p44_p0, %s46_s23), %s6513_s19 }
  0x25   : > { %p6702_p3 = por %p113_p2, %p8193_p1  ;;  %p8192_p4 = scmp.ne.s32.totalorder %s6493_s28, %s6489_s27 }
  0x26   : > { %p48_p5 = scmp.ge.s32.totalorder %s8508_s23, 2  ;;  %p119_p6 = scmp.eq.s32.totalorder %s6685_s20, 0 }
  0x27   : > { %s8266_s16 = scalar_select %p6702_p3, 1, 0 }
  0x28   : > { %s212_s4 = ssub.s32 %s6509_s18, %s8506_s22  ;;  %s215_s5 = sadd.s32 1, %s6485_s26 }
  0x29   : > { %s8510_s23 = smov (%p48_p5, %s8508_s23), 0  ;;  %p6719_p7 = por %p119_p6, %p8192_p4 }
  0x2a   : > { %8267 = sst [smem:[#allocation26_spill]] %s8510_s23  ;;  %p213_p8 = scmp.eq.s32.totalorder %s212_s4, 0 }
  0x2b   : > { %s8268_s3 = scalar_select %p6719_p7, 1, 0 }
  0x2c   : > { %s102_s10 = ssub.s32 %s6513_s19, %s8510_s23  ;;  %p222_p9 = scmp.ne.s32.totalorder %s6485_s26, %s6481_s25 }
  0x2d   : > { %8269 = sst [smem:[#allocation27_spill]] %s8268_s3  ;;  %p103_p10 = scmp.eq.s32.totalorder %s102_s10, 0 }
  0x2e   : > { %p280_p11 = scmp.ne.s32.totalorder %s6481_s25, %s6477_s24  ;;  %p6737_p12 = por %p222_p9, %p113_p2 }
  0x2f   : > { %s6730_s22 = scalar_select %p213_p8, %s6485_s26, %s215_s5  }
  0x30   : > { %s6733_s8 = scalar_select %p103_p10, %s6497_s29, %s105_s17  }
  0x31   : > { %8270 = sst [smem:[#allocation28_spill]] %s6730_s22  ;;  %p6743_p13 = por %p280_p11, %p119_p6 }
  0x32   : > { %8271 = sst [smem:[#allocation29_spill]] %s6733_s8  ;;  %p481_p0 = scmp.eq.s32.totalorder %s6685_s20, 3 }
  0x33   : > { %s8273_s30 = scalar_select %p6743_p13, 1, 0 }
  0x34   : > { %p487_p5 = scmp.eq.s32.totalorder %s5218_s21, 3  ;;  %p5219_p4 = scmp.ge.s32.totalorder %s6517_s1, 1 }
  0x35   : > { %8274 = sst [smem:[#allocation30_spill]] %s8273_s30  ;;  %p494_p1 = scmp.lt.s32.totalorder %s6517_s1, 5 }
  0x36   : > { %p8275_p7 = scmp.ne.s32.totalorder %s6497_s29, %s6493_s28  ;;  %p8278_p8 = scmp.ne.s32.totalorder %s6493_s28, %s6489_s27 }
  0x37   : > { %p6764_p2 = pnand %p5219_p4, %p494_p1  ;;  %s6519_s17 = smov [#allocation6]  }
  0x38   : > { %p6753_p3 = por %p481_p0, %p8275_p7  ;;  %p6760_p10 = por %p487_p5, %p8278_p8 }
  0x39   : > { %p5838_p9 = pneg %p6764_p2  ;;  %s516_s24 = sshll.u32 %s6519_s17, 4  ;;  %s517_s24 = int_to_ptr.vmem [resolvable:$true] %s516_s24 }
  0x3a   : > { %s8276_s4 = scalar_select %p6753_p3, 1, 0 }
  0x3b   : > { %s8279_s5 = scalar_select %p6760_p10, 1, 0 }
  0x3c   : > { %8277 = sst [smem:[#allocation31_spill]] %s8276_s4  ;;  %p5839_p7 = pnand %p5838_p9, %p119_p6 }
  0x3d   : > { %8280 = sst [smem:[#allocation32_spill]] %s8279_s5  ;;  %s6192_s21 = scalar_lea.vmem %s517_s24, 16 }
  0x3e   : > { %p6183_p11 = pneg %p5839_p7  ;;  %p6193_p0 = scmp.ne.s32.totalorder %s517_s24, %s6192_s21 }
  0x3f   : > { %s6199_s23 = scalar_lea.vmem %s517_s24, 32  ;;  %p6200_p8 = scmp.lt.s32.totalorder %s517_s24, %s517_s24 }
  0x40   : > { %p6195_p3 = pnand %p6193_p0, %p6183_p11  ;;  %p6201_p10 = scmp.lt.s32.totalorder %s6199_s23, %s6192_s21 }
  0x42   : > { %p6196_p5 = pneg %p6195_p3  ;;  %p6202_p1 = por %p6201_p10, %p6200_p8 }
  0x44   : > { %p6203_p4 = pnand %p6202_p1, %p6196_p5 }
  0x46   : > { %6206 = shalt.err (!%p6203_p4)
}
  0x47   : > { %s8282_s6 = sld [smem:[#allocation96_spill]]  ;;  %p5221_p13 = scmp.ge.s32.totalorder %s6517_s1, 4 }
  0x48   : > { %s546_s17 = sand.u32 (!%p5221_p13), 1, %s6517_s1   ;;  %s548_s5 = sand.u32 (!%p5221_p13), 1, %s6497_s29  }
  0x49   : > { %526 = sbr.rel (%p5221_p13) target bundleno = 189 (0xbd), region = 36  ;;  %s5222_s27 = sshll.u32 (!%p5221_p13), %s6513_s19, 4 }
  0x4a   : > { %s549_s4 = scalar_lea.vmem (!%p5221_p13), [#allocation3], %s548_s5  ;;  %s8283_s2 = sld [smem:[#allocation92_spill]] (!%p5221_p13) }
  0x4b   : > { %s556_s30 = sshll.u32 (!%p5221_p13), %s549_s4, 4  ;;  %s6782_s3 = scalar_lea.sflag (!%p5221_p13), [#allocation4], %s546_s17  ;;  %s557_s30 = int_to_ptr.vmem [resolvable:$true] %s556_s30 }
  0x4c   : > { %s6219_s8 = scalar_lea.vmem (!%p5221_p13), %s557_s30, 16  ;;  %p8284_p10 = scmp.ne.s32.totalorder (!%p5221_p13), %s8266_s16, 0 }
  0x4d   : > { %5841 = dma.hbm_to_vmem [thread:$0]  (!%p5839_p7), %s8282_s6, 16, %s517_s24, [#allocation7]  }
  0x4e   : > { %p6220_p3 = scmp.ne.s32.totalorder %s557_s30, %s6219_s8  ;;  %s6520_s22 = smov [#allocation3]  }
  0x4f   : > { %s6223_s24 = sshll.u32 %s6520_s22, 4  ;;  %s6224_s24 = int_to_ptr.vmem [resolvable:$false] %s6223_s24 }
  0x50   : > { %s554_s25 = scalar_lea.hbm %s8283_s2, %s5222_s27  ;;  %p6221_p13 = pnand %p6220_p3, %p8284_p10 }
  0x51   : > { %s6225_s6 = scalar_lea.vmem %s6224_s24, 32  ;;  %p6226_p7 = scmp.lt.s32.totalorder %s557_s30, %s6224_s24 }
  0x52   : > { %p6222_p9 = pneg %p6221_p13  ;;  %p6227_p11 = scmp.lt.s32.totalorder %s6225_s6, %s6219_s8 }
  0x54   : > { %p6228_p0 = por %p6227_p11, %p6226_p7 }
  0x56   : > { %p6229_p5 = pnand %p6228_p0, %p6222_p9 }
  0x58   : > { %6232 = shalt.err (!%p6229_p5)
}
  0x59   : > { %5820 = dma.hbm_to_vmem [thread:$0]  (%p8284_p10), %s554_s25, 16, %s557_s30, %s6782_s3  }
  0x5a   : > { %562 = sbr.rel (!%p6737_p12) target bundleno = 104 (0x68), region = 52  ;;  %s564_s27 = sand.u32 (%p6737_p12), 1, %s6485_s26  }
  0x5b   : > { %s5528_s4 = sshll.u32 (%p6737_p12), %s6509_s18, 4  ;;  %s5223_s5 = sshll.u32 (%p6737_p12), %s564_s27, 6 }
  0x5c   : > { %s8285_s7 = sld [smem:[#allocation97_spill]] (%p6737_p12)  ;;  %s566_s6 = scalar_lea.vmem (%p6737_p12), [#allocation8], %s5223_s5 }
  0x62   : > { %s569_s21 = scalar_lea.vmem %s8285_s7, %s5528_s4 }
  0x63   : > { %v582_v0 = vld [vmem:[%s569_s21] sm:$0xff]  ;;  %v584_v1 = vld [vmem:[%s569_s21 + $0x8] sm:$0xff] }
  0x64   : > { %v586_v2 = vld [vmem:[%s569_s21 + $0x20] sm:$0xff]  ;;  %583 = vst [vmem:[%s566_s6] sm:$0xff] %v582_v0  ;;  %585 = vst [vmem:[%s566_s6 + $0x8] sm:$0xff] %v584_v1  ;;  %v588_v3 = vld [vmem:[%s569_s21 + $0x28] sm:$0xff] }
  0x65   : > { %587 = vst [vmem:[%s566_s6 + $0x10] sm:$0xff] %v586_v2  ;;  %v590_v4 = vld [vmem:[%s569_s21 + $0x40] sm:$0xff]  ;;  %v592_v5 = vld [vmem:[%s569_s21 + $0x48] sm:$0xff]  ;;  %589 = vst [vmem:[%s566_s6 + $0x18] sm:$0xff] %v588_v3 }
  0x66   : > { %591 = vst [vmem:[%s566_s6 + $0x20] sm:$0xff] %v590_v4  ;;  %593 = vst [vmem:[%s566_s6 + $0x28] sm:$0xff] %v592_v5  ;;  %v594_v6 = vld [vmem:[%s569_s21 + $0x60] sm:$0xff]  ;;  %v596_v7 = vld [vmem:[%s569_s21 + $0x68] sm:$0xff] }
  0x67   : > { %595 = vst [vmem:[%s566_s6 + $0x30] sm:$0xff] %v594_v6  ;;  %597 = vst [vmem:[%s566_s6 + $0x38] sm:$0xff] %v596_v7 }
  0x68 PF: > { %s6797_s16 = sand.u32 1, %s6485_s26   ;;  %s5529_s25 = sshll.u32 %s6509_s18, 8 }
  0x69   : > { %s5814_s30 = smul.u32 192, %s6797_s16  ;;  %s8286_s9 = sld [smem:[#allocation99_spill]] }
  0x6a   : > { %s8287_s11 = sld [smem:[#allocation101_spill]]  ;;  %s5815_s21 = smul.u32 320, %s6797_s16 }
  0x6b   : > { %s616_s27 = scalar_lea.vmem [#allocation9], %s5814_s30  ;;  %s6521_s2 = smov [#allocation9]  }
  0x6c   : > { %s623_s4 = sshll.u32 %s616_s27, 4  ;;  %s6249_s7 = sshll.u32 %s6521_s2, 4  ;;  %s624_s4 = int_to_ptr.vmem [resolvable:$true] %s623_s4  ;;  %s6250_s7 = int_to_ptr.vmem [resolvable:$false] %s6249_s7 }
  0x6d   : > { %s6245_s6 = scalar_lea.vmem %s624_s4, 3072  ;;  %s6251_s19 = scalar_lea.vmem %s6250_s7, 6144 }
  0x6e   : > { %p6246_p8 = scmp.ne.s32.totalorder %s624_s4, %s6245_s6  ;;  %p6252_p3 = scmp.lt.s32.totalorder %s624_s4, %s6250_s7 }
  0x6f   : > { %s622_s24 = scalar_lea.hbm %s8286_s9, %s5529_s25  ;;  %p6253_p10 = scmp.lt.s32.totalorder %s6251_s19, %s6245_s6 }
  0x70   : > { %s6807_s23 = scalar_lea.hbm %s8287_s11, %s5529_s25  ;;  %p6247_p1 = pnand %p6246_p8, %p6737_p12 }
  0x71   : > { %p6254_p13 = por %p6253_p10, %p6252_p3 }
  0x72   : > { %p6248_p4 = pneg %p6247_p1 }
  0x74   : > { %p6255_p9 = pnand %p6254_p13, %p6248_p4 }
  0x76   : > { %6258 = shalt.err (!%p6255_p9)
}
  0x77   : > { %s6522_s30 = smov 512   ;;  %s6523_s25 = smov 256  }
  0x78   : > { %s6524_s8 = smov 16   ;;  %s5230_s22 = sshll.u32 %s6797_s16, 2 }
  0x79   : > { %5821 = dma.hbm_to_vmem [thread:$0]  (%p6737_p12), %s622_s24, 3072, %s624_s4, %s6782_s3, %s6522_s30, %s6523_s25, %s6524_s8  }
  0x7a   : > { %s645_s27 = scalar_lea.vmem [#allocation10], %s5815_s21  ;;  %s5531_s5 = sshll.u32 %s6509_s18, 6 }
  0x7b   : > { %s652_s2 = sshll.u32 %s645_s27, 4  ;;  %s6525_s19 = smov [#allocation10]   ;;  %s653_s2 = int_to_ptr.vmem [resolvable:$true] %s652_s2 }
  0x7c   : > { %s6271_s7 = scalar_lea.vmem %s653_s2, 5120  ;;  %s6275_s17 = sshll.u32 %s6525_s19, 4  ;;  %s6276_s17 = int_to_ptr.vmem [resolvable:$false] %s6275_s17 }
  0x7d   : > { %p6272_p7 = scmp.ne.s32.totalorder %s653_s2, %s6271_s7  ;;  %s6277_s6 = scalar_lea.vmem %s6276_s17, 10240 }
  0x7e   : > { %p6278_p5 = scmp.lt.s32.totalorder %s653_s2, %s6276_s17  ;;  %p6279_p8 = scmp.lt.s32.totalorder %s6277_s6, %s6271_s7 }
  0x7f   : > { %p6273_p11 = pnand %p6272_p7, %p6737_p12 }
  0x80   : > { %p6280_p1 = por %p6279_p8, %p6278_p5 }
  0x81   : > { %p6274_p0 = pneg %p6273_p11 }
  0x83   : > { %p6281_p4 = pnand %p6280_p1, %p6274_p0 }
  0x85   : > { %6284 = shalt.err (!%p6281_p4)
}
  0x86   : > { %5822 = dma.hbm_to_vmem [thread:$0]  (%p6737_p12), %s6807_s23, 5120, %s653_s2, %s6782_s3, %s6522_s30, %s6523_s25, %s6524_s8  }
  0x87   : > { %s8288_s12 = sld [smem:[#allocation102_spill]]  ;;  %s666_s27 = scalar_lea.vmem [#allocation11], %s5230_s22 }
  0x88   : > { %s674_s19 = sshll.u32 %s666_s27, 4  ;;  %s6827_s9 = sshll.u32 %s6797_s16, 8  ;;  %s675_s19 = int_to_ptr.vmem [resolvable:$true] %s674_s19 }
  0x89   : > { %s6297_s7 = scalar_lea.vmem %s675_s19, 64  ;;  %s6526_s17 = smov [#allocation11]  }
  0x8a   : > { %p6298_p3 = scmp.ne.s32.totalorder %s675_s19, %s6297_s7  ;;  %s6301_s6 = sshll.u32 %s6526_s17, 4  ;;  %s6302_s6 = int_to_ptr.vmem [resolvable:$false] %s6301_s6 }
  0x8b   : > { %s6303_s11 = scalar_lea.vmem %s6302_s6, 128  ;;  %p6304_p9 = scmp.lt.s32.totalorder %s675_s19, %s6302_s6 }
  0x8c   : > { %p6299_p10 = pnand %p6298_p3, %p6737_p12  ;;  %p6305_p7 = scmp.lt.s32.totalorder %s6303_s11, %s6297_s7 }
  0x8d   : > { %s672_s21 = scalar_lea.hbm %s8288_s12, %s5531_s5 }
  0x8e   : > { %p6300_p13 = pneg %p6299_p10  ;;  %p6306_p11 = por %p6305_p7, %p6304_p9 }
  0x90   : > { %p6307_p0 = pnand %p6306_p11, %p6300_p13 }
  0x92   : > { %6310 = shalt.err (!%p6307_p0)
}
  0x93   : > { %5823 = dma.hbm_to_vmem [thread:$0]  (%p6737_p12), %s672_s21, 64, %s675_s19, %s6782_s3  }
  0x94   : > { %s6835_s16 = sshll.u32 %s6509_s18, 12  ;;  %s8289_s13 = sld [smem:[#allocation103_spill]] }
  0x95   : > { %s685_s8 = scalar_lea.vmem [#allocation12], %s6827_s9  ;;  %s6527_s2 = smov [#allocation12]  }
  0x96   : > { %s692_s22 = sshll.u32 %s685_s8, 4  ;;  %s6327_s5 = sshll.u32 %s6527_s2, 4  ;;  %s693_s22 = int_to_ptr.vmem [resolvable:$true] %s692_s22  ;;  %s6328_s5 = int_to_ptr.vmem [resolvable:$false] %s6327_s5 }
  0x97   : > { %s6323_s11 = scalar_lea.vmem %s693_s22, 4096  ;;  %s6329_s24 = scalar_lea.vmem %s6328_s5, 8192 }
  0x98   : > { %p6324_p5 = scmp.ne.s32.totalorder %s693_s22, %s6323_s11  ;;  %p6330_p4 = scmp.lt.s32.totalorder %s693_s22, %s6328_s5 }
  0x99   : > { %p6331_p3 = scmp.lt.s32.totalorder %s6329_s24, %s6323_s11 }
  0x9a   : > { %s691_s25 = scalar_lea.hbm %s8289_s13, %s6835_s16  ;;  %p6325_p8 = pnand %p6324_p5, %p6737_p12 }
  0x9b   : > { %p6332_p10 = por %p6331_p3, %p6330_p4 }
  0x9c   : > { %p6326_p1 = pneg %p6325_p8 }
  0x9e   : > { %p6333_p13 = pnand %p6332_p10, %p6326_p1 }
  0xa0   : > { %6336 = shalt.err (!%p6333_p13)
}
  0xa1   : > { %s6528_s4 = smov 64   ;;  %s6529_s21 = smov 4  }
  0xa2   : > { %5824 = dma.hbm_to_vmem [thread:$0]  (%p6737_p12), %s691_s25, 4096, %s693_s22, %s6782_s3, %s6528_s4, %s6528_s4, %s6529_s21  }
  0xa3   : > { %s8290_s14 = sld [smem:[#allocation104_spill]]  ;;  %s706_s17 = scalar_lea.vmem [#allocation13], %s6827_s9 }
  0xa4   : > { %s713_s6 = sshll.u32 %s706_s17, 4  ;;  %s6530_s30 = smov [#allocation13]   ;;  %s714_s6 = int_to_ptr.vmem [resolvable:$true] %s713_s6 }
  0xa5   : > { %s6349_s23 = scalar_lea.vmem %s714_s6, 4096  ;;  %s6353_s8 = sshll.u32 %s6530_s30, 4  ;;  %s6354_s8 = int_to_ptr.vmem [resolvable:$false] %s6353_s8 }
  0xa6   : > { %p6350_p9 = scmp.ne.s32.totalorder %s714_s6, %s6349_s23  ;;  %s6355_s11 = scalar_lea.vmem %s6354_s8, 8192 }
  0xa7   : > { %p6356_p0 = scmp.lt.s32.totalorder %s714_s6, %s6354_s8  ;;  %p6357_p5 = scmp.lt.s32.totalorder %s6355_s11, %s6349_s23 }
  0xa8   : > { %p6351_p7 = pnand %p6350_p9, %p6737_p12 }
  0xa9   : > { %s712_s7 = scalar_lea.hbm %s8290_s14, %s6835_s16  ;;  %p6358_p8 = por %p6357_p5, %p6356_p0 }
  0xaa   : > { %p6352_p11 = pneg %p6351_p7 }
  0xac   : > { %p6359_p1 = pnand %p6358_p8, %p6352_p11 }
  0xae   : > { %6362 = shalt.err (!%p6359_p1)
}
  0xaf   : > { %5825 = dma.hbm_to_vmem [thread:$0]  (%p6737_p12), %s712_s7, 4096, %s714_s6, %s6782_s3, %s6528_s4, %s6528_s4, %s6529_s21  }
  0xb0   : > { %s8291_s15 = sld [smem:[#allocation105_spill]]  ;;  %s727_s5 = scalar_lea.vmem [#allocation14], %s6827_s9 }
  0xb1   : > { %s734_s24 = sshll.u32 %s727_s5, 4  ;;  %s6531_s19 = smov [#allocation14]   ;;  %s735_s24 = int_to_ptr.vmem [resolvable:$true] %s734_s24 }
  0xb2   : > { %s6375_s27 = scalar_lea.vmem %s735_s24, 4096  ;;  %s6379_s17 = sshll.u32 %s6531_s19, 4  ;;  %s6380_s17 = int_to_ptr.vmem [resolvable:$false] %s6379_s17 }
  0xb3   : > { %p6376_p4 = scmp.ne.s32.totalorder %s735_s24, %s6375_s27  ;;  %s6381_s23 = scalar_lea.vmem %s6380_s17, 8192 }
  0xb4   : > { %p6382_p13 = scmp.lt.s32.totalorder %s735_s24, %s6380_s17  ;;  %p6383_p9 = scmp.lt.s32.totalorder %s6381_s23, %s6375_s27 }
  0xb5   : > { %p6377_p3 = pnand %p6376_p4, %p6737_p12 }
  0xb6   : > { %s733_s2 = scalar_lea.hbm %s8291_s15, %s6835_s16  ;;  %p6384_p7 = por %p6383_p9, %p6382_p13 }
  0xb7   : > { %p6378_p10 = pneg %p6377_p3 }
  0xb9   : > { %p6385_p11 = pnand %p6384_p7, %p6378_p10 }
  0xbb   : > { %6388 = shalt.err (!%p6385_p11)
}
  0xbc   : > { %5826 = dma.hbm_to_vmem [thread:$0]  (%p6737_p12), %s733_s2, 4096, %s735_s24, %s6782_s3, %s6528_s4, %s6528_s4, %s6529_s21  }
  0xbd PF: > { %746 = sbr.rel (%p6764_p2) target bundleno = 1812 (0x714), region = 107 }
  0xc2   : > { %s8292_s9 = sld [smem:[#allocation27_spill]]  ;;  %s748_s16 = sand.u32 1, %s6685_s20  }
  0xc3   : > { %s6880_s7 = sand.u32 1, %s6493_s28   ;;  %s749_s6 = scalar_lea.sflag [#allocation4], %s748_s16 }
  0xc8   : > { %p8293_p0 = scmp.ne.s32.totalorder %s8292_s9, 0 }
  0xca   : > { %6460 = dma.done.wait (%p8293_p0), %s749_s6, 16  }
  0xcb   : > { %6462 = vsyncadd (%p8293_p0), %s749_s6, 4294967280 }
  0xcc   : > { %6464 = dma.done.wait (%p119_p6), [#allocation7], 16  }
  0xcd   : > { %6466 = vsyncadd (%p119_p6), [#allocation7], 4294967280  ;;  %s8294_s3 = sld [smem:[#allocation20_spill]] }
  0xce   : > { %s8295_s0 = sld [smem:[#allocation30_spill]] }
  0xd3   : > { %s761_s10 = sand.u32 1, %s8294_s3  }
  0xd4   : > { %s5244_s4 = sshll.u32 %s761_s10, 6  ;;  %s5816_s21 = smul.u32 192, %s761_s10 }
  0xd5   : > { %s6892_s8 = scalar_lea.vmem [#allocation8], %s5244_s4  ;;  %p8296_p12 = scmp.ne.s32.totalorder %s8295_s0, 0 }
  0xd6   : > { %s6894_s11 = scalar_lea.vmem [#allocation9], %s5816_s21 }
  0xd7   : > { %6468 = dma.done.wait (%p8296_p12), %s749_s6, 20544  }
  0xd8   : > { %6470 = vsyncadd (%p8296_p12), %s749_s6, 4294946752  ;;  %s8297_s25 = sld [smem:[#allocation23_spill]]  ;;  %s5817_s20 = smul.u32 320, %s761_s10 }
  0xd9   : > { %s8298_s22 = sld [smem:[#allocation22_spill]]  ;;  %s5245_s2 = sshll.u32 %s761_s10, 2 }
  0xda   : > { %s5246_s5 = sshll.u32 %s761_s10, 8  ;;  %s5249_s24 = sshll.u32 %s6880_s7, 6 }
  0xdb   : > { %s8299_s9 = sld [smem:[#allocation90_spill]]  ;;  %s6924_s17 = scalar_lea.vmem [#allocation10], %s5817_s20 }
  0xdc   : > { %s8300_s0 = sld [smem:[#allocation91_spill]]  ;;  %s6926_s23 = scalar_lea.vmem [#allocation11], %s5245_s2 }
  0xdd   : > { %s8301_s30 = sld [smem:[#allocation98_spill]]  ;;  %s6932_s3 = scalar_lea.vmem [#allocation14], %s5246_s5 }
  0xde   : > { %p918_p6 = scmp.lt.s32.totalorder %s8297_s25, 1  ;;  %s8302_s14 = sld [smem:[#allocation100_spill]] }
  0xdf   : > { %s5254_s27 = sshll.u32 %s8298_s22, 2  ;;  %s6934_s6 = scalar_lea.vmem [#allocation15], %s5249_s24 }
  0xe0   : > { %s8512_s25 = smov (!%p918_p6, %s8297_s25), 1  ;;  %p930_p2 = scmp.lt.s32.totalorder %s5254_s27, 7 }
  0xe1   : > { %s5535_s19 = sshll.u32 %s8512_s25, 5  ;;  %p5256_p5 = scmp.ne.s32.totalorder %s8298_s22, 0 }
  0xe2   : > { %s6907_s16 = scalar_lea.vmem %s8299_s9, %s5535_s19  ;;  %s6912_s4 = scalar_lea.vmem %s8300_s0, %s5535_s19 }
  0xe3   : > { %s8514_s27 = smov (!%p930_p2, %s5254_s27), 7  ;;  %s6928_s9 = scalar_lea.vmem [#allocation12], %s5246_s5 }
  0xe4   : > { %s932_s12 = scalar_lea.vmem %s8301_s30, %s8514_s27  ;;  %s938_s15 = scalar_lea.vmem %s8302_s14, %s8514_s27 }
  0xe5   : > { %s6930_s19 = scalar_lea.vmem [#allocation13], %s5246_s5  ;;  %949 = sbr.rel (%p5256_p5) target bundleno = 812 (0x32c), region = 147 }
  0xe6   : > { %s8303_s30 = sld [smem:[#allocation93_spill]] (!%p5256_p5)  ;;  %s8308_s14 = scalar_lea.vmem (!%p5256_p5), [#allocation3], %s6880_s7 }
  0xe7   : > { %s8305_s0 = sld [smem:[#allocation95_spill]] (!%p5256_p5) }
  0xe8   : > { %s8307_s13 = sld [smem:[#allocation94_spill]] (!%p5256_p5) }
  0xea   : > { %v960_v8 = vld [vmem:[%s6912_s4 + $0x8] sm:$0xf]  ;;  %v958_v9 = vld [vmem:[%s6912_s4] sm:$0xf]  ;;  %v6532_v11 = vmov 0   ;;  %v974_v21 = vlaneseq  ;;  %vm1113_vm0 = vcmask 261120  }
  0xeb   : > { %5950 = vset.pattern.permute.xlu1 %v6532_v11  ;;  %5949 = vset.pattern.permute.xlu0 %v6532_v11  ;;  %v961_v12 = vld [vmem:[%s6912_s4 + $0xc] sm:$0xf]  ;;  %v959_v13 = vld [vmem:[%s6912_s4 + $0x4] sm:$0xf]  ;;  %v963_v15 = vld [vmem:[%s6912_s4 + $0x14] sm:$0xf] }
  0xec   : > { %s8304_s20 = smov %s8303_s30  ;;  %v5951_v10 = vld [vmem:[%s8303_s30 + $0x8] sm:$0xff]   ;;  %992 = vperm.xlu1 %5950, %v960_v8   ;;  %968 = vperm.xlu0 %5949, %v958_v9   ;;  %v962_v16 = vld [vmem:[%s6912_s4 + $0x10] sm:$0xf]  ;;  %v965_v17 = vld [vmem:[%s6912_s4 + $0x1c] sm:$0xf]  ;;  %v975_v23 = vshrl.u32 %v974_v21, 7 }
  0xed   : > { %5790 = vmatprep.subr.bf16.mxu0 %v5951_v10  ;;  %v5953_v14 = vld [vmem:[%s8304_s20] sm:$0xff]   ;;  %v964_v18 = vld [vmem:[%s6912_s4 + $0x18] sm:$0xf]  ;;  %v6533_v19 = vmov 839922192   ;;  %s8306_s4 = smov %s8305_s0  ;;  %v5956_v61 = vld [vmem:[%s8305_s0 + $0x8] sm:$0xff]  }
  0xee   : > { %5791 = vmatpush3.bf16.msra.mxu0 %v5951_v10  ;;  %v972_v20 = vunpack.c.l.s4 %v6533_v19  ;;  %v952_v27 = vld [vmem:[%s6907_s16 + $0x8] sm:$0xf]  ;;  %v950_v30 = vld [vmem:[%s6907_s16] sm:$0xf]  ;;  %v953_v32 = vld [vmem:[%s6907_s16 + $0xc] sm:$0xf]  ;;  %5802 = vmatprep.subr.bf16.mxu1 %v5956_v61 }
  0xef   : > { %5792 = vmatprep.subr.bf16.mxu0 %v5953_v14  ;;  %v951_v34 = vld [vmem:[%s6907_s16 + $0x4] sm:$0xf]  ;;  %v955_v42 = vld [vmem:[%s6907_s16 + $0x14] sm:$0xf]  ;;  %v954_v44 = vld [vmem:[%s6907_s16 + $0x10] sm:$0xf]  ;;  %5803 = vmatpush3.bf16.msra.mxu1 %v5956_v61  ;;  %v5271_v63 = vcombine.low %v952_v27, %v953_v32 }
  0xf0   : > { %1004 = vperm.xlu1 %5950, %v961_v12   ;;  %980 = vperm.xlu0 %5949, %v959_v13   ;;  %v973_v22 = vunpack.c.0.s8 %v972_v20  ;;  %v957_v52 = vld [vmem:[%s6907_s16 + $0x1c] sm:$0xf]  ;;  %v956_v54 = vld [vmem:[%s6907_s16 + $0x18] sm:$0xf]  ;;  %v5957_v62 = vld [vmem:[%s8306_s4] sm:$0xff]   ;;  %v5272_v0 = vcombine.low %v954_v44, %v955_v42  ;;  %v5270_v1 = vcombine.low %v950_v30, %v951_v34  ;;  %vm1433_vm1 = vcmask 257024  }
  0xf1   : > { %5804 = vmatprep.subr.bf16.mxu1 %v5957_v62  ;;  %v5273_v2 = vcombine.low %v956_v54, %v957_v52  ;;  %v5257_v3 = vld [vmem:[%s8307_s13] ss:$0 sm:$0xff] }
  0xf2   : > { %5793 = vmatpush3.bf16.msra.mxu0 %v5953_v14  ;;  %v976_v24 = vsub.s32 %v973_v22, %v975_v23  ;;  %5806 = vmatprep.mubr.msk.bf16.mxu1 %vm1113_vm0, %v5270_v1  ;;  %v5268_v5 = vld [vmem:[%s8308_s14] ss:$0 sm:$0xff] }
  0xf3   : > { %5805 = vmatpush3.bf16.msra.mxu1 %v5957_v62 }
  0xf4   : > { %1028 = vperm.xlu1 %5950, %v963_v15   ;;  %1016 = vperm.xlu0 %5949, %v962_v16  }
  0xf6   : > { %5807 = vmatmul.mubr.msk.bf16.vlgmr.msra.gmra.mxu1 %vm1113_vm0, %v5271_v63 }
  0xf7   : > { %5810 = vmatprep.mubr.msk.bf16.mxu1 %vm1113_vm0, %v5272_v0 }
  0xf8   : > { %1052 = vperm.xlu1 %5950, %v965_v17   ;;  %1040 = vperm.xlu0 %5949, %v964_v18  }
  0xfe   : > { %5811 = vmatmul.mubr.msk.bf16.gmra.mxu1 %vm1113_vm0, %v5273_v2 }
 0x167   : > { %v993_v25 = vpop.permute.xlu1 %992  ;;  %v969_v26 = vpop.permute.xlu0 %968 }
 0x168   : > { %v1001_v28 = vrot.slane %v993_v25, %v976_v24  ;;  %v977_v29 = vrot.slane %v969_v26, %v976_v24 }
 0x16a   : > { %v1064_v37 = vmul.bf16 %v1001_v28, %v952_v27  ;;  %v1062_v38 = vmul.bf16 %v977_v29, %v950_v30 }
 0x16b   : > { %v1005_v31 = vpop.permute.xlu1 %1004  ;;  %v981_v33 = vpop.permute.xlu0 %980 }
 0x16c   : > { %v1013_v35 = vrot.slane %v1005_v31, %v976_v24  ;;  %v989_v36 = vrot.slane %v981_v33, %v976_v24 }
 0x16e   : > { %v1065_v39 = vmul.bf16 %v1013_v35, %v953_v32  ;;  %v1063_v40 = vmul.bf16 %v989_v36, %v951_v34 }
 0x16f   : > { %v1029_v41 = vpop.permute.xlu1 %1028  ;;  %v1017_v43 = vpop.permute.xlu0 %1016 }
 0x170   : > { %v5259_v45 = vcombine.low %v1064_v37, %v1065_v39  ;;  %v1037_v46 = vrot.slane %v1029_v41, %v976_v24  ;;  %v1025_v47 = vrot.slane %v1017_v43, %v976_v24  ;;  %v5258_v48 = vcombine.low %v1062_v38, %v1063_v40 }
 0x171   : > { %v6534_v37 = vmov 0.0  }
 0x172   : > { %v1067_v49 = vmul.bf16 %v1037_v46, %v955_v42  ;;  %v1066_v50 = vmul.bf16 %v1025_v47, %v954_v44  ;;  %5794 = vmatprep.mubr.msk.bf16.mxu0 %vm1113_vm0, %v5258_v48  ;;  %1427 = vst.msk [vmem:[#allocation2 + $0x10] sm:$0xff] %vm1113_vm0, %v6534_v37  ;;  %1428 = vst.msk [vmem:[#allocation2 + $0x18] sm:$0xff] %vm1113_vm0, %v6534_v37 }
 0x173   : > { %v1053_v51 = vpop.permute.xlu1 %1052  ;;  %v1041_v53 = vpop.permute.xlu0 %1040  ;;  %5795 = vmatmul.mubr.msk.bf16.vlgmr.msra.gmra.mxu0 %vm1113_vm0, %v5259_v45  ;;  %1425 = vst.msk [vmem:[#allocation2] sm:$0xff] %vm1113_vm0, %v6534_v37  ;;  %1426 = vst.msk [vmem:[#allocation2 + $0x8] sm:$0xff] %vm1113_vm0, %v6534_v37 }
 0x174   : > { %v5260_v55 = vcombine.low %v1066_v50, %v1067_v49  ;;  %v1061_v56 = vrot.slane %v1053_v51, %v976_v24  ;;  %v1049_v57 = vrot.slane %v1041_v53, %v976_v24  ;;  %1429 = vst.msk [vmem:[#allocation2 + $0x20] sm:$0xff] %vm1113_vm0, %v6534_v37  ;;  %1430 = vst.msk [vmem:[#allocation2 + $0x28] sm:$0xff] %vm1113_vm0, %v6534_v37 }
 0x175   : > { %1431 = vst.msk [vmem:[#allocation2 + $0x30] sm:$0xff] %vm1113_vm0, %v6534_v37  ;;  %1432 = vst.msk [vmem:[#allocation2 + $0x38] sm:$0xff] %vm1113_vm0, %v6534_v37 }
 0x176   : > { %v1069_v58 = vmul.bf16 %v1061_v56, %v957_v52  ;;  %v1068_v59 = vmul.bf16 %v1049_v57, %v956_v54  ;;  %5798 = vmatprep.mubr.msk.bf16.mxu0 %vm1113_vm0, %v5260_v55  ;;  %1434 = vst.msk [vmem:[#allocation2 + $0x40] sm:$0xf] %vm1433_vm1, %v6534_v37 }
 0x178   : > { %v5261_v60 = vcombine.low %v1068_v59, %v1069_v58 }
 0x17b   : > { %5799 = vmatmul.mubr.msk.bf16.gmra.mxu0 %vm1113_vm0, %v5261_v60 }
 0x233   : > { %v5796_v4 = vpop.f32.mrf.mxu0 }
 0x234   : > { %v1169_v6 = vadd.f32 %v5796_v4, %v5257_v3 }
 0x235   : > { %v1160_v7 = vpop.f32.mrf.mxu0 }
 0x236   : > { %v1161_v8 = vadd.f32 %v5257_v3, %v1160_v7  ;;  %v1200_v9 = vmul.f32 %v5268_v5, %v1169_v6 }
 0x237   : > { %v5797_v10 = vpop.f32.mrf.mxu0 }
 0x238   : > { %v1172_v11 = vadd.f32 %v5797_v10, %v5257_v3  ;;  %v1212_v12 = vsel %vm1113_vm0, %v1200_v9, 0.0  ;;  %v1198_v13 = vmul.f32 %v5268_v5, %v1161_v8 }
 0x239   : > { %1213 = vadd.xlane.f32.xlu0 %v1212_v12  ;;  %v1163_v14 = vpop.f32.mrf.mxu0 }
 0x23a   : > { %v1164_v15 = vadd.f32 %v5257_v3, %v1163_v14  ;;  %v1206_v17 = vsel %vm1113_vm0, %v1198_v13, 0.0  ;;  %v1201_v19 = vmul.f32 %v5268_v5, %v1172_v11 }
 0x23b   : > { %v5800_v16 = vpop.f32.mrf.mxu0 }
 0x23c   : > { %v1199_v18 = vmul.f32 %v5268_v5, %v1164_v15  ;;  %v1185_v21 = vadd.f32 %v5800_v16, %v5257_v3  ;;  %v1215_v25 = vsel %vm1113_vm0, %v1201_v19, 0.0 }
 0x23d   : > { %v1176_v20 = vpop.f32.mrf.mxu0  ;;  %1207 = vadd.xlane.f32.xlu0 %v1206_v17 }
 0x23e   : > { %v1177_v22 = vadd.f32 %v5257_v3, %v1176_v20  ;;  %v1209_v23 = vsel %vm1113_vm0, %v1199_v18, 0.0  ;;  %v1204_v31 = vmul.f32 %v5268_v5, %v1185_v21 }
 0x23f   : > { %v5801_v24 = vpop.f32.mrf.mxu0  ;;  %1210 = vadd.xlane.f32.xlu1 %v1209_v23 }
 0x240   : > { %v1202_v26 = vmul.f32 %v5268_v5, %v1177_v22  ;;  %v1188_v28 = vadd.f32 %v5801_v24, %v5257_v3  ;;  %v1224_v33 = vsel %vm1113_vm0, %v1204_v31, 0.0 }
 0x241   : > { %v1179_v27 = vpop.f32.mrf.mxu0  ;;  %1216 = vadd.xlane.f32.xlu0 %v1215_v25 }
 0x242   : > { %v1180_v29 = vadd.f32 %v5257_v3, %v1179_v27  ;;  %v1218_v30 = vsel %vm1113_vm0, %v1202_v26, 0.0  ;;  %v1205_v35 = vmul.f32 %v5268_v5, %v1188_v28 }
 0x243   : > { %1219 = vadd.xlane.f32.xlu1 %v1218_v30  ;;  %v5808_v30 = vpop.f32.mrf.mxu1 }
 0x244   : > { %v1203_v32 = vmul.f32 %v5268_v5, %v1180_v29  ;;  %v1227_v36 = vsel %vm1113_vm0, %v1205_v35, 0.0 }
 0x245   : > { %v1386_v35 = vpop.f32.mrf.mxu1 }
 0x246   : > { %v1221_v34 = vsel %vm1113_vm0, %v1203_v32, 0.0 }
 0x247   : > { %1225 = vadd.xlane.f32.xlu1 %v1224_v33  ;;  %1222 = vadd.xlane.f32.xlu0 %v1221_v34 }
 0x24b   : > { %1228 = vadd.xlane.f32.xlu0 %v1227_v36 }
 0x2c2   : > { %v1214_v38 = vpop.xlane.xlu0 %1213 }
 0x2c3   : > { %v1232_v49 = vmul.f32 0.01767767, %v1214_v38  ;;  %v5809_v38 = vpop.f32.mrf.mxu1 }
 0x2c6   : > { %v1208_v39 = vpop.xlane.xlu0 %1207 }
 0x2c7   : > { %v1230_v51 = vmul.f32 0.01767767, %v1208_v39 }
 0x2c8   : > { %v1211_v40 = vpop.xlane.xlu1 %1210 }
 0x2c9   : > { %v1231_v46 = vmul.f32 0.01767767, %v1211_v40 }
 0x2ca   : > { %v1217_v41 = vpop.xlane.xlu0 %1216 }
 0x2cb   : > { %v1233_v52 = vmul.f32 0.01767767, %v1217_v41  ;;  %v1389_v41 = vpop.f32.mrf.mxu1 }
 0x2cc   : > { %v1220_v42 = vpop.xlane.xlu1 %1219 }
 0x2cd   : > { %v1234_v47 = vmul.f32 0.01767767, %v1220_v42 }
 0x2cf   : > { %v1238_v55 = vmax.f32 %v1230_v51, %v1234_v47 }
 0x2d0   : > { %v1226_v43 = vpop.xlane.xlu1 %1225  ;;  %v1223_v44 = vpop.xlane.xlu0 %1222 }
 0x2d1   : > { %v1235_v45 = vmul.f32 0.01767767, %v1223_v44  ;;  %v1236_v48 = vmul.f32 0.01767767, %v1226_v43  ;;  %v5812_v44 = vpop.f32.mrf.mxu1 }
 0x2d3   : > { %v1239_v53 = vmax.f32 %v1231_v46, %v1235_v45  ;;  %v1240_v56 = vmax.f32 %v1232_v49, %v1236_v48 }
 0x2d4   : > { %v1229_v50 = vpop.xlane.xlu0 %1228 }
 0x2d5   : > { %v1237_v54 = vmul.f32 0.01767767, %v1229_v50  ;;  %v1242_v58 = vmax.f32 %v1238_v55, %v1239_v53 }
 0x2d7   : > { %v1241_v57 = vmax.f32 %v1233_v52, %v1237_v54 }
 0x2d9   : > { %v1243_v59 = vmax.f32 %v1240_v56, %v1241_v57 }
 0x2db   : > { %v1244_v60 = vmax.f32 %v1242_v58, %v1243_v59 }
 0x2dd   : > { %v1245_v61 = vrot.slane %v1244_v60, 4 }
 0x2df   : > { %v1246_v62 = vmax.f32 %v1244_v60, %v1245_v61 }
 0x2e1   : > { %v1247_v63 = vrot.slane %v1246_v62, 2 }
 0x2e3   : > { %v1248_v0 = vmax.f32 %v1246_v62, %v1247_v63 }
 0x2e5   : > { %v1249_v1 = vrot.slane %v1248_v0, 1 }
 0x2e7   : > { %v1250_v2 = vmax.f32 %v1248_v0, %v1249_v1 }
 0x2e9   : > { %v1251_v3 = vsub.f32 %v1230_v51, %v1250_v2  ;;  %v1252_v4 = vsub.f32 %v1231_v46, %v1250_v2  ;;  %v1253_v5 = vsub.f32 %v1232_v49, %v1250_v2  ;;  %v1254_v6 = vsub.f32 %v1233_v52, %v1250_v2 }
 0x2ea   : > { %v1255_v9 = vsub.f32 %v1234_v47, %v1250_v2  ;;  %v1256_v11 = vsub.f32 %v1235_v45, %v1250_v2  ;;  %v1257_v13 = vsub.f32 %v1236_v48, %v1250_v2  ;;  %v1258_v15 = vsub.f32 %v1237_v54, %v1250_v2  ;;  %v1402_v45 = vpop.f32.mrf.mxu1  ;;  %v5269_v47 = vld [vmem:[#allocation6] ss:$0 sm:$0xff] }
 0x2eb   : > { %v1259_v7 = vmul.f32 1.442695, %v1251_v3  ;;  %v1261_v8 = vmul.f32 1.442695, %v1252_v4  ;;  %v1263_v10 = vmul.f32 1.442695, %v1253_v5  ;;  %v1395_v49 = vadd.f32 %v5808_v30, %v5269_v47 }
 0x2ec   : > { %v1265_v12 = vmul.f32 1.442695, %v1254_v6  ;;  %v1267_v14 = vmul.f32 1.442695, %v1255_v9  ;;  %v1269_v16 = vmul.f32 1.442695, %v1256_v11  ;;  %v5813_v46 = vpop.f32.mrf.mxu1  ;;  %v1387_v50 = vadd.f32 %v5269_v47, %v1386_v35 }
 0x2ed   : > { %5959 = vpow2.f32 %v1259_v7  ;;  %v1271_v17 = vmul.f32 1.442695, %v1257_v13  ;;  %v1273_v18 = vmul.f32 1.442695, %v1258_v15  ;;  %v1398_v51 = vadd.f32 %v5809_v38, %v5269_v47 }
 0x2ee   : > { %5961 = vpow2.f32 %v1261_v8  ;;  %v1405_v48 = vpop.f32.mrf.mxu1  ;;  %v1390_v52 = vadd.f32 %v5269_v47, %v1389_v41  ;;  %v1411_v54 = vadd.f32 %v5812_v44, %v5269_v47  ;;  %v1403_v55 = vadd.f32 %v5269_v47, %v1402_v45 }
 0x2ef   : > { %5963 = vpow2.f32 %v1263_v10  ;;  %v1414_v56 = vadd.f32 %v5813_v46, %v5269_v47  ;;  %v1406_v57 = vadd.f32 %v5269_v47, %v1405_v48 }
 0x2f0   : > { %5965 = vpow2.f32 %v1265_v12 }
 0x2f1   : > { %5967 = vpow2.f32 %v1267_v14 }
 0x2f2   : > { %5969 = vpow2.f32 %v1269_v16 }
 0x2f3   : > { %5971 = vpow2.f32 %v1271_v17 }
 0x2f4   : > { %5973 = vpow2.f32 %v1273_v18 }
 0x2fa   : > { %v5960_v19 = vpop.eup %5959 }
 0x2fb   : > { %v5962_v20 = vpop.eup %5961 }
 0x2fc   : > { %v1275_v21 = vadd.f32 %v5962_v20, %v5960_v19  ;;  %v5964_v22 = vpop.eup %5963 }
 0x2fd   : > { %v5966_v24 = vpop.eup %5965 }
 0x2fe   : > { %v1276_v23 = vadd.f32 %v5964_v22, %v1275_v21  ;;  %v5968_v26 = vpop.eup %5967 }
 0x2ff   : > { %v5970_v28 = vpop.eup %5969 }
 0x300   : > { %v1277_v25 = vadd.f32 %v5966_v24, %v1276_v23  ;;  %v5972_v31 = vpop.eup %5971 }
 0x301   : > { %v5974_v33 = vpop.eup %5973 }
 0x302   : > { %v1278_v27 = vadd.f32 %v5968_v26, %v1277_v25 }
 0x304   : > { %v1279_v29 = vadd.f32 %v5970_v28, %v1278_v27 }
 0x306   : > { %v1280_v32 = vadd.f32 %v5972_v31, %v1279_v29 }
 0x308   : > { %v1281_v34 = vadd.f32 %v5974_v33, %v1280_v32 }
 0x30a   : > { %v1282_v36 = vrot.slane %v1281_v34, 4 }
 0x30c   : > { %v1283_v37 = vadd.f32 %v1282_v36, %v1281_v34 }
 0x30e   : > { %v1284_v39 = vrot.slane %v1283_v37, 2 }
 0x310   : > { %v1285_v40 = vadd.f32 %v1284_v39, %v1283_v37 }
 0x312   : > { %v1286_v42 = vrot.slane %v1285_v40, 1 }
 0x314   : > { %v1287_v43 = vadd.f32 %v1286_v42, %v1285_v40 }
 0x316   : > { %5975 = vrcp.f32 %v1287_v43 }
 0x323   : > { %v5976_v53 = vpop.eup %5975 }
 0x324   : > { %v1291_v58 = vmul.f32 %v5976_v53, %v5964_v22  ;;  %v1289_v59 = vmul.f32 %v5976_v53, %v5960_v19  ;;  %v1292_v60 = vmul.f32 %v5976_v53, %v5966_v24  ;;  %v1290_v61 = vmul.f32 %v5976_v53, %v5962_v20 }
 0x325   : > { %v1295_v62 = vmul.f32 %v5976_v53, %v5972_v31  ;;  %v1293_v63 = vmul.f32 %v5976_v53, %v5968_v26  ;;  %v1296_v0 = vmul.f32 %v5976_v53, %v5974_v33  ;;  %v1294_v1 = vmul.f32 %v5976_v53, %v5970_v28 }
 0x326   : > { %v1419_v2 = vmul.f32 %v1395_v49, %v1291_v58  ;;  %v1417_v3 = vmul.f32 %v1387_v50, %v1289_v59  ;;  %v1420_v4 = vmul.f32 %v1398_v51, %v1292_v60  ;;  %v1418_v5 = vmul.f32 %v1390_v52, %v1290_v61 }
 0x327   : > { %v1423_v6 = vmul.f32 %v1411_v54, %v1295_v62  ;;  %v1421_v7 = vmul.f32 %v1403_v55, %v1293_v63  ;;  %v1424_v8 = vmul.f32 %v1414_v56, %v1296_v0  ;;  %v1422_v9 = vmul.f32 %v1406_v57, %v1294_v1 }
 0x328   : > { %1437 = vst.msk [vmem:[#allocation2 + $0x12] sm:$0xff] %vm1113_vm0, %v1419_v2  ;;  %1435 = vst.msk [vmem:[#allocation2 + $0x2] sm:$0xff] %vm1113_vm0, %v1417_v3 }
 0x329   : > { %1438 = vst.msk [vmem:[#allocation2 + $0x1a] sm:$0xff] %vm1113_vm0, %v1420_v4  ;;  %1436 = vst.msk [vmem:[#allocation2 + $0xa] sm:$0xff] %vm1113_vm0, %v1418_v5 }
 0x32a   : > { %1441 = vst.msk [vmem:[#allocation2 + $0x32] sm:$0xff] %vm1113_vm0, %v1423_v6  ;;  %1439 = vst.msk [vmem:[#allocation2 + $0x22] sm:$0xff] %vm1113_vm0, %v1421_v7 }
 0x32b   : > { %1442 = vst.msk [vmem:[#allocation2 + $0x3a] sm:$0xff] %vm1113_vm0, %v1424_v8  ;;  %1440 = vst.msk [vmem:[#allocation2 + $0x2a] sm:$0xff] %vm1113_vm0, %v1422_v9 }
 0x32c PF: > { %v5977_v10 = vld [vmem:[%s6892_s8 + $0x24] ss:$16 sps:$4 sm:$0xff]   ;;  %v5979_v11 = vld [vmem:[%s6892_s8 + $0x2c] ss:$16 sps:$4 sm:$0xff]   ;;  %v8209_v12 = vmov 0   ;;  %vm1525_vm2 = vcmask 261120  }
 0x32d   : > { %1570 = vmatprep.mubr.bf16.mxu0 %v8209_v12  ;;  %1643 = vmatprep.mubr.bf16.mxu1 %v8209_v12  ;;  %v5981_v13 = vld [vmem:[%s6892_s8 + $0x20] ss:$16 sps:$4 sm:$0xff]   ;;  %v5982_v14 = vld [vmem:[%s6892_s8 + $0x28] ss:$16 sps:$4 sm:$0xff]   ;;  %v5983_v15 = vld [vmem:[%s6892_s8 + $0x4] ss:$16 sps:$4 sm:$0xff]  }
 0x32e   : > { %1550 = vmatprep.subr.bf16.mxu0 %v5977_v10  ;;  %1623 = vmatprep.subr.bf16.mxu1 %v5979_v11  ;;  %v5985_v16 = vld [vmem:[%s6892_s8 + $0xc] ss:$16 sps:$4 sm:$0xff]   ;;  %v5987_v17 = vld [vmem:[%s6892_s8] ss:$16 sps:$4 sm:$0xff]   ;;  %v5988_v18 = vld [vmem:[%s6892_s8 + $0x8] ss:$16 sps:$4 sm:$0xff]  }
 0x32f   : > { %1551 = vmatpush1.bf16.msra.mxu0 %v5981_v13  ;;  %1624 = vmatpush1.bf16.msra.mxu1 %v5982_v14  ;;  %v1443_v19 = vld [vmem:[#allocation2 + $0x2] sm:$0xff]  ;;  %v5989_v23 = vld [vmem:[%s6894_s11 + $0x60] ss:$16 sps:$4 sm:$0xff]   ;;  %v1445_v26 = vld [vmem:[#allocation2 + $0x12] sm:$0xff] }
 0x330   : > { %1552 = vmatprep.subr.bf16.mxu0 %v5983_v15  ;;  %v1444_v20 = vld [vmem:[#allocation2 + $0xa] sm:$0xff]  ;;  %1625 = vmatprep.subr.bf16.mxu1 %v5985_v16  ;;  %v5992_v24 = vld [vmem:[%s6894_s11 + $0x68] ss:$16 sps:$4 sm:$0xff]   ;;  %v1446_v27 = vld [vmem:[#allocation2 + $0x1a] sm:$0xff] }
 0x331   : > { %v7014_v21 = vpack.c.bf16 %v1444_v20, %v1443_v19  ;;  %v5991_v22 = vld [vmem:[%s6894_s11 + $0x64] ss:$16 sps:$4 sm:$0xff]   ;;  %v5994_v25 = vld [vmem:[%s6894_s11 + $0x6c] ss:$16 sps:$4 sm:$0xff]   ;;  %v5995_v29 = vld [vmem:[%s6894_s11 + $0x40] ss:$16 sps:$4 sm:$0xff]   ;;  %v7031_v33 = vpack.c.bf16 %v1446_v27, %v1445_v26 }
 0x332   : > { %v5997_v28 = vld [vmem:[%s6894_s11 + $0x44] ss:$16 sps:$4 sm:$0xff]   ;;  %v5998_v30 = vld [vmem:[%s6894_s11 + $0x48] ss:$16 sps:$4 sm:$0xff]   ;;  %v6000_v31 = vld [vmem:[%s6894_s11 + $0x4c] ss:$16 sps:$4 sm:$0xff]  }
 0x333   : > { %8309 = vst [vmem:[#allocation33_spill] sm:$0xff] %v7014_v21  ;;  %1553 = vmatpush1.bf16.msra.mxu0 %v5987_v17  ;;  %1626 = vmatpush1.bf16.msra.mxu1 %v5988_v18  ;;  %v6003_v32 = vld [vmem:[%s6894_s11 + $0x24] ss:$16 sps:$4 sm:$0xff]   ;;  %8310 = vst [vmem:[#allocation34_spill] sm:$0xff] %v7031_v33  ;;  %v6006_v34 = vld [vmem:[%s6894_s11 + $0x2c] ss:$16 sps:$4 sm:$0xff]  }
 0x334   : > { %1876 = vmatprep.subr.bf16.mxu0 %v5991_v22  ;;  %1949 = vmatprep.subr.bf16.mxu1 %v5994_v25  ;;  %v1447_v35 = vld [vmem:[#allocation2 + $0x22] sm:$0xff]  ;;  %v1448_v36 = vld [vmem:[#allocation2 + $0x2a] sm:$0xff]  ;;  %v1449_v38 = vld [vmem:[#allocation2 + $0x32] sm:$0xff] }
 0x335   : > { %v7040_v37 = vpack.c.bf16 %v1448_v36, %v1447_v35  ;;  %v1450_v39 = vld [vmem:[#allocation2 + $0x3a] sm:$0xff]  ;;  %v6004_v42 = vld [vmem:[%s6894_s11 + $0x28] ss:$16 sps:$4 sm:$0xff]   ;;  %v1797_v50 = vld [vmem:[#allocation2 + $0x9] sm:$0xff] }
 0x336   : > { %5288 = vmatmul.mubr.msk.bf16.vlgmr.msra.gmra.mxu0 %vm1525_vm2, %v7014_v21  ;;  %5292 = vmatmul.mubr.msk.bf16.vlgmr.msra.gmra.mxu1 %vm1525_vm2, %v7014_v21  ;;  %v7048_v40 = vpack.c.bf16 %v1450_v39, %v1449_v38  ;;  %v6001_v41 = vld [vmem:[%s6894_s11 + $0x20] ss:$16 sps:$4 sm:$0xff]   ;;  %v6009_v43 = vld [vmem:[%s6894_s11 + $0x4] ss:$16 sps:$4 sm:$0xff]   ;;  %v6012_v44 = vld [vmem:[%s6894_s11 + $0xc] ss:$16 sps:$4 sm:$0xff]  }
 0x337   : > { %1877 = vmatpush1.bf16.msra.mxu0 %v5989_v23  ;;  %1950 = vmatpush1.bf16.msra.mxu1 %v5992_v24  ;;  %8311 = vst [vmem:[#allocation35_spill] sm:$0xff] %v7040_v37  ;;  %v6007_v45 = vld [vmem:[%s6894_s11] ss:$16 sps:$4 sm:$0xff]   ;;  %v6010_v46 = vld [vmem:[%s6894_s11 + $0x8] ss:$16 sps:$4 sm:$0xff]  }
 0x338   : > { %1580 = vmatprep.mubr.bf16.mxu0 %v8209_v12  ;;  %1653 = vmatprep.mubr.bf16.mxu1 %v8209_v12  ;;  %8312 = vst [vmem:[#allocation36_spill] sm:$0xff] %v7048_v40  ;;  %v6015_v47 = vld [vmem:[%s6894_s11 + $0xa4] ss:$16 sps:$4 sm:$0xff]   ;;  %v6018_v48 = vld [vmem:[%s6894_s11 + $0xac] ss:$16 sps:$4 sm:$0xff]  }
 0x339   : > { %1878 = vmatprep.subr.bf16.mxu0 %v5997_v28  ;;  %1951 = vmatprep.subr.bf16.mxu1 %v6000_v31  ;;  %v1796_v49 = vld [vmem:[#allocation2 + $0x1] sm:$0xff]  ;;  %v6013_v51 = vld [vmem:[%s6894_s11 + $0xa0] ss:$16 sps:$4 sm:$0xff]   ;;  %v1798_v56 = vld [vmem:[#allocation2 + $0x11] sm:$0xff] }
 0x33a   : > { %v6016_v52 = vld [vmem:[%s6894_s11 + $0xa8] ss:$16 sps:$4 sm:$0xff]   ;;  %v7090_v53 = vpack.c.bf16 %v1797_v50, %v1796_v49  ;;  %v6021_v54 = vld [vmem:[%s6894_s11 + $0x84] ss:$16 sps:$4 sm:$0xff]   ;;  %v6024_v55 = vld [vmem:[%s6894_s11 + $0x8c] ss:$16 sps:$4 sm:$0xff]  }
 0x33b   : > { %1879 = vmatpush1.bf16.msra.mxu0 %v5995_v29  ;;  %1952 = vmatpush1.bf16.msra.mxu1 %v5998_v30  ;;  %v1799_v57 = vld [vmem:[#allocation2 + $0x19] sm:$0xff]  ;;  %v6022_v59 = vld [vmem:[%s6894_s11 + $0x88] ss:$16 sps:$4 sm:$0xff]   ;;  %v1801_v62 = vld [vmem:[#allocation2 + $0x29] sm:$0xff] }
 0x33c   : > { %2074 = vmatprep.subr.bf16.mxu0 %v6003_v32  ;;  %2147 = vmatprep.subr.bf16.mxu1 %v6006_v34  ;;  %8313 = vst [vmem:[#allocation37_spill] sm:$0xff] %v7090_v53  ;;  %v6019_v58 = vld [vmem:[%s6894_s11 + $0x80] ss:$16 sps:$4 sm:$0xff]   ;;  %v7102_v60 = vpack.c.bf16 %v1799_v57, %v1798_v56  ;;  %v1800_v61 = vld [vmem:[#allocation2 + $0x21] sm:$0xff]  ;;  %v1802_v0 = vld [vmem:[#allocation2 + $0x31] sm:$0xff] }
 0x33d   : > { %v7110_v63 = vpack.c.bf16 %v1801_v62, %v1800_v61  ;;  %v1803_v1 = vld [vmem:[#allocation2 + $0x39] sm:$0xff]  ;;  %v2208_v3 = vld [vmem:[#allocation2 + $0x3] sm:$0xff]  ;;  %v2209_v4 = vld [vmem:[#allocation2 + $0xb] sm:$0xff] }
 0x33e   : > { %5289 = vmatmul.mubr.msk.bf16.gmra.mxu0 %vm1525_vm2, %v7031_v33  ;;  %5293 = vmatmul.mubr.msk.bf16.gmra.mxu1 %vm1525_vm2, %v7031_v33  ;;  %8314 = vst [vmem:[#allocation38_spill] sm:$0xff] %v7102_v60  ;;  %v7118_v2 = vpack.c.bf16 %v1803_v1, %v1802_v0  ;;  %v7126_v5 = vpack.c.bf16 %v2209_v4, %v2208_v3  ;;  %v2210_v6 = vld [vmem:[#allocation2 + $0x13] sm:$0xff]  ;;  %v2211_v7 = vld [vmem:[#allocation2 + $0x1b] sm:$0xff]  ;;  %v2212_v9 = vld [vmem:[#allocation2 + $0x23] sm:$0xff] }
 0x33f   : > { %1590 = vmatprep.mubr.bf16.mxu0 %v8209_v12  ;;  %1663 = vmatprep.mubr.bf16.mxu1 %v8209_v12  ;;  %8315 = vst [vmem:[#allocation39_spill] sm:$0xff] %v7110_v63  ;;  %v7134_v8 = vpack.c.bf16 %v2211_v7, %v2210_v6  ;;  %v2213_v10 = vld [vmem:[#allocation2 + $0x2b] sm:$0xff]  ;;  %v2214_v13 = vld [vmem:[#allocation2 + $0x33] sm:$0xff]  ;;  %v2215_v14 = vld [vmem:[#allocation2 + $0x3b] sm:$0xff] }
 0x340   : > { %8316 = vst [vmem:[#allocation40_spill] sm:$0xff] %v7118_v2  ;;  %8317 = vst [vmem:[#allocation41_spill] sm:$0xff] %v7126_v5  ;;  %v7142_v11 = vpack.c.bf16 %v2213_v10, %v2212_v9  ;;  %v7150_v15 = vpack.c.bf16 %v2215_v14, %v2214_v13  ;;  %v6025_v16 = vld [vmem:[%s6930_s19 + $0x78] sm:$0xff]   ;;  %v6029_v20 = vld [vmem:[%s6930_s19 + $0x70] sm:$0xff]  }
 0x341   : > { %8318 = vst [vmem:[#allocation42_spill] sm:$0xff] %v7134_v8  ;;  %v6026_v17 = vld [vmem:[%s6930_s19 + $0xf8] sm:$0xff]   ;;  %v6030_v22 = vld [vmem:[%s6930_s19 + $0xf0] sm:$0xff]   ;;  %v6033_v25 = vld [vmem:[%s6930_s19 + $0x68] sm:$0xff]  }
 0x342   : > { %8319 = vst [vmem:[#allocation43_spill] sm:$0xff] %v7142_v11  ;;  %8320 = vst [vmem:[#allocation44_spill] sm:$0xff] %v7150_v15  ;;  %v6027_v18 = vld [vmem:[%s6930_s19 + $0x38] sm:$0xff]   ;;  %v6031_v23 = vld [vmem:[%s6930_s19 + $0x30] sm:$0xff]  }
 0x343   : > { %v6028_v19 = vld [vmem:[%s6930_s19 + $0xb8] sm:$0xff]   ;;  %v6032_v24 = vld [vmem:[%s6930_s19 + $0xb0] sm:$0xff]   ;;  %v6034_v26 = vld [vmem:[%s6930_s19 + $0xe8] sm:$0xff]  }
 0x344   : > { %v6035_v27 = vld [vmem:[%s6930_s19 + $0x28] sm:$0xff]   ;;  %v6037_v29 = vld [vmem:[%s6930_s19 + $0x60] sm:$0xff]   ;;  %v6041_v34 = vld [vmem:[%s6930_s19 + $0x58] sm:$0xff]  }
 0x345   : > { %v6036_v28 = vld [vmem:[%s6930_s19 + $0xa8] sm:$0xff]   ;;  %v6038_v30 = vld [vmem:[%s6930_s19 + $0xe0] sm:$0xff]   ;;  %v6042_v35 = vld [vmem:[%s6930_s19 + $0xd8] sm:$0xff]  }
 0x346   : > { %5290 = vmatmul.mubr.msk.bf16.gmra.mxu0 %vm1525_vm2, %v7040_v37  ;;  %5294 = vmatmul.mubr.msk.bf16.gmra.mxu1 %vm1525_vm2, %v7040_v37  ;;  %v6039_v31 = vld [vmem:[%s6930_s19 + $0x20] sm:$0xff]   ;;  %v6043_v36 = vld [vmem:[%s6930_s19 + $0x18] sm:$0xff]   ;;  %v6045_v39 = vld [vmem:[%s6930_s19 + $0x50] sm:$0xff]  }
 0x347   : > { %1600 = vmatprep.mubr.bf16.mxu0 %v8209_v12  ;;  %1673 = vmatprep.mubr.bf16.mxu1 %v8209_v12  ;;  %v6040_v32 = vld [vmem:[%s6930_s19 + $0xa0] sm:$0xff]   ;;  %v6044_v38 = vld [vmem:[%s6930_s19 + $0x98] sm:$0xff]  }
 0x348   : > { %v6054_v49 = vld [vmem:[%s6930_s19 + $0xc0] sm:$0xff]  }
 0x349   : > { %v6055_v50 = vld [vmem:[%s6930_s19] sm:$0xff]  }
 0x34e   : > { %5291 = vmatmul.mubr.msk.bf16.gmra.mxu0 %vm1525_vm2, %v7048_v40  ;;  %5295 = vmatmul.mubr.msk.bf16.gmra.mxu1 %vm1525_vm2, %v7048_v40 }
 0x34f   : > { %1896 = vmatprep.mubr.bf16.mxu0 %v8209_v12  ;;  %1969 = vmatprep.mubr.bf16.mxu1 %v8209_v12 }
 0x356   : > { %5304 = vmatmul.mubr.msk.bf16.vlgmr.msra.gmra.mxu0 %vm1525_vm2, %v7014_v21  ;;  %5308 = vmatmul.mubr.msk.bf16.vlgmr.msra.gmra.mxu1 %vm1525_vm2, %v7014_v21 }
 0x357   : > { %2075 = vmatpush1.bf16.msra.mxu0 %v6001_v41  ;;  %2148 = vmatpush1.bf16.msra.mxu1 %v6004_v42  ;;  %v6046_v41 = vld [vmem:[%s6930_s19 + $0xd0] sm:$0xff]  }
 0x358   : > { %1906 = vmatprep.mubr.bf16.mxu0 %v8209_v12  ;;  %1979 = vmatprep.mubr.bf16.mxu1 %v8209_v12  ;;  %v6047_v42 = vld [vmem:[%s6930_s19 + $0x10] sm:$0xff]  }
 0x359   : > { %2076 = vmatprep.subr.bf16.mxu0 %v6009_v43  ;;  %2149 = vmatprep.subr.bf16.mxu1 %v6012_v44  ;;  %v6048_v43 = vld [vmem:[%s6930_s19 + $0x90] sm:$0xff]   ;;  %v6049_v44 = vld [vmem:[%s6930_s19 + $0x48] sm:$0xff]  }
 0x35b   : > { %2077 = vmatpush1.bf16.msra.mxu0 %v6007_v45  ;;  %2150 = vmatpush1.bf16.msra.mxu1 %v6010_v46  ;;  %v6050_v45 = vld [vmem:[%s6930_s19 + $0xc8] sm:$0xff]  }
 0x35c   : > { %2292 = vmatprep.subr.bf16.mxu0 %v6015_v47  ;;  %2365 = vmatprep.subr.bf16.mxu1 %v6018_v48  ;;  %v6051_v46 = vld [vmem:[%s6930_s19 + $0x8] sm:$0xff]   ;;  %v6053_v48 = vld [vmem:[%s6930_s19 + $0x40] sm:$0xff]  }
 0x35d   : > { %v6052_v47 = vld [vmem:[%s6930_s19 + $0x88] sm:$0xff]  }
 0x35e   : > { %5305 = vmatmul.mubr.msk.bf16.gmra.mxu0 %vm1525_vm2, %v7031_v33  ;;  %5309 = vmatmul.mubr.msk.bf16.gmra.mxu1 %vm1525_vm2, %v7031_v33 }
 0x35f   : > { %1916 = vmatprep.mubr.bf16.mxu0 %v8209_v12  ;;  %1989 = vmatprep.mubr.bf16.mxu1 %v8209_v12 }
 0x366   : > { %5306 = vmatmul.mubr.msk.bf16.gmra.mxu0 %vm1525_vm2, %v7040_v37  ;;  %5310 = vmatmul.mubr.msk.bf16.gmra.mxu1 %vm1525_vm2, %v7040_v37 }
 0x367   : > { %1926 = vmatprep.mubr.bf16.mxu0 %v8209_v12  ;;  %1999 = vmatprep.mubr.bf16.mxu1 %v8209_v12 }
 0x36e   : > { %5307 = vmatmul.mubr.msk.bf16.gmra.mxu0 %vm1525_vm2, %v7048_v40  ;;  %5311 = vmatmul.mubr.msk.bf16.gmra.mxu1 %vm1525_vm2, %v7048_v40 }
 0x36f   : > { %2094 = vmatprep.mubr.bf16.mxu0 %v8209_v12  ;;  %2167 = vmatprep.mubr.bf16.mxu1 %v8209_v12 }
 0x376   : > { %5320 = vmatmul.mubr.msk.bf16.vlgmr.msra.gmra.mxu0 %vm1525_vm2, %v7090_v53  ;;  %5324 = vmatmul.mubr.msk.bf16.vlgmr.msra.gmra.mxu1 %vm1525_vm2, %v7090_v53 }
 0x377   : > { %2293 = vmatpush1.bf16.msra.mxu0 %v6013_v51  ;;  %2366 = vmatpush1.bf16.msra.mxu1 %v6016_v52  ;;  %v6056_v51 = vld [vmem:[%s6930_s19 + $0x80] sm:$0xff]   ;;  %v6057_v52 = vld [vmem:[%s6928_s9 + $0x78] sm:$0xff]  }
 0x378   : > { %2104 = vmatprep.mubr.bf16.mxu0 %v8209_v12  ;;  %2177 = vmatprep.mubr.bf16.mxu1 %v8209_v12 }
 0x379   : > { %2294 = vmatprep.subr.bf16.mxu0 %v6021_v54  ;;  %2367 = vmatprep.subr.bf16.mxu1 %v6024_v55  ;;  %v6058_v54 = vld [vmem:[%s6928_s9 + $0xf8] sm:$0xff]   ;;  %v1465_v55 = vlaneseq }
 0x37b   : > { %2295 = vmatpush1.bf16.msra.mxu0 %v6019_v58  ;;  %2368 = vmatpush1.bf16.msra.mxu1 %v6022_v59  ;;  %v7190_v56 = vshrl.u32 %v1465_v55, 7  ;;  %v7203_v59 = vld [vmem:[%s932_s12] sm:$0xf] }
 0x37c   : > { %5550 = vmatprep.subr.bf16.mxu0 %v6025_v16  ;;  %5590 = vmatprep.subr.bf16.mxu1 %v6026_v17 }
 0x37d   : > { %v7193_v57 = vsub.s32 0, %v7190_v56  ;;  %v7196_v58 = vsub.s32 2, %v7190_v56 }
 0x37e   : > { %5321 = vmatmul.mubr.msk.bf16.gmra.mxu0 %vm1525_vm2, %v7102_v60  ;;  %5325 = vmatmul.mubr.msk.bf16.gmra.mxu1 %vm1525_vm2, %v7102_v60 }
 0x37f   : > { %2114 = vmatprep.mubr.bf16.mxu0 %v8209_v12  ;;  %2187 = vmatprep.mubr.bf16.mxu1 %v8209_v12  ;;  %8321 = vst [vmem:[#allocation45_spill] sm:$0xff] %v7193_v57  ;;  %8322 = vst [vmem:[#allocation46_spill] sm:$0xff] %v7196_v58  ;;  %v7207_v61 = vrot.slane %v7203_v59, %v7193_v57  ;;  %v7211_v62 = vrot.slane %v7203_v59, %v7196_v58 }
 0x386   : > { %5322 = vmatmul.mubr.msk.bf16.gmra.mxu0 %vm1525_vm2, %v7110_v63  ;;  %5326 = vmatmul.mubr.msk.bf16.gmra.mxu1 %vm1525_vm2, %v7110_v63 }
 0x387   : > { %2124 = vmatprep.mubr.bf16.mxu0 %v8209_v12  ;;  %2197 = vmatprep.mubr.bf16.mxu1 %v8209_v12 }
 0x38e   : > { %5323 = vmatmul.mubr.msk.bf16.gmra.mxu0 %vm1525_vm2, %v7118_v2  ;;  %5327 = vmatmul.mubr.msk.bf16.gmra.mxu1 %vm1525_vm2, %v7118_v2 }
 0x38f   : > { %2312 = vmatprep.mubr.bf16.mxu0 %v8209_v12  ;;  %2385 = vmatprep.mubr.bf16.mxu1 %v8209_v12 }
 0x396   : > { %5336 = vmatmul.mubr.msk.bf16.vlgmr.msra.gmra.mxu0 %vm1525_vm2, %v7126_v5  ;;  %5340 = vmatmul.mubr.msk.bf16.vlgmr.msra.gmra.mxu1 %vm1525_vm2, %v7126_v5 }
 0x397   : > { %2322 = vmatprep.mubr.bf16.mxu0 %v8209_v12  ;;  %2395 = vmatprep.mubr.bf16.mxu1 %v8209_v12 }
 0x398   : > { %5551 = vmatpush3.bf16.msra.mxu0 %v6027_v18  ;;  %5591 = vmatpush3.bf16.msra.mxu1 %v6028_v19 }
 0x399   : > { %5552 = vmatprep.subr.bf16.mxu0 %v6029_v20  ;;  %5592 = vmatprep.subr.bf16.mxu1 %v6030_v22 }
 0x39c   : > { %5553 = vmatpush3.bf16.msra.mxu0 %v6031_v23  ;;  %5593 = vmatpush3.bf16.msra.mxu1 %v6032_v24 }
 0x39d   : > { %5554 = vmatprep.subr.bf16.mxu0 %v6033_v25  ;;  %5594 = vmatprep.subr.bf16.mxu1 %v6034_v26 }
 0x39e   : > { %5337 = vmatmul.mubr.msk.bf16.gmra.mxu0 %vm1525_vm2, %v7134_v8  ;;  %5341 = vmatmul.mubr.msk.bf16.gmra.mxu1 %vm1525_vm2, %v7134_v8 }
 0x39f   : > { %2332 = vmatprep.mubr.bf16.mxu0 %v8209_v12  ;;  %2405 = vmatprep.mubr.bf16.mxu1 %v8209_v12 }
 0x3a0   : > { %5555 = vmatpush3.bf16.msra.mxu0 %v6035_v27  ;;  %5595 = vmatpush3.bf16.msra.mxu1 %v6036_v28 }
 0x3a1   : > { %5556 = vmatprep.subr.bf16.mxu0 %v6037_v29  ;;  %5596 = vmatprep.subr.bf16.mxu1 %v6038_v30 }
 0x3a4   : > { %5557 = vmatpush3.bf16.msra.mxu0 %v6039_v31  ;;  %5597 = vmatpush3.bf16.msra.mxu1 %v6040_v32 }
 0x3a5   : > { %5558 = vmatprep.subr.bf16.mxu0 %v6041_v34  ;;  %5598 = vmatprep.subr.bf16.mxu1 %v6042_v35 }
 0x3a6   : > { %5338 = vmatmul.mubr.msk.bf16.gmra.mxu0 %vm1525_vm2, %v7142_v11  ;;  %5342 = vmatmul.mubr.msk.bf16.gmra.mxu1 %vm1525_vm2, %v7142_v11 }
 0x3a7   : > { %2342 = vmatprep.mubr.bf16.mxu0 %v8209_v12  ;;  %2415 = vmatprep.mubr.bf16.mxu1 %v8209_v12 }
 0x3a8   : > { %5559 = vmatpush3.bf16.msra.mxu0 %v6043_v36  ;;  %5599 = vmatpush3.bf16.msra.mxu1 %v6044_v38 }
 0x3a9   : > { %5560 = vmatprep.subr.bf16.mxu0 %v6045_v39  ;;  %5600 = vmatprep.subr.bf16.mxu1 %v6046_v41 }
 0x3ac   : > { %5561 = vmatpush3.bf16.msra.mxu0 %v6047_v42  ;;  %5601 = vmatpush3.bf16.msra.mxu1 %v6048_v43 }
 0x3ad   : > { %5562 = vmatprep.subr.bf16.mxu0 %v6049_v44  ;;  %5602 = vmatprep.subr.bf16.mxu1 %v6050_v45 }
 0x3ae   : > { %5339 = vmatmul.mubr.msk.bf16.gmra.mxu0 %vm1525_vm2, %v7150_v15  ;;  %5343 = vmatmul.mubr.msk.bf16.gmra.mxu1 %vm1525_vm2, %v7150_v15 }
 0x3b0   : > { %5563 = vmatpush3.bf16.msra.mxu0 %v6051_v46  ;;  %5603 = vmatpush3.bf16.msra.mxu1 %v6052_v47 }
 0x3b1   : > { %5564 = vmatprep.subr.bf16.mxu0 %v6053_v48  ;;  %5604 = vmatprep.subr.bf16.mxu1 %v6054_v49 }
 0x3b4   : > { %5565 = vmatpush3.bf16.msra.mxu0 %v6055_v50  ;;  %5605 = vmatpush3.bf16.msra.mxu1 %v6056_v51 }
 0x3b5   : > { %5630 = vmatprep.subr.bf16.mxu0 %v6057_v52  ;;  %5670 = vmatprep.subr.bf16.mxu1 %v6058_v54 }
 0x3f6   : > { %v1572_v0 = vpop.f32.mrf.mxu0  ;;  %v1645_v1 = vpop.f32.mrf.mxu1 }
 0x3f7   : > { %v1573_v6 = vadd.f32 %v1572_v0, %v7207_v61  ;;  %v1646_v7 = vadd.f32 %v1645_v1, %v7211_v62 }
 0x3f8   : > { %v7213_v3 = vpop.f32.mrf.mxu0  ;;  %v7215_v4 = vpop.f32.mrf.mxu1 }
 0x3f9   : > { %8324 = vst [vmem:[#allocation47_spill] sm:$0xff] %v7213_v3  ;;  %8325 = vst [vmem:[#allocation48_spill] sm:$0xff] %v7215_v4  ;;  %v1684_v18 = vmax.f32 %v1573_v6, 0.0  ;;  %v1686_v19 = vmax.f32 %v1646_v7, 0.0  ;;  %v7342_v3 = vsub.s32 1, %v7190_v56 }
 0x3fa   : > { %v1576_v9 = vpop.f32.mrf.mxu0  ;;  %v1649_v10 = vpop.f32.mrf.mxu1 }
 0x3fb   : > { %v1577_v13 = vadd.f32 %v1576_v9, %v7207_v61  ;;  %v1650_v14 = vadd.f32 %v1649_v10, %v7211_v62  ;;  %8356 = vst [vmem:[#allocation79_spill] sm:$0xff] %v7342_v3 }
 0x3fc   : > { %v7221_v16 = vpop.f32.mrf.mxu0  ;;  %v7223_v17 = vpop.f32.mrf.mxu1 }
 0x3fd   : > { %8326 = vst [vmem:[#allocation49_spill] sm:$0xff] %v7221_v16  ;;  %8327 = vst [vmem:[#allocation50_spill] sm:$0xff] %v7223_v17  ;;  %v1688_v20 = vmax.f32 %v1577_v13, 0.0  ;;  %v1690_v22 = vmax.f32 %v1650_v14, 0.0  ;;  %v7345_v16 = vsub.s32 3, %v7190_v56 }
 0x3fe   : > { %v1582_v23 = vpop.f32.mrf.mxu0  ;;  %v1655_v24 = vpop.f32.mrf.mxu1 }
 0x3ff   : > { %v7225_v25 = vpack.c.bf16 %v1688_v20, %v1684_v18  ;;  %v7227_v26 = vpack.c.bf16 %v1690_v22, %v1686_v19  ;;  %v1583_v29 = vadd.f32 %v1582_v23, %v7207_v61  ;;  %v1656_v30 = vadd.f32 %v1655_v24, %v7211_v62 }
 0x400   : > { %v7229_v27 = vpop.f32.mrf.mxu0  ;;  %v7231_v28 = vpop.f32.mrf.mxu1  ;;  %v7366_v56 = vrot.slane %v7203_v59, %v7345_v16 }
 0x401   : > { %8328 = vst [vmem:[#allocation51_spill] sm:$0xff] %v7225_v25  ;;  %8329 = vst [vmem:[#allocation52_spill] sm:$0xff] %v7227_v26  ;;  %v1692_v39 = vmax.f32 %v1583_v29, 0.0  ;;  %v1694_v41 = vmax.f32 %v1656_v30, 0.0 }
 0x402   : > { %8330 = vst [vmem:[#allocation53_spill] sm:$0xff] %v7229_v27  ;;  %8331 = vst [vmem:[#allocation54_spill] sm:$0xff] %v7231_v28  ;;  %v1586_v31 = vpop.f32.mrf.mxu0  ;;  %v1659_v32 = vpop.f32.mrf.mxu1 }
 0x403   : > { %v1587_v34 = vadd.f32 %v1586_v31, %v7207_v61  ;;  %v1660_v35 = vadd.f32 %v1659_v32, %v7211_v62  ;;  %8363 = vst [vmem:[#allocation85_spill] sm:$0xff] %v7366_v56 }
 0x404   : > { %v7237_v36 = vpop.f32.mrf.mxu0  ;;  %v7239_v38 = vpop.f32.mrf.mxu1 }
 0x405   : > { %8332 = vst [vmem:[#allocation55_spill] sm:$0xff] %v7237_v36  ;;  %8333 = vst [vmem:[#allocation56_spill] sm:$0xff] %v7239_v38  ;;  %v1696_v42 = vmax.f32 %v1587_v34, 0.0  ;;  %v1698_v43 = vmax.f32 %v1660_v35, 0.0 }
 0x406   : > { %v1592_v44 = vpop.f32.mrf.mxu0  ;;  %v1665_v45 = vpop.f32.mrf.mxu1 }
 0x407   : > { %v7241_v46 = vpack.c.bf16 %v1696_v42, %v1692_v39  ;;  %v7243_v47 = vpack.c.bf16 %v1698_v43, %v1694_v41  ;;  %v1593_v50 = vadd.f32 %v1592_v44, %v7207_v61  ;;  %v1666_v51 = vadd.f32 %v1665_v45, %v7211_v62 }
 0x408   : > { %v7245_v48 = vpop.f32.mrf.mxu0  ;;  %v7247_v49 = vpop.f32.mrf.mxu1 }
 0x409   : > { %8334 = vst [vmem:[#allocation57_spill] sm:$0xff] %v7241_v46  ;;  %8335 = vst [vmem:[#allocation58_spill] sm:$0xff] %v7243_v47  ;;  %v1700_v7 = vmax.f32 %v1593_v50, 0.0  ;;  %v1702_v9 = vmax.f32 %v1666_v51, 0.0 }
 0x40a   : > { %8336 = vst [vmem:[#allocation59_spill] sm:$0xff] %v7245_v48  ;;  %8337 = vst [vmem:[#allocation60_spill] sm:$0xff] %v7247_v49  ;;  %v1596_v52 = vpop.f32.mrf.mxu0  ;;  %v1669_v54 = vpop.f32.mrf.mxu1 }
 0x40b   : > { %v1597_v55 = vadd.f32 %v1596_v52, %v7207_v61  ;;  %v1670_v0 = vadd.f32 %v1669_v54, %v7211_v62 }
 0x40c   : > { %v7253_v1 = vpop.f32.mrf.mxu0  ;;  %v7255_v6 = vpop.f32.mrf.mxu1 }
 0x40d   : > { %8338 = vst [vmem:[#allocation61_spill] sm:$0xff] %v7253_v1  ;;  %8339 = vst [vmem:[#allocation62_spill] sm:$0xff] %v7255_v6  ;;  %v1704_v10 = vmax.f32 %v1597_v55, 0.0  ;;  %v1706_v13 = vmax.f32 %v1670_v0, 0.0 }
 0x40e   : > { %v1602_v14 = vpop.f32.mrf.mxu0  ;;  %v1675_v18 = vpop.f32.mrf.mxu1 }
 0x40f   : > { %v7257_v19 = vpack.c.bf16 %v1704_v10, %v1700_v7  ;;  %v7259_v20 = vpack.c.bf16 %v1706_v13, %v1702_v9  ;;  %v1603_v24 = vadd.f32 %v1602_v14, %v7207_v61  ;;  %v1676_v29 = vadd.f32 %v1675_v18, %v7211_v62 }
 0x410   : > { %v7261_v22 = vpop.f32.mrf.mxu0  ;;  %v7263_v23 = vpop.f32.mrf.mxu1 }
 0x411   : > { %8340 = vst [vmem:[#allocation63_spill] sm:$0xff] %v7257_v19  ;;  %8341 = vst [vmem:[#allocation64_spill] sm:$0xff] %v7259_v20  ;;  %v1708_v41 = vmax.f32 %v1603_v24, 0.0  ;;  %v1710_v42 = vmax.f32 %v1676_v29, 0.0 }
 0x412   : > { %8342 = vst [vmem:[#allocation65_spill] sm:$0xff] %v7261_v22  ;;  %8343 = vst [vmem:[#allocation66_spill] sm:$0xff] %v7263_v23  ;;  %v1606_v30 = vpop.f32.mrf.mxu0  ;;  %v1679_v31 = vpop.f32.mrf.mxu1 }
 0x413   : > { %v1607_v32 = vadd.f32 %v1606_v30, %v7207_v61  ;;  %v1680_v34 = vadd.f32 %v1679_v31, %v7211_v62 }
 0x414   : > { %v7269_v35 = vpop.f32.mrf.mxu0  ;;  %v7271_v39 = vpop.f32.mrf.mxu1 }
 0x415   : > { %8344 = vst [vmem:[#allocation67_spill] sm:$0xff] %v7269_v35  ;;  %8345 = vst [vmem:[#allocation68_spill] sm:$0xff] %v7271_v39  ;;  %v1712_v43 = vmax.f32 %v1607_v32, 0.0  ;;  %v1714_v44 = vmax.f32 %v1680_v34, 0.0 }
 0x416   : > { %v7273_v45 = vpop.f32.mrf.mxu0  ;;  %v7275_v50 = vpop.f32.mrf.mxu1 }
 0x417   : > { %v7277_v51 = vpack.c.bf16 %v1712_v43, %v1708_v41  ;;  %v7279_v52 = vpack.c.bf16 %v1714_v44, %v1710_v42 }
 0x418   : > { %v7281_v54 = vpop.f32.mrf.mxu0  ;;  %v7283_v61 = vpop.f32.mrf.mxu1 }
 0x419   : > { %8346 = vst [vmem:[#allocation69_spill] sm:$0xff] %v7277_v51  ;;  %8347 = vst [vmem:[#allocation70_spill] sm:$0xff] %v7279_v52 }
 0x41a   : > { %v7285_v62 = vpop.f32.mrf.mxu0  ;;  %v7287_v55 = vpop.f32.mrf.mxu1 }
 0x41c   : > { %v7289_v0 = vpop.f32.mrf.mxu0  ;;  %v7291_v7 = vpop.f32.mrf.mxu1 }
 0x41e   : > { %v7293_v9 = vpop.f32.mrf.mxu0  ;;  %v7295_v10 = vpop.f32.mrf.mxu1 }
 0x420   : > { %v7297_v13 = vpop.f32.mrf.mxu0  ;;  %v7299_v14 = vpop.f32.mrf.mxu1 }
 0x422   : > { %v7301_v18 = vpop.f32.mrf.mxu0  ;;  %v7303_v24 = vpop.f32.mrf.mxu1 }
 0x424   : > { %v7305_v29 = vpop.f32.mrf.mxu0  ;;  %v7307_v30 = vpop.f32.mrf.mxu1 }
 0x426   : > { %v7309_v31 = vpop.f32.mrf.mxu0  ;;  %v7311_v32 = vpop.f32.mrf.mxu1 }
 0x428   : > { %v7313_v34 = vpop.f32.mrf.mxu0  ;;  %v7315_v41 = vpop.f32.mrf.mxu1 }
 0x42a   : > { %v7317_v42 = vpop.f32.mrf.mxu0  ;;  %v7319_v43 = vpop.f32.mrf.mxu1 }
 0x42c   : > { %v7321_v44 = vpop.f32.mrf.mxu0  ;;  %v7323_v12 = vpop.f32.mrf.mxu1 }
 0x42e   : > { %v7325_v15 = vpop.f32.mrf.mxu0  ;;  %v7327_v11 = vpop.f32.mrf.mxu1 }
 0x42f   : > { %8348 = vst [vmem:[#allocation71_spill] sm:$0xff] %v7325_v15  ;;  %8349 = vst [vmem:[#allocation72_spill] sm:$0xff] %v7327_v11 }
 0x430   : > { %v7329_v8 = vpop.f32.mrf.mxu0  ;;  %v7331_v5 = vpop.f32.mrf.mxu1 }
 0x431   : > { %8350 = vst [vmem:[#allocation73_spill] sm:$0xff] %v7329_v8  ;;  %8351 = vst [vmem:[#allocation74_spill] sm:$0xff] %v7331_v5  ;;  %v7362_v8 = vrot.slane %v7203_v59, %v7342_v3 }
 0x432   : > { %v7333_v40 = vpop.f32.mrf.mxu0  ;;  %v7335_v37 = vpop.f32.mrf.mxu1 }
 0x433   : > { %8352 = vst [vmem:[#allocation75_spill] sm:$0xff] %v7333_v40  ;;  %8353 = vst [vmem:[#allocation76_spill] sm:$0xff] %v7335_v37  ;;  %v2458_v37 = vld [vmem:[%s938_s15] sm:$0xf] }
 0x434   : > { %v7337_v33 = vpop.f32.mrf.mxu0  ;;  %v7339_v21 = vpop.f32.mrf.mxu1  ;;  %8362 = vst [vmem:[#allocation84_spill] sm:$0xff] %v7362_v8  ;;  %v7373_v11 = vrot.slane %v2458_v37, %v7193_v57  ;;  %v7376_v15 = vrot.slane %v2458_v37, %v7196_v58 }
 0x435   : > { %8354 = vst [vmem:[#allocation77_spill] sm:$0xff] %v7337_v33  ;;  %8355 = vst [vmem:[#allocation78_spill] sm:$0xff] %v7339_v21 }
 0x436   : > { %v2096_v2 = vpop.f32.mrf.mxu0  ;;  %v2169_v63 = vpop.f32.mrf.mxu1  ;;  %8366 = vst [vmem:[#allocation88_spill] sm:$0xff] %v7376_v15 }
 0x437   : > { %v2097_v8 = vadd.f32 %v2096_v2, %v7273_v45  ;;  %v2170_v59 = vadd.f32 %v2169_v63, %v7275_v50 }
 0x438   : > { %v2098_v60 = vpop.f32.mrf.mxu0  ;;  %v2171_v53 = vpop.f32.mrf.mxu1 }
 0x439   : > { %v2099_v56 = vadd.f32 %v2098_v60, %v7281_v54 }
 0x43a   : > { %v2100_v52 = vpop.f32.mrf.mxu0  ;;  %v2173_v51 = vpop.f32.mrf.mxu1 }
 0x43b   : > { %v2101_v57 = vadd.f32 %v2100_v52, %v7285_v62 }
 0x43c   : > { %v2102_v20 = vpop.f32.mrf.mxu0  ;;  %v2175_v19 = vpop.f32.mrf.mxu1 }
 0x43d   : > { %v2103_v58 = vadd.f32 %v2102_v20, %v7289_v0 }
 0x43e   : > { %v2106_v23 = vpop.f32.mrf.mxu0  ;;  %v2179_v47 = vpop.f32.mrf.mxu1 }
 0x43f   : > { %v2180_v2 = vadd.f32 %v2179_v47, %v7295_v10  ;;  %v8370_v10 = vld [vmem:[#allocation71_spill] sm:$0xff] }
 0x440   : > { %v2108_v39 = vpop.f32.mrf.mxu0  ;;  %v2181_v22 = vpop.f32.mrf.mxu1 }
 0x441   : > { %v2109_v63 = vadd.f32 %v2108_v39, %v7297_v13  ;;  %v2182_v60 = vadd.f32 %v2181_v22, %v7299_v14  ;;  %v8371_v13 = vld [vmem:[#allocation72_spill] sm:$0xff] }
 0x442   : > { %v2110_v46 = vpop.f32.mrf.mxu0  ;;  %v2183_v35 = vpop.f32.mrf.mxu1 }
 0x443   : > { %v2184_v50 = vadd.f32 %v2183_v35, %v7303_v24 }
 0x444   : > { %v2112_v49 = vpop.f32.mrf.mxu0  ;;  %v2185_v26 = vpop.f32.mrf.mxu1 }
 0x445   : > { %v7402_v54 = vadd.f32 %v2185_v26, %v7307_v30 }
 0x446   : > { %v2116_v6 = vpop.f32.mrf.mxu0  ;;  %v2189_v48 = vpop.f32.mrf.mxu1 }
 0x447   : > { %v7405_v39 = vadd.f32 %v2116_v6, %v7309_v31 }
 0x448   : > { %v2118_v25 = vpop.f32.mrf.mxu0  ;;  %v2191_v1 = vpop.f32.mrf.mxu1 }
 0x44a   : > { %v2120_v28 = vpop.f32.mrf.mxu0  ;;  %v2193_v38 = vpop.f32.mrf.mxu1 }
 0x44b   : > { %v7417_v22 = vadd.f32 %v2120_v28, %v7317_v42  ;;  %v7420_v26 = vadd.f32 %v2193_v38, %v7319_v43 }
 0x44c   : > { %v2122_v27 = vpop.f32.mrf.mxu0  ;;  %v2195_v36 = vpop.f32.mrf.mxu1 }
 0x44d   : > { %v7427_v6 = vadd.f32 %v2195_v36, %v7323_v12 }
 0x44e   : > { %v2126_v4 = vpop.f32.mrf.mxu0  ;;  %v2199_v17 = vpop.f32.mrf.mxu1 }
 0x44f   : > { %v7436_v14 = vadd.f32 %v2199_v17, %v8371_v13 }
 0x450   : > { %v7347_v21 = vpop.f32.mrf.mxu0  ;;  %v7349_v33 = vpop.f32.mrf.mxu1 }
 0x451   : > { %8357 = vst [vmem:[#allocation80_spill] sm:$0xff] %v7347_v21  ;;  %8358 = vst [vmem:[#allocation81_spill] sm:$0xff] %v7349_v33 }
 0x452   : > { %v7356_v40 = vpop.f32.mrf.mxu0  ;;  %v7358_v5 = vpop.f32.mrf.mxu1 }
 0x453   : > { %8360 = vst [vmem:[#allocation82_spill] sm:$0xff] %v7356_v40  ;;  %8361 = vst [vmem:[#allocation83_spill] sm:$0xff] %v7358_v5  ;;  %v7379_v5 = vrot.slane %v2458_v37, %v7342_v3  ;;  %v7382_v40 = vrot.slane %v2458_v37, %v7345_v16  ;;  %v2176_v3 = vadd.f32 %v2175_v19, %v7291_v7 }
 0x454   : > { %v7368_v21 = vpop.f32.mrf.mxu0  ;;  %v7370_v33 = vpop.f32.mrf.mxu1  ;;  %v2107_v37 = vadd.f32 %v2106_v23, %v7293_v9  ;;  %v7399_v19 = vadd.f32 %v2112_v49, %v7305_v29 }
 0x455   : > { %8364 = vst [vmem:[#allocation86_spill] sm:$0xff] %v7368_v21  ;;  %8365 = vst [vmem:[#allocation87_spill] sm:$0xff] %v7370_v33  ;;  %v2172_v33 = vadd.f32 %v2171_v53, %v7283_v61  ;;  %v2174_v21 = vadd.f32 %v2173_v51, %v7287_v55  ;;  %v2111_v53 = vadd.f32 %v2110_v46, %v7301_v18 }
 0x456   : > { %8367 = vst [vmem:[#allocation89_spill] sm:$0xff] %v7379_v5  ;;  %v2314_v5 = vpop.f32.mrf.mxu0  ;;  %v2387_v15 = vpop.f32.mrf.mxu1 }
 0x457   : > { %v2426_v45 = vadd.f32 %v2314_v5, %v2097_v8  ;;  %v2428_v51 = vadd.f32 %v2387_v15, %v2170_v59  ;;  %v7408_v5 = vadd.f32 %v2189_v48, %v7311_v32  ;;  %v7411_v8 = vadd.f32 %v2118_v25, %v7313_v34  ;;  %v8368_v25 = vld [vmem:[#allocation88_spill] sm:$0xff] }
 0x458   : > { %v2316_v52 = vpop.f32.mrf.mxu0  ;;  %v2389_v20 = vpop.f32.mrf.mxu1  ;;  %v7414_v15 = vadd.f32 %v2191_v1, %v7315_v41 }
 0x459   : > { %v2427_v23 = vadd.f32 %v2316_v52, %v2099_v56  ;;  %v2429_v47 = vadd.f32 %v2389_v20, %v2172_v33  ;;  %v7423_v33 = vadd.f32 %v2122_v27, %v7321_v44  ;;  %v2480_v48 = vadd.f32 %v7373_v11, %v2426_v45  ;;  %v8372_v20 = vld [vmem:[#allocation73_spill] sm:$0xff] }
 0x45a   : > { %v2318_v46 = vpop.f32.mrf.mxu0  ;;  %v2391_v49 = vpop.f32.mrf.mxu1  ;;  %v2482_v35 = vadd.f32 %v8368_v25, %v2428_v51  ;;  %v7433_v27 = vadd.f32 %v2126_v4, %v8370_v10  ;;  %v8375_v10 = vld [vmem:[#allocation81_spill] sm:$0xff] }
 0x45b   : > { %v2430_v1 = vadd.f32 %v2318_v46, %v2101_v57  ;;  %v2432_v61 = vadd.f32 %v2391_v49, %v2174_v21  ;;  %v2483_v7 = vadd.f32 %v7382_v40, %v2429_v47  ;;  %v2512_v18 = vmax.f32 %v2480_v48, 0.0 }
 0x45c   : > { %v2320_v62 = vpop.f32.mrf.mxu0  ;;  %v2393_v55 = vpop.f32.mrf.mxu1 }
 0x45d   : > { %v8369_v0 = vld [vmem:[#allocation89_spill] sm:$0xff]  ;;  %v2431_v38 = vadd.f32 %v2320_v62, %v2103_v58  ;;  %v2433_v9 = vadd.f32 %v2393_v55, %v2176_v3  ;;  %v2484_v12 = vadd.f32 %v7373_v11, %v2430_v1  ;;  %v2486_v36 = vadd.f32 %v8368_v25, %v2432_v61  ;;  %v6059_v61 = vld [vmem:[%s6928_s9 + $0x38] sm:$0xff]  }
 0x45e   : > { %v2481_v28 = vadd.f32 %v8369_v0, %v2427_v23  ;;  %v2324_v57 = vpop.f32.mrf.mxu0  ;;  %v2397_v21 = vpop.f32.mrf.mxu1  ;;  %v2514_v58 = vmax.f32 %v2482_v35, 0.0  ;;  %v2515_v41 = vmax.f32 %v2483_v7, 0.0  ;;  %v6060_v62 = vld [vmem:[%s6928_s9 + $0xb8] sm:$0xff]  }
 0x45f   : > { %v2485_v24 = vadd.f32 %v8369_v0, %v2431_v38  ;;  %v2487_v29 = vadd.f32 %v7382_v40, %v2433_v9  ;;  %v2434_v30 = vadd.f32 %v2324_v57, %v2107_v37  ;;  %v2516_v3 = vmax.f32 %v2484_v12, 0.0  ;;  %v8373_v37 = vld [vmem:[#allocation80_spill] sm:$0xff]  ;;  %v8374_v9 = vld [vmem:[#allocation74_spill] sm:$0xff]  ;;  %v8376_v12 = vld [vmem:[#allocation75_spill] sm:$0xff] }
 0x460   : > { %v2518_v31 = vmax.f32 %v2486_v36, 0.0  ;;  %v2436_v4 = vadd.f32 %v2397_v21, %v2180_v2  ;;  %v2326_v32 = vpop.f32.mrf.mxu0  ;;  %v2399_v34 = vpop.f32.mrf.mxu1  ;;  %v2513_v17 = vmax.f32 %v2481_v28, 0.0  ;;  %v7444_v23 = vadd.f32 %v8373_v37, %v8372_v20  ;;  %v8377_v36 = vld [vmem:[#allocation82_spill] sm:$0xff] }
 0x461   : > { %v2517_v42 = vmax.f32 %v2485_v24, 0.0  ;;  %v2519_v43 = vmax.f32 %v2487_v29, 0.0  ;;  %v2544_v44 = vpack.c.bf16 %v2516_v3, %v2512_v18  ;;  %v2435_v59 = vadd.f32 %v2326_v32, %v2109_v63 }
 0x462   : > { %v2546_v56 = vpack.c.bf16 %v2518_v31, %v2514_v58  ;;  %v2437_v45 = vadd.f32 %v2399_v34, %v2182_v60  ;;  %v2328_v51 = vpop.f32.mrf.mxu0  ;;  %v2401_v52 = vpop.f32.mrf.mxu1  ;;  %v2488_v2 = vadd.f32 %v7373_v11, %v2434_v30  ;;  %v2490_v49 = vadd.f32 %v8368_v25, %v2436_v4 }
 0x463   : > { %v2438_v47 = vadd.f32 %v2328_v51, %v2111_v53  ;;  %v2440_v46 = vadd.f32 %v2401_v52, %v2184_v50  ;;  %v2489_v48 = vadd.f32 %v8369_v0, %v2435_v59  ;;  %v2545_v63 = vpack.c.bf16 %v2517_v42, %v2513_v17  ;;  %v6061_v53 = vld [vmem:[%s6928_s9 + $0x70] sm:$0xff]  }
 0x464   : > { %v2330_v35 = vpop.f32.mrf.mxu0  ;;  %v2403_v1 = vpop.f32.mrf.mxu1  ;;  %v2547_v60 = vpack.c.bf16 %v2519_v43, %v2515_v41  ;;  %v6062_v50 = vld [vmem:[%s6928_s9 + $0xf0] sm:$0xff]   ;;  %v7459_v13 = vadd.f32 %v8375_v10, %v8374_v9  ;;  %v7463_v57 = vadd.f32 %v8377_v36, %v8376_v12  ;;  %v2491_v21 = vadd.f32 %v7382_v40, %v2437_v45  ;;  %v6066_v45 = vld [vmem:[%s6928_s9 + $0xe8] sm:$0xff]   ;;  %v6070_v10 = vld [vmem:[%s6928_s9 + $0xe0] sm:$0xff]  }
 0x465   : > { %v2492_v55 = vadd.f32 %v7373_v11, %v2438_v47  ;;  %v2494_v28 = vadd.f32 %v8368_v25, %v2440_v46  ;;  %v2439_v7 = vadd.f32 %v2330_v35, %v7399_v19  ;;  %v2441_v38 = vadd.f32 %v2403_v1, %v7402_v54  ;;  %2848 = vmatprep.mubr.bf16.mxu0 %v2545_v63  ;;  %v6063_v17 = vld [vmem:[%s6928_s9 + $0x30] sm:$0xff]  }
 0x466   : > { %2913 = vmatprep.mubr.bf16.mxu1 %v2547_v60  ;;  %v2334_v18 = vpop.f32.mrf.mxu0  ;;  %v2407_v24 = vpop.f32.mrf.mxu1  ;;  %2849 = vmatmul.mubr.bf16.vlgmr.msra.gmra.mxu0 %v2544_v44  ;;  %v2520_v58 = vmax.f32 %v2488_v2, 0.0  ;;  %v2522_v3 = vmax.f32 %v2490_v49, 0.0  ;;  %v6064_v41 = vld [vmem:[%s6928_s9 + $0xb0] sm:$0xff]   ;;  %v2521_v42 = vmax.f32 %v2489_v48, 0.0  ;;  %v2523_v51 = vmax.f32 %v2491_v21, 0.0  ;;  %v8378_v2 = vld [vmem:[#allocation76_spill] sm:$0xff] }
 0x467   : > { %v2524_v19 = vmax.f32 %v2492_v55, 0.0  ;;  %v2526_v54 = vmax.f32 %v2494_v28, 0.0  ;;  %v2493_v29 = vadd.f32 %v8369_v0, %v2439_v7  ;;  %v2495_v30 = vadd.f32 %v7382_v40, %v2441_v38  ;;  %2914 = vmatmul.mubr.bf16.vlgmr.msra.gmra.mxu1 %v2546_v56  ;;  %5631 = vmatpush3.bf16.msra.mxu0 %v6059_v61  ;;  %v6065_v56 = vld [vmem:[%s6928_s9 + $0x68] sm:$0xff]   ;;  %v8379_v47 = vld [vmem:[#allocation83_spill] sm:$0xff] }
 0x468   : > { %v2442_v31 = vadd.f32 %v2334_v18, %v7405_v39  ;;  %v2444_v4 = vadd.f32 %v2407_v24, %v7408_v5  ;;  %5671 = vmatpush3.bf16.msra.mxu1 %v6060_v62  ;;  %v2336_v32 = vpop.f32.mrf.mxu0  ;;  %v2409_v34 = vpop.f32.mrf.mxu1  ;;  %5632 = vmatprep.subr.bf16.mxu0 %v6061_v53  ;;  %v7478_v46 = vadd.f32 %v8379_v47, %v8378_v2  ;;  %v6067_v61 = vld [vmem:[%s6928_s9 + $0x28] sm:$0xff]  }
 0x469   : > { %v2525_v43 = vmax.f32 %v2493_v29, 0.0  ;;  %v2527_v59 = vmax.f32 %v2495_v30, 0.0  ;;  %v2443_v44 = vadd.f32 %v2336_v32, %v7411_v8  ;;  %5672 = vmatprep.subr.bf16.mxu1 %v6062_v50  ;;  %v2445_v39 = vadd.f32 %v2409_v34, %v7414_v15  ;;  %v6068_v62 = vld [vmem:[%s6928_s9 + $0xa8] sm:$0xff]   ;;  %v6071_v30 = vld [vmem:[%s6928_s9 + $0x20] sm:$0xff]   ;;  %v6073_v34 = vld [vmem:[%s6928_s9 + $0x58] sm:$0xff]  }
 0x46a   : > { %v2338_v5 = vpop.f32.mrf.mxu0  ;;  %v2411_v52 = vpop.f32.mrf.mxu1  ;;  %v2548_v20 = vpack.c.bf16 %v2524_v19, %v2520_v58  ;;  %v2550_v37 = vpack.c.bf16 %v2526_v54, %v2522_v3  ;;  %v2496_v49 = vadd.f32 %v7373_v11, %v2442_v31  ;;  %v2498_v35 = vadd.f32 %v8368_v25, %v2444_v4  ;;  %v6072_v58 = vld [vmem:[%s6928_s9 + $0xa0] sm:$0xff]  }
 0x46b   : > { %v2446_v8 = vadd.f32 %v2338_v5, %v7417_v22  ;;  %v2448_v48 = vadd.f32 %v2411_v52, %v7420_v26  ;;  %5633 = vmatpush3.bf16.msra.mxu0 %v6063_v17  ;;  %v2549_v63 = vpack.c.bf16 %v2525_v43, %v2521_v42  ;;  %v2551_v60 = vpack.c.bf16 %v2527_v59, %v2523_v51  ;;  %v6069_v26 = vld [vmem:[%s6928_s9 + $0x60] sm:$0xff]   ;;  %v6074_v17 = vld [vmem:[%s6928_s9 + $0xd8] sm:$0xff]   ;;  %v8383_v51 = vld [vmem:[#allocation87_spill] sm:$0xff] }
 0x46c   : > { %5673 = vmatpush3.bf16.msra.mxu1 %v6064_v41  ;;  %v2340_v15 = vpop.f32.mrf.mxu0  ;;  %v2413_v1 = vpop.f32.mrf.mxu1  ;;  %v2497_v55 = vadd.f32 %v8369_v0, %v2443_v44  ;;  %5634 = vmatprep.subr.bf16.mxu0 %v6065_v56  ;;  %v2499_v7 = vadd.f32 %v7382_v40, %v2445_v39  ;;  %v2528_v24 = vmax.f32 %v2496_v49, 0.0  ;;  %v8380_v3 = vld [vmem:[#allocation77_spill] sm:$0xff] }
 0x46d   : > { %v2500_v28 = vadd.f32 %v7373_v11, %v2446_v8  ;;  %v2502_v22 = vadd.f32 %v8368_v25, %v2448_v48  ;;  %5674 = vmatprep.subr.bf16.mxu1 %v6066_v45  ;;  %v2447_v38 = vadd.f32 %v2340_v15, %v7423_v33  ;;  %v2449_v53 = vadd.f32 %v2413_v1, %v7427_v6  ;;  %v8382_v45 = vld [vmem:[#allocation78_spill] sm:$0xff]  ;;  %v6075_v8 = vld [vmem:[%s6928_s9 + $0x18] sm:$0xff]   ;;  %v6077_v1 = vld [vmem:[%s6928_s9 + $0x50] sm:$0xff]  }
 0x46e   : > { %2856 = vmatprep.mubr.bf16.mxu0 %v2549_v63  ;;  %2921 = vmatprep.mubr.bf16.mxu1 %v2551_v60  ;;  %v2344_v50 = vpop.f32.mrf.mxu0  ;;  %v2417_v9 = vpop.f32.mrf.mxu1  ;;  %v2530_v33 = vmax.f32 %v2498_v35, 0.0  ;;  %v2206_v39 = vadd.f32 %v8383_v51, %v8382_v45  ;;  %v2531_v52 = vmax.f32 %v2499_v7, 0.0  ;;  %v8384_v63 = vld [vmem:[#allocation84_spill] sm:$0xff]  ;;  %v8385_v60 = vld [vmem:[#allocation49_spill] sm:$0xff]  ;;  %v8388_v7 = vld [vmem:[#allocation50_spill] sm:$0xff] }
 0x46f   : > { %v2532_v12 = vmax.f32 %v2500_v28, 0.0  ;;  %v2534_v36 = vmax.f32 %v2502_v22, 0.0  ;;  %v2450_v21 = vadd.f32 %v2344_v50, %v7433_v27  ;;  %v2452_v18 = vadd.f32 %v2417_v9, %v7436_v14  ;;  %2857 = vmatmul.mubr.bf16.gmra.mxu0 %v2548_v20  ;;  %2922 = vmatmul.mubr.bf16.gmra.mxu1 %v2550_v37  ;;  %v8381_v27 = vld [vmem:[#allocation86_spill] sm:$0xff]  ;;  %v8386_v28 = vld [vmem:[#allocation47_spill] sm:$0xff]  ;;  %v8392_v45 = vld [vmem:[#allocation56_spill] sm:$0xff] }
 0x470   : > { %v2501_v6 = vadd.f32 %v8369_v0, %v2447_v38  ;;  %v2503_v19 = vadd.f32 %v7382_v40, %v2449_v53  ;;  %5635 = vmatpush3.bf16.msra.mxu0 %v6067_v61  ;;  %5675 = vmatpush3.bf16.msra.mxu1 %v6068_v62  ;;  %v2346_v54 = vpop.f32.mrf.mxu0  ;;  %v2419_v29 = vpop.f32.mrf.mxu1  ;;  %v2133_v31 = vadd.f32 %v8381_v27, %v8380_v3  ;;  %v2529_v14 = vmax.f32 %v2497_v55, 0.0  ;;  %v6076_v55 = vld [vmem:[%s6928_s9 + $0x98] sm:$0xff]   ;;  %v6078_v9 = vld [vmem:[%s6928_s9 + $0xd0] sm:$0xff]   ;;  %v6082_v27 = vld [vmem:[%s6928_s9 + $0xc8] sm:$0xff]  }
 0x471   : > { %v2451_v4 = vadd.f32 %v2346_v54, %v7444_v23  ;;  %v2453_v32 = vadd.f32 %v2419_v29, %v7459_v13  ;;  %5636 = vmatprep.subr.bf16.mxu0 %v6069_v26  ;;  %5676 = vmatprep.subr.bf16.mxu1 %v6070_v10  ;;  %v2552_v44 = vpack.c.bf16 %v2532_v12, %v2528_v24  ;;  %v8387_v26 = vld [vmem:[#allocation85_spill] sm:$0xff] }
 0x472   : > { %v2533_v41 = vmax.f32 %v2501_v6, 0.0  ;;  %v2535_v42 = vmax.f32 %v2503_v19, 0.0  ;;  %v2348_v43 = vpop.f32.mrf.mxu0  ;;  %v2421_v59 = vpop.f32.mrf.mxu1  ;;  %v2554_v56 = vpack.c.bf16 %v2534_v36, %v2530_v33  ;;  %v2504_v5 = vadd.f32 %v7373_v11, %v2450_v21  ;;  %v6079_v36 = vld [vmem:[%s6928_s9 + $0x10] sm:$0xff]  }
 0x473   : > { %v2506_v23 = vadd.f32 %v8368_v25, %v2452_v18  ;;  %v2505_v13 = vadd.f32 %v8369_v0, %v2451_v4  ;;  %v2454_v20 = vadd.f32 %v2348_v43, %v7463_v57  ;;  %v2456_v37 = vadd.f32 %v2421_v59, %v7478_v46  ;;  %v6080_v19 = vld [vmem:[%s6928_s9 + $0x90] sm:$0xff]   ;;  %v6083_v4 = vld [vmem:[%s6928_s9 + $0x8] sm:$0xff]   ;;  %v6086_v59 = vld [vmem:[%s6928_s9 + $0xc0] sm:$0xff]  }
 0x474   : > { %5637 = vmatpush3.bf16.msra.mxu0 %v6071_v30  ;;  %5677 = vmatpush3.bf16.msra.mxu1 %v6072_v58  ;;  %v2350_v2 = vpop.f32.mrf.mxu0  ;;  %v2423_v47 = vpop.f32.mrf.mxu1  ;;  %v2553_v49 = vpack.c.bf16 %v2533_v41, %v2529_v14  ;;  %v2507_v48 = vadd.f32 %v7382_v40, %v2453_v32  ;;  %v1579_v57 = vadd.f32 %v8385_v60, %v8384_v63  ;;  %v2536_v10 = vmax.f32 %v2504_v5, 0.0  ;;  %v6081_v30 = vld [vmem:[%s6928_s9 + $0x48] sm:$0xff]   ;;  %v6085_v32 = vld [vmem:[%s6928_s9 + $0x40] sm:$0xff]  }
 0x475   : > { %v2455_v35 = vadd.f32 %v2350_v2, %v2133_v31  ;;  %v2457_v15 = vadd.f32 %v2423_v47, %v2206_v39  ;;  %5638 = vmatprep.subr.bf16.mxu0 %v6073_v34  ;;  %5678 = vmatprep.subr.bf16.mxu1 %v6074_v17  ;;  %v2508_v46 = vadd.f32 %v7373_v11, %v2454_v20  ;;  %v2538_v11 = vmax.f32 %v2506_v23, 0.0  ;;  %v8390_v17 = vld [vmem:[#allocation55_spill] sm:$0xff]  ;;  %v6084_v43 = vld [vmem:[%s6928_s9 + $0x88] sm:$0xff]   ;;  %v6087_v5 = vld [vmem:[%s6928_s9] sm:$0xff]  }
 0x476   : > { %v2510_v61 = vadd.f32 %v8368_v25, %v2456_v37  ;;  %2864 = vmatprep.mubr.bf16.mxu0 %v2553_v49  ;;  %v2555_v62 = vpack.c.bf16 %v2535_v42, %v2531_v52  ;;  %v1575_v22 = vadd.f32 %v8386_v28, %v8384_v63  ;;  %v1652_v38 = vadd.f32 %v8388_v7, %v8387_v26  ;;  %v6091_v23 = vld [vmem:[%s6924_s17 + $0x64] ss:$16 sps:$4 sm:$0xff]   ;;  %v6088_v37 = vld [vmem:[%s6928_s9 + $0x80] sm:$0xff]  }
 0x477   : > { %v2509_v53 = vadd.f32 %v8369_v0, %v2455_v35  ;;  %v2511_v50 = vadd.f32 %v7382_v40, %v2457_v15  ;;  %2865 = vmatmul.mubr.bf16.gmra.mxu0 %v2552_v44  ;;  %v2540_v25 = vmax.f32 %v2508_v46, 0.0  ;;  %v2537_v21 = vmax.f32 %v2505_v13, 0.0  ;;  %v8389_v40 = vld [vmem:[#allocation48_spill] sm:$0xff]  ;;  %v8391_v44 = vld [vmem:[#allocation53_spill] sm:$0xff]  ;;  %v8393_v13 = vld [vmem:[#allocation54_spill] sm:$0xff] }
 0x478   : > { %v2542_v12 = vmax.f32 %v2510_v61, 0.0  ;;  %2929 = vmatprep.mubr.bf16.mxu1 %v2555_v62  ;;  %5639 = vmatpush3.bf16.msra.mxu0 %v6075_v8  ;;  %v2539_v18 = vmax.f32 %v2507_v48, 0.0  ;;  %v1648_v0 = vadd.f32 %v8389_v40, %v8387_v26  ;;  %v1689_v6 = vmax.f32 %v1579_v57, 0.0  ;;  %v6094_v2 = vld [vmem:[%s6924_s17 + $0x6c] ss:$16 sps:$4 sm:$0xff]   ;;  %v8397_v28 = vld [vmem:[#allocation62_spill] sm:$0xff] }
 0x479   : > { %v2541_v24 = vmax.f32 %v2509_v53, 0.0  ;;  %v2543_v33 = vmax.f32 %v2511_v50, 0.0  ;;  %2930 = vmatmul.mubr.bf16.gmra.mxu1 %v2554_v56  ;;  %5640 = vmatprep.subr.bf16.mxu0 %v6077_v1  ;;  %v2556_v54 = vpack.c.bf16 %v2540_v25, %v2536_v10  ;;  %v1685_v31 = vmax.f32 %v1575_v22, 0.0  ;;  %v6089_v8 = vld [vmem:[%s6924_s17 + $0x60] ss:$16 sps:$4 sm:$0xff]   ;;  %v8394_v15 = vld [vmem:[#allocation61_spill] sm:$0xff] }
 0x47a   : > { %5679 = vmatpush3.bf16.msra.mxu1 %v6076_v55  ;;  %v2558_v29 = vpack.c.bf16 %v2542_v12, %v2538_v11  ;;  %v1691_v14 = vmax.f32 %v1652_v38, 0.0  ;;  %v1687_v34 = vmax.f32 %v1648_v0, 0.0  ;;  %v1589_v41 = vadd.f32 %v8390_v17, %v8384_v63  ;;  %v6097_v48 = vld [vmem:[%s6924_s17 + $0x44] ss:$16 sps:$4 sm:$0xff]   ;;  %v6092_v60 = vld [vmem:[%s6924_s17 + $0x68] ss:$16 sps:$4 sm:$0xff]  }
 0x47b   : > { %5680 = vmatprep.subr.bf16.mxu1 %v6078_v9  ;;  %v2557_v58 = vpack.c.bf16 %v2541_v24, %v2537_v21  ;;  %v2559_v3 = vpack.c.bf16 %v2543_v33, %v2539_v18  ;;  %v1717_v42 = vpack.c.bf16 %v1689_v6, %v1685_v31  ;;  %v1585_v56 = vadd.f32 %v8391_v44, %v8384_v63  ;;  %v8395_v46 = vld [vmem:[#allocation51_spill] sm:$0xff]  ;;  %v6095_v38 = vld [vmem:[%s6924_s17 + $0x40] ss:$16 sps:$4 sm:$0xff]   ;;  %v6103_v50 = vld [vmem:[%s6924_s17 + $0x24] ss:$16 sps:$4 sm:$0xff]  }
 0x47c   : > { %5641 = vmatpush3.bf16.msra.mxu0 %v6079_v36  ;;  %v1662_v51 = vadd.f32 %v8392_v45, %v8387_v26  ;;  %v1719_v39 = vpack.c.bf16 %v1691_v14, %v1687_v34  ;;  %v1658_v52 = vadd.f32 %v8393_v13, %v8387_v26  ;;  %v1697_v20 = vmax.f32 %v1589_v41, 0.0  ;;  %v6100_v61 = vld [vmem:[%s6924_s17 + $0x4c] ss:$16 sps:$4 sm:$0xff]   ;;  %v8398_v53 = vld [vmem:[#allocation52_spill] sm:$0xff]  ;;  %v6098_v25 = vld [vmem:[%s6924_s17 + $0x48] ss:$16 sps:$4 sm:$0xff]  }
 0x47d   : > { %2872 = vmatprep.mubr.bf16.mxu0 %v2557_v58  ;;  %2937 = vmatprep.mubr.bf16.mxu1 %v2559_v3  ;;  %v1693_v47 = vmax.f32 %v1585_v56, 0.0  ;;  %v1599_v1 = vadd.f32 %v8394_v15, %v8384_v63  ;;  %v8396_v62 = vld [vmem:[#allocation59_spill] sm:$0xff]  ;;  %v1672_v22 = vadd.f32 %v8397_v28, %v8387_v26  ;;  %v8399_v9 = vld [vmem:[#allocation60_spill] sm:$0xff]  ;;  %v8401_v0 = vld [vmem:[#allocation57_spill] sm:$0xff] }
 0x47e   : > { %5681 = vmatpush3.bf16.msra.mxu1 %v6080_v19  ;;  %5642 = vmatprep.subr.bf16.mxu0 %v6081_v30  ;;  %v1699_v49 = vmax.f32 %v1662_v51, 0.0  ;;  %v1695_v35 = vmax.f32 %v1658_v52, 0.0  ;;  %v1595_v55 = vadd.f32 %v8396_v62, %v8384_v63  ;;  %v1668_v10 = vadd.f32 %v8399_v9, %v8387_v26  ;;  %v6106_v12 = vld [vmem:[%s6924_s17 + $0x2c] ss:$16 sps:$4 sm:$0xff]   ;;  %v8404_v58 = vld [vmem:[#allocation58_spill] sm:$0xff]  ;;  %v8407_v41 = vld [vmem:[#allocation64_spill] sm:$0xff] }
 0x47f   : > { %2873 = vmatmul.mubr.bf16.gmra.mxu0 %v2556_v54  ;;  %5682 = vmatprep.subr.bf16.mxu1 %v6082_v27  ;;  %v1721_v57 = vpack.c.bf16 %v1697_v20, %v1693_v47  ;;  %v1705_v11 = vmax.f32 %v1599_v1, 0.0  ;;  %v1707_v21 = vmax.f32 %v1672_v22, 0.0  ;;  %v8400_v24 = vld [vmem:[#allocation67_spill] sm:$0xff]  ;;  %v8402_v6 = vld [vmem:[#allocation65_spill] sm:$0xff]  ;;  %v8403_v54 = vld [vmem:[#allocation68_spill] sm:$0xff] }
 0x480   : > { %5643 = vmatpush3.bf16.msra.mxu0 %v6083_v4  ;;  %3170 = vmatprep.mubr.bf16.mxu0 %v1717_v42  ;;  %v1723_v7 = vpack.c.bf16 %v1699_v49, %v1695_v35  ;;  %v1701_v36 = vmax.f32 %v1595_v55, 0.0  ;;  %v1703_v18 = vmax.f32 %v1668_v10, 0.0  ;;  %v1609_v33 = vadd.f32 %v8400_v24, %v8384_v63  ;;  %v8405_v3 = vld [vmem:[#allocation66_spill] sm:$0xff]  ;;  %v8406_v34 = vld [vmem:[#allocation63_spill] sm:$0xff]  ;;  %v8411_v45 = vld [vmem:[#allocation37_spill] sm:$0xff] }
 0x481   : > { %2938 = vmatmul.mubr.bf16.gmra.mxu1 %v2558_v29  ;;  %5644 = vmatprep.subr.bf16.mxu0 %v6085_v32  ;;  %v1605_v19 = vadd.f32 %v8402_v6, %v8384_v63  ;;  %v1682_v29 = vadd.f32 %v8403_v54, %v8387_v26  ;;  %v1678_v27 = vadd.f32 %v8405_v3, %v8387_v26  ;;  %v8408_v26 = vld [vmem:[#allocation69_spill] sm:$0xff]  ;;  %v8409_v42 = vmov 0   ;;  %v6109_v44 = vld [vmem:[%s6924_s17 + $0x4] ss:$16 sps:$4 sm:$0xff]   ;;  %v8413_v20 = vld [vmem:[#allocation39_spill] sm:$0xff] }
 0x482   : > { %5683 = vmatpush3.bf16.msra.mxu1 %v6084_v43  ;;  %3235 = vmatprep.mubr.bf16.mxu1 %v1719_v39  ;;  %v1725_v40 = vpack.c.bf16 %v1705_v11, %v1701_v36  ;;  %v1727_v30 = vpack.c.bf16 %v1707_v21, %v1703_v18  ;;  %v1713_v31 = vmax.f32 %v1609_v33, 0.0  ;;  %v8410_v43 = vld [vmem:[#allocation70_spill] sm:$0xff]  ;;  %v6104_v56 = vld [vmem:[%s6924_s17 + $0x28] ss:$16 sps:$4 sm:$0xff]   ;;  %v6112_v51 = vld [vmem:[%s6924_s17 + $0xc] ss:$16 sps:$4 sm:$0xff]  }
 0x483   : > { %5684 = vmatprep.subr.bf16.mxu1 %v6086_v59  ;;  %v1709_v14 = vmax.f32 %v1605_v19, 0.0  ;;  %v1715_v4 = vmax.f32 %v1682_v29, 0.0  ;;  %v1711_v32 = vmax.f32 %v1678_v27, 0.0  ;;  %v6101_v59 = vld [vmem:[%s6924_s17 + $0x20] ss:$16 sps:$4 sm:$0xff]   ;;  %v3270_v1 = vld [vmem:[#allocation2 + $0x10] sm:$0xff] }
 0x484   : > { %5645 = vmatpush3.bf16.msra.mxu0 %v6087_v5  ;;  %v6107_v39 = vld [vmem:[%s6924_s17] ss:$16 sps:$4 sm:$0xff]   ;;  %v6115_v5 = vld [vmem:[%s6924_s17 + $0xa4] ss:$16 sps:$4 sm:$0xff]   ;;  %v6118_v13 = vld [vmem:[%s6924_s17 + $0xac] ss:$16 sps:$4 sm:$0xff]  }
 0x485   : > { %3348 = vmatprep.subr.bf16.mxu0 %v6091_v23  ;;  %v1729_v63 = vpack.c.bf16 %v1713_v31, %v1709_v14  ;;  %v1731_v17 = vpack.c.bf16 %v1715_v4, %v1711_v32  ;;  %v6110_v23 = vld [vmem:[%s6924_s17 + $0x8] ss:$16 sps:$4 sm:$0xff]   ;;  %v8412_v52 = vld [vmem:[#allocation38_spill] sm:$0xff]  ;;  %v3269_v47 = vld [vmem:[#allocation2 + $0x8] sm:$0xff] }
 0x486   : > { %5685 = vmatpush3.bf16.msra.mxu1 %v6088_v37  ;;  %v8414_v37 = vld [vmem:[#allocation40_spill] sm:$0xff]  ;;  %v6116_v35 = vld [vmem:[%s6924_s17 + $0xa8] ss:$16 sps:$4 sm:$0xff]   ;;  %v6124_v15 = vld [vmem:[%s6924_s17 + $0x8c] ss:$16 sps:$4 sm:$0xff]  }
 0x487   : > { %3171 = vmatmul.mubr.bf16.vlgmr.msra.gmra.mxu0 %v8395_v46  ;;  %3421 = vmatprep.subr.bf16.mxu1 %v6094_v2  ;;  %v3268_v2 = vld [vmem:[#allocation2] sm:$0xff]  ;;  %v6130_v55 = vld [vmem:[%s6924_s17 + $0xec] ss:$16 sps:$4 sm:$0xff]   ;;  %v6125_v9 = vld [vmem:[%s6924_s17 + $0xe0] ss:$16 sps:$4 sm:$0xff]  }
 0x488   : > { %3178 = vmatprep.mubr.bf16.mxu0 %v1721_v57  ;;  %3349 = vmatpush1.bf16.msra.mxu0 %v6089_v8  ;;  %v3276_v49 = vpack.c.bf16 %v3269_v47, %v3268_v2  ;;  %v6113_v8 = vld [vmem:[%s6924_s17 + $0xa0] ss:$16 sps:$4 sm:$0xff]   ;;  %v6127_v46 = vld [vmem:[%s6924_s17 + $0xe4] ss:$16 sps:$4 sm:$0xff]   ;;  %v6128_v11 = vld [vmem:[%s6924_s17 + $0xe8] ss:$16 sps:$4 sm:$0xff]  }
 0x489   : > { %3236 = vmatmul.mubr.bf16.vlgmr.msra.gmra.mxu1 %v8398_v53  ;;  %3350 = vmatprep.subr.bf16.mxu0 %v6097_v48  ;;  %v6121_v48 = vld [vmem:[%s6924_s17 + $0x84] ss:$16 sps:$4 sm:$0xff]   ;;  %v6119_v57 = vld [vmem:[%s6924_s17 + $0x80] ss:$16 sps:$4 sm:$0xff]   ;;  %v6134_v18 = vld [vmem:[%s6924_s17 + $0xc8] ss:$16 sps:$4 sm:$0xff]  }
 0x48a   : > { %3243 = vmatprep.mubr.bf16.mxu1 %v1723_v7  ;;  %3422 = vmatpush1.bf16.msra.mxu1 %v6092_v60  ;;  %v3271_v60 = vld [vmem:[#allocation2 + $0x18] sm:$0xff]  ;;  %v3272_v28 = vld [vmem:[#allocation2 + $0x20] sm:$0xff]  ;;  %v3273_v22 = vld [vmem:[#allocation2 + $0x28] sm:$0xff] }
 0x48b   : > { %3423 = vmatprep.subr.bf16.mxu1 %v6100_v61  ;;  %v6122_v61 = vld [vmem:[%s6924_s17 + $0x88] ss:$16 sps:$4 sm:$0xff]   ;;  %v3277_v62 = vpack.c.bf16 %v3271_v60, %v3270_v1  ;;  %v3278_v7 = vpack.c.bf16 %v3273_v22, %v3272_v28  ;;  %v3275_v53 = vld [vmem:[#allocation2 + $0x38] sm:$0xff]  ;;  %v6133_v10 = vld [vmem:[%s6924_s17 + $0xc4] ss:$16 sps:$4 sm:$0xff]  }
 0x48c   : > { %3351 = vmatpush1.bf16.msra.mxu0 %v6095_v38  ;;  %v3274_v38 = vld [vmem:[#allocation2 + $0x30] sm:$0xff]  ;;  %v6131_v36 = vld [vmem:[%s6924_s17 + $0xc0] ss:$16 sps:$4 sm:$0xff]   ;;  %v6142_v24 = vld [vmem:[%s6924_s17 + $0x12c] ss:$16 sps:$4 sm:$0xff]  }
 0x48d   : > { %3546 = vmatprep.subr.bf16.mxu0 %v6103_v50  ;;  %v3279_v50 = vpack.c.bf16 %v3275_v53, %v3274_v38  ;;  %v6139_v21 = vld [vmem:[%s6924_s17 + $0x124] ss:$16 sps:$4 sm:$0xff]   ;;  %v6137_v6 = vld [vmem:[%s6924_s17 + $0x120] ss:$16 sps:$4 sm:$0xff]   ;;  %v6140_v54 = vld [vmem:[%s6924_s17 + $0x128] ss:$16 sps:$4 sm:$0xff]  }
 0x48e   : > { %3424 = vmatpush1.bf16.msra.mxu1 %v6098_v25  ;;  %v8415_v25 = vld [vmem:[#allocation33_spill] sm:$0xff]  ;;  %v8416_v33 = vld [vmem:[#allocation34_spill] sm:$0xff]  ;;  %v8421_v31 = vld [vmem:[#allocation43_spill] sm:$0xff] }
 0x48f   : > { %3179 = vmatmul.mubr.bf16.gmra.mxu0 %v8401_v0  ;;  %3619 = vmatprep.subr.bf16.mxu1 %v6106_v12  ;;  %v6136_v12 = vld [vmem:[%s6924_s17 + $0xcc] ss:$16 sps:$4 sm:$0xff]   ;;  %v8418_v0 = vld [vmem:[#allocation36_spill] sm:$0xff]  ;;  %v6146_v3 = vld [vmem:[%s6924_s17 + $0x108] ss:$16 sps:$4 sm:$0xff]  }
 0x490   : > { %3186 = vmatprep.mubr.bf16.mxu0 %v1725_v40  ;;  %v8417_v40 = vld [vmem:[#allocation35_spill] sm:$0xff]  ;;  %v6145_v19 = vld [vmem:[%s6924_s17 + $0x104] ss:$16 sps:$4 sm:$0xff]   ;;  %v8419_v29 = vld [vmem:[#allocation41_spill] sm:$0xff] }
 0x491   : > { %3244 = vmatmul.mubr.bf16.gmra.mxu1 %v8404_v58  ;;  %v6143_v58 = vld [vmem:[%s6924_s17 + $0x100] ss:$16 sps:$4 sm:$0xff]   ;;  %v4132_v4 = vld [vmem:[#allocation2 + $0x4] sm:$0xff]  ;;  %v4138_v53 = vld [vmem:[#allocation2 + $0x34] sm:$0xff] }
 0x492   : > { %3251 = vmatprep.mubr.bf16.mxu1 %v1727_v30  ;;  %v6148_v30 = vld [vmem:[%s6924_s17 + $0x10c] ss:$16 sps:$4 sm:$0xff]   ;;  %v8420_v27 = vld [vmem:[#allocation42_spill] sm:$0xff]  ;;  %v8422_v14 = vld [vmem:[#allocation44_spill] sm:$0xff] }
 0x493   : > { %v4133_v32 = vld [vmem:[#allocation2 + $0xc] sm:$0xff] }
 0x497   : > { %3187 = vmatmul.mubr.bf16.gmra.mxu0 %v8406_v34 }
 0x498   : > { %3194 = vmatprep.mubr.bf16.mxu0 %v1729_v63  ;;  %v4140_v63 = vpack.c.bf16 %v4133_v32, %v4132_v4 }
 0x499   : > { %3252 = vmatmul.mubr.bf16.gmra.mxu1 %v8407_v41  ;;  %v4134_v41 = vld [vmem:[#allocation2 + $0x14] sm:$0xff] }
 0x49a   : > { %3259 = vmatprep.mubr.bf16.mxu1 %v1731_v17 }
 0x49f   : > { %3195 = vmatmul.mubr.bf16.gmra.mxu0 %v8408_v26  ;;  %v4135_v26 = vld [vmem:[#allocation2 + $0x1c] sm:$0xff] }
 0x4a0   : > { %3368 = vmatprep.mubr.bf16.mxu0 %v8409_v42 }
 0x4a1   : > { %3260 = vmatmul.mubr.bf16.gmra.mxu1 %v8410_v43 }
 0x4a2   : > { %3441 = vmatprep.mubr.bf16.mxu1 %v8409_v42 }
 0x4a7   : > { %5416 = vmatmul.mubr.msk.bf16.vlgmr.msra.gmra.mxu0 %vm1525_vm2, %v8411_v45 }
 0x4a8   : > { %3547 = vmatpush1.bf16.msra.mxu0 %v6101_v59  ;;  %3378 = vmatprep.mubr.bf16.mxu0 %v8409_v42 }
 0x4a9   : > { %5420 = vmatmul.mubr.msk.bf16.vlgmr.msra.gmra.mxu1 %vm1525_vm2, %v8411_v45  ;;  %3548 = vmatprep.subr.bf16.mxu0 %v6109_v44 }
 0x4aa   : > { %3620 = vmatpush1.bf16.msra.mxu1 %v6104_v56  ;;  %3451 = vmatprep.mubr.bf16.mxu1 %v8409_v42 }
 0x4ab   : > { %3621 = vmatprep.subr.bf16.mxu1 %v6112_v51 }
 0x4ac   : > { %3549 = vmatpush1.bf16.msra.mxu0 %v6107_v39  ;;  %v4141_v39 = vpack.c.bf16 %v4135_v26, %v4134_v41 }
 0x4ad   : > { %3740 = vmatprep.subr.bf16.mxu0 %v6115_v5 }
 0x4ae   : > { %3622 = vmatpush1.bf16.msra.mxu1 %v6110_v23 }
 0x4af   : > { %5417 = vmatmul.mubr.msk.bf16.gmra.mxu0 %vm1525_vm2, %v8412_v52  ;;  %3813 = vmatprep.subr.bf16.mxu1 %v6118_v13 }
 0x4b0   : > { %3388 = vmatprep.mubr.bf16.mxu0 %v8409_v42 }
 0x4b1   : > { %5421 = vmatmul.mubr.msk.bf16.gmra.mxu1 %vm1525_vm2, %v8412_v52 }
 0x4b2   : > { %3461 = vmatprep.mubr.bf16.mxu1 %v8409_v42 }
 0x4b7   : > { %5418 = vmatmul.mubr.msk.bf16.gmra.mxu0 %vm1525_vm2, %v8413_v20 }
 0x4b8   : > { %3398 = vmatprep.mubr.bf16.mxu0 %v8409_v42 }
 0x4b9   : > { %5422 = vmatmul.mubr.msk.bf16.gmra.mxu1 %vm1525_vm2, %v8413_v20 }
 0x4ba   : > { %3471 = vmatprep.mubr.bf16.mxu1 %v8409_v42 }
 0x4bf   : > { %5419 = vmatmul.mubr.msk.bf16.gmra.mxu0 %vm1525_vm2, %v8414_v37 }
 0x4c0   : > { %3566 = vmatprep.mubr.bf16.mxu0 %v8409_v42 }
 0x4c1   : > { %5423 = vmatmul.mubr.msk.bf16.gmra.mxu1 %vm1525_vm2, %v8414_v37 }
 0x4c2   : > { %3639 = vmatprep.mubr.bf16.mxu1 %v8409_v42 }
 0x4c7   : > { %5432 = vmatmul.mubr.msk.bf16.vlgmr.msra.gmra.mxu0 %vm1525_vm2, %v3276_v49 }
 0x4c8   : > { %3741 = vmatpush1.bf16.msra.mxu0 %v6113_v8  ;;  %3576 = vmatprep.mubr.bf16.mxu0 %v8409_v42  ;;  %v4137_v8 = vld [vmem:[#allocation2 + $0x2c] sm:$0xff] }
 0x4c9   : > { %5436 = vmatmul.mubr.msk.bf16.vlgmr.msra.gmra.mxu1 %vm1525_vm2, %v3276_v49  ;;  %3742 = vmatprep.subr.bf16.mxu0 %v6121_v48  ;;  %v4136_v49 = vld [vmem:[#allocation2 + $0x24] sm:$0xff] }
 0x4ca   : > { %3814 = vmatpush1.bf16.msra.mxu1 %v6116_v35  ;;  %3649 = vmatprep.mubr.bf16.mxu1 %v8409_v42 }
 0x4cb   : > { %3815 = vmatprep.subr.bf16.mxu1 %v6124_v15 }
 0x4cc   : > { %3743 = vmatpush1.bf16.msra.mxu0 %v6119_v57 }
 0x4cd   : > { %3966 = vmatprep.subr.bf16.mxu0 %v6127_v46  ;;  %v4142_v46 = vpack.c.bf16 %v4137_v8, %v4136_v49 }
 0x4ce   : > { %3816 = vmatpush1.bf16.msra.mxu1 %v6122_v61 }
 0x4cf   : > { %5433 = vmatmul.mubr.msk.bf16.gmra.mxu0 %vm1525_vm2, %v3277_v62  ;;  %4039 = vmatprep.subr.bf16.mxu1 %v6130_v55 }
 0x4d0   : > { %3586 = vmatprep.mubr.bf16.mxu0 %v8409_v42 }
 0x4d1   : > { %5437 = vmatmul.mubr.msk.bf16.gmra.mxu1 %vm1525_vm2, %v3277_v62 }
 0x4d2   : > { %3659 = vmatprep.mubr.bf16.mxu1 %v8409_v42 }
 0x4d7   : > { %5434 = vmatmul.mubr.msk.bf16.gmra.mxu0 %vm1525_vm2, %v3278_v7 }
 0x4d8   : > { %3596 = vmatprep.mubr.bf16.mxu0 %v8409_v42 }
 0x4d9   : > { %5438 = vmatmul.mubr.msk.bf16.gmra.mxu1 %vm1525_vm2, %v3278_v7 }
 0x4da   : > { %3669 = vmatprep.mubr.bf16.mxu1 %v8409_v42 }
 0x4df   : > { %5435 = vmatmul.mubr.msk.bf16.gmra.mxu0 %vm1525_vm2, %v3279_v50 }
 0x4e0   : > { %3760 = vmatprep.mubr.bf16.mxu0 %v8409_v42 }
 0x4e1   : > { %5439 = vmatmul.mubr.msk.bf16.gmra.mxu1 %vm1525_vm2, %v3279_v50  ;;  %v4139_v50 = vld [vmem:[#allocation2 + $0x3c] sm:$0xff] }
 0x4e2   : > { %3833 = vmatprep.mubr.bf16.mxu1 %v8409_v42 }
 0x4e7   : > { %5448 = vmatmul.mubr.msk.bf16.vlgmr.msra.gmra.mxu0 %vm1525_vm2, %v8415_v25 }
 0x4e8   : > { %3967 = vmatpush1.bf16.msra.mxu0 %v6125_v9  ;;  %3770 = vmatprep.mubr.bf16.mxu0 %v8409_v42 }
 0x4e9   : > { %5452 = vmatmul.mubr.msk.bf16.vlgmr.msra.gmra.mxu1 %vm1525_vm2, %v8415_v25  ;;  %3968 = vmatprep.subr.bf16.mxu0 %v6133_v10 }
 0x4ea   : > { %4040 = vmatpush1.bf16.msra.mxu1 %v6128_v11  ;;  %3843 = vmatprep.mubr.bf16.mxu1 %v8409_v42 }
 0x4eb   : > { %4041 = vmatprep.subr.bf16.mxu1 %v6136_v12 }
 0x4ec   : > { %3969 = vmatpush1.bf16.msra.mxu0 %v6131_v36  ;;  %v4143_v36 = vpack.c.bf16 %v4139_v50, %v4138_v53  ;;  %v6150_v53 = vld [vmem:[%s6932_s3 + $0xf8] sm:$0xff]  }
 0x4ed   : > { %4216 = vmatprep.subr.bf16.mxu0 %v6139_v21 }
 0x4ee   : > { %4042 = vmatpush1.bf16.msra.mxu1 %v6134_v18 }
 0x4ef   : > { %5449 = vmatmul.mubr.msk.bf16.gmra.mxu0 %vm1525_vm2, %v8416_v33  ;;  %4289 = vmatprep.subr.bf16.mxu1 %v6142_v24 }
 0x4f0   : > { %3780 = vmatprep.mubr.bf16.mxu0 %v8409_v42 }
 0x4f1   : > { %5453 = vmatmul.mubr.msk.bf16.gmra.mxu1 %vm1525_vm2, %v8416_v33 }
 0x4f2   : > { %3853 = vmatprep.mubr.bf16.mxu1 %v8409_v42 }
 0x4f7   : > { %5450 = vmatmul.mubr.msk.bf16.gmra.mxu0 %vm1525_vm2, %v8417_v40 }
 0x4f8   : > { %3790 = vmatprep.mubr.bf16.mxu0 %v8409_v42 }
 0x4f9   : > { %5454 = vmatmul.mubr.msk.bf16.gmra.mxu1 %vm1525_vm2, %v8417_v40 }
 0x4fa   : > { %3863 = vmatprep.mubr.bf16.mxu1 %v8409_v42 }
 0x4ff   : > { %5451 = vmatmul.mubr.msk.bf16.gmra.mxu0 %vm1525_vm2, %v8418_v0 }
 0x500   : > { %3986 = vmatprep.mubr.bf16.mxu0 %v8409_v42 }
 0x501   : > { %5455 = vmatmul.mubr.msk.bf16.gmra.mxu1 %vm1525_vm2, %v8418_v0 }
 0x502   : > { %4059 = vmatprep.mubr.bf16.mxu1 %v8409_v42 }
 0x507   : > { %5464 = vmatmul.mubr.msk.bf16.vlgmr.msra.gmra.mxu0 %vm1525_vm2, %v8419_v29 }
 0x508   : > { %4217 = vmatpush1.bf16.msra.mxu0 %v6137_v6  ;;  %3996 = vmatprep.mubr.bf16.mxu0 %v8409_v42 }
 0x509   : > { %5468 = vmatmul.mubr.msk.bf16.vlgmr.msra.gmra.mxu1 %vm1525_vm2, %v8419_v29  ;;  %4218 = vmatprep.subr.bf16.mxu0 %v6145_v19 }
 0x50a   : > { %4290 = vmatpush1.bf16.msra.mxu1 %v6140_v54  ;;  %4069 = vmatprep.mubr.bf16.mxu1 %v8409_v42 }
 0x50b   : > { %4291 = vmatprep.subr.bf16.mxu1 %v6148_v30 }
 0x50c   : > { %4219 = vmatpush1.bf16.msra.mxu0 %v6143_v58 }
 0x50e   : > { %4292 = vmatpush1.bf16.msra.mxu1 %v6146_v3 }
 0x50f   : > { %5465 = vmatmul.mubr.msk.bf16.gmra.mxu0 %vm1525_vm2, %v8420_v27  ;;  %5750 = vmatprep.subr.bf16.mxu1 %v6150_v53  ;;  %v6171_v53 = vld [vmem:[%s6932_s3 + $0x10] sm:$0xff]  }
 0x510   : > { %4006 = vmatprep.mubr.bf16.mxu0 %v8409_v42 }
 0x511   : > { %5469 = vmatmul.mubr.msk.bf16.gmra.mxu1 %vm1525_vm2, %v8420_v27 }
 0x512   : > { %4079 = vmatprep.mubr.bf16.mxu1 %v8409_v42 }
 0x517   : > { %5466 = vmatmul.mubr.msk.bf16.gmra.mxu0 %vm1525_vm2, %v8421_v31 }
 0x518   : > { %4016 = vmatprep.mubr.bf16.mxu0 %v8409_v42 }
 0x519   : > { %5470 = vmatmul.mubr.msk.bf16.gmra.mxu1 %vm1525_vm2, %v8421_v31 }
 0x51a   : > { %4089 = vmatprep.mubr.bf16.mxu1 %v8409_v42 }
 0x51f   : > { %5467 = vmatmul.mubr.msk.bf16.gmra.mxu0 %vm1525_vm2, %v8422_v14 }
 0x520   : > { %4236 = vmatprep.mubr.bf16.mxu0 %v8409_v42 }
 0x521   : > { %5471 = vmatmul.mubr.msk.bf16.gmra.mxu1 %vm1525_vm2, %v8422_v14 }
 0x522   : > { %4309 = vmatprep.mubr.bf16.mxu1 %v8409_v42 }
 0x526   : > { %v5566_v34 = vpop.f32.mrf.mxu0 }
 0x527   : > { %v5606_v17 = vpop.f32.mrf.mxu1  ;;  %5480 = vmatmul.mubr.msk.bf16.vlgmr.msra.gmra.mxu0 %vm1525_vm2, %v4140_v63 }
 0x528   : > { %4246 = vmatprep.mubr.bf16.mxu0 %v8409_v42  ;;  %v5567_v43 = vpop.f32.mrf.mxu0 }
 0x529   : > { %5484 = vmatmul.mubr.msk.bf16.vlgmr.msra.gmra.mxu1 %vm1525_vm2, %v4140_v63  ;;  %v5607_v59 = vpop.f32.mrf.mxu1  ;;  %v5568_v44 = vadd.f32 %v5567_v43, %v5566_v34 }
 0x52a   : > { %v5608_v56 = vadd.f32 %v5607_v59, %v5606_v17  ;;  %4319 = vmatprep.mubr.bf16.mxu1 %v8409_v42  ;;  %v5569_v45 = vpop.f32.mrf.mxu0 }
 0x52b   : > { %v5609_v51 = vpop.f32.mrf.mxu1 }
 0x52c   : > { %v7706_v5 = vadd.f32 %v5608_v56, %v5568_v44  ;;  %v5570_v23 = vpop.f32.mrf.mxu0 }
 0x52d   : > { %v5610_v13 = vpop.f32.mrf.mxu1  ;;  %v5571_v52 = vadd.f32 %v5570_v23, %v5569_v45 }
 0x52e   : > { %v5611_v20 = vadd.f32 %v5610_v13, %v5609_v51 }
 0x52f   : > { %v5572_v37 = vpop.f32.mrf.mxu0  ;;  %v5612_v2 = vpop.f32.mrf.mxu1  ;;  %5481 = vmatmul.mubr.msk.bf16.gmra.mxu0 %vm1525_vm2, %v4141_v39 }
 0x530   : > { %v7709_v47 = vadd.f32 %v5611_v20, %v5571_v52  ;;  %4256 = vmatprep.mubr.bf16.mxu0 %v8409_v42 }
 0x531   : > { %5485 = vmatmul.mubr.msk.bf16.gmra.mxu1 %vm1525_vm2, %v4141_v39  ;;  %v5573_v48 = vpop.f32.mrf.mxu0  ;;  %v5613_v35 = vpop.f32.mrf.mxu1 }
 0x532   : > { %v5574_v15 = vadd.f32 %v5573_v48, %v5572_v37  ;;  %v5614_v1 = vadd.f32 %v5613_v35, %v5612_v2  ;;  %4329 = vmatprep.mubr.bf16.mxu1 %v8409_v42 }
 0x533   : > { %v5575_v60 = vpop.f32.mrf.mxu0  ;;  %v5615_v57 = vpop.f32.mrf.mxu1 }
 0x534   : > { %v7714_v61 = vadd.f32 %v5614_v1, %v5574_v15 }
 0x535   : > { %v5576_v62 = vpop.f32.mrf.mxu0  ;;  %v5616_v55 = vpop.f32.mrf.mxu1 }
 0x536   : > { %v5577_v28 = vadd.f32 %v5576_v62, %v5575_v60  ;;  %v5617_v22 = vadd.f32 %v5616_v55, %v5615_v57 }
 0x537   : > { %v5578_v7 = vpop.f32.mrf.mxu0  ;;  %5482 = vmatmul.mubr.msk.bf16.gmra.mxu0 %vm1525_vm2, %v4142_v46 }
 0x538   : > { %v7717_v38 = vadd.f32 %v5617_v22, %v5577_v28  ;;  %4266 = vmatprep.mubr.bf16.mxu0 %v8409_v42 }
 0x539   : > { %v5618_v9 = vpop.f32.mrf.mxu1  ;;  %5486 = vmatmul.mubr.msk.bf16.gmra.mxu1 %vm1525_vm2, %v4142_v46  ;;  %v5579_v10 = vpop.f32.mrf.mxu0 }
 0x53a   : > { %v5580_v11 = vadd.f32 %v5579_v10, %v5578_v7  ;;  %4339 = vmatprep.mubr.bf16.mxu1 %v8409_v42  ;;  %v6149_v7 = vld [vmem:[%s6932_s3 + $0x78] sm:$0xff]  }
 0x53b   : > { %v5619_v25 = vpop.f32.mrf.mxu1  ;;  %v5581_v12 = vpop.f32.mrf.mxu0  ;;  %v6151_v10 = vld [vmem:[%s6932_s3 + $0x38] sm:$0xff]   ;;  %5710 = vmatprep.subr.bf16.mxu0 %v6149_v7  ;;  %v6170_v7 = vld [vmem:[%s6932_s3 + $0xd0] sm:$0xff]  }
 0x53c   : > { %v5620_v21 = vadd.f32 %v5619_v25, %v5618_v9  ;;  %5711 = vmatpush3.bf16.msra.mxu0 %v6151_v10 }
 0x53d   : > { %v5621_v18 = vpop.f32.mrf.mxu1  ;;  %v5582_v24 = vpop.f32.mrf.mxu0 }
 0x53e   : > { %v7722_v33 = vadd.f32 %v5620_v21, %v5580_v11  ;;  %v5583_v40 = vadd.f32 %v5582_v24, %v5581_v12  ;;  %v6152_v11 = vld [vmem:[%s6932_s3 + $0xb8] sm:$0xff]   ;;  %v6153_v24 = vld [vmem:[%s6932_s3 + $0x70] sm:$0xff]  }
 0x53f   : > { %v5622_v0 = vpop.f32.mrf.mxu1  ;;  %v5584_v6 = vpop.f32.mrf.mxu0  ;;  %5483 = vmatmul.mubr.msk.bf16.gmra.mxu0 %vm1525_vm2, %v4143_v36  ;;  %5751 = vmatpush3.bf16.msra.mxu1 %v6152_v11 }
 0x540   : > { %v5623_v19 = vadd.f32 %v5622_v0, %v5621_v18  ;;  %5712 = vmatprep.subr.bf16.mxu0 %v6153_v24 }
 0x541   : > { %v5624_v54 = vpop.f32.mrf.mxu1  ;;  %5487 = vmatmul.mubr.msk.bf16.gmra.mxu1 %vm1525_vm2, %v4143_v36  ;;  %v5585_v29 = vpop.f32.mrf.mxu0 }
 0x542   : > { %v7726_v30 = vadd.f32 %v5623_v19, %v5583_v40  ;;  %v5586_v42 = vadd.f32 %v5585_v29, %v5584_v6  ;;  %v6154_v40 = vld [vmem:[%s6932_s3 + $0xf0] sm:$0xff]  }
 0x543   : > { %v5625_v58 = vpop.f32.mrf.mxu1  ;;  %v5587_v3 = vpop.f32.mrf.mxu0  ;;  %v6155_v6 = vld [vmem:[%s6932_s3 + $0x30] sm:$0xff]   ;;  %5752 = vmatprep.subr.bf16.mxu1 %v6154_v40 }
 0x544   : > { %v5626_v27 = vadd.f32 %v5625_v58, %v5624_v54  ;;  %v6156_v19 = vld [vmem:[%s6932_s3 + $0xb0] sm:$0xff]   ;;  %5713 = vmatpush3.bf16.msra.mxu0 %v6155_v6  ;;  %v6177_v6 = vld [vmem:[%s6932_s3 + $0x40] sm:$0xff]  }
 0x545   : > { %v5627_v31 = vpop.f32.mrf.mxu1  ;;  %v5588_v14 = vpop.f32.mrf.mxu0  ;;  %5753 = vmatpush3.bf16.msra.mxu1 %v6156_v19  ;;  %v6178_v19 = vld [vmem:[%s6932_s3 + $0xc0] sm:$0xff]  }
 0x546   : > { %v7728_v4 = vadd.f32 %v5626_v27, %v5586_v42  ;;  %v5589_v32 = vadd.f32 %v5588_v14, %v5587_v3  ;;  %v6158_v14 = vld [vmem:[%s6932_s3 + $0xe8] sm:$0xff]  }
 0x547   : > { %v5628_v63 = vpop.f32.mrf.mxu1  ;;  %v5646_v34 = vpop.f32.mrf.mxu0  ;;  %5754 = vmatprep.subr.bf16.mxu1 %v6158_v14 }
 0x548   : > { %v5629_v17 = vadd.f32 %v5628_v63, %v5627_v31  ;;  %v6157_v31 = vld [vmem:[%s6932_s3 + $0x68] sm:$0xff]  }
 0x549   : > { %v5686_v41 = vpop.f32.mrf.mxu1  ;;  %v5647_v26 = vpop.f32.mrf.mxu0  ;;  %v6159_v63 = vld [vmem:[%s6932_s3 + $0x28] sm:$0xff]   ;;  %5714 = vmatprep.subr.bf16.mxu0 %v6157_v31 }
 0x54a   : > { %v7730_v43 = vadd.f32 %v5629_v17, %v5589_v32  ;;  %v5648_v59 = vadd.f32 %v5647_v26, %v5646_v34  ;;  %v6160_v34 = vld [vmem:[%s6932_s3 + $0xa8] sm:$0xff]   ;;  %5715 = vmatpush3.bf16.msra.mxu0 %v6159_v63 }
 0x54b   : > { %v5687_v44 = vpop.f32.mrf.mxu1  ;;  %v5649_v56 = vpop.f32.mrf.mxu0  ;;  %5755 = vmatpush3.bf16.msra.mxu1 %v6160_v34 }
 0x54c   : > { %v3173_v45 = vadd.f32 %v5648_v59, %v7706_v5  ;;  %v5688_v51 = vadd.f32 %v5687_v44, %v5686_v41 }
 0x54d   : > { %v5689_v39 = vpop.f32.mrf.mxu1  ;;  %v5650_v23 = vpop.f32.mrf.mxu0 }
 0x54e   : > { %v7733_v13 = vadd.f32 %v5688_v51, %v3173_v45  ;;  %v5651_v52 = vadd.f32 %v5650_v23, %v5649_v56  ;;  %v6161_v45 = vld [vmem:[%s6932_s3 + $0x60] sm:$0xff]  }
 0x54f   : > { %v5690_v20 = vpop.f32.mrf.mxu1  ;;  %v5652_v37 = vpop.f32.mrf.mxu0  ;;  %v6162_v51 = vld [vmem:[%s6932_s3 + $0xe0] sm:$0xff]   ;;  %5716 = vmatprep.subr.bf16.mxu0 %v6161_v45 }
 0x550   : > { %8423 = vst [vmem:[#allocation88_spill] sm:$0xff] %v7733_v13  ;;  %v3176_v2 = vadd.f32 %v5651_v52, %v7709_v47  ;;  %v5691_v49 = vadd.f32 %v5690_v20, %v5689_v39  ;;  %v6163_v23 = vld [vmem:[%s6932_s3 + $0x20] sm:$0xff]   ;;  %5756 = vmatprep.subr.bf16.mxu1 %v6162_v51 }
 0x551   : > { %v5692_v8 = vpop.f32.mrf.mxu1  ;;  %v5653_v48 = vpop.f32.mrf.mxu0  ;;  %v6164_v52 = vld [vmem:[%s6932_s3 + $0xa0] sm:$0xff]   ;;  %5717 = vmatpush3.bf16.msra.mxu0 %v6163_v23 }
 0x552   : > { %v7736_v35 = vadd.f32 %v5691_v49, %v3176_v2  ;;  %v5654_v15 = vadd.f32 %v5653_v48, %v5652_v37  ;;  %5757 = vmatpush3.bf16.msra.mxu1 %v6164_v52 }
 0x553   : > { %v5693_v5 = vpop.f32.mrf.mxu1  ;;  %v5655_v1 = vpop.f32.mrf.mxu0 }
 0x554   : > { %8424 = vst [vmem:[#allocation89_spill] sm:$0xff] %v7736_v35  ;;  %v3181_v60 = vadd.f32 %v5654_v15, %v7714_v61  ;;  %v5694_v57 = vadd.f32 %v5693_v5, %v5692_v8  ;;  %v6165_v15 = vld [vmem:[%s6932_s3 + $0x58] sm:$0xff]  }
 0x555   : > { %v5695_v46 = vpop.f32.mrf.mxu1  ;;  %v5656_v62 = vpop.f32.mrf.mxu0  ;;  %5718 = vmatprep.subr.bf16.mxu0 %v6165_v15 }
 0x556   : > { %v7739_v55 = vadd.f32 %v5694_v57, %v3181_v60  ;;  %v5657_v47 = vadd.f32 %v5656_v62, %v5655_v1  ;;  %v6167_v60 = vld [vmem:[%s6932_s3 + $0x18] sm:$0xff]  }
 0x557   : > { %v5696_v28 = vpop.f32.mrf.mxu1  ;;  %v5658_v22 = vpop.f32.mrf.mxu0  ;;  %v6168_v57 = vld [vmem:[%s6932_s3 + $0x98] sm:$0xff]   ;;  %5719 = vmatpush3.bf16.msra.mxu0 %v6167_v60 }
 0x558   : > { %8425 = vst [vmem:[#allocation71_spill] sm:$0xff] %v7739_v55  ;;  %v3184_v50 = vadd.f32 %v5657_v47, %v7717_v38  ;;  %v5697_v9 = vadd.f32 %v5696_v28, %v5695_v46 }
 0x559   : > { %v5698_v61 = vpop.f32.mrf.mxu1  ;;  %v5659_v25 = vpop.f32.mrf.mxu0 }
 0x55a   : > { %v7746_v12 = vadd.f32 %v5697_v9, %v3184_v50  ;;  %v5660_v36 = vadd.f32 %v5659_v25, %v5658_v22  ;;  %v6172_v50 = vld [vmem:[%s6932_s3 + $0x90] sm:$0xff]   ;;  %v6173_v25 = vld [vmem:[%s6932_s3 + $0x48] sm:$0xff]  }
 0x55b   : > { %v5699_v21 = vpop.f32.mrf.mxu1  ;;  %v5661_v18 = vpop.f32.mrf.mxu0 }
 0x55c   : > { %8426 = vst [vmem:[#allocation72_spill] sm:$0xff] %v7746_v12  ;;  %v3189_v38 = vadd.f32 %v5660_v36, %v7722_v33  ;;  %v5700_v0 = vadd.f32 %v5699_v21, %v5698_v61  ;;  %v6174_v36 = vld [vmem:[%s6932_s3 + $0xc8] sm:$0xff]  }
 0x55d   : > { %v5701_v54 = vpop.f32.mrf.mxu1  ;;  %v5662_v29 = vpop.f32.mrf.mxu0  ;;  %v6175_v21 = vld [vmem:[%s6932_s3 + $0x8] sm:$0xff]  }
 0x55e   : > { %v7753_v42 = vadd.f32 %v5700_v0, %v3189_v38  ;;  %v5663_v58 = vadd.f32 %v5662_v29, %v5661_v18  ;;  %v6176_v18 = vld [vmem:[%s6932_s3 + $0x88] sm:$0xff]  }
 0x55f   : > { %v5702_v3 = vpop.f32.mrf.mxu1  ;;  %v5664_v27 = vpop.f32.mrf.mxu0 }
 0x560   : > { %8427 = vst [vmem:[#allocation73_spill] sm:$0xff] %v7753_v42  ;;  %v3192_v33 = vadd.f32 %v5663_v58, %v7726_v30  ;;  %v5703_v32 = vadd.f32 %v5702_v3, %v5701_v54  ;;  %v6179_v58 = vld [vmem:[%s6932_s3] sm:$0xff]  }
 0x561   : > { %v5704_v17 = vpop.f32.mrf.mxu1  ;;  %v5665_v41 = vpop.f32.mrf.mxu0  ;;  %v6180_v3 = vld [vmem:[%s6932_s3 + $0x80] sm:$0xff]  }
 0x562   : > { %v7760_v26 = vadd.f32 %v5703_v32, %v3192_v33  ;;  %v5666_v59 = vadd.f32 %v5665_v41, %v5664_v27 }
 0x563   : > { %v5705_v44 = vpop.f32.mrf.mxu1  ;;  %v5667_v56 = vpop.f32.mrf.mxu0 }
 0x564   : > { %8428 = vst [vmem:[#allocation80_spill] sm:$0xff] %v7760_v26  ;;  %v3197_v30 = vadd.f32 %v5666_v59, %v7728_v4  ;;  %v5706_v39 = vadd.f32 %v5705_v44, %v5704_v17  ;;  %v6166_v4 = vld [vmem:[%s6932_s3 + $0xd8] sm:$0xff]  }
 0x565   : > { %v5707_v20 = vpop.f32.mrf.mxu1  ;;  %v5668_v37 = vpop.f32.mrf.mxu0  ;;  %5758 = vmatprep.subr.bf16.mxu1 %v6166_v4 }
 0x566   : > { %v7767_v2 = vadd.f32 %v5706_v39, %v3197_v30  ;;  %v5669_v49 = vadd.f32 %v5668_v37, %v5667_v56  ;;  %5759 = vmatpush3.bf16.msra.mxu1 %v6168_v57 }
 0x567   : > { %v5708_v8 = vpop.f32.mrf.mxu1  ;;  %v7769_v48 = vpop.f32.mrf.mxu0  ;;  %5760 = vmatprep.subr.bf16.mxu1 %v6170_v7 }
 0x568   : > { %8429 = vst [vmem:[#allocation74_spill] sm:$0xff] %v7767_v2  ;;  %v3200_v5 = vadd.f32 %v5669_v49, %v7730_v43  ;;  %v5709_v1 = vadd.f32 %v5708_v8, %v5707_v20  ;;  %v6169_v43 = vld [vmem:[%s6932_s3 + $0x50] sm:$0xff]  }
 0x569   : > { %v7776_v46 = vpop.f32.mrf.mxu1  ;;  %v7778_v62 = vpop.f32.mrf.mxu0  ;;  %5720 = vmatprep.subr.bf16.mxu0 %v6169_v43 }
 0x56a   : > { %v7780_v47 = vadd.f32 %v5709_v1, %v3200_v5  ;;  %5721 = vmatpush3.bf16.msra.mxu0 %v6171_v53  ;;  %5761 = vmatpush3.bf16.msra.mxu1 %v6172_v50 }
 0x56b   : > { %v3445_v28 = vpop.f32.mrf.mxu1  ;;  %v3374_v22 = vpop.f32.mrf.mxu0  ;;  %5722 = vmatprep.subr.bf16.mxu0 %v6173_v25  ;;  %5762 = vmatprep.subr.bf16.mxu1 %v6174_v36 }
 0x56c   : > { %8430 = vst [vmem:[#allocation81_spill] sm:$0xff] %v7780_v47 }
 0x56d   : > { %v3447_v9 = vpop.f32.mrf.mxu1  ;;  %v3376_v10 = vpop.f32.mrf.mxu0 }
 0x56e   : > { %5723 = vmatpush3.bf16.msra.mxu0 %v6175_v21  ;;  %5763 = vmatpush3.bf16.msra.mxu1 %v6176_v18 }
 0x56f   : > { %v3449_v11 = vpop.f32.mrf.mxu1  ;;  %v3380_v61 = vpop.f32.mrf.mxu0  ;;  %5724 = vmatprep.subr.bf16.mxu0 %v6177_v6  ;;  %5764 = vmatprep.subr.bf16.mxu1 %v6178_v19 }
 0x571   : > { %v3453_v24 = vpop.f32.mrf.mxu1  ;;  %v3382_v40 = vpop.f32.mrf.mxu0 }
 0x572   : > { %5725 = vmatpush3.bf16.msra.mxu0 %v6179_v58  ;;  %5765 = vmatpush3.bf16.msra.mxu1 %v6180_v3 }
 0x573   : > { %v3455_v38 = vpop.f32.mrf.mxu1  ;;  %v3384_v0 = vpop.f32.mrf.mxu0 }
 0x575   : > { %v3457_v54 = vpop.f32.mrf.mxu1  ;;  %v3386_v29 = vpop.f32.mrf.mxu0 }
 0x577   : > { %v3459_v27 = vpop.f32.mrf.mxu1  ;;  %v3390_v31 = vpop.f32.mrf.mxu0 }
 0x579   : > { %v3463_v14 = vpop.f32.mrf.mxu1  ;;  %v3392_v33 = vpop.f32.mrf.mxu0 }
 0x57b   : > { %v3465_v32 = vpop.f32.mrf.mxu1  ;;  %v3394_v63 = vpop.f32.mrf.mxu0 }
 0x57d   : > { %v3467_v34 = vpop.f32.mrf.mxu1  ;;  %v3396_v17 = vpop.f32.mrf.mxu0 }
 0x57f   : > { %v3469_v41 = vpop.f32.mrf.mxu1  ;;  %v3400_v59 = vpop.f32.mrf.mxu0 }
 0x581   : > { %v3473_v44 = vpop.f32.mrf.mxu1  ;;  %v3402_v56 = vpop.f32.mrf.mxu0 }
 0x583   : > { %v3475_v45 = vpop.f32.mrf.mxu1  ;;  %v3404_v51 = vpop.f32.mrf.mxu0 }
 0x585   : > { %v7794_v30 = vpop.f32.mrf.mxu1  ;;  %v7796_v39 = vpop.f32.mrf.mxu0 }
 0x587   : > { %v7798_v23 = vpop.f32.mrf.mxu1  ;;  %v3568_v52 = vpop.f32.mrf.mxu0 }
 0x588   : > { %v7801_v20 = vadd.f32 %v3568_v52, %v7769_v48 }
 0x589   : > { %v3641_v37 = vpop.f32.mrf.mxu1  ;;  %v3570_v49 = vpop.f32.mrf.mxu0 }
 0x58a   : > { %v7804_v8 = vadd.f32 %v3641_v37, %v7776_v46  ;;  %v7807_v15 = vadd.f32 %v3570_v49, %v7778_v62 }
 0x58b   : > { %v3643_v4 = vpop.f32.mrf.mxu1  ;;  %v3572_v5 = vpop.f32.mrf.mxu0 }
 0x58c   : > { %v7809_v1 = vadd.f32 %v3643_v4, %v3445_v28  ;;  %v7811_v60 = vadd.f32 %v3572_v5, %v3374_v22 }
 0x58d   : > { %v3645_v57 = vpop.f32.mrf.mxu1  ;;  %v3574_v43 = vpop.f32.mrf.mxu0 }
 0x58e   : > { %v7813_v7 = vadd.f32 %v3645_v57, %v3447_v9  ;;  %v7815_v48 = vadd.f32 %v3574_v43, %v3376_v10 }
 0x58f   : > { %v3647_v53 = vpop.f32.mrf.mxu1  ;;  %v3578_v50 = vpop.f32.mrf.mxu0 }
 0x590   : > { %v7817_v25 = vadd.f32 %v3647_v53, %v3449_v11  ;;  %v3579_v46 = vadd.f32 %v3578_v50, %v3380_v61 }
 0x591   : > { %v3651_v36 = vpop.f32.mrf.mxu1  ;;  %v3580_v62 = vpop.f32.mrf.mxu0 }
 0x592   : > { %v3652_v21 = vadd.f32 %v3651_v36, %v3453_v24  ;;  %v3581_v18 = vadd.f32 %v3580_v62, %v3382_v40 }
 0x593   : > { %v3653_v6 = vpop.f32.mrf.mxu1  ;;  %v3582_v28 = vpop.f32.mrf.mxu0 }
 0x594   : > { %v3654_v19 = vadd.f32 %v3653_v6, %v3455_v38  ;;  %v3583_v22 = vadd.f32 %v3582_v28, %v3384_v0 }
 0x595   : > { %v3655_v58 = vpop.f32.mrf.mxu1  ;;  %v3584_v3 = vpop.f32.mrf.mxu0 }
 0x596   : > { %v7819_v52 = vadd.f32 %v3655_v58, %v3457_v54  ;;  %v7821_v9 = vadd.f32 %v3584_v3, %v3386_v29 }
 0x597   : > { %v3657_v10 = vpop.f32.mrf.mxu1  ;;  %v3588_v37 = vpop.f32.mrf.mxu0 }
 0x598   : > { %v7823_v49 = vadd.f32 %v3657_v10, %v3459_v27  ;;  %v3589_v11 = vadd.f32 %v3588_v37, %v3390_v31 }
 0x599   : > { %v3661_v61 = vpop.f32.mrf.mxu1  ;;  %v3590_v4 = vpop.f32.mrf.mxu0 }
 0x59a   : > { %v3662_v5 = vadd.f32 %v3661_v61, %v3463_v14  ;;  %v3591_v24 = vadd.f32 %v3590_v4, %v3392_v33 }
 0x59b   : > { %v3663_v40 = vpop.f32.mrf.mxu1  ;;  %v3592_v57 = vpop.f32.mrf.mxu0 }
 0x59c   : > { %v3664_v43 = vadd.f32 %v3663_v40, %v3465_v32  ;;  %v3593_v38 = vadd.f32 %v3592_v57, %v3394_v63 }
 0x59d   : > { %v3665_v0 = vpop.f32.mrf.mxu1  ;;  %v3594_v53 = vpop.f32.mrf.mxu0 }
 0x59e   : > { %v3666_v50 = vadd.f32 %v3665_v0, %v3467_v34  ;;  %v7825_v54 = vadd.f32 %v3594_v53, %v3396_v17 }
 0x59f   : > { %v3667_v29 = vpop.f32.mrf.mxu1  ;;  %v3598_v36 = vpop.f32.mrf.mxu0 }
 0x5a0   : > { %v7827_v62 = vadd.f32 %v3667_v29, %v3469_v41  ;;  %v3599_v27 = vadd.f32 %v3598_v36, %v3400_v59 }
 0x5a1   : > { %v3671_v6 = vpop.f32.mrf.mxu1  ;;  %v3600_v31 = vpop.f32.mrf.mxu0 }
 0x5a2   : > { %v3672_v28 = vadd.f32 %v3671_v6, %v3473_v44  ;;  %v3601_v58 = vadd.f32 %v3600_v31, %v3402_v56 }
 0x5a3   : > { %v3673_v14 = vpop.f32.mrf.mxu1  ;;  %v3602_v33 = vpop.f32.mrf.mxu0 }
 0x5a4   : > { %v3674_v3 = vadd.f32 %v3673_v14, %v3475_v45  ;;  %v3603_v10 = vadd.f32 %v3602_v33, %v3404_v51 }
 0x5a5   : > { %v3675_v32 = vpop.f32.mrf.mxu1  ;;  %v3604_v63 = vpop.f32.mrf.mxu0 }
 0x5a6   : > { %v3676_v37 = vadd.f32 %v3675_v32, %v7794_v30  ;;  %v7831_v34 = vadd.f32 %v3604_v63, %v7796_v39 }
 0x5a7   : > { %v3677_v17 = vpop.f32.mrf.mxu1  ;;  %v3762_v61 = vpop.f32.mrf.mxu0 }
 0x5a8   : > { %v7834_v41 = vadd.f32 %v3677_v17, %v7798_v23  ;;  %v7837_v59 = vadd.f32 %v3762_v61, %v7801_v20 }
 0x5a9   : > { %v3835_v44 = vpop.f32.mrf.mxu1  ;;  %v3764_v56 = vpop.f32.mrf.mxu0 }
 0x5aa   : > { %v7840_v45 = vadd.f32 %v3835_v44, %v7804_v8  ;;  %v7843_v51 = vadd.f32 %v3764_v56, %v7807_v15 }
 0x5ab   : > { %v3837_v30 = vpop.f32.mrf.mxu1  ;;  %v3766_v4 = vpop.f32.mrf.mxu0 }
 0x5ac   : > { %v7846_v39 = vadd.f32 %v3837_v30, %v7809_v1  ;;  %v7849_v40 = vadd.f32 %v3766_v4, %v7811_v60 }
 0x5ad   : > { %v7851_v23 = vpop.f32.mrf.mxu1  ;;  %v7853_v20 = vpop.f32.mrf.mxu0 }
 0x5af   : > { %v7855_v57 = vpop.f32.mrf.mxu1  ;;  %v3772_v0 = vpop.f32.mrf.mxu0 }
 0x5b0   : > { %v7857_v8 = vadd.f32 %v3772_v0, %v3579_v46 }
 0x5b1   : > { %v3845_v53 = vpop.f32.mrf.mxu1  ;;  %v3774_v15 = vpop.f32.mrf.mxu0 }
 0x5b2   : > { %v7859_v29 = vadd.f32 %v3845_v53, %v3652_v21  ;;  %v7861_v36 = vadd.f32 %v3774_v15, %v3581_v18 }
 0x5b3   : > { %v3847_v1 = vpop.f32.mrf.mxu1  ;;  %v3776_v6 = vpop.f32.mrf.mxu0 }
 0x5b4   : > { %v7863_v31 = vadd.f32 %v3847_v1, %v3654_v19  ;;  %v7865_v60 = vadd.f32 %v3776_v6, %v3583_v22 }
 0x5b5   : > { %v7867_v14 = vpop.f32.mrf.mxu1  ;;  %v7869_v33 = vpop.f32.mrf.mxu0 }
 0x5b6   : > { %8431 = vst [vmem:[#allocation75_spill] sm:$0xff] %v7863_v31  ;;  %8432 = vst [vmem:[#allocation82_spill] sm:$0xff] %v7865_v60 }
 0x5b7   : > { %v7871_v32 = vpop.f32.mrf.mxu1  ;;  %v3782_v46 = vpop.f32.mrf.mxu0 }
 0x5b8   : > { %v7873_v63 = vadd.f32 %v3782_v46, %v3589_v11 }
 0x5b9   : > { %v3855_v17 = vpop.f32.mrf.mxu1  ;;  %v3784_v21 = vpop.f32.mrf.mxu0 }
 0x5ba   : > { %8433 = vst [vmem:[#allocation76_spill] sm:$0xff] %v7873_v63  ;;  %v7875_v61 = vadd.f32 %v3855_v17, %v3662_v5  ;;  %v7877_v18 = vadd.f32 %v3784_v21, %v3591_v24  ;;  %v8452_v63 = vld [vmem:[#allocation46_spill] sm:$0xff] }
 0x5bb   : > { %v3857_v44 = vpop.f32.mrf.mxu1  ;;  %v3786_v19 = vpop.f32.mrf.mxu0 }
 0x5bc   : > { %8434 = vst [vmem:[#allocation83_spill] sm:$0xff] %v7875_v61  ;;  %8435 = vst [vmem:[#allocation77_spill] sm:$0xff] %v7877_v18  ;;  %v7879_v56 = vadd.f32 %v3857_v44, %v3664_v43  ;;  %v7881_v22 = vadd.f32 %v3786_v19, %v3593_v38  ;;  %v8451_v18 = vld [vmem:[#allocation45_spill] sm:$0xff] }
 0x5bd   : > { %v3859_v30 = vpop.f32.mrf.mxu1  ;;  %v3788_v4 = vpop.f32.mrf.mxu0 }
 0x5be   : > { %8436 = vst [vmem:[#allocation86_spill] sm:$0xff] %v7879_v56  ;;  %8437 = vst [vmem:[#allocation78_spill] sm:$0xff] %v7881_v22  ;;  %v7883_v0 = vadd.f32 %v3859_v30, %v3666_v50 }
 0x5bf   : > { %v3861_v53 = vpop.f32.mrf.mxu1  ;;  %v3792_v15 = vpop.f32.mrf.mxu0 }
 0x5c0   : > { %8438 = vst [vmem:[#allocation87_spill] sm:$0xff] %v7883_v0  ;;  %v7885_v11 = vadd.f32 %v3792_v15, %v3599_v27  ;;  %v4382_v0 = vld [vmem:[%s6926_s23] sm:$0xf]  ;;  %s8483_s23 = sld [smem:[#allocation106_spill]] (!%p5256_p5) }
 0x5c1   : > { %v3865_v1 = vpop.f32.mrf.mxu1  ;;  %v3794_v6 = vpop.f32.mrf.mxu0  ;;  %v7913_v61 = vrot.slane %v4382_v0, %v8451_v18  ;;  %v7916_v60 = vrot.slane %v4382_v0, %v8452_v63  ;;  %v7932_v18 = vrot.slane %v4382_v0, %v7345_v16  ;;  %v3888_v63 = vadd.f32 %v7867_v14, %v7819_v52 }
 0x5c2   : > { %8439 = vst [vmem:[#allocation84_spill] sm:$0xff] %v7885_v11  ;;  %v7887_v5 = vadd.f32 %v3865_v1, %v3672_v28  ;;  %v7889_v24 = vadd.f32 %v3794_v6, %v3601_v58 }
 0x5c3   : > { %v3867_v46 = vpop.f32.mrf.mxu1  ;;  %v3796_v17 = vpop.f32.mrf.mxu0 }
 0x5c4   : > { %8440 = vst [vmem:[#allocation49_spill] sm:$0xff] %v7887_v5  ;;  %8441 = vst [vmem:[#allocation47_spill] sm:$0xff] %v7889_v24  ;;  %v7891_v43 = vadd.f32 %v3867_v46, %v3674_v3  ;;  %v7893_v38 = vadd.f32 %v3796_v17, %v3603_v10 }
 0x5c5   : > { %v3869_v21 = vpop.f32.mrf.mxu1  ;;  %v3798_v44 = vpop.f32.mrf.mxu0 }
 0x5c6   : > { %8442 = vst [vmem:[#allocation85_spill] sm:$0xff] %v7891_v43  ;;  %8443 = vst [vmem:[#allocation50_spill] sm:$0xff] %v7893_v38  ;;  %v7895_v50 = vadd.f32 %v3869_v21, %v3676_v37 }
 0x5c7   : > { %v3871_v19 = vpop.f32.mrf.mxu1  ;;  %v3988_v30 = vpop.f32.mrf.mxu0 }
 0x5c8   : > { %8444 = vst [vmem:[#allocation48_spill] sm:$0xff] %v7895_v50  ;;  %v7948_v16 = vadd.f32 %v3871_v19, %v7834_v41 }
 0x5c9   : > { %v4061_v27 = vpop.f32.mrf.mxu1  ;;  %v3990_v15 = vpop.f32.mrf.mxu0 }
 0x5cb   : > { %v4063_v47 = vpop.f32.mrf.mxu1  ;;  %v3992_v2 = vpop.f32.mrf.mxu0 }
 0x5cd   : > { %v4065_v28 = vpop.f32.mrf.mxu1  ;;  %v3994_v1 = vpop.f32.mrf.mxu0 }
 0x5cf   : > { %v4067_v58 = vpop.f32.mrf.mxu1  ;;  %v3998_v6 = vpop.f32.mrf.mxu0 }
 0x5d1   : > { %v4071_v26 = vpop.f32.mrf.mxu1  ;;  %v4000_v42 = vpop.f32.mrf.mxu0 }
 0x5d3   : > { %v4073_v3 = vpop.f32.mrf.mxu1  ;;  %v4002_v10 = vpop.f32.mrf.mxu0 }
 0x5d5   : > { %v4075_v46 = vpop.f32.mrf.mxu1  ;;  %v4004_v17 = vpop.f32.mrf.mxu0 }
 0x5d7   : > { %v4077_v12 = vpop.f32.mrf.mxu1  ;;  %v4008_v37 = vpop.f32.mrf.mxu0 }
 0x5d9   : > { %v4081_v21 = vpop.f32.mrf.mxu1  ;;  %v4010_v55 = vpop.f32.mrf.mxu0 }
 0x5db   : > { %v4083_v35 = vpop.f32.mrf.mxu1  ;;  %v4012_v13 = vpop.f32.mrf.mxu0 }
 0x5dd   : > { %v4085_v50 = vpop.f32.mrf.mxu1  ;;  %v7897_v38 = vpop.f32.mrf.mxu0 }
 0x5de   : > { %8445 = vst [vmem:[#allocation55_spill] sm:$0xff] %v7897_v38  ;;  %v8453_v38 = vld [vmem:[#allocation79_spill] sm:$0xff] }
 0x5df   : > { %v7899_v43 = vpop.f32.mrf.mxu1  ;;  %v7901_v24 = vpop.f32.mrf.mxu0  ;;  %v7919_v31 = vrot.slane %v4382_v0, %v8453_v38  ;;  %v3887_v38 = vadd.f32 %v7869_v33, %v7821_v9  ;;  %v4102_v9 = vadd.f32 %v4061_v27, %v7840_v45  ;;  %v4108_v0 = vadd.f32 %v3998_v6, %v7857_v8  ;;  %v8454_v45 = vld [vmem:[#allocation75_spill] sm:$0xff]  ;;  %v8459_v6 = vld [vmem:[#allocation86_spill] sm:$0xff] }
 0x5e0   : > { %8446 = vst [vmem:[#allocation53_spill] sm:$0xff] %v7901_v24  ;;  %v3880_v24 = vadd.f32 %v7851_v23, %v7813_v7  ;;  %v3889_v7 = vadd.f32 %v7871_v32, %v7823_v49  ;;  %v7945_v23 = vadd.f32 %v3798_v44, %v7831_v34  ;;  %v4101_v49 = vadd.f32 %v3990_v15, %v7843_v51  ;;  %v8455_v51 = vld [vmem:[#allocation82_spill] sm:$0xff]  ;;  %v8457_v15 = vld [vmem:[#allocation83_spill] sm:$0xff] }
 0x5e1   : > { %v7903_v5 = vpop.f32.mrf.mxu1  ;;  %v7905_v11 = vpop.f32.mrf.mxu0  ;;  %v4111_v19 = vadd.f32 %v4073_v3, %v8454_v45  ;;  %v7975_v3 = vadd.f32 %v4083_v35, %v8459_v6 }
 0x5e2   : > { %8447 = vst [vmem:[#allocation56_spill] sm:$0xff] %v7903_v5  ;;  %8448 = vst [vmem:[#allocation54_spill] sm:$0xff] %v7905_v11  ;;  %v3879_v11 = vadd.f32 %v7853_v20, %v7815_v48  ;;  %v3895_v48 = vadd.f32 %v3788_v4, %v7825_v54  ;;  %v4100_v20 = vadd.f32 %v3988_v30, %v7837_v59 }
 0x5e3   : > { %v7908_v22 = vpop.f32.mrf.mxu1  ;;  %v7910_v56 = vpop.f32.mrf.mxu0  ;;  %v4103_v54 = vadd.f32 %v4063_v47, %v7846_v39  ;;  %v4106_v14 = vadd.f32 %v4065_v28, %v3880_v24  ;;  %v4110_v59 = vadd.f32 %v4071_v26, %v7859_v29  ;;  %v4112_v30 = vadd.f32 %v4002_v10, %v8455_v51  ;;  %v8456_v24 = vld [vmem:[#allocation76_spill] sm:$0xff] }
 0x5e4   : > { %8449 = vst [vmem:[#allocation61_spill] sm:$0xff] %v7908_v22  ;;  %8450 = vst [vmem:[#allocation51_spill] sm:$0xff] %v7910_v56  ;;  %v3881_v22 = vadd.f32 %v7855_v57, %v7817_v25  ;;  %v7942_v25 = vadd.f32 %v3861_v53, %v7827_v62  ;;  %v4104_v62 = vadd.f32 %v3992_v2, %v7849_v40 }
 0x5e5   : > { %v7927_v5 = vpop.f32.mrf.mxu1  ;;  %v7929_v56 = vpop.f32.mrf.mxu0  ;;  %v4105_v33 = vadd.f32 %v3994_v1, %v3879_v11  ;;  %v4109_v53 = vadd.f32 %v4000_v42, %v7861_v36  ;;  %v4114_v47 = vadd.f32 %v4075_v46, %v3888_v63  ;;  %v4113_v11 = vadd.f32 %v4004_v17, %v3887_v38  ;;  %v8458_v42 = vld [vmem:[#allocation77_spill] sm:$0xff] }
 0x5e6   : > { %v4107_v34 = vadd.f32 %v4067_v58, %v3881_v22  ;;  %v7962_v22 = vadd.f32 %v4077_v12, %v3889_v7  ;;  %v7965_v27 = vadd.f32 %v4008_v37, %v8456_v24  ;;  %v7968_v26 = vadd.f32 %v4081_v21, %v8457_v15  ;;  %v8460_v12 = vld [vmem:[#allocation78_spill] sm:$0xff]  ;;  %v8461_v37 = vld [vmem:[#allocation87_spill] sm:$0xff] }
 0x5e7   : > { %v7951_v52 = vpop.f32.mrf.mxu1  ;;  %v4238_v57 = vpop.f32.mrf.mxu0  ;;  %v7971_v29 = vadd.f32 %v4010_v55, %v8458_v42  ;;  %v7978_v10 = vadd.f32 %v4012_v13, %v8460_v12  ;;  %v7982_v21 = vadd.f32 %v4085_v50, %v8461_v37  ;;  %v8464_v37 = vld [vmem:[#allocation53_spill] sm:$0xff] }
 0x5e8   : > { %v4350_v32 = vadd.f32 %v4238_v57, %v4100_v20  ;;  %v8462_v57 = vld [vmem:[#allocation55_spill] sm:$0xff] }
 0x5e9   : > { %v4311_v4 = vpop.f32.mrf.mxu1  ;;  %v4240_v41 = vpop.f32.mrf.mxu0 }
 0x5ea   : > { %v4352_v44 = vadd.f32 %v4311_v4, %v4102_v9  ;;  %v4351_v39 = vadd.f32 %v4240_v41, %v4101_v49  ;;  %v4404_v36 = vadd.f32 %v7913_v61, %v4350_v32  ;;  %v7987_v9 = vadd.f32 %v8462_v57, %v3895_v48 }
 0x5eb   : > { %v4313_v2 = vpop.f32.mrf.mxu1  ;;  %v4242_v40 = vpop.f32.mrf.mxu0 }
 0x5ec   : > { %v4353_v8 = vadd.f32 %v4313_v2, %v4103_v54  ;;  %v4354_v28 = vadd.f32 %v4242_v40, %v4104_v62  ;;  %v4406_v46 = vadd.f32 %v7916_v60, %v4352_v44  ;;  %v4405_v55 = vadd.f32 %v7919_v31, %v4351_v39 }
 0x5ed   : > { %v4315_v1 = vpop.f32.mrf.mxu1  ;;  %v4244_v58 = vpop.f32.mrf.mxu0  ;;  %v4436_v54 = vmax.f32 %v4404_v36, 0.0 }
 0x5ee   : > { %v4356_v17 = vadd.f32 %v4315_v1, %v4106_v14  ;;  %v4408_v63 = vadd.f32 %v7913_v61, %v4354_v28  ;;  %v4355_v38 = vadd.f32 %v4244_v58, %v4105_v33  ;;  %v4407_v35 = vadd.f32 %v7932_v18, %v4353_v8 }
 0x5ef   : > { %v4317_v7 = vpop.f32.mrf.mxu1  ;;  %v4248_v20 = vpop.f32.mrf.mxu0  ;;  %v4438_v41 = vmax.f32 %v4406_v46, 0.0  ;;  %v4437_v51 = vmax.f32 %v4405_v55, 0.0 }
 0x5f0   : > { %v4410_v13 = vadd.f32 %v7916_v60, %v4356_v17  ;;  %v4357_v49 = vadd.f32 %v4317_v7, %v4107_v34  ;;  %v4440_v62 = vmax.f32 %v4408_v63, 0.0  ;;  %v4409_v50 = vadd.f32 %v7919_v31, %v4355_v38  ;;  %v8463_v17 = vld [vmem:[#allocation84_spill] sm:$0xff] }
 0x5f1   : > { %v4358_v14 = vadd.f32 %v4248_v20, %v4108_v0  ;;  %v4321_v32 = vpop.f32.mrf.mxu1  ;;  %v4250_v4 = vpop.f32.mrf.mxu0  ;;  %v7995_v34 = vadd.f32 %v7899_v43, %v7942_v25  ;;  %v4439_v8 = vmax.f32 %v4407_v35, 0.0  ;;  %v4124_v55 = vadd.f32 %v8464_v37, %v8463_v17  ;;  %v8465_v43 = vld [vmem:[#allocation49_spill] sm:$0xff]  ;;  %v8466_v25 = vld [vmem:[#allocation56_spill] sm:$0xff]  ;;  %v8467_v35 = vld [vmem:[#allocation47_spill] sm:$0xff] }
 0x5f2   : > { %v4442_v44 = vmax.f32 %v4410_v13, 0.0  ;;  %v4411_v33 = vadd.f32 %v7932_v18, %v4357_v49  ;;  %v4360_v45 = vadd.f32 %v4321_v32, %v4110_v59  ;;  %v4468_v48 = vpack.c.bf16 %v4440_v62, %v4436_v54  ;;  %v8468_v13 = vld [vmem:[#allocation54_spill] sm:$0xff]  ;;  %v8473_v17 = vld [vmem:[#allocation48_spill] sm:$0xff] }
 0x5f3   : > { %v4441_v39 = vmax.f32 %v4409_v50, 0.0  ;;  %v4359_v2 = vadd.f32 %v4250_v4, %v4109_v53  ;;  %v4323_v40 = vpop.f32.mrf.mxu1  ;;  %v4252_v24 = vpop.f32.mrf.mxu0  ;;  %v4412_v42 = vadd.f32 %v7913_v61, %v4358_v14  ;;  %v8003_v63 = vadd.f32 %v8466_v25, %v8465_v43 }
 0x5f4   : > { %v4470_v15 = vpack.c.bf16 %v4442_v44, %v4438_v41  ;;  %v4443_v0 = vmax.f32 %v4411_v33, 0.0  ;;  %v4361_v36 = vadd.f32 %v4323_v40, %v4111_v19  ;;  %v4362_v28 = vadd.f32 %v4252_v24, %v4112_v30 }
 0x5f5   : > { %v4325_v1 = vpop.f32.mrf.mxu1  ;;  %v4254_v58 = vpop.f32.mrf.mxu0  ;;  %v4469_v59 = vpack.c.bf16 %v4441_v39, %v4437_v51  ;;  %v4414_v6 = vadd.f32 %v7916_v60, %v4360_v45  ;;  %v4413_v38 = vadd.f32 %v7919_v31, %v4359_v2  ;;  %v4125_v49 = vadd.f32 %v8468_v13, %v8467_v35 }
 0x5f6   : > { %v4364_v12 = vadd.f32 %v4325_v1, %v4114_v47  ;;  %v4363_v53 = vadd.f32 %v4254_v58, %v4113_v11  ;;  %v4471_v46 = vpack.c.bf16 %v4443_v0, %v4439_v8  ;;  %v4416_v19 = vadd.f32 %v7913_v61, %v4362_v28  ;;  %v8469_v58 = vld [vmem:[#allocation85_spill] sm:$0xff] }
 0x5f7   : > { %v4327_v30 = vpop.f32.mrf.mxu1  ;;  %4772 = vmatprep.mubr.bf16.mxu0 %v4469_v59  ;;  %v4258_v7 = vpop.f32.mrf.mxu0  ;;  %v4415_v20 = vadd.f32 %v7932_v18, %v4361_v36  ;;  %v4444_v54 = vmax.f32 %v4412_v42, 0.0  ;;  %v4446_v4 = vmax.f32 %v4414_v6, 0.0  ;;  %v4445_v45 = vmax.f32 %v4413_v38, 0.0 }
 0x5f8   : > { %v4418_v47 = vadd.f32 %v7916_v60, %v4364_v12  ;;  %v4417_v11 = vadd.f32 %v7919_v31, %v4363_v53  ;;  %v4365_v57 = vadd.f32 %v4327_v30, %v7962_v22  ;;  %4837 = vmatprep.mubr.bf16.mxu1 %v4471_v46  ;;  %v4448_v62 = vmax.f32 %v4416_v19, 0.0  ;;  %4773 = vmatmul.mubr.bf16.vlgmr.msra.gmra.mxu0 %v4468_v48  ;;  %v8471_v53 = vld [vmem:[#allocation50_spill] sm:$0xff]  ;;  %v8472_v46 = vld [vmem:[#allocation51_spill] sm:$0xff] }
 0x5f9   : > { %v4366_v50 = vadd.f32 %v4258_v7, %v7965_v27  ;;  %v4331_v14 = vpop.f32.mrf.mxu1  ;;  %4838 = vmatmul.mubr.bf16.vlgmr.msra.gmra.mxu1 %v4470_v15  ;;  %v4260_v32 = vpop.f32.mrf.mxu0  ;;  %v4447_v24 = vmax.f32 %v4415_v20, 0.0  ;;  %v4130_v37 = vadd.f32 %v7927_v5, %v8473_v17 }
 0x5fa   : > { %v4450_v41 = vmax.f32 %v4418_v47, 0.0  ;;  %v4449_v44 = vmax.f32 %v4417_v11, 0.0  ;;  %v4419_v33 = vadd.f32 %v7932_v18, %v4365_v57  ;;  %v4472_v51 = vpack.c.bf16 %v4448_v62, %v4444_v54 }
 0x5fb   : > { %v4368_v22 = vadd.f32 %v4331_v14, %v7968_v26  ;;  %v4367_v39 = vadd.f32 %v4260_v32, %v7971_v29  ;;  %v4333_v2 = vpop.f32.mrf.mxu1  ;;  %v4262_v40 = vpop.f32.mrf.mxu0  ;;  %v4420_v15 = vadd.f32 %v7913_v61, %v4366_v50  ;;  %v8470_v26 = vld [vmem:[#allocation61_spill] sm:$0xff]  ;;  %v4129_v50 = vadd.f32 %v7929_v56, %v7945_v23 }
 0x5fc   : > { %v4474_v8 = vpack.c.bf16 %v4450_v41, %v4446_v4  ;;  %v4451_v27 = vmax.f32 %v4419_v33, 0.0  ;;  %v4369_v48 = vadd.f32 %v4333_v2, %v7975_v3  ;;  %v4370_v42 = vadd.f32 %v4262_v40, %v7978_v10 }
 0x5fd   : > { %v4422_v0 = vadd.f32 %v7916_v60, %v4368_v22  ;;  %v4335_v36 = vpop.f32.mrf.mxu1  ;;  %v4264_v28 = vpop.f32.mrf.mxu0  ;;  %v4473_v1 = vpack.c.bf16 %v4449_v44, %v4445_v45  ;;  %v4127_v59 = vadd.f32 %v8470_v26, %v8469_v58  ;;  %v4128_v3 = vadd.f32 %v8472_v46, %v8471_v53 }
 0x5fe   : > { %v4372_v29 = vadd.f32 %v4335_v36, %v7982_v21  ;;  %v4371_v6 = vadd.f32 %v4264_v28, %v7987_v9  ;;  %v4475_v12 = vpack.c.bf16 %v4451_v27, %v4447_v24  ;;  %v4421_v43 = vadd.f32 %v7919_v31, %v4367_v39 }
 0x5ff   : > { %v4424_v10 = vadd.f32 %v7913_v61, %v4370_v42  ;;  %v4337_v25 = vpop.f32.mrf.mxu1  ;;  %4780 = vmatprep.mubr.bf16.mxu0 %v4473_v1  ;;  %v4268_v38 = vpop.f32.mrf.mxu0  ;;  %v4423_v19 = vadd.f32 %v7932_v18, %v4369_v48  ;;  %v4452_v7 = vmax.f32 %v4420_v15, 0.0  ;;  %v4454_v20 = vmax.f32 %v4422_v0, 0.0 }
 0x600   : > { %v4426_v21 = vadd.f32 %v7916_v60, %v4372_v29  ;;  %v4425_v9 = vadd.f32 %v7919_v31, %v4371_v6  ;;  %v4373_v30 = vadd.f32 %v4337_v25, %v7995_v34  ;;  %4845 = vmatprep.mubr.bf16.mxu1 %v4475_v12  ;;  %v4374_v5 = vadd.f32 %v4268_v38, %v4124_v55 }
 0x601   : > { %v4456_v47 = vmax.f32 %v4424_v10, 0.0  ;;  %v4341_v11 = vpop.f32.mrf.mxu1  ;;  %4781 = vmatmul.mubr.bf16.gmra.mxu0 %v4472_v51  ;;  %4846 = vmatmul.mubr.bf16.gmra.mxu1 %v4474_v8  ;;  %v4270_v57 = vpop.f32.mrf.mxu0  ;;  %v4453_v14 = vmax.f32 %v4421_v43, 0.0  ;;  %v4455_v44 = vmax.f32 %v4423_v19, 0.0  ;;  %v4131_v56 = vadd.f32 %v7951_v52, %v7948_v16 }
 0x602   : > { %v4458_v35 = vmax.f32 %v4426_v21, 0.0  ;;  %v4457_v13 = vmax.f32 %v4425_v9, 0.0  ;;  %v4427_v54 = vadd.f32 %v7932_v18, %v4373_v30  ;;  %v4376_v62 = vadd.f32 %v4341_v11, %v8003_v63  ;;  %v8474_v21 = vld [vmem:[#allocation88_spill] sm:$0xff] }
 0x603   : > { %v4476_v34 = vpack.c.bf16 %v4456_v47, %v4452_v7  ;;  %v4375_v32 = vadd.f32 %v4270_v57, %v4125_v49  ;;  %v4343_v4 = vpop.f32.mrf.mxu1  ;;  %v4272_v41 = vpop.f32.mrf.mxu0  ;;  %v4428_v51 = vadd.f32 %v7913_v61, %v4374_v5 }
 0x604   : > { %v4478_v55 = vpack.c.bf16 %v4458_v35, %v4454_v20  ;;  %v4459_v33 = vmax.f32 %v4427_v54, 0.0  ;;  %v4377_v45 = vadd.f32 %v4343_v4, %v4127_v59  ;;  %v4430_v22 = vadd.f32 %v7916_v60, %v4376_v62  ;;  %v8475_v35 = vld [vmem:[#allocation89_spill] sm:$0xff] }
 0x605   : > { %v4378_v39 = vadd.f32 %v4272_v41, %v4128_v3  ;;  %v4345_v2 = vpop.f32.mrf.mxu1  ;;  %v4274_v40 = vpop.f32.mrf.mxu0  ;;  %v4477_v63 = vpack.c.bf16 %v4457_v13, %v4453_v14  ;;  %v4429_v23 = vadd.f32 %v7919_v31, %v4375_v32  ;;  %v4460_v28 = vmax.f32 %v4428_v51, 0.0  ;;  %v8476_v41 = vld [vmem:[#allocation71_spill] sm:$0xff] }
 0x606   : > { %v4380_v49 = vadd.f32 %v4345_v2, %v4130_v37  ;;  %v4379_v24 = vadd.f32 %v4274_v40, %v4129_v50  ;;  %v4479_v48 = vpack.c.bf16 %v4459_v33, %v4455_v44  ;;  %v4431_v15 = vadd.f32 %v7932_v18, %v4377_v45  ;;  %v8477_v2 = vld [vmem:[#allocation72_spill] sm:$0xff] }
 0x607   : > { %v4432_v8 = vadd.f32 %v7913_v61, %v4378_v39  ;;  %v4347_v27 = vpop.f32.mrf.mxu1  ;;  %4788 = vmatprep.mubr.bf16.mxu0 %v4477_v63  ;;  %v4462_v1 = vmax.f32 %v4430_v22, 0.0  ;;  %v4461_v16 = vmax.f32 %v4429_v23, 0.0 }
 0x608   : > { %v4434_v0 = vadd.f32 %v7916_v60, %v4380_v49  ;;  %v4433_v42 = vadd.f32 %v7919_v31, %v4379_v24  ;;  %v4381_v36 = vadd.f32 %v4347_v27, %v4131_v56  ;;  %4853 = vmatprep.mubr.bf16.mxu1 %v4479_v48  ;;  %v4463_v29 = vmax.f32 %v4431_v15, 0.0 }
 0x609   : > { %v4464_v58 = vmax.f32 %v4432_v8, 0.0  ;;  %4789 = vmatmul.mubr.bf16.gmra.mxu0 %v4476_v34  ;;  %4854 = vmatmul.mubr.bf16.gmra.mxu1 %v4478_v55 }
 0x60a   : > { %v4466_v52 = vmax.f32 %v4434_v0, 0.0  ;;  %v4465_v26 = vmax.f32 %v4433_v42, 0.0  ;;  %v4435_v61 = vadd.f32 %v7932_v18, %v4381_v36  ;;  %v8478_v0 = vld [vmem:[#allocation73_spill] sm:$0xff] }
 0x60b   : > { %v4480_v59 = vpack.c.bf16 %v4464_v58, %v4460_v28 }
 0x60c   : > { %v4482_v6 = vpack.c.bf16 %v4466_v52, %v4462_v1  ;;  %v4467_v12 = vmax.f32 %v4435_v61, 0.0  ;;  %v4481_v53 = vpack.c.bf16 %v4465_v26, %v4461_v16  ;;  %v8479_v61 = vld [vmem:[#allocation80_spill] sm:$0xff] }
 0x60e   : > { %4796 = vmatprep.mubr.bf16.mxu0 %v4481_v53  ;;  %v4483_v60 = vpack.c.bf16 %v4467_v12, %v4463_v29 }
 0x610   : > { %4861 = vmatprep.mubr.bf16.mxu1 %v4483_v60 }
 0x611   : > { %4797 = vmatmul.mubr.bf16.gmra.mxu0 %v4480_v59  ;;  %4862 = vmatmul.mubr.bf16.gmra.mxu1 %v4482_v6 }
 0x6b8   : > { %v5726_v31 = vpop.f32.mrf.mxu0 }
 0x6b9   : > { %v5766_v46 = vpop.f32.mrf.mxu1 }
 0x6ba   : > { %v5727_v3 = vpop.f32.mrf.mxu0 }
 0x6bb   : > { %v5767_v17 = vpop.f32.mrf.mxu1  ;;  %v5728_v37 = vadd.f32 %v5727_v3, %v5726_v31  ;;  %v8480_v3 = vld [vmem:[#allocation74_spill] sm:$0xff] }
 0x6bc   : > { %v5768_v43 = vadd.f32 %v5767_v17, %v5766_v46  ;;  %v5729_v10 = vpop.f32.mrf.mxu0 }
 0x6bd   : > { %v5769_v25 = vpop.f32.mrf.mxu1 }
 0x6be   : > { %v4840_v18 = vadd.f32 %v5768_v43, %v5728_v37  ;;  %v5730_v38 = vpop.f32.mrf.mxu0 }
 0x6bf   : > { %v5770_v19 = vpop.f32.mrf.mxu1  ;;  %v5731_v30 = vadd.f32 %v5730_v38, %v5729_v10  ;;  %v8481_v10 = vld [vmem:[#allocation81_spill] sm:$0xff] }
 0x6c0   : > { %v8050_v9 = vadd.f32 %v4840_v18, %v8474_v21  ;;  %v5771_v7 = vadd.f32 %v5770_v19, %v5769_v25 }
 0x6c1   : > { %v5732_v20 = vpop.f32.mrf.mxu0  ;;  %v5772_v47 = vpop.f32.mrf.mxu1 }
 0x6c2   : > { %v4843_v5 = vadd.f32 %v5771_v7, %v5731_v30 }
 0x6c3   : > { %v5733_v11 = vpop.f32.mrf.mxu0  ;;  %v5773_v57 = vpop.f32.mrf.mxu1 }
 0x6c4   : > { %v8053_v13 = vadd.f32 %v4843_v5, %v8475_v35  ;;  %v5734_v54 = vadd.f32 %v5733_v11, %v5732_v20  ;;  %v5774_v62 = vadd.f32 %v5773_v57, %v5772_v47 }
 0x6c5   : > { %v5735_v50 = vpop.f32.mrf.mxu0  ;;  %v5775_v14 = vpop.f32.mrf.mxu1 }
 0x6c6   : > { %v4848_v34 = vadd.f32 %v5774_v62, %v5734_v54 }
 0x6c7   : > { %v5736_v32 = vpop.f32.mrf.mxu0  ;;  %v5776_v4 = vpop.f32.mrf.mxu1 }
 0x6c8   : > { %v8056_v44 = vadd.f32 %v4848_v34, %v8476_v41  ;;  %v5737_v55 = vadd.f32 %v5736_v32, %v5735_v50  ;;  %v5777_v33 = vadd.f32 %v5776_v4, %v5775_v14 }
 0x6c9   : > { %v5738_v45 = vpop.f32.mrf.mxu0  ;;  %v5778_v22 = vpop.f32.mrf.mxu1 }
 0x6ca   : > { %v4851_v51 = vadd.f32 %v5777_v33, %v5737_v55 }
 0x6cb   : > { %v5739_v39 = vpop.f32.mrf.mxu0  ;;  %v5779_v56 = vpop.f32.mrf.mxu1 }
 0x6cc   : > { %v4873_v40 = vadd.f32 %v4851_v51, %v8477_v2  ;;  %v5740_v63 = vadd.f32 %v5739_v39, %v5738_v45  ;;  %v5780_v23 = vadd.f32 %v5779_v56, %v5778_v22 }
 0x6cd   : > { %v5741_v49 = vpop.f32.mrf.mxu0  ;;  %v5781_v24 = vpop.f32.mrf.mxu1 }
 0x6ce   : > { %v4856_v8 = vadd.f32 %v5780_v23, %v5740_v63 }
 0x6cf   : > { %v5742_v27 = vpop.f32.mrf.mxu0  ;;  %v5782_v15 = vpop.f32.mrf.mxu1 }
 0x6d0   : > { %v5743_v48 = vadd.f32 %v5742_v27, %v5741_v49  ;;  %v4874_v42 = vadd.f32 %v4856_v8, %v8478_v0  ;;  %v5783_v36 = vadd.f32 %v5782_v15, %v5781_v24 }
 0x6d1   : > { %v5744_v28 = vpop.f32.mrf.mxu0  ;;  %v5784_v1 = vpop.f32.mrf.mxu1 }
 0x6d2   : > { %v4859_v58 = vadd.f32 %v5783_v36, %v5743_v48 }
 0x6d3   : > { %v5745_v16 = vpop.f32.mrf.mxu0  ;;  %v5785_v26 = vpop.f32.mrf.mxu1 }
 0x6d4   : > { %v5746_v52 = vadd.f32 %v5745_v16, %v5744_v28  ;;  %v4875_v59 = vadd.f32 %v4859_v58, %v8479_v61  ;;  %v5786_v29 = vadd.f32 %v5785_v26, %v5784_v1 }
 0x6d5   : > { %v5747_v6 = vpop.f32.mrf.mxu0  ;;  %v5787_v12 = vpop.f32.mrf.mxu1 }
 0x6d6   : > { %v4864_v53 = vadd.f32 %v5786_v29, %v5746_v52 }
 0x6d7   : > { %v5748_v60 = vpop.f32.mrf.mxu0  ;;  %v5788_v46 = vpop.f32.mrf.mxu1 }
 0x6d8   : > { %v5749_v31 = vadd.f32 %v5748_v60, %v5747_v6  ;;  %v4876_v17 = vadd.f32 %v4864_v53, %v8480_v3  ;;  %v5789_v37 = vadd.f32 %v5788_v46, %v5787_v12  ;;  %4880 = sbr.rel (%p5256_p5) target bundleno = 1764 (0x6e4), region = 151 }
 0x6da   : > { %v4867_v43 = vadd.f32 %v5789_v37, %v5749_v31 }
 0x6dc   : > { %v4877_v25 = vadd.f32 %v4867_v43, %v8481_v10 }
 0x6dd   : > { %v5521_v18 = vld [vmem:[%s8483_s23] ss:$0 sm:$0xff] }
 0x6de   : > { %v4888_v38 = vadd.f32 %v5521_v18, %v8050_v9  ;;  %v4889_v19 = vadd.f32 %v5521_v18, %v8053_v13  ;;  %v4890_v21 = vadd.f32 %v5521_v18, %v8056_v44  ;;  %v4891_v30 = vadd.f32 %v5521_v18, %v4873_v40 }
 0x6df   : > { %v4892_v7 = vadd.f32 %v5521_v18, %v4874_v42  ;;  %v4893_v20 = vadd.f32 %v5521_v18, %v4875_v59  ;;  %v4894_v47 = vadd.f32 %v5521_v18, %v4876_v17  ;;  %v4895_v5 = vadd.f32 %v5521_v18, %v4877_v25 }
 0x6e0   : > { %4896 = vst [vmem:[%s6934_s6] sm:$0xff] %v4888_v38  ;;  %4897 = vst [vmem:[%s6934_s6 + $0x8] sm:$0xff] %v4889_v19 }
 0x6e1   : > { %4898 = vst [vmem:[%s6934_s6 + $0x10] sm:$0xff] %v4890_v21  ;;  %4899 = vst [vmem:[%s6934_s6 + $0x18] sm:$0xff] %v4891_v30 }
 0x6e2   : > { %4900 = vst [vmem:[%s6934_s6 + $0x20] sm:$0xff] %v4892_v7  ;;  %4901 = vst [vmem:[%s6934_s6 + $0x28] sm:$0xff] %v4893_v20 }
 0x6e3   : > { %4902 = vst [vmem:[%s6934_s6 + $0x30] sm:$0xff] %v4894_v47  ;;  %4903 = vst [vmem:[%s6934_s6 + $0x38] sm:$0xff] %v4895_v5 }
 0x6e4 PF: > { %s8484_s9 = sld [smem:[#allocation22_spill]] }
 0x6ea   : > { %p5522_p8 = scmp.eq.s32.totalorder %s8484_s9, 0 }
 0x6ec   : > { %4907 = sbr.rel (%p5522_p8) target bundleno = 1784 (0x6f8), region = 155 }
 0x6f1   : > { %v4908_v11 = vld [vmem:[%s6934_s6] sm:$0xff]  ;;  %v4909_v57 = vld [vmem:[%s6934_s6 + $0x8] sm:$0xff]  ;;  %v4910_v35 = vld [vmem:[%s6934_s6 + $0x10] sm:$0xff] }
 0x6f2   : > { %v4916_v54 = vadd.f32 %v4908_v11, %v8050_v9  ;;  %v4917_v62 = vadd.f32 %v4909_v57, %v8053_v13  ;;  %v4918_v50 = vadd.f32 %v4910_v35, %v8056_v44  ;;  %v4911_v14 = vld [vmem:[%s6934_s6 + $0x18] sm:$0xff]  ;;  %v4912_v34 = vld [vmem:[%s6934_s6 + $0x20] sm:$0xff]  ;;  %v4913_v32 = vld [vmem:[%s6934_s6 + $0x28] sm:$0xff] }
 0x6f3   : > { %v4919_v4 = vadd.f32 %v4911_v14, %v4873_v40  ;;  %v4920_v41 = vadd.f32 %v4912_v34, %v4874_v42  ;;  %v4921_v55 = vadd.f32 %v4913_v32, %v4875_v59  ;;  %v4914_v33 = vld [vmem:[%s6934_s6 + $0x30] sm:$0xff]  ;;  %v4915_v45 = vld [vmem:[%s6934_s6 + $0x38] sm:$0xff] }
 0x6f4   : > { %4924 = vst [vmem:[%s6934_s6] sm:$0xff] %v4916_v54  ;;  %4925 = vst [vmem:[%s6934_s6 + $0x8] sm:$0xff] %v4917_v62  ;;  %v4922_v9 = vadd.f32 %v4914_v33, %v4876_v17  ;;  %v4923_v51 = vadd.f32 %v4915_v45, %v4877_v25 }
 0x6f5   : > { %4926 = vst [vmem:[%s6934_s6 + $0x10] sm:$0xff] %v4918_v50  ;;  %4927 = vst [vmem:[%s6934_s6 + $0x18] sm:$0xff] %v4919_v4 }
 0x6f6   : > { %4928 = vst [vmem:[%s6934_s6 + $0x20] sm:$0xff] %v4920_v41  ;;  %4929 = vst [vmem:[%s6934_s6 + $0x28] sm:$0xff] %v4921_v55 }
 0x6f7   : > { %4930 = vst [vmem:[%s6934_s6 + $0x30] sm:$0xff] %v4922_v9  ;;  %4931 = vst [vmem:[%s6934_s6 + $0x38] sm:$0xff] %v4923_v51 }
 0x6f8 PF: > { %s8485_s3 = sld [smem:[#allocation23_spill]]  ;;  %s4946_s21 = sshll.u32 %s6934_s6, 4  ;;  %s8106_s21 = int_to_ptr.vmem [resolvable:$true] %s4946_s21 }
 0x6f9   : > { %s8486_s2 = sld [smem:[#allocation31_spill]]  ;;  %s4933_s25 = scalar_lea.sflag [#allocation5], %s6880_s7 }
 0x6fa   : > { %s8487_s16 = sld [smem:[#allocation107_spill]]  ;;  %s6389_s13 = scalar_lea.vmem %s8106_s21, 1024 }
 0x6fb   : > { %p6390_p1 = scmp.ne.s32.totalorder %s8106_s21, %s6389_s13  ;;  %s6536_s14 = smov [#allocation15]  }
 0x6fc   : > { %s6393_s8 = sshll.u32 %s6536_s14, 4  ;;  %s6394_s8 = int_to_ptr.vmem [resolvable:$false] %s6393_s8 }
 0x6fd   : > { %s6395_s11 = scalar_lea.vmem %s6394_s8, 2048  ;;  %p6396_p13 = scmp.lt.s32.totalorder %s8106_s21, %s6394_s8 }
 0x6fe   : > { %s5537_s5 = sshll.u32 %s8485_s3, 10  ;;  %p6397_p9 = scmp.lt.s32.totalorder %s6395_s11, %s6389_s13 }
 0x6ff   : > { %p8488_p4 = scmp.ne.s32.totalorder %s8486_s2, 0 }
 0x700   : > { %s8103_s10 = scalar_lea.hbm %s8487_s16, %s5537_s5  ;;  %p6398_p7 = por %p6397_p9, %p6396_p13 }
 0x701   : > { %p6391_p3 = pnand %p6390_p1, %p8488_p4 }
 0x703   : > { %p6392_p10 = pneg %p6391_p3 }
 0x705   : > { %p6399_p11 = pnand %p6398_p7, %p6392_p10 }
 0x707   : > { %6402 = shalt.err (!%p6399_p11)
}
 0x708   : > { %s6403_s6 = scalar_lea.hbm %s8103_s10, 1024  ;;  %s6407_s30 = scalar_lea.hbm %s8487_s16, 2048 }
 0x709   : > { %p6404_p0 = scmp.ne.s32.totalorder %s8103_s10, %s6403_s6  ;;  %p6408_p2 = scmp.lt.s32.totalorder %s8103_s10, %s8487_s16 }
 0x70a   : > { %p6409_p5 = scmp.lt.s32.totalorder %s6407_s30, %s6403_s6 }
 0x70b   : > { %p6405_p12 = pnand %p6404_p0, %p8488_p4 }
 0x70c   : > { %p6410_p8 = por %p6409_p5, %p6408_p2 }
 0x70d   : > { %p6406_p6 = pneg %p6405_p12 }
 0x70f   : > { %p6411_p1 = pnand %p6410_p8, %p6406_p6 }
 0x711   : > { %6414 = shalt.err (!%p6411_p1)
}
 0x712   : > { %s6537_s27 = smov 128   ;;  %s6538_s17 = smov 8  }
 0x713   : > { %5836 = dma.vmem_to_hbm [thread:$0]  (%p8488_p4), %s8106_s21, 1024, %s8103_s10, %s4933_s25, %s6537_s27, %s6537_s27, %s6538_s17  }
 0x714 PF: > { %s8489_s23 = sld [smem:[#allocation21_spill]]  ;;  %p5848_p3 = scmp.ge.s32.totalorder %s6517_s1, 2 }
 0x715   : > { %s8490_s9 = sld [smem:[#allocation32_spill]] }
 0x71a   : > { %s4961_s3 = sand.u32 1, %s8489_s23  }
 0x71b   : > { %p8491_p10 = scmp.ne.s32.totalorder %s8490_s9, 0  ;;  %s4962_s5 = scalar_lea.sflag [#allocation5], %s4961_s3 }
 0x71d   : > { %p5843_p13 = pnand %p5848_p3, %p8491_p10 }
 0x71f   : > { %p5844_p9 = pneg %p5843_p13 }
 0x721   : > { %6472 = dma.done.wait (%p5844_p9), %s4962_s5, 1024  }
 0x722   : > { %6474 = vsyncadd (%p5844_p9), %s4962_s5, 4294966272  ;;  %s34_s1 = sadd.s32 1, %s6517_s1   ;;  %s8492_s24 = sld [smem:[#allocation20_spill]] }
 0x723   : > { %p31_p7 = scmp.ge.s32.totalorder %s34_s1, 6   ;;  %s8493_s2 = sld [smem:[#allocation28_spill]] }
 0x724   : > { %s8494_s7 = sld [smem:[#allocation29_spill]]  ;;  %s8498_s25 = smov %s6485_s26 }
 0x725   : > { %s8495_s30 = sld [smem:[#allocation24_spill]]  ;;  %s8500_s27 = smov %s6493_s28 }
 0x726   : > { %s8496_s10 = sld [smem:[#allocation25_spill]]  ;;  %s8501_s28 = smov %s6497_s29 }
 0x727   : > { %s8497_s19 = sld [smem:[#allocation26_spill]]  ;;  %s8503_s0 = smov %s6509_s18 }
 0x728   :  { %33 = sbr.rel (!%p31_p7) target bundleno = 29 (0x1d), region = 258 }
 0x729   : > { %s8499_s26 = smov %s8493_s2 }
 0x72a   : > { %s8502_s29 = smov %s8494_s7 }
 0x72c   : > { %s8504_s18 = smov %s8496_s10 }
 0x72d   :  { %4967 = vsyncpa [#allocation4], 1 }
 0x72e   :  { %4969 = vsyncpa [#allocation4 + $0x1], 1 }
 0x72f   :  { %4970 = vsyncpa [#allocation7], 1 }
 0x730   :  { %4971 = vsyncpa [#allocation5], 1 }
 0x731   :  { %4973 = vsyncpa [#allocation5 + $0x1], 1 }

</bundles_post_ra>
